<compile_context>
chip_gen: v7x
topology: tpu7x:2x2x1
jax: 0.10.0
libtpu: 0.0.40
codegen_flags: <defaults>
</compile_context>

<pallas_src>
import numpy as np

import jax
import jax.numpy as jnp
from jax import lax
from jax.experimental import pallas as pl
from jax.experimental.pallas import tpu as pltpu


# ----------------------------------------------------------------------------
# Static geometry: 8x8 cell grid (cell = 4x4 input pixels), padded with a
# 1-cell zero ring -> 10x10 = 100 rows per image, plus 11-row margins so that
# every neighbour-cell access is a static, in-bounds sublane slice.
# ----------------------------------------------------------------------------
_GRID = 10                    # padded cell grid is 10 x 10
_ROWS = _GRID * _GRID         # 100 rows per image
_MARGIN = _GRID + 1           # 11 == largest |row shift| (1*10 + 1)
_PHASES = ((0, 0), (0, 1), (1, 0), (1, 1))   # 2x2 pooling phases


def _tap_offsets(d):
    # pooling phase d in {0,1}: which neighbouring cells that phase can touch
    return (-1, 0) if d == 0 else (0, 1)


def _block_taps(dy, dx):
    return [(qy, qx) for qy in _tap_offsets(dy) for qx in _tap_offsets(dx)]


# SHIFTS[block][tap]: static row shift on the flattened 10x10 cell grid.
# (The tap structure is identical for both conv layers.)
SHIFTS = tuple(tuple(qy * _GRID + qx for (qy, qx) in _block_taps(dy, dx))
               for (dy, dx) in _PHASES)


# ----------------------------------------------------------------------------
# One-time weight pre-packing (outside the jitted forward).
# ----------------------------------------------------------------------------
def _pack_conv1(w1, b1):
    """conv1 (16,3,3,3) OIHW -> 4 pooling-phase blocks x 4 taps of (48, 64)."""
    w1 = np.asarray(w1, np.float32)
    t = np.zeros((4, 4, 48, 64), np.float32)
    for bidx, (dy, dx) in enumerate(_PHASES):
        tap_pos = {q: k for k, q in enumerate(_block_taps(dy, dx))}
        for py in range(2):
            for px in range(2):
                for co in range(16):
                    j = py * 32 + px * 16 + co
                    ry, rx = 2 * py + dy, 2 * px + dx      # conv1 output pos in cell
                    for ki in range(3):
                        for kj in range(3):
                            oy, ox = ry + ki - 1, rx + kj - 1
                            qy, sy = oy // 4, oy % 4
                            qx, sx = ox // 4, ox % 4
                            k = tap_pos[(qy, qx)]
                            for ci in range(3):
                                i = sy * 12 + sx * 3 + ci
                                t[bidx, k, i, j] = w1[co, ci, ki, kj]
    brep = np.zeros((1, 64), np.float32)
    b1 = np.asarray(b1, np.float32)
    for py in range(2):
        for px in range(2):
            off = py * 32 + px * 16
            brep[0, off:off + 16] = b1
    return jnp.asarray(t.reshape(16, 48, 64)), jnp.asarray(brep)


def _pack_conv2(w2, b2):
    """conv2 (32,16,3,3) OIHW -> 4 pooling-phase blocks x 4 taps of (64, 32)."""
    w2 = np.asarray(w2, np.float32)
    t = np.zeros((4, 4, 64, 32), np.float32)
    for bidx, (py, px) in enumerate(_PHASES):
        tap_pos = {q: k for k, q in enumerate(_block_taps(py, px))}
        for co in range(32):
            for ki in range(3):
                for kj in range(3):
                    oy, ox = py + ki - 1, px + kj - 1
                    qy, sy = oy // 2, oy % 2
                    qx, sx = ox // 2, ox % 2
                    k = tap_pos[(qy, qx)]
                    for ci in range(16):
                        i = sy * 32 + sx * 16 + ci
                        t[bidx, k, i, co] = w2[co, ci, ki, kj]
    brep = np.asarray(b2, np.float32).reshape(1, 32)
    return jnp.asarray(t.reshape(16, 64, 32)), jnp.asarray(brep)


def _pack_fc(wfc, bfc):
    """fc (10, 2048) over PyTorch NCHW flatten -> (3200, 10) over our padded
    (cell-row, channel) flatten; padding rows get zero weights."""
    wfc = np.asarray(wfc, np.float32)
    w = np.zeros((_ROWS, 32, 10), np.float32)
    for p in range(_ROWS):
        gy, gx = p // _GRID - 1, p % _GRID - 1
        if 0 <= gy < 8 and 0 <= gx < 8:
            for c in range(32):
                w[p, c, :] = wfc[:, c * 64 + gy * 8 + gx]
    return (jnp.asarray(w.reshape(_ROWS * 32, 10)),
            jnp.asarray(np.asarray(bfc, np.float32).reshape(1, 10)))


def _valid_row_mask():
    m = np.zeros((_ROWS, 1), np.float32)
    for p in range(_ROWS):
        gy, gx = p // _GRID - 1, p % _GRID - 1
        if 0 <= gy < 8 and 0 <= gx < 8:
            m[p, 0] = 1.0
    return jnp.asarray(m)


def pack_params(params):
    w1, b1, w2, b2, wfc, bfc = params
    t1, b1r = _pack_conv1(w1, b1)
    t2, b2r = _pack_conv2(w2, b2)
    wfcp, bfcr = _pack_fc(wfc, bfc)
    return dict(t1=t1, b1=b1r, t2=t2, b2=b2r, wfc=wfcp, bfc=bfcr,
                mask=_valid_row_mask())


# ----------------------------------------------------------------------------
# Pallas kernels
# ----------------------------------------------------------------------------
def _fused_cnn_kernel(a1_ref, t1_ref, b1_ref, mask_ref, t2_ref, b2_ref,
                      o_ref, a2_ref):
    """conv1+ReLU+pool1+conv2+ReLU+pool2 for one image, entirely in VMEM."""
    mask = mask_ref[...]                                      # (100, 1)

    def conv_relu_pool(in_ref, t_ref, b_ref):
        out = None
        for bidx in range(4):                                 # pooling phase
            acc = None
            for k in range(4):                                # neighbour taps
                start = _MARGIN + SHIFTS[bidx][k]
                lhs = in_ref[start:start + _ROWS, :]          # (100, Cin_rep)
                contrib = jnp.dot(lhs, t_ref[bidx * 4 + k],
                                  preferred_element_type=jnp.float32)
                acc = contrib if acc is None else acc + contrib
            z = jnp.maximum(acc + b_ref[...], 0.0)            # bias + ReLU
            out = z if out is None else jnp.maximum(out, z)   # 2x2 max-pool
        return out                                            # (100, Cout)

    # ---- layer 1: conv1 + ReLU + pool1 ------------------------------------
    y1 = conv_relu_pool(a1_ref, t1_ref, b1_ref) * mask        # zero pad ring
    # stage pooled features into a margin-padded VMEM buffer for layer 2
    a2_ref[...] = jnp.zeros(a2_ref.shape, jnp.float32)
    a2_ref[_MARGIN:_MARGIN + _ROWS, :] = y1
    # ---- layer 2: conv2 + ReLU + pool2 ------------------------------------
    o_ref[...] = conv_relu_pool(a2_ref, t2_ref, b2_ref)       # (100, 32)


def _fc_kernel(x_ref, w_ref, b_ref, o_ref):
    o_ref[...] = (jnp.dot(x_ref[...], w_ref[...],
                          preferred_element_type=jnp.float32) + b_ref[...])


# ----------------------------------------------------------------------------
# Forward pass
# ----------------------------------------------------------------------------
def _prep_input(x_nchw):
    """NCHW (B,3,32,32) -> space-to-depth cell rows (B, 122, 48), zero padded."""
    B = x_nchw.shape[0]
    xs = x_nchw.reshape(B, 3, 8, 4, 8, 4).transpose(0, 2, 4, 3, 5, 1)
    xs = xs.reshape(B, 8, 8, 48)                       # (b, gy, gx, sy*12+sx*3+c)
    xp = jnp.pad(xs, ((0, 0), (1, 1), (1, 1), (0, 0))).reshape(B, _ROWS, 48)
    return jnp.pad(xp, ((0, 0), (_MARGIN, _MARGIN), (0, 0)))


def simple_cnn_forward(x_nchw, packed):
    B = x_nchw.shape[0]
    a1 = _prep_input(x_nchw)                           # (B, 122, 48), ~43 KB

    pooled = pl.pallas_call(
        _fused_cnn_kernel,
        out_shape=jax.ShapeDtypeStruct((B, _ROWS, 32), jnp.float32),
        grid=(B,),
        in_specs=[
            pl.BlockSpec((None, _ROWS + 2 * _MARGIN, 48), lambda b: (b, 0, 0)),
            pl.BlockSpec((16, 48, 64), lambda b: (0, 0, 0)),
            pl.BlockSpec((1, 64), lambda b: (0, 0)),
            pl.BlockSpec((_ROWS, 1), lambda b: (0, 0)),
            pl.BlockSpec((16, 64, 32), lambda b: (0, 0, 0)),
            pl.BlockSpec((1, 32), lambda b: (0, 0)),
        ],
        out_specs=pl.BlockSpec((None, _ROWS, 32), lambda b: (b, 0, 0)),
        scratch_shapes=[pltpu.VMEM((_ROWS + 2 * _MARGIN, 64), jnp.float32)],
        compiler_params=pltpu.CompilerParams(dimension_semantics=("parallel",)),
    )(a1, packed["t1"], packed["b1"], packed["mask"], packed["t2"], packed["b2"])

    # Free (contiguous) reshape; padding rows hit zero FC weight rows.
    flat = pooled.reshape(B, _ROWS * 32)
    logits = pl.pallas_call(
        _fc_kernel,
        out_shape=jax.ShapeDtypeStruct((B, 10), jnp.float32),
        grid=(1,),
        in_specs=[
            pl.BlockSpec((B, _ROWS * 32), lambda i: (0, 0)),
            pl.BlockSpec((_ROWS * 32, 10), lambda i: (0, 0)),
            pl.BlockSpec((1, 10), lambda i: (0, 0)),
        ],
        out_specs=pl.BlockSpec((B, 10), lambda i: (0, 0)),
    )(flat, packed["wfc"], packed["bfc"])
    return logits


# ----------------------------------------------------------------------------
# Pure-JAX reference (semantics of the PyTorch module) and parameter init
# ----------------------------------------------------------------------------
def simple_cnn_reference(x_nchw, params):
    w1, b1, w2, b2, wfc, bfc = params

    def conv(x, w, b):
        y = lax.conv_general_dilated(
            x, w, window_strides=(1, 1), padding="SAME",
            dimension_numbers=("NCHW", "OIHW", "NCHW"))
        return jnp.maximum(y + b[None, :, None, None], 0.0)

    def pool(x):
        B, C, H, W = x.shape
        return x.reshape(B, C, H // 2, 2, W // 2, 2).max(axis=(3, 5))

    y = pool(conv(x_nchw, w1, b1))
    y = pool(conv(y, w2, b2))
    flat = y.reshape(y.shape[0], -1)
    return flat @ wfc.T + bfc


def init_params(key):
    """Deterministic parameter init matching the PyTorch module's shapes."""
    ks = jax.random.split(key, 6)

    def u(k, shape, fan_in):
        bound = 1.0 / jnp.sqrt(fan_in)
        return jax.random.uniform(k, shape, jnp.float32, -bound, bound)

    w1 = u(ks[0], (16, 3, 3, 3), 3 * 3 * 3)
    b1 = u(ks[1], (16,), 3 * 3 * 3)
    w2 = u(ks[2], (32, 16, 3, 3), 16 * 3 * 3)
    b2 = u(ks[3], (32,), 16 * 3 * 3)
    wfc = u(ks[4], (10, 8 * 8 * 32), 8 * 8 * 32)
    bfc = u(ks[5], (10,), 8 * 8 * 32)
    return (w1, b1, w2, b2, wfc, bfc)


if __name__ == "__main__":
    # Input shape implied by the module: 3 channels, 32x32 spatial (fc expects 8*8*32).
    B = 2
    x = jax.random.normal(jax.random.PRNGKey(0), (B, 3, 32, 32), jnp.float32)
    params = init_params(jax.random.PRNGKey(42))
    packed = pack_params(params)          # one-time pre-pack, outside jit

    fwd = jax.jit(simple_cnn_forward)
    out = jax.block_until_ready(fwd(x, packed))
    assert out.shape == (B, 10), out.shape

    ref = simple_cnn_reference(x, params)
    err = float(jnp.max(jnp.abs(out - ref)))
    assert jnp.allclose(out, ref, atol=2e-4, rtol=2e-4), err

    print("KERNEL_OK")
</pallas_src>

<mosaic_0001>
module attributes {stable_mosaic.version = 11 : i64} {
  func.func @_fc_kernel(%arg0: i32, %arg1: memref<2x3200xf32, #tpu.memory_space<vmem>>, %arg2: memref<3200x10xf32, #tpu.memory_space<vmem>>, %arg3: memref<1x10xf32, #tpu.memory_space<vmem>>, %arg4: memref<2x10xf32, #tpu.memory_space<vmem>>) attributes {dimension_semantics = [#tpu.dimension_semantics<arbitrary>], iteration_bounds = array<i64: 1>, scalar_prefetch = 0 : i64, scratch_operands = 0 : i64, tpu.core_type = #tpu.core_type<tc>, window_params = [{pipeline_mode = #tpu.pipeline_mode<synchronous>, transform_indices = @transform_0, window_bounds = array<i64: 2, 3200>}, {pipeline_mode = #tpu.pipeline_mode<synchronous>, transform_indices = @transform_1, window_bounds = array<i64: 3200, 10>}, {pipeline_mode = #tpu.pipeline_mode<synchronous>, transform_indices = @transform_2, window_bounds = array<i64: 1, 10>}, {pipeline_mode = #tpu.pipeline_mode<synchronous>, transform_indices = @transform_3, window_bounds = array<i64: 2, 10>}]} {
    %c0 = arith.constant 0 : index
    %c0_0 = arith.constant 0 : index
    %0 = vector.load %arg1[%c0, %c0_0] : memref<2x3200xf32, #tpu.memory_space<vmem>>, vector<2x3200xf32>
    %c0_1 = arith.constant 0 : index
    %c0_2 = arith.constant 0 : index
    %1 = vector.load %arg2[%c0_1, %c0_2] : memref<3200x10xf32, #tpu.memory_space<vmem>>, vector<3200x10xf32>
    %cst = arith.constant dense<0.000000e+00> : vector<2x10xf32>
    %2 = tpu.matmul %0, %1, %cst {dimension_numbers = #tpu.dot_dimension_numbers<[1], [0], [0], [1], [0, 0, 1, 1], [], []>} : vector<2x3200xf32>, vector<3200x10xf32>, vector<2x10xf32> -> vector<2x10xf32>
    %c0_3 = arith.constant 0 : index
    %c0_4 = arith.constant 0 : index
    %3 = vector.load %arg3[%c0_3, %c0_4] : memref<1x10xf32, #tpu.memory_space<vmem>>, vector<1x10xf32>
    %4 = vector.broadcast %3 : vector<1x10xf32> to vector<2x10xf32>
    %5 = arith.addf %2, %4 : vector<2x10xf32>
    %c0_5 = arith.constant 0 : index
    %c0_6 = arith.constant 0 : index
    %6 = vector.load %arg4[%c0_5, %c0_6] : memref<2x10xf32, #tpu.memory_space<vmem>>, vector<2x10xf32>
    tpu.vector_store %arg4[%c0_5, %c0_6], %5 {strides = array<i32>} : memref<2x10xf32, #tpu.memory_space<vmem>>, vector<2x10xf32>,
    return
  }
  func.func @transform_0(%arg0: i32) -> (i32, i32) {
    %c0_i32 = arith.constant 0 : i32
    %c0_i32_0 = arith.constant 0 : i32
    %c0_i32_1 = arith.constant 0 : i32
    return %c0_i32, %c0_i32_0 : i32, i32
  }
  func.func @transform_1(%arg0: i32) -> (i32, i32) {
    %c0_i32 = arith.constant 0 : i32
    %c0_i32_0 = arith.constant 0 : i32
    %c0_i32_1 = arith.constant 0 : i32
    return %c0_i32, %c0_i32_0 : i32, i32
  }
  func.func @transform_2(%arg0: i32) -> (i32, i32) {
    %c0_i32 = arith.constant 0 : i32
    %c0_i32_0 = arith.constant 0 : i32
    %c0_i32_1 = arith.constant 0 : i32
    return %c0_i32, %c0_i32_0 : i32, i32
  }
  func.func @transform_3(%arg0: i32) -> (i32, i32) {
    %c0_i32 = arith.constant 0 : i32
    %c0_i32_0 = arith.constant 0 : i32
    %c0_i32_1 = arith.constant 0 : i32
    return %c0_i32, %c0_i32_0 : i32, i32
  }
}

module attributes {stable_mosaic.version = 11 : i64} {
  func.func @_fused_cnn_kernel(%arg0: i32, %arg1: memref<1x122x48xf32, #tpu.memory_space<vmem>>, %arg2: memref<16x48x64xf32, #tpu.memory_space<vmem>>, %arg3: memref<1x64xf32, #tpu.memory_space<vmem>>, %arg4: memref<100x1xf32, #tpu.memory_space<vmem>>, %arg5: memref<16x64x32xf32, #tpu.memory_space<vmem>>, %arg6: memref<1x32xf32, #tpu.memory_space<vmem>>, %arg7: memref<1x100x32xf32, #tpu.memory_space<vmem>>, %arg8: memref<122x64xf32, #tpu.memory_space<vmem>>) attributes {dimension_semantics = [#tpu.dimension_semantics<parallel>], iteration_bounds = array<i64: 2>, scalar_prefetch = 0 : i64, scratch_operands = 1 : i64, tpu.core_type = #tpu.core_type<tc>, window_params = [{transform_indices = @transform_0, window_bounds = array<i64: 1, 122, 48>}, {pipeline_mode = #tpu.pipeline_mode<synchronous>, transform_indices = @transform_1, window_bounds = array<i64: 16, 48, 64>}, {pipeline_mode = #tpu.pipeline_mode<synchronous>, transform_indices = @transform_2, window_bounds = array<i64: 1, 64>}, {pipeline_mode = #tpu.pipeline_mode<synchronous>, transform_indices = @transform_3, window_bounds = array<i64: 100, 1>}, {pipeline_mode = #tpu.pipeline_mode<synchronous>, transform_indices = @transform_4, window_bounds = array<i64: 16, 64, 32>}, {pipeline_mode = #tpu.pipeline_mode<synchronous>, transform_indices = @transform_5, window_bounds = array<i64: 1, 32>}, {transform_indices = @transform_6, window_bounds = array<i64: 1, 100, 32>}]} {
    %c0 = arith.constant 0 : index
    %c0_0 = arith.constant 0 : index
    %0 = vector.load %arg4[%c0, %c0_0] : memref<100x1xf32, #tpu.memory_space<vmem>>, vector<100x1xf32>
    %c0_1 = arith.constant 0 : index
    %c0_2 = arith.constant 0 : index
    %c0_3 = arith.constant 0 : index
    %1 = vector.load %arg1[%c0_1, %c0_2, %c0_3] : memref<1x122x48xf32, #tpu.memory_space<vmem>>, vector<1x100x48xf32>
    %2 = vector.shape_cast %1 : vector<1x100x48xf32> to vector<100x48xf32>
    %c0_4 = arith.constant 0 : index
    %c0_5 = arith.constant 0 : index
    %c0_6 = arith.constant 0 : index
    %3 = vector.load %arg2[%c0_4, %c0_5, %c0_6] : memref<16x48x64xf32, #tpu.memory_space<vmem>>, vector<1x48x64xf32>
    %4 = vector.shape_cast %3 : vector<1x48x64xf32> to vector<48x64xf32>
    %cst = arith.constant dense<0.000000e+00> : vector<100x64xf32>
    %5 = tpu.matmul %2, %4, %cst {dimension_numbers = #tpu.dot_dimension_numbers<[1], [0], [0], [1], [0, 0, 1, 1], [], []>} : vector<100x48xf32>, vector<48x64xf32>, vector<100x64xf32> -> vector<100x64xf32>
    %c0_7 = arith.constant 0 : index
    %c1 = arith.constant 1 : index
    %c0_8 = arith.constant 0 : index
    %6 = vector.load %arg1[%c0_7, %c1, %c0_8] : memref<1x122x48xf32, #tpu.memory_space<vmem>>, vector<1x100x48xf32>
    %7 = vector.shape_cast %6 : vector<1x100x48xf32> to vector<100x48xf32>
    %c1_9 = arith.constant 1 : index
    %c0_10 = arith.constant 0 : index
    %c0_11 = arith.constant 0 : index
    %8 = vector.load %arg2[%c1_9, %c0_10, %c0_11] : memref<16x48x64xf32, #tpu.memory_space<vmem>>, vector<1x48x64xf32>
    %9 = vector.shape_cast %8 : vector<1x48x64xf32> to vector<48x64xf32>
    %cst_12 = arith.constant dense<0.000000e+00> : vector<100x64xf32>
    %10 = tpu.matmul %7, %9, %cst_12 {dimension_numbers = #tpu.dot_dimension_numbers<[1], [0], [0], [1], [0, 0, 1, 1], [], []>} : vector<100x48xf32>, vector<48x64xf32>, vector<100x64xf32> -> vector<100x64xf32>
    %11 = arith.addf %5, %10 : vector<100x64xf32>
    %c0_13 = arith.constant 0 : index
    %c10 = arith.constant 10 : index
    %c0_14 = arith.constant 0 : index
    %12 = vector.load %arg1[%c0_13, %c10, %c0_14] : memref<1x122x48xf32, #tpu.memory_space<vmem>>, vector<1x100x48xf32>
    %13 = vector.shape_cast %12 : vector<1x100x48xf32> to vector<100x48xf32>
    %c2 = arith.constant 2 : index
    %c0_15 = arith.constant 0 : index
    %c0_16 = arith.constant 0 : index
    %14 = vector.load %arg2[%c2, %c0_15, %c0_16] : memref<16x48x64xf32, #tpu.memory_space<vmem>>, vector<1x48x64xf32>
    %15 = vector.shape_cast %14 : vector<1x48x64xf32> to vector<48x64xf32>
    %cst_17 = arith.constant dense<0.000000e+00> : vector<100x64xf32>
    %16 = tpu.matmul %13, %15, %cst_17 {dimension_numbers = #tpu.dot_dimension_numbers<[1], [0], [0], [1], [0, 0, 1, 1], [], []>} : vector<100x48xf32>, vector<48x64xf32>, vector<100x64xf32> -> vector<100x64xf32>
    %17 = arith.addf %11, %16 : vector<100x64xf32>
    %c0_18 = arith.constant 0 : index
    %c11 = arith.constant 11 : index
    %c0_19 = arith.constant 0 : index
    %18 = vector.load %arg1[%c0_18, %c11, %c0_19] : memref<1x122x48xf32, #tpu.memory_space<vmem>>, vector<1x100x48xf32>
    %19 = vector.shape_cast %18 : vector<1x100x48xf32> to vector<100x48xf32>
    %c3 = arith.constant 3 : index
    %c0_20 = arith.constant 0 : index
    %c0_21 = arith.constant 0 : index
    %20 = vector.load %arg2[%c3, %c0_20, %c0_21] : memref<16x48x64xf32, #tpu.memory_space<vmem>>, vector<1x48x64xf32>
    %21 = vector.shape_cast %20 : vector<1x48x64xf32> to vector<48x64xf32>
    %cst_22 = arith.constant dense<0.000000e+00> : vector<100x64xf32>
    %22 = tpu.matmul %19, %21, %cst_22 {dimension_numbers = #tpu.dot_dimension_numbers<[1], [0], [0], [1], [0, 0, 1, 1], [], []>} : vector<100x48xf32>, vector<48x64xf32>, vector<100x64xf32> -> vector<100x64xf32>
    %23 = arith.addf %17, %22 : vector<100x64xf32>
    %c0_23 = arith.constant 0 : index
    %c0_24 = arith.constant 0 : index
    %24 = vector.load %arg3[%c0_23, %c0_24] : memref<1x64xf32, #tpu.memory_space<vmem>>, vector<1x64xf32>
    %25 = vector.broadcast %24 : vector<1x64xf32> to vector<100x64xf32>
    %26 = arith.addf %23, %25 : vector<100x64xf32>
    %cst_25 = arith.constant 0.000000e+00 : f32
    %27 = vector.broadcast %cst_25 : f32 to vector<100x64xf32>
    %28 = arith.maximumf %26, %27 : vector<100x64xf32>
    %c0_26 = arith.constant 0 : index
    %c1_27 = arith.constant 1 : index
    %c0_28 = arith.constant 0 : index
    %29 = vector.load %arg1[%c0_26, %c1_27, %c0_28] : memref<1x122x48xf32, #tpu.memory_space<vmem>>, vector<1x100x48xf32>
    %30 = vector.shape_cast %29 : vector<1x100x48xf32> to vector<100x48xf32>
    %c4 = arith.constant 4 : index
    %c0_29 = arith.constant 0 : index
    %c0_30 = arith.constant 0 : index
    %31 = vector.load %arg2[%c4, %c0_29, %c0_30] : memref<16x48x64xf32, #tpu.memory_space<vmem>>, vector<1x48x64xf32>
    %32 = vector.shape_cast %31 : vector<1x48x64xf32> to vector<48x64xf32>
    %cst_31 = arith.constant dense<0.000000e+00> : vector<100x64xf32>
    %33 = tpu.matmul %30, %32, %cst_31 {dimension_numbers = #tpu.dot_dimension_numbers<[1], [0], [0], [1], [0, 0, 1, 1], [], []>} : vector<100x48xf32>, vector<48x64xf32>, vector<100x64xf32> -> vector<100x64xf32>
    %c0_32 = arith.constant 0 : index
    %c2_33 = arith.constant 2 : index
    %c0_34 = arith.constant 0 : index
    %34 = vector.load %arg1[%c0_32, %c2_33, %c0_34] : memref<1x122x48xf32, #tpu.memory_space<vmem>>, vector<1x100x48xf32>
    %35 = vector.shape_cast %34 : vector<1x100x48xf32> to vector<100x48xf32>
    %c5 = arith.constant 5 : index
    %c0_35 = arith.constant 0 : index
    %c0_36 = arith.constant 0 : index
    %36 = vector.load %arg2[%c5, %c0_35, %c0_36] : memref<16x48x64xf32, #tpu.memory_space<vmem>>, vector<1x48x64xf32>
    %37 = vector.shape_cast %36 : vector<1x48x64xf32> to vector<48x64xf32>
    %cst_37 = arith.constant dense<0.000000e+00> : vector<100x64xf32>
    %38 = tpu.matmul %35, %37, %cst_37 {dimension_numbers = #tpu.dot_dimension_numbers<[1], [0], [0], [1], [0, 0, 1, 1], [], []>} : vector<100x48xf32>, vector<48x64xf32>, vector<100x64xf32> -> vector<100x64xf32>
    %39 = arith.addf %33, %38 : vector<100x64xf32>
    %c0_38 = arith.constant 0 : index
    %c11_39 = arith.constant 11 : index
    %c0_40 = arith.constant 0 : index
    %40 = vector.load %arg1[%c0_38, %c11_39, %c0_40] : memref<1x122x48xf32, #tpu.memory_space<vmem>>, vector<1x100x48xf32>
    %41 = vector.shape_cast %40 : vector<1x100x48xf32> to vector<100x48xf32>
    %c6 = arith.constant 6 : index
    %c0_41 = arith.constant 0 : index
    %c0_42 = arith.constant 0 : index
    %42 = vector.load %arg2[%c6, %c0_41, %c0_42] : memref<16x48x64xf32, #tpu.memory_space<vmem>>, vector<1x48x64xf32>
    %43 = vector.shape_cast %42 : vector<1x48x64xf32> to vector<48x64xf32>
    %cst_43 = arith.constant dense<0.000000e+00> : vector<100x64xf32>
    %44 = tpu.matmul %41, %43, %cst_43 {dimension_numbers = #tpu.dot_dimension_numbers<[1], [0], [0], [1], [0, 0, 1, 1], [], []>} : vector<100x48xf32>, vector<48x64xf32>, vector<100x64xf32> -> vector<100x64xf32>
    %45 = arith.addf %39, %44 : vector<100x64xf32>
    %c0_44 = arith.constant 0 : index
    %c12 = arith.constant 12 : index
    %c0_45 = arith.constant 0 : index
    %46 = vector.load %arg1[%c0_44, %c12, %c0_45] : memref<1x122x48xf32, #tpu.memory_space<vmem>>, vector<1x100x48xf32>
    %47 = vector.shape_cast %46 : vector<1x100x48xf32> to vector<100x48xf32>
    %c7 = arith.constant 7 : index
    %c0_46 = arith.constant 0 : index
    %c0_47 = arith.constant 0 : index
    %48 = vector.load %arg2[%c7, %c0_46, %c0_47] : memref<16x48x64xf32, #tpu.memory_space<vmem>>, vector<1x48x64xf32>
    %49 = vector.shape_cast %48 : vector<1x48x64xf32> to vector<48x64xf32>
    %cst_48 = arith.constant dense<0.000000e+00> : vector<100x64xf32>
    %50 = tpu.matmul %47, %49, %cst_48 {dimension_numbers = #tpu.dot_dimension_numbers<[1], [0], [0], [1], [0, 0, 1, 1], [], []>} : vector<100x48xf32>, vector<48x64xf32>, vector<100x64xf32> -> vector<100x64xf32>
    %51 = arith.addf %45, %50 : vector<100x64xf32>
    %c0_49 = arith.constant 0 : index
    %c0_50 = arith.constant 0 : index
    %52 = vector.load %arg3[%c0_49, %c0_50] : memref<1x64xf32, #tpu.memory_space<vmem>>, vector<1x64xf32>
    %53 = vector.broadcast %52 : vector<1x64xf32> to vector<100x64xf32>
    %54 = arith.addf %51, %53 : vector<100x64xf32>
    %cst_51 = arith.constant 0.000000e+00 : f32
    %55 = vector.broadcast %cst_51 : f32 to vector<100x64xf32>
    %56 = arith.maximumf %54, %55 : vector<100x64xf32>
    %57 = arith.maximumf %28, %56 : vector<100x64xf32>
    %c0_52 = arith.constant 0 : index
    %c10_53 = arith.constant 10 : index
    %c0_54 = arith.constant 0 : index
    %58 = vector.load %arg1[%c0_52, %c10_53, %c0_54] : memref<1x122x48xf32, #tpu.memory_space<vmem>>, vector<1x100x48xf32>
    %59 = vector.shape_cast %58 : vector<1x100x48xf32> to vector<100x48xf32>
    %c8 = arith.constant 8 : index
    %c0_55 = arith.constant 0 : index
    %c0_56 = arith.constant 0 : index
    %60 = vector.load %arg2[%c8, %c0_55, %c0_56] : memref<16x48x64xf32, #tpu.memory_space<vmem>>, vector<1x48x64xf32>
    %61 = vector.shape_cast %60 : vector<1x48x64xf32> to vector<48x64xf32>
    %cst_57 = arith.constant dense<0.000000e+00> : vector<100x64xf32>
    %62 = tpu.matmul %59, %61, %cst_57 {dimension_numbers = #tpu.dot_dimension_numbers<[1], [0], [0], [1], [0, 0, 1, 1], [], []>} : vector<100x48xf32>, vector<48x64xf32>, vector<100x64xf32> -> vector<100x64xf32>
    %c0_58 = arith.constant 0 : index
    %c11_59 = arith.constant 11 : index
    %c0_60 = arith.constant 0 : index
    %63 = vector.load %arg1[%c0_58, %c11_59, %c0_60] : memref<1x122x48xf32, #tpu.memory_space<vmem>>, vector<1x100x48xf32>
    %64 = vector.shape_cast %63 : vector<1x100x48xf32> to vector<100x48xf32>
    %c9 = arith.constant 9 : index
    %c0_61 = arith.constant 0 : index
    %c0_62 = arith.constant 0 : index
    %65 = vector.load %arg2[%c9, %c0_61, %c0_62] : memref<16x48x64xf32, #tpu.memory_space<vmem>>, vector<1x48x64xf32>
    %66 = vector.shape_cast %65 : vector<1x48x64xf32> to vector<48x64xf32>
    %cst_63 = arith.constant dense<0.000000e+00> : vector<100x64xf32>
    %67 = tpu.matmul %64, %66, %cst_63 {dimension_numbers = #tpu.dot_dimension_numbers<[1], [0], [0], [1], [0, 0, 1, 1], [], []>} : vector<100x48xf32>, vector<48x64xf32>, vector<100x64xf32> -> vector<100x64xf32>
    %68 = arith.addf %62, %67 : vector<100x64xf32>
    %c0_64 = arith.constant 0 : index
    %c20 = arith.constant 20 : index
    %c0_65 = arith.constant 0 : index
    %69 = vector.load %arg1[%c0_64, %c20, %c0_65] : memref<1x122x48xf32, #tpu.memory_space<vmem>>, vector<1x100x48xf32>
    %70 = vector.shape_cast %69 : vector<1x100x48xf32> to vector<100x48xf32>
    %c10_66 = arith.constant 10 : index
    %c0_67 = arith.constant 0 : index
    %c0_68 = arith.constant 0 : index
    %71 = vector.load %arg2[%c10_66, %c0_67, %c0_68] : memref<16x48x64xf32, #tpu.memory_space<vmem>>, vector<1x48x64xf32>
    %72 = vector.shape_cast %71 : vector<1x48x64xf32> to vector<48x64xf32>
    %cst_69 = arith.constant dense<0.000000e+00> : vector<100x64xf32>
    %73 = tpu.matmul %70, %72, %cst_69 {dimension_numbers = #tpu.dot_dimension_numbers<[1], [0], [0], [1], [0, 0, 1, 1], [], []>} : vector<100x48xf32>, vector<48x64xf32>, vector<100x64xf32> -> vector<100x64xf32>
    %74 = arith.addf %68, %73 : vector<100x64xf32>
    %c0_70 = arith.constant 0 : index
    %c21 = arith.constant 21 : index
    %c0_71 = arith.constant 0 : index
    %75 = vector.load %arg1[%c0_70, %c21, %c0_71] : memref<1x122x48xf32, #tpu.memory_space<vmem>>, vector<1x100x48xf32>
    %76 = vector.shape_cast %75 : vector<1x100x48xf32> to vector<100x48xf32>
    %c11_72 = arith.constant 11 : index
    %c0_73 = arith.constant 0 : index
    %c0_74 = arith.constant 0 : index
    %77 = vector.load %arg2[%c11_72, %c0_73, %c0_74] : memref<16x48x64xf32, #tpu.memory_space<vmem>>, vector<1x48x64xf32>
    %78 = vector.shape_cast %77 : vector<1x48x64xf32> to vector<48x64xf32>
    %cst_75 = arith.constant dense<0.000000e+00> : vector<100x64xf32>
    %79 = tpu.matmul %76, %78, %cst_75 {dimension_numbers = #tpu.dot_dimension_numbers<[1], [0], [0], [1], [0, 0, 1, 1], [], []>} : vector<100x48xf32>, vector<48x64xf32>, vector<100x64xf32> -> vector<100x64xf32>
    %80 = arith.addf %74, %79 : vector<100x64xf32>
    %c0_76 = arith.constant 0 : index
    %c0_77 = arith.constant 0 : index
    %81 = vector.load %arg3[%c0_76, %c0_77] : memref<1x64xf32, #tpu.memory_space<vmem>>, vector<1x64xf32>
    %82 = vector.broadcast %81 : vector<1x64xf32> to vector<100x64xf32>
    %83 = arith.addf %80, %82 : vector<100x64xf32>
    %cst_78 = arith.constant 0.000000e+00 : f32
    %84 = vector.broadcast %cst_78 : f32 to vector<100x64xf32>
    %85 = arith.maximumf %83, %84 : vector<100x64xf32>
    %86 = arith.maximumf %57, %85 : vector<100x64xf32>
    %c0_79 = arith.constant 0 : index
    %c11_80 = arith.constant 11 : index
    %c0_81 = arith.constant 0 : index
    %87 = vector.load %arg1[%c0_79, %c11_80, %c0_81] : memref<1x122x48xf32, #tpu.memory_space<vmem>>, vector<1x100x48xf32>
    %88 = vector.shape_cast %87 : vector<1x100x48xf32> to vector<100x48xf32>
    %c12_82 = arith.constant 12 : index
    %c0_83 = arith.constant 0 : index
    %c0_84 = arith.constant 0 : index
    %89 = vector.load %arg2[%c12_82, %c0_83, %c0_84] : memref<16x48x64xf32, #tpu.memory_space<vmem>>, vector<1x48x64xf32>
    %90 = vector.shape_cast %89 : vector<1x48x64xf32> to vector<48x64xf32>
    %cst_85 = arith.constant dense<0.000000e+00> : vector<100x64xf32>
    %91 = tpu.matmul %88, %90, %cst_85 {dimension_numbers = #tpu.dot_dimension_numbers<[1], [0], [0], [1], [0, 0, 1, 1], [], []>} : vector<100x48xf32>, vector<48x64xf32>, vector<100x64xf32> -> vector<100x64xf32>
    %c0_86 = arith.constant 0 : index
    %c12_87 = arith.constant 12 : index
    %c0_88 = arith.constant 0 : index
    %92 = vector.load %arg1[%c0_86, %c12_87, %c0_88] : memref<1x122x48xf32, #tpu.memory_space<vmem>>, vector<1x100x48xf32>
    %93 = vector.shape_cast %92 : vector<1x100x48xf32> to vector<100x48xf32>
    %c13 = arith.constant 13 : index
    %c0_89 = arith.constant 0 : index
    %c0_90 = arith.constant 0 : index
    %94 = vector.load %arg2[%c13, %c0_89, %c0_90] : memref<16x48x64xf32, #tpu.memory_space<vmem>>, vector<1x48x64xf32>
    %95 = vector.shape_cast %94 : vector<1x48x64xf32> to vector<48x64xf32>
    %cst_91 = arith.constant dense<0.000000e+00> : vector<100x64xf32>
    %96 = tpu.matmul %93, %95, %cst_91 {dimension_numbers = #tpu.dot_dimension_numbers<[1], [0], [0], [1], [0, 0, 1, 1], [], []>} : vector<100x48xf32>, vector<48x64xf32>, vector<100x64xf32> -> vector<100x64xf32>
    %97 = arith.addf %91, %96 : vector<100x64xf32>
    %c0_92 = arith.constant 0 : index
    %c21_93 = arith.constant 21 : index
    %c0_94 = arith.constant 0 : index
    %98 = vector.load %arg1[%c0_92, %c21_93, %c0_94] : memref<1x122x48xf32, #tpu.memory_space<vmem>>, vector<1x100x48xf32>
    %99 = vector.shape_cast %98 : vector<1x100x48xf32> to vector<100x48xf32>
    %c14 = arith.constant 14 : index
    %c0_95 = arith.constant 0 : index
    %c0_96 = arith.constant 0 : index
    %100 = vector.load %arg2[%c14, %c0_95, %c0_96] : memref<16x48x64xf32, #tpu.memory_space<vmem>>, vector<1x48x64xf32>
    %101 = vector.shape_cast %100 : vector<1x48x64xf32> to vector<48x64xf32>
    %cst_97 = arith.constant dense<0.000000e+00> : vector<100x64xf32>
    %102 = tpu.matmul %99, %101, %cst_97 {dimension_numbers = #tpu.dot_dimension_numbers<[1], [0], [0], [1], [0, 0, 1, 1], [], []>} : vector<100x48xf32>, vector<48x64xf32>, vector<100x64xf32> -> vector<100x64xf32>
    %103 = arith.addf %97, %102 : vector<100x64xf32>
    %c0_98 = arith.constant 0 : index
    %c22 = arith.constant 22 : index
    %c0_99 = arith.constant 0 : index
    %104 = vector.load %arg1[%c0_98, %c22, %c0_99] : memref<1x122x48xf32, #tpu.memory_space<vmem>>, vector<1x100x48xf32>
    %105 = vector.shape_cast %104 : vector<1x100x48xf32> to vector<100x48xf32>
    %c15 = arith.constant 15 : index
    %c0_100 = arith.constant 0 : index
    %c0_101 = arith.constant 0 : index
    %106 = vector.load %arg2[%c15, %c0_100, %c0_101] : memref<16x48x64xf32, #tpu.memory_space<vmem>>, vector<1x48x64xf32>
    %107 = vector.shape_cast %106 : vector<1x48x64xf32> to vector<48x64xf32>
    %cst_102 = arith.constant dense<0.000000e+00> : vector<100x64xf32>
    %108 = tpu.matmul %105, %107, %cst_102 {dimension_numbers = #tpu.dot_dimension_numbers<[1], [0], [0], [1], [0, 0, 1, 1], [], []>} : vector<100x48xf32>, vector<48x64xf32>, vector<100x64xf32> -> vector<100x64xf32>
    %109 = arith.addf %103, %108 : vector<100x64xf32>
    %c0_103 = arith.constant 0 : index
    %c0_104 = arith.constant 0 : index
    %110 = vector.load %arg3[%c0_103, %c0_104] : memref<1x64xf32, #tpu.memory_space<vmem>>, vector<1x64xf32>
    %111 = vector.broadcast %110 : vector<1x64xf32> to vector<100x64xf32>
    %112 = arith.addf %109, %111 : vector<100x64xf32>
    %cst_105 = arith.constant 0.000000e+00 : f32
    %113 = vector.broadcast %cst_105 : f32 to vector<100x64xf32>
    %114 = arith.maximumf %112, %113 : vector<100x64xf32>
    %115 = arith.maximumf %86, %114 : vector<100x64xf32>
    %116 = vector.broadcast %0 : vector<100x1xf32> to vector<100x64xf32>
    %117 = arith.mulf %115, %116 : vector<100x64xf32>
    %cst_106 = arith.constant 0.000000e+00 : f32
    %118 = vector.broadcast %cst_106 : f32 to vector<122x64xf32>
    %c0_107 = arith.constant 0 : index
    %c0_108 = arith.constant 0 : index
    %119 = vector.load %arg8[%c0_107, %c0_108] : memref<122x64xf32, #tpu.memory_space<vmem>>, vector<122x64xf32>
    tpu.vector_store %arg8[%c0_107, %c0_108], %118 {strides = array<i32>} : memref<122x64xf32, #tpu.memory_space<vmem>>, vector<122x64xf32>,
    %c11_109 = arith.constant 11 : index
    %c0_110 = arith.constant 0 : index
    %120 = vector.load %arg8[%c11_109, %c0_110] : memref<122x64xf32, #tpu.memory_space<vmem>>, vector<100x64xf32>
    tpu.vector_store %arg8[%c11_109, %c0_110], %117 {strides = array<i32>} : memref<122x64xf32, #tpu.memory_space<vmem>>, vector<100x64xf32>,
    %c0_111 = arith.constant 0 : index
    %c0_112 = arith.constant 0 : index
    %121 = vector.load %arg8[%c0_111, %c0_112] : memref<122x64xf32, #tpu.memory_space<vmem>>, vector<100x64xf32>
    %c0_113 = arith.constant 0 : index
    %c0_114 = arith.constant 0 : index
    %c0_115 = arith.constant 0 : index
    %122 = vector.load %arg5[%c0_113, %c0_114, %c0_115] : memref<16x64x32xf32, #tpu.memory_space<vmem>>, vector<1x64x32xf32>
    %123 = vector.shape_cast %122 : vector<1x64x32xf32> to vector<64x32xf32>
    %cst_116 = arith.constant dense<0.000000e+00> : vector<100x32xf32>
    %124 = tpu.matmul %121, %123, %cst_116 {dimension_numbers = #tpu.dot_dimension_numbers<[1], [0], [0], [1], [0, 0, 1, 1], [], []>} : vector<100x64xf32>, vector<64x32xf32>, vector<100x32xf32> -> vector<100x32xf32>
    %c1_117 = arith.constant 1 : index
    %c0_118 = arith.constant 0 : index
    %125 = vector.load %arg8[%c1_117, %c0_118] : memref<122x64xf32, #tpu.memory_space<vmem>>, vector<100x64xf32>
    %c1_119 = arith.constant 1 : index
    %c0_120 = arith.constant 0 : index
    %c0_121 = arith.constant 0 : index
    %126 = vector.load %arg5[%c1_119, %c0_120, %c0_121] : memref<16x64x32xf32, #tpu.memory_space<vmem>>, vector<1x64x32xf32>
    %127 = vector.shape_cast %126 : vector<1x64x32xf32> to vector<64x32xf32>
    %cst_122 = arith.constant dense<0.000000e+00> : vector<100x32xf32>
    %128 = tpu.matmul %125, %127, %cst_122 {dimension_numbers = #tpu.dot_dimension_numbers<[1], [0], [0], [1], [0, 0, 1, 1], [], []>} : vector<100x64xf32>, vector<64x32xf32>, vector<100x32xf32> -> vector<100x32xf32>
    %129 = arith.addf %124, %128 : vector<100x32xf32>
    %c10_123 = arith.constant 10 : index
    %c0_124 = arith.constant 0 : index
    %130 = vector.load %arg8[%c10_123, %c0_124] : memref<122x64xf32, #tpu.memory_space<vmem>>, vector<100x64xf32>
    %c2_125 = arith.constant 2 : index
    %c0_126 = arith.constant 0 : index
    %c0_127 = arith.constant 0 : index
    %131 = vector.load %arg5[%c2_125, %c0_126, %c0_127] : memref<16x64x32xf32, #tpu.memory_space<vmem>>, vector<1x64x32xf32>
    %132 = vector.shape_cast %131 : vector<1x64x32xf32> to vector<64x32xf32>
    %cst_128 = arith.constant dense<0.000000e+00> : vector<100x32xf32>
    %133 = tpu.matmul %130, %132, %cst_128 {dimension_numbers = #tpu.dot_dimension_numbers<[1], [0], [0], [1], [0, 0, 1, 1], [], []>} : vector<100x64xf32>, vector<64x32xf32>, vector<100x32xf32> -> vector<100x32xf32>
    %134 = arith.addf %129, %133 : vector<100x32xf32>
    %c11_129 = arith.constant 11 : index
    %c0_130 = arith.constant 0 : index
    %135 = vector.load %arg8[%c11_129, %c0_130] : memref<122x64xf32, #tpu.memory_space<vmem>>, vector<100x64xf32>
    %c3_131 = arith.constant 3 : index
    %c0_132 = arith.constant 0 : index
    %c0_133 = arith.constant 0 : index
    %136 = vector.load %arg5[%c3_131, %c0_132, %c0_133] : memref<16x64x32xf32, #tpu.memory_space<vmem>>, vector<1x64x32xf32>
    %137 = vector.shape_cast %136 : vector<1x64x32xf32> to vector<64x32xf32>
    %cst_134 = arith.constant dense<0.000000e+00> : vector<100x32xf32>
    %138 = tpu.matmul %135, %137, %cst_134 {dimension_numbers = #tpu.dot_dimension_numbers<[1], [0], [0], [1], [0, 0, 1, 1], [], []>} : vector<100x64xf32>, vector<64x32xf32>, vector<100x32xf32> -> vector<100x32xf32>
    %139 = arith.addf %134, %138 : vector<100x32xf32>
    %c0_135 = arith.constant 0 : index
    %c0_136 = arith.constant 0 : index
    %140 = vector.load %arg6[%c0_135, %c0_136] : memref<1x32xf32, #tpu.memory_space<vmem>>, vector<1x32xf32>
    %141 = vector.broadcast %140 : vector<1x32xf32> to vector<100x32xf32>
    %142 = arith.addf %139, %141 : vector<100x32xf32>
    %cst_137 = arith.constant 0.000000e+00 : f32
    %143 = vector.broadcast %cst_137 : f32 to vector<100x32xf32>
    %144 = arith.maximumf %142, %143 : vector<100x32xf32>
    %c1_138 = arith.constant 1 : index
    %c0_139 = arith.constant 0 : index
    %145 = vector.load %arg8[%c1_138, %c0_139] : memref<122x64xf32, #tpu.memory_space<vmem>>, vector<100x64xf32>
    %c4_140 = arith.constant 4 : index
    %c0_141 = arith.constant 0 : index
    %c0_142 = arith.constant 0 : index
    %146 = vector.load %arg5[%c4_140, %c0_141, %c0_142] : memref<16x64x32xf32, #tpu.memory_space<vmem>>, vector<1x64x32xf32>
    %147 = vector.shape_cast %146 : vector<1x64x32xf32> to vector<64x32xf32>
    %cst_143 = arith.constant dense<0.000000e+00> : vector<100x32xf32>
    %148 = tpu.matmul %145, %147, %cst_143 {dimension_numbers = #tpu.dot_dimension_numbers<[1], [0], [0], [1], [0, 0, 1, 1], [], []>} : vector<100x64xf32>, vector<64x32xf32>, vector<100x32xf32> -> vector<100x32xf32>
    %c2_144 = arith.constant 2 : index
    %c0_145 = arith.constant 0 : index
    %149 = vector.load %arg8[%c2_144, %c0_145] : memref<122x64xf32, #tpu.memory_space<vmem>>, vector<100x64xf32>
    %c5_146 = arith.constant 5 : index
    %c0_147 = arith.constant 0 : index
    %c0_148 = arith.constant 0 : index
    %150 = vector.load %arg5[%c5_146, %c0_147, %c0_148] : memref<16x64x32xf32, #tpu.memory_space<vmem>>, vector<1x64x32xf32>
    %151 = vector.shape_cast %150 : vector<1x64x32xf32> to vector<64x32xf32>
    %cst_149 = arith.constant dense<0.000000e+00> : vector<100x32xf32>
    %152 = tpu.matmul %149, %151, %cst_149 {dimension_numbers = #tpu.dot_dimension_numbers<[1], [0], [0], [1], [0, 0, 1, 1], [], []>} : vector<100x64xf32>, vector<64x32xf32>, vector<100x32xf32> -> vector<100x32xf32>
    %153 = arith.addf %148, %152 : vector<100x32xf32>
    %c11_150 = arith.constant 11 : index
    %c0_151 = arith.constant 0 : index
    %154 = vector.load %arg8[%c11_150, %c0_151] : memref<122x64xf32, #tpu.memory_space<vmem>>, vector<100x64xf32>
    %c6_152 = arith.constant 6 : index
    %c0_153 = arith.constant 0 : index
    %c0_154 = arith.constant 0 : index
    %155 = vector.load %arg5[%c6_152, %c0_153, %c0_154] : memref<16x64x32xf32, #tpu.memory_space<vmem>>, vector<1x64x32xf32>
    %156 = vector.shape_cast %155 : vector<1x64x32xf32> to vector<64x32xf32>
    %cst_155 = arith.constant dense<0.000000e+00> : vector<100x32xf32>
    %157 = tpu.matmul %154, %156, %cst_155 {dimension_numbers = #tpu.dot_dimension_numbers<[1], [0], [0], [1], [0, 0, 1, 1], [], []>} : vector<100x64xf32>, vector<64x32xf32>, vector<100x32xf32> -> vector<100x32xf32>
    %158 = arith.addf %153, %157 : vector<100x32xf32>
    %c12_156 = arith.constant 12 : index
    %c0_157 = arith.constant 0 : index
    %159 = vector.load %arg8[%c12_156, %c0_157] : memref<122x64xf32, #tpu.memory_space<vmem>>, vector<100x64xf32>
    %c7_158 = arith.constant 7 : index
    %c0_159 = arith.constant 0 : index
    %c0_160 = arith.constant 0 : index
    %160 = vector.load %arg5[%c7_158, %c0_159, %c0_160] : memref<16x64x32xf32, #tpu.memory_space<vmem>>, vector<1x64x32xf32>
    %161 = vector.shape_cast %160 : vector<1x64x32xf32> to vector<64x32xf32>
    %cst_161 = arith.constant dense<0.000000e+00> : vector<100x32xf32>
    %162 = tpu.matmul %159, %161, %cst_161 {dimension_numbers = #tpu.dot_dimension_numbers<[1], [0], [0], [1], [0, 0, 1, 1], [], []>} : vector<100x64xf32>, vector<64x32xf32>, vector<100x32xf32> -> vector<100x32xf32>
    %163 = arith.addf %158, %162 : vector<100x32xf32>
    %c0_162 = arith.constant 0 : index
    %c0_163 = arith.constant 0 : index
    %164 = vector.load %arg6[%c0_162, %c0_163] : memref<1x32xf32, #tpu.memory_space<vmem>>, vector<1x32xf32>
    %165 = vector.broadcast %164 : vector<1x32xf32> to vector<100x32xf32>
    %166 = arith.addf %163, %165 : vector<100x32xf32>
    %cst_164 = arith.constant 0.000000e+00 : f32
    %167 = vector.broadcast %cst_164 : f32 to vector<100x32xf32>
    %168 = arith.maximumf %166, %167 : vector<100x32xf32>
    %169 = arith.maximumf %144, %168 : vector<100x32xf32>
    %c10_165 = arith.constant 10 : index
    %c0_166 = arith.constant 0 : index
    %170 = vector.load %arg8[%c10_165, %c0_166] : memref<122x64xf32, #tpu.memory_space<vmem>>, vector<100x64xf32>
    %c8_167 = arith.constant 8 : index
    %c0_168 = arith.constant 0 : index
    %c0_169 = arith.constant 0 : index
    %171 = vector.load %arg5[%c8_167, %c0_168, %c0_169] : memref<16x64x32xf32, #tpu.memory_space<vmem>>, vector<1x64x32xf32>
    %172 = vector.shape_cast %171 : vector<1x64x32xf32> to vector<64x32xf32>
    %cst_170 = arith.constant dense<0.000000e+00> : vector<100x32xf32>
    %173 = tpu.matmul %170, %172, %cst_170 {dimension_numbers = #tpu.dot_dimension_numbers<[1], [0], [0], [1], [0, 0, 1, 1], [], []>} : vector<100x64xf32>, vector<64x32xf32>, vector<100x32xf32> -> vector<100x32xf32>
    %c11_171 = arith.constant 11 : index
    %c0_172 = arith.constant 0 : index
    %174 = vector.load %arg8[%c11_171, %c0_172] : memref<122x64xf32, #tpu.memory_space<vmem>>, vector<100x64xf32>
    %c9_173 = arith.constant 9 : index
    %c0_174 = arith.constant 0 : index
    %c0_175 = arith.constant 0 : index
    %175 = vector.load %arg5[%c9_173, %c0_174, %c0_175] : memref<16x64x32xf32, #tpu.memory_space<vmem>>, vector<1x64x32xf32>
    %176 = vector.shape_cast %175 : vector<1x64x32xf32> to vector<64x32xf32>
    %cst_176 = arith.constant dense<0.000000e+00> : vector<100x32xf32>
    %177 = tpu.matmul %174, %176, %cst_176 {dimension_numbers = #tpu.dot_dimension_numbers<[1], [0], [0], [1], [0, 0, 1, 1], [], []>} : vector<100x64xf32>, vector<64x32xf32>, vector<100x32xf32> -> vector<100x32xf32>
    %178 = arith.addf %173, %177 : vector<100x32xf32>
    %c20_177 = arith.constant 20 : index
    %c0_178 = arith.constant 0 : index
    %179 = vector.load %arg8[%c20_177, %c0_178] : memref<122x64xf32, #tpu.memory_space<vmem>>, vector<100x64xf32>
    %c10_179 = arith.constant 10 : index
    %c0_180 = arith.constant 0 : index
    %c0_181 = arith.constant 0 : index
    %180 = vector.load %arg5[%c10_179, %c0_180, %c0_181] : memref<16x64x32xf32, #tpu.memory_space<vmem>>, vector<1x64x32xf32>
    %181 = vector.shape_cast %180 : vector<1x64x32xf32> to vector<64x32xf32>
    %cst_182 = arith.constant dense<0.000000e+00> : vector<100x32xf32>
    %182 = tpu.matmul %179, %181, %cst_182 {dimension_numbers = #tpu.dot_dimension_numbers<[1], [0], [0], [1], [0, 0, 1, 1], [], []>} : vector<100x64xf32>, vector<64x32xf32>, vector<100x32xf32> -> vector<100x32xf32>
    %183 = arith.addf %178, %182 : vector<100x32xf32>
    %c21_183 = arith.constant 21 : index
    %c0_184 = arith.constant 0 : index
    %184 = vector.load %arg8[%c21_183, %c0_184] : memref<122x64xf32, #tpu.memory_space<vmem>>, vector<100x64xf32>
    %c11_185 = arith.constant 11 : index
    %c0_186 = arith.constant 0 : index
    %c0_187 = arith.constant 0 : index
    %185 = vector.load %arg5[%c11_185, %c0_186, %c0_187] : memref<16x64x32xf32, #tpu.memory_space<vmem>>, vector<1x64x32xf32>
    %186 = vector.shape_cast %185 : vector<1x64x32xf32> to vector<64x32xf32>
    %cst_188 = arith.constant dense<0.000000e+00> : vector<100x32xf32>
    %187 = tpu.matmul %184, %186, %cst_188 {dimension_numbers = #tpu.dot_dimension_numbers<[1], [0], [0], [1], [0, 0, 1, 1], [], []>} : vector<100x64xf32>, vector<64x32xf32>, vector<100x32xf32> -> vector<100x32xf32>
    %188 = arith.addf %183, %187 : vector<100x32xf32>
    %c0_189 = arith.constant 0 : index
    %c0_190 = arith.constant 0 : index
    %189 = vector.load %arg6[%c0_189, %c0_190] : memref<1x32xf32, #tpu.memory_space<vmem>>, vector<1x32xf32>
    %190 = vector.broadcast %189 : vector<1x32xf32> to vector<100x32xf32>
    %191 = arith.addf %188, %190 : vector<100x32xf32>
    %cst_191 = arith.constant 0.000000e+00 : f32
    %192 = vector.broadcast %cst_191 : f32 to vector<100x32xf32>
    %193 = arith.maximumf %191, %192 : vector<100x32xf32>
    %194 = arith.maximumf %169, %193 : vector<100x32xf32>
    %c11_192 = arith.constant 11 : index
    %c0_193 = arith.constant 0 : index
    %195 = vector.load %arg8[%c11_192, %c0_193] : memref<122x64xf32, #tpu.memory_space<vmem>>, vector<100x64xf32>
    %c12_194 = arith.constant 12 : index
    %c0_195 = arith.constant 0 : index
    %c0_196 = arith.constant 0 : index
    %196 = vector.load %arg5[%c12_194, %c0_195, %c0_196] : memref<16x64x32xf32, #tpu.memory_space<vmem>>, vector<1x64x32xf32>
    %197 = vector.shape_cast %196 : vector<1x64x32xf32> to vector<64x32xf32>
    %cst_197 = arith.constant dense<0.000000e+00> : vector<100x32xf32>
    %198 = tpu.matmul %195, %197, %cst_197 {dimension_numbers = #tpu.dot_dimension_numbers<[1], [0], [0], [1], [0, 0, 1, 1], [], []>} : vector<100x64xf32>, vector<64x32xf32>, vector<100x32xf32> -> vector<100x32xf32>
    %c12_198 = arith.constant 12 : index
    %c0_199 = arith.constant 0 : index
    %199 = vector.load %arg8[%c12_198, %c0_199] : memref<122x64xf32, #tpu.memory_space<vmem>>, vector<100x64xf32>
    %c13_200 = arith.constant 13 : index
    %c0_201 = arith.constant 0 : index
    %c0_202 = arith.constant 0 : index
    %200 = vector.load %arg5[%c13_200, %c0_201, %c0_202] : memref<16x64x32xf32, #tpu.memory_space<vmem>>, vector<1x64x32xf32>
    %201 = vector.shape_cast %200 : vector<1x64x32xf32> to vector<64x32xf32>
    %cst_203 = arith.constant dense<0.000000e+00> : vector<100x32xf32>
    %202 = tpu.matmul %199, %201, %cst_203 {dimension_numbers = #tpu.dot_dimension_numbers<[1], [0], [0], [1], [0, 0, 1, 1], [], []>} : vector<100x64xf32>, vector<64x32xf32>, vector<100x32xf32> -> vector<100x32xf32>
    %203 = arith.addf %198, %202 : vector<100x32xf32>
    %c21_204 = arith.constant 21 : index
    %c0_205 = arith.constant 0 : index
    %204 = vector.load %arg8[%c21_204, %c0_205] : memref<122x64xf32, #tpu.memory_space<vmem>>, vector<100x64xf32>
    %c14_206 = arith.constant 14 : index
    %c0_207 = arith.constant 0 : index
    %c0_208 = arith.constant 0 : index
    %205 = vector.load %arg5[%c14_206, %c0_207, %c0_208] : memref<16x64x32xf32, #tpu.memory_space<vmem>>, vector<1x64x32xf32>
    %206 = vector.shape_cast %205 : vector<1x64x32xf32> to vector<64x32xf32>
    %cst_209 = arith.constant dense<0.000000e+00> : vector<100x32xf32>
    %207 = tpu.matmul %204, %206, %cst_209 {dimension_numbers = #tpu.dot_dimension_numbers<[1], [0], [0], [1], [0, 0, 1, 1], [], []>} : vector<100x64xf32>, vector<64x32xf32>, vector<100x32xf32> -> vector<100x32xf32>
    %208 = arith.addf %203, %207 : vector<100x32xf32>
    %c22_210 = arith.constant 22 : index
    %c0_211 = arith.constant 0 : index
    %209 = vector.load %arg8[%c22_210, %c0_211] : memref<122x64xf32, #tpu.memory_space<vmem>>, vector<100x64xf32>
    %c15_212 = arith.constant 15 : index
    %c0_213 = arith.constant 0 : index
    %c0_214 = arith.constant 0 : index
    %210 = vector.load %arg5[%c15_212, %c0_213, %c0_214] : memref<16x64x32xf32, #tpu.memory_space<vmem>>, vector<1x64x32xf32>
    %211 = vector.shape_cast %210 : vector<1x64x32xf32> to vector<64x32xf32>
    %cst_215 = arith.constant dense<0.000000e+00> : vector<100x32xf32>
    %212 = tpu.matmul %209, %211, %cst_215 {dimension_numbers = #tpu.dot_dimension_numbers<[1], [0], [0], [1], [0, 0, 1, 1], [], []>} : vector<100x64xf32>, vector<64x32xf32>, vector<100x32xf32> -> vector<100x32xf32>
    %213 = arith.addf %208, %212 : vector<100x32xf32>
    %c0_216 = arith.constant 0 : index
    %c0_217 = arith.constant 0 : index
    %214 = vector.load %arg6[%c0_216, %c0_217] : memref<1x32xf32, #tpu.memory_space<vmem>>, vector<1x32xf32>
    %215 = vector.broadcast %214 : vector<1x32xf32> to vector<100x32xf32>
    %216 = arith.addf %213, %215 : vector<100x32xf32>
    %cst_218 = arith.constant 0.000000e+00 : f32
    %217 = vector.broadcast %cst_218 : f32 to vector<100x32xf32>
    %218 = arith.maximumf %216, %217 : vector<100x32xf32>
    %219 = arith.maximumf %194, %218 : vector<100x32xf32>
    %c0_219 = arith.constant 0 : index
    %c0_220 = arith.constant 0 : index
    %c0_221 = arith.constant 0 : index
    %220 = vector.load %arg7[%c0_219, %c0_220, %c0_221] : memref<1x100x32xf32, #tpu.memory_space<vmem>>, vector<1x100x32xf32>
    %221 = vector.shape_cast %220 : vector<1x100x32xf32> to vector<100x32xf32>
    %222 = vector.shape_cast %219 : vector<100x32xf32> to vector<1x100x32xf32>
    tpu.vector_store %arg7[%c0_219, %c0_220, %c0_221], %222 {strides = array<i32>} : memref<1x100x32xf32, #tpu.memory_space<vmem>>, vector<1x100x32xf32>,
    return
  }
  func.func @transform_0(%arg0: i32) -> (i32, i32, i32) {
    %c0_i32 = arith.constant 0 : i32
    %c0_i32_0 = arith.constant 0 : i32
    %c0_i32_1 = arith.constant 0 : i32
    return %arg0, %c0_i32, %c0_i32_0 : i32, i32, i32
  }
  func.func @transform_1(%arg0: i32) -> (i32, i32, i32) {
    %c0_i32 = arith.constant 0 : i32
    %c0_i32_0 = arith.constant 0 : i32
    %c0_i32_1 = arith.constant 0 : i32
    %c0_i32_2 = arith.constant 0 : i32
    return %c0_i32, %c0_i32_0, %c0_i32_1 : i32, i32, i32
  }
  func.func @transform_2(%arg0: i32) -> (i32, i32) {
    %c0_i32 = arith.constant 0 : i32
    %c0_i32_0 = arith.constant 0 : i32
    %c0_i32_1 = arith.constant 0 : i32
    return %c0_i32, %c0_i32_0 : i32, i32
  }
  func.func @transform_3(%arg0: i32) -> (i32, i32) {
    %c0_i32 = arith.constant 0 : i32
    %c0_i32_0 = arith.constant 0 : i32
    %c0_i32_1 = arith.constant 0 : i32
    return %c0_i32, %c0_i32_0 : i32, i32
  }
  func.func @transform_4(%arg0: i32) -> (i32, i32, i32) {
    %c0_i32 = arith.constant 0 : i32
    %c0_i32_0 = arith.constant 0 : i32
    %c0_i32_1 = arith.constant 0 : i32
    %c0_i32_2 = arith.constant 0 : i32
    return %c0_i32, %c0_i32_0, %c0_i32_1 : i32, i32, i32
  }
  func.func @transform_5(%arg0: i32) -> (i32, i32) {
    %c0_i32 = arith.constant 0 : i32
    %c0_i32_0 = arith.constant 0 : i32
    %c0_i32_1 = arith.constant 0 : i32
    return %c0_i32, %c0_i32_0 : i32, i32
  }
  func.func @transform_6(%arg0: i32) -> (i32, i32, i32) {
    %c0_i32 = arith.constant 0 : i32
    %c0_i32_0 = arith.constant 0 : i32
    %c0_i32_1 = arith.constant 0 : i32
    return %arg0, %c0_i32, %c0_i32_0 : i32, i32, i32
  }
}

</mosaic_0001>

<bundles_post_ra>
// kernel: simple_cnn_forward.3
= control target key start
LH: loop header
LB: loop body
LE: loop exit
PB: predicated region body
PF: predicated region fallthrough
CT: control target
= control target key end

     0   :  { %v2413_v43 = vmov 1983009808   ;;  %v440_v45 = vlaneseq  ;;  %s3738_s0 = inlined_call_operand.vmem [shape: f32[2,3200], index: 0, kind: input, shape index: {}]   ;;  %s3739_s1 = inlined_call_operand.vmem [shape: f32[3200,10], index: 1, kind: input, shape index: {}]   ;;  %s3740_s2 = inlined_call_operand.vmem [shape: f32[1,10], index: 2, kind: input, shape index: {}]   ;;  %s3741_s3 = inlined_call_operand.hbm [shape: f32[2,10], index: 3, kind: output, shape index: {}]  }
   0x1   :  { %v38_v0 = vld [vmem:[%s3739_s1 + $0x80] sm:$0xff]  ;;  %v39_v1 = vld [vmem:[%s3739_s1 + $0x88] sm:$0xff]  ;;  %v40_v11 = vld [vmem:[%s3739_s1 + $0x90] sm:$0xff]  ;;  %v438_v44 = vunpack.c.l.s4 %v2413_v43 }
   0x2   :  { %v22_v2 = vld [vmem:[%s3739_s1] sm:$0xff]  ;;  %v1970_v3 = vpack.c.bf16 %v39_v1, %v38_v0  ;;  %v23_v4 = vld [vmem:[%s3739_s1 + $0x8] sm:$0xff]  ;;  %v41_v13 = vld [vmem:[%s3739_s1 + $0x98] sm:$0xff]  ;;  %v441_v60 = vshrl.u32 %v440_v45, 7 }
   0x3   :  { %v70_v5 = vld [vmem:[%s3739_s1 + $0x180] sm:$0xff]  ;;  %v71_v6 = vld [vmem:[%s3739_s1 + $0x188] sm:$0xff]  ;;  %v1972_v7 = vpack.c.bf16 %v23_v4, %v22_v2  ;;  %v24_v14 = vld [vmem:[%s3739_s1 + $0x10] sm:$0xff]  ;;  %v1974_v16 = vpack.c.bf16 %v41_v13, %v40_v11  ;;  %v439_v59 = vunpack.c.0.s8 %v438_v44 }
   0x4   :  { %v2002_v8 = vpack.c.bf16 %v71_v6, %v70_v5  ;;  %v54_v9 = vld [vmem:[%s3739_s1 + $0x100] sm:$0xff]  ;;  %v55_v10 = vld [vmem:[%s3739_s1 + $0x108] sm:$0xff]  ;;  %1971 = vmatprep.subr.bf16.mxu0 %v1970_v3  ;;  %v25_v15 = vld [vmem:[%s3739_s1 + $0x18] sm:$0xff] }
   0x5   :  { %v2004_v12 = vpack.c.bf16 %v55_v10, %v54_v9  ;;  %1973 = vmatpush3.bf16.msra.mxu0 %v1972_v7  ;;  %v1976_v17 = vpack.c.bf16 %v25_v15, %v24_v14  ;;  %v72_v18 = vld [vmem:[%s3739_s1 + $0x190] sm:$0xff]  ;;  %v73_v19 = vld [vmem:[%s3739_s1 + $0x198] sm:$0xff]  ;;  %v42_v23 = vld [vmem:[%s3739_s1 + $0xa0] sm:$0xff]  ;;  %v2582_v10 = vsub.s32 %v439_v59, %v441_v60 }
   0x6   :  { %2003 = vmatprep.subr.bf16.mxu1 %v2002_v8  ;;  %v56_v20 = vld [vmem:[%s3739_s1 + $0x110] sm:$0xff]  ;;  %v2006_v21 = vpack.c.bf16 %v73_v19, %v72_v18  ;;  %v57_v22 = vld [vmem:[%s3739_s1 + $0x118] sm:$0xff]  ;;  %v43_v24 = vld [vmem:[%s3739_s1 + $0xa8] sm:$0xff]  ;;  %1975 = vmatprep.subr.bf16.mxu0 %v1974_v16 }
   0x7   :  { %2005 = vmatpush3.bf16.msra.mxu1 %v2004_v12  ;;  %v2008_v25 = vpack.c.bf16 %v57_v22, %v56_v20  ;;  %v1978_v26 = vpack.c.bf16 %v43_v24, %v42_v23  ;;  %v26_v27 = vld [vmem:[%s3739_s1 + $0x20] sm:$0xff]  ;;  %v27_v28 = vld [vmem:[%s3739_s1 + $0x28] sm:$0xff]  ;;  %v44_v35 = vld [vmem:[%s3739_s1 + $0xb0] sm:$0xff] }
   0x8   :  { %v74_v29 = vld [vmem:[%s3739_s1 + $0x1a0] sm:$0xff]  ;;  %2007 = vmatprep.subr.bf16.mxu1 %v2006_v21  ;;  %v75_v30 = vld [vmem:[%s3739_s1 + $0x1a8] sm:$0xff]  ;;  %v1980_v33 = vpack.c.bf16 %v27_v28, %v26_v27  ;;  %v45_v36 = vld [vmem:[%s3739_s1 + $0xb8] sm:$0xff] }
   0x9   :  { %v58_v31 = vld [vmem:[%s3739_s1 + $0x120] sm:$0xff]  ;;  %v59_v32 = vld [vmem:[%s3739_s1 + $0x128] sm:$0xff]  ;;  %1977 = vmatpush3.bf16.msra.mxu0 %v1976_v17  ;;  %v2010_v34 = vpack.c.bf16 %v75_v30, %v74_v29  ;;  %v28_v37 = vld [vmem:[%s3739_s1 + $0x30] sm:$0xff]  ;;  %v1982_v39 = vpack.c.bf16 %v45_v36, %v44_v35 }
   0xa   :  { %1979 = vmatprep.subr.bf16.mxu0 %v1978_v26  ;;  %v2012_v38 = vpack.c.bf16 %v59_v32, %v58_v31  ;;  %v29_v40 = vld [vmem:[%s3739_s1 + $0x38] sm:$0xff]  ;;  %v76_v41 = vld [vmem:[%s3739_s1 + $0x1b0] sm:$0xff]  ;;  %v46_v49 = vld [vmem:[%s3739_s1 + $0xc0] sm:$0xff] }
   0xb   :  { %2009 = vmatpush3.bf16.msra.mxu1 %v2008_v25  ;;  %v77_v42 = vld [vmem:[%s3739_s1 + $0x1b8] sm:$0xff]  ;;  %v60_v47 = vld [vmem:[%s3739_s1 + $0x130] sm:$0xff]  ;;  %v47_v50 = vld [vmem:[%s3739_s1 + $0xc8] sm:$0xff]  ;;  %v1984_v51 = vpack.c.bf16 %v29_v40, %v28_v37 }
   0xc   :  { %2011 = vmatprep.subr.bf16.mxu1 %v2010_v34  ;;  %v2014_v46 = vpack.c.bf16 %v77_v42, %v76_v41  ;;  %v61_v48 = vld [vmem:[%s3739_s1 + $0x138] sm:$0xff]  ;;  %v78_v52 = vld [vmem:[%s3739_s1 + $0x1c0] sm:$0xff]  ;;  %v79_v53 = vld [vmem:[%s3739_s1 + $0x1c8] sm:$0xff]  ;;  %v1986_v55 = vpack.c.bf16 %v47_v50, %v46_v49 }
   0xd   :  { %1981 = vmatpush3.bf16.msra.mxu0 %v1980_v33  ;;  %v2016_v54 = vpack.c.bf16 %v61_v48, %v60_v47  ;;  %v30_v56 = vld [vmem:[%s3739_s1 + $0x40] sm:$0xff]  ;;  %v31_v57 = vld [vmem:[%s3739_s1 + $0x48] sm:$0xff]  ;;  %v2018_v61 = vpack.c.bf16 %v79_v53, %v78_v52  ;;  %v48_v63 = vld [vmem:[%s3739_s1 + $0xd0] sm:$0xff] }
   0xe   :  { %1983 = vmatprep.subr.bf16.mxu0 %v1982_v39  ;;  %v62_v58 = vld [vmem:[%s3739_s1 + $0x140] sm:$0xff]  ;;  %v63_v62 = vld [vmem:[%s3739_s1 + $0x148] sm:$0xff]  ;;  %v49_v0 = vld [vmem:[%s3739_s1 + $0xd8] sm:$0xff]  ;;  %v1988_v3 = vpack.c.bf16 %v31_v57, %v30_v56 }
   0xf   :  { %2013 = vmatpush3.bf16.msra.mxu1 %v2012_v38  ;;  %v80_v1 = vld [vmem:[%s3739_s1 + $0x1d0] sm:$0xff]  ;;  %v81_v2 = vld [vmem:[%s3739_s1 + $0x1d8] sm:$0xff]  ;;  %v2020_v5 = vpack.c.bf16 %v63_v62, %v62_v58  ;;  %v1990_v6 = vpack.c.bf16 %v49_v0, %v48_v63  ;;  %v50_v12 = vld [vmem:[%s3739_s1 + $0xe0] sm:$0xff] }
  0x10   :  { %2015 = vmatprep.subr.bf16.mxu1 %v2014_v46  ;;  %v32_v4 = vld [vmem:[%s3739_s1 + $0x50] sm:$0xff]  ;;  %v33_v7 = vld [vmem:[%s3739_s1 + $0x58] sm:$0xff]  ;;  %v2022_v11 = vpack.c.bf16 %v81_v2, %v80_v1  ;;  %v51_v13 = vld [vmem:[%s3739_s1 + $0xe8] sm:$0xff] }
  0x11   :  { %1985 = vmatpush3.bf16.msra.mxu0 %v1984_v51  ;;  %v64_v8 = vld [vmem:[%s3739_s1 + $0x150] sm:$0xff]  ;;  %v65_v9 = vld [vmem:[%s3739_s1 + $0x158] sm:$0xff]  ;;  %v82_v14 = vld [vmem:[%s3739_s1 + $0x1e0] sm:$0xff]  ;;  %v1992_v16 = vpack.c.bf16 %v33_v7, %v32_v4  ;;  %v1994_v19 = vpack.c.bf16 %v51_v13, %v50_v12 }
  0x12   :  { %1987 = vmatprep.subr.bf16.mxu0 %v1986_v55  ;;  %v83_v15 = vld [vmem:[%s3739_s1 + $0x1e8] sm:$0xff]  ;;  %v2024_v17 = vpack.c.bf16 %v65_v9, %v64_v8  ;;  %v15_v18 = vld [vmem:[%s3738_s0] sm:$0xff]  ;;  %v52_v27 = vld [vmem:[%s3739_s1 + $0xf0] sm:$0xff] }
  0x13   :  { %2017 = vmatpush3.bf16.msra.mxu1 %v2016_v54  ;;  %v34_v20 = vld [vmem:[%s3739_s1 + $0x60] sm:$0xff]  ;;  %v35_v21 = vld [vmem:[%s3739_s1 + $0x68] sm:$0xff]  ;;  %v443_v23 = vrot.slane %v15_v18, %v2582_v10  ;;  %v436_v24 = vcombine.high %v15_v18, %v15_v18  ;;  %v2026_v25 = vpack.c.bf16 %v83_v15, %v82_v14  ;;  %v53_v28 = vld [vmem:[%s3739_s1 + $0xf8] sm:$0xff] }
  0x14   :  { %2019 = vmatprep.subr.bf16.mxu1 %v2018_v61  ;;  %v66_v22 = vld [vmem:[%s3739_s1 + $0x160] sm:$0xff]  ;;  %v67_v26 = vld [vmem:[%s3739_s1 + $0x168] sm:$0xff]  ;;  %v84_v29 = vld [vmem:[%s3739_s1 + $0x1f0] sm:$0xff]  ;;  %v1996_v33 = vpack.c.bf16 %v35_v21, %v34_v20  ;;  %v1998_v35 = vpack.c.bf16 %v53_v28, %v52_v27 }
  0x15   :  { %1989 = vmatpush3.bf16.msra.mxu0 %v1988_v3  ;;  %v85_v30 = vld [vmem:[%s3739_s1 + $0x1f8] sm:$0xff]  ;;  %v451_v31 = vcombine.high %v443_v23, %v443_v23  ;;  %v450_v32 = vrot.slane %v436_v24, %v2582_v10  ;;  %v2028_v34 = vpack.c.bf16 %v67_v26, %v66_v22  ;;  %v36_v36 = vld [vmem:[%s3739_s1 + $0x70] sm:$0xff]  ;;  %v102_v42 = vld [vmem:[%s3739_s1 + $0x280] sm:$0xff] }
  0x16   :  { %1991 = vmatprep.subr.bf16.mxu0 %v1990_v6  ;;  %v37_v37 = vld [vmem:[%s3739_s1 + $0x78] sm:$0xff]  ;;  %v68_v38 = vld [vmem:[%s3739_s1 + $0x170] sm:$0xff]  ;;  %v2030_v40 = vpack.c.bf16 %v85_v30, %v84_v29  ;;  %v103_v43 = vld [vmem:[%s3739_s1 + $0x288] sm:$0xff] }
  0x17   :  { %2021 = vmatpush3.bf16.msra.mxu1 %v2020_v5  ;;  %v452_v39 = vcombine.high %v450_v32, %v450_v32  ;;  %634 = vmatprep.mubr.f32.mxu0 %v451_v31  ;;  %v69_v41 = vld [vmem:[%s3739_s1 + $0x178] sm:$0xff]  ;;  %v134_v44 = vld [vmem:[%s3739_s1 + $0x380] sm:$0xff]  ;;  %v135_v45 = vld [vmem:[%s3739_s1 + $0x388] sm:$0xff]  ;;  %v2000_v46 = vpack.c.bf16 %v37_v37, %v36_v36  ;;  %v2034_v48 = vpack.c.bf16 %v103_v43, %v102_v42 }
  0x18   :  { %2023 = vmatprep.subr.bf16.mxu1 %v2022_v11  ;;  %v2032_v47 = vpack.c.bf16 %v69_v41, %v68_v38  ;;  %v86_v49 = vld [vmem:[%s3739_s1 + $0x200] sm:$0xff]  ;;  %v87_v50 = vld [vmem:[%s3739_s1 + $0x208] sm:$0xff]  ;;  %v2066_v52 = vpack.c.bf16 %v135_v45, %v134_v44  ;;  %v104_v54 = vld [vmem:[%s3739_s1 + $0x290] sm:$0xff] }
  0x19   :  { %1993 = vmatpush3.bf16.msra.mxu0 %v1992_v16  ;;  %704 = vmatprep.mubr.f32.mxu1 %v452_v39  ;;  %v118_v51 = vld [vmem:[%s3739_s1 + $0x300] sm:$0xff]  ;;  %v119_v53 = vld [vmem:[%s3739_s1 + $0x308] sm:$0xff]  ;;  %v105_v55 = vld [vmem:[%s3739_s1 + $0x298] sm:$0xff]  ;;  %v2036_v58 = vpack.c.bf16 %v87_v50, %v86_v49 }
  0x1a   :  { %1995 = vmatprep.subr.bf16.mxu0 %v1994_v19  ;;  %v136_v56 = vld [vmem:[%s3739_s1 + $0x390] sm:$0xff]  ;;  %v137_v57 = vld [vmem:[%s3739_s1 + $0x398] sm:$0xff]  ;;  %v2068_v59 = vpack.c.bf16 %v119_v53, %v118_v51  ;;  %v2038_v60 = vpack.c.bf16 %v105_v55, %v104_v54  ;;  %v106_v2 = vld [vmem:[%s3739_s1 + $0x2a0] sm:$0xff] }
  0x1b   :  { %2025 = vmatpush3.bf16.msra.mxu1 %v2024_v17  ;;  %v88_v61 = vld [vmem:[%s3739_s1 + $0x210] sm:$0xff]  ;;  %v89_v62 = vld [vmem:[%s3739_s1 + $0x218] sm:$0xff]  ;;  %v2070_v0 = vpack.c.bf16 %v137_v57, %v136_v56  ;;  %v107_v3 = vld [vmem:[%s3739_s1 + $0x2a8] sm:$0xff] }
  0x1c   :  { %2027 = vmatprep.subr.bf16.mxu1 %v2026_v25  ;;  %v120_v63 = vld [vmem:[%s3739_s1 + $0x310] sm:$0xff]  ;;  %v121_v1 = vld [vmem:[%s3739_s1 + $0x318] sm:$0xff]  ;;  %v138_v4 = vld [vmem:[%s3739_s1 + $0x3a0] sm:$0xff]  ;;  %v2040_v6 = vpack.c.bf16 %v89_v62, %v88_v61  ;;  %v2042_v8 = vpack.c.bf16 %v107_v3, %v106_v2 }
  0x1d   :  { %1997 = vmatpush3.bf16.msra.mxu0 %v1996_v33  ;;  %v139_v5 = vld [vmem:[%s3739_s1 + $0x3a8] sm:$0xff]  ;;  %v2072_v7 = vpack.c.bf16 %v121_v1, %v120_v63  ;;  %v90_v9 = vld [vmem:[%s3739_s1 + $0x220] sm:$0xff]  ;;  %v108_v15 = vld [vmem:[%s3739_s1 + $0x2b0] sm:$0xff] }
  0x1e   :  { %1999 = vmatprep.subr.bf16.mxu0 %v1998_v35  ;;  %v91_v11 = vld [vmem:[%s3739_s1 + $0x228] sm:$0xff]  ;;  %v122_v12 = vld [vmem:[%s3739_s1 + $0x320] sm:$0xff]  ;;  %v2074_v13 = vpack.c.bf16 %v139_v5, %v138_v4  ;;  %v109_v16 = vld [vmem:[%s3739_s1 + $0x2b8] sm:$0xff] }
  0x1f   :  { %2029 = vmatpush3.bf16.msra.mxu1 %v2028_v34  ;;  %v123_v14 = vld [vmem:[%s3739_s1 + $0x328] sm:$0xff]  ;;  %v140_v17 = vld [vmem:[%s3739_s1 + $0x3b0] sm:$0xff]  ;;  %v141_v18 = vld [vmem:[%s3739_s1 + $0x3b8] sm:$0xff]  ;;  %v2044_v19 = vpack.c.bf16 %v91_v11, %v90_v9  ;;  %v2046_v22 = vpack.c.bf16 %v109_v16, %v108_v15 }
  0x20   :  { %2031 = vmatprep.subr.bf16.mxu1 %v2030_v40  ;;  %v92_v20 = vld [vmem:[%s3739_s1 + $0x230] sm:$0xff]  ;;  %v2076_v21 = vpack.c.bf16 %v123_v14, %v122_v12  ;;  %v125_v25 = vld [vmem:[%s3739_s1 + $0x338] sm:$0xff]  ;;  %v2078_v26 = vpack.c.bf16 %v141_v18, %v140_v17  ;;  %v110_v27 = vld [vmem:[%s3739_s1 + $0x2c0] sm:$0xff] }
  0x21   :  { %2001 = vmatpush3.bf16.msra.mxu0 %v2000_v46  ;;  %v124_v24 = vld [vmem:[%s3739_s1 + $0x330] sm:$0xff]  ;;  %v111_v28 = vld [vmem:[%s3739_s1 + $0x2c8] sm:$0xff]  ;;  %v142_v30 = vld [vmem:[%s3739_s1 + $0x3c0] sm:$0xff] }
  0x22   :  { %2035 = vmatprep.subr.bf16.mxu0 %v2034_v48  ;;  %v16_v29 = vld [vmem:[%s3738_s0 + $0x8] sm:$0xff]  ;;  %v2080_v35 = vpack.c.bf16 %v125_v25, %v124_v24  ;;  %v2050_v36 = vpack.c.bf16 %v111_v28, %v110_v27  ;;  %v94_v37 = vld [vmem:[%s3739_s1 + $0x240] sm:$0xff]  ;;  %v112_v44 = vld [vmem:[%s3739_s1 + $0x2d0] sm:$0xff] }
  0x23   :  { %2033 = vmatpush3.bf16.msra.mxu1 %v2032_v47  ;;  %v143_v31 = vld [vmem:[%s3739_s1 + $0x3c8] sm:$0xff]  ;;  %v453_v33 = vcombine.high %v16_v29, %v16_v29  ;;  %v126_v39 = vld [vmem:[%s3739_s1 + $0x340] sm:$0xff]  ;;  %v113_v45 = vld [vmem:[%s3739_s1 + $0x2d8] sm:$0xff] }
  0x24   :  { %2067 = vmatprep.subr.bf16.mxu1 %v2066_v52  ;;  %635 = vmatmul.mubr.f32.vlgmr.msra.gmra.mrb[0].mxu0 %v443_v23  ;;  %v93_v23 = vld [vmem:[%s3739_s1 + $0x238] sm:$0xff]  ;;  %v95_v38 = vld [vmem:[%s3739_s1 + $0x248] sm:$0xff]  ;;  %v2082_v42 = vpack.c.bf16 %v143_v31, %v142_v30  ;;  %v144_v46 = vld [vmem:[%s3739_s1 + $0x3d0] sm:$0xff]  ;;  %v2054_v51 = vpack.c.bf16 %v113_v45, %v112_v44 }
  0x25   :  { %2037 = vmatpush3.bf16.msra.mxu0 %v2036_v58  ;;  %v2048_v34 = vpack.c.bf16 %v93_v23, %v92_v20  ;;  %v2763_v41 = vrot.slane %v453_v33, %v2582_v10  ;;  %v127_v43 = vld [vmem:[%s3739_s1 + $0x348] sm:$0xff]  ;;  %v145_v47 = vld [vmem:[%s3739_s1 + $0x3d8] sm:$0xff]  ;;  %v2052_v49 = vpack.c.bf16 %v95_v38, %v94_v37  ;;  %v96_v52 = vld [vmem:[%s3739_s1 + $0x250] sm:$0xff] }
  0x26   :  { %705 = vmatmul.mubr.f32.vlgmr.msra.gmra.mrb[0].mxu1 %v450_v32  ;;  %2039 = vmatprep.subr.bf16.mxu0 %v2038_v60  ;;  %v2749_v32 = vrot.slane %v16_v29, %v2582_v10  ;;  %v2084_v50 = vpack.c.bf16 %v127_v43, %v126_v39  ;;  %v97_v53 = vld [vmem:[%s3739_s1 + $0x258] sm:$0xff]  ;;  %v128_v54 = vld [vmem:[%s3739_s1 + $0x350] sm:$0xff]  ;;  %v2086_v55 = vpack.c.bf16 %v145_v47, %v144_v46  ;;  %v114_v57 = vld [vmem:[%s3739_s1 + $0x2e0] sm:$0xff] }
  0x27   :  { %2069 = vmatpush3.bf16.msra.mxu1 %v2068_v59  ;;  %v469_v48 = vcombine.high %v2763_v41, %v2763_v41  ;;  %v129_v56 = vld [vmem:[%s3739_s1 + $0x358] sm:$0xff]  ;;  %v115_v58 = vld [vmem:[%s3739_s1 + $0x2e8] sm:$0xff]  ;;  %v146_v59 = vld [vmem:[%s3739_s1 + $0x3e0] sm:$0xff]  ;;  %v2056_v61 = vpack.c.bf16 %v97_v53, %v96_v52 }
  0x28   :  { %2071 = vmatprep.subr.bf16.mxu1 %v2070_v0  ;;  %v468_v40 = vcombine.high %v2749_v32, %v2749_v32  ;;  %v147_v60 = vld [vmem:[%s3739_s1 + $0x3e8] sm:$0xff]  ;;  %v2088_v62 = vpack.c.bf16 %v129_v56, %v128_v54  ;;  %v2058_v63 = vpack.c.bf16 %v115_v58, %v114_v57  ;;  %v98_v0 = vld [vmem:[%s3739_s1 + $0x260] sm:$0xff]  ;;  %v116_v5 = vld [vmem:[%s3739_s1 + $0x2f0] sm:$0xff] }
  0x29   :  { %2041 = vmatpush3.bf16.msra.mxu0 %v2040_v6  ;;  %844 = vmatprep.mubr.f32.mxu1 %v469_v48  ;;  %v99_v1 = vld [vmem:[%s3739_s1 + $0x268] sm:$0xff]  ;;  %v130_v2 = vld [vmem:[%s3739_s1 + $0x360] sm:$0xff]  ;;  %v2090_v3 = vpack.c.bf16 %v147_v60, %v146_v59  ;;  %v117_v6 = vld [vmem:[%s3739_s1 + $0x2f8] sm:$0xff] }
  0x2a   :  { %2043 = vmatprep.subr.bf16.mxu0 %v2042_v8  ;;  %774 = vmatprep.mubr.f32.mxu0 %v468_v40  ;;  %v131_v4 = vld [vmem:[%s3739_s1 + $0x368] sm:$0xff]  ;;  %v149_v8 = vld [vmem:[%s3739_s1 + $0x3f8] sm:$0xff]  ;;  %v2060_v9 = vpack.c.bf16 %v99_v1, %v98_v0  ;;  %v2062_v12 = vpack.c.bf16 %v117_v6, %v116_v5  ;;  %v132_v15 = vld [vmem:[%s3739_s1 + $0x370] sm:$0xff] }
  0x2b   :  { %2073 = vmatpush3.bf16.msra.mxu1 %v2072_v7  ;;  %v148_v7 = vld [vmem:[%s3739_s1 + $0x3f0] sm:$0xff]  ;;  %v2092_v11 = vpack.c.bf16 %v131_v4, %v130_v2  ;;  %v101_v14 = vld [vmem:[%s3739_s1 + $0x278] sm:$0xff]  ;;  %v166_v18 = vld [vmem:[%s3739_s1 + $0x480] sm:$0xff] }
  0x2c   :  { %2075 = vmatprep.subr.bf16.mxu1 %v2074_v13  ;;  %v100_v13 = vld [vmem:[%s3739_s1 + $0x270] sm:$0xff]  ;;  %v2094_v16 = vpack.c.bf16 %v149_v8, %v148_v7  ;;  %v133_v17 = vld [vmem:[%s3739_s1 + $0x378] sm:$0xff]  ;;  %v198_v20 = vld [vmem:[%s3739_s1 + $0x580] sm:$0xff] }
  0x2d   :  { %2045 = vmatpush3.bf16.msra.mxu0 %v2044_v19  ;;  %v167_v19 = vld [vmem:[%s3739_s1 + $0x488] sm:$0xff]  ;;  %v150_v23 = vld [vmem:[%s3739_s1 + $0x400] sm:$0xff]  ;;  %v2096_v24 = vpack.c.bf16 %v133_v17, %v132_v15  ;;  %v168_v30 = vld [vmem:[%s3739_s1 + $0x490] sm:$0xff] }
  0x2e   :  { %2047 = vmatprep.subr.bf16.mxu0 %v2046_v22  ;;  %v2064_v22 = vpack.c.bf16 %v101_v14, %v100_v13  ;;  %v2098_v25 = vpack.c.bf16 %v167_v19, %v166_v18  ;;  %v182_v27 = vld [vmem:[%s3739_s1 + $0x500] sm:$0xff]  ;;  %v183_v28 = vld [vmem:[%s3739_s1 + $0x508] sm:$0xff]  ;;  %v169_v31 = vld [vmem:[%s3739_s1 + $0x498] sm:$0xff] }
  0x2f   :  { %2077 = vmatpush3.bf16.msra.mxu1 %v2076_v21  ;;  %v199_v21 = vld [vmem:[%s3739_s1 + $0x588] sm:$0xff]  ;;  %v200_v33 = vld [vmem:[%s3739_s1 + $0x590] sm:$0xff]  ;;  %v2102_v38 = vpack.c.bf16 %v169_v31, %v168_v30  ;;  %v153_v40 = vld [vmem:[%s3739_s1 + $0x418] sm:$0xff] }
  0x30   :  { %2079 = vmatprep.subr.bf16.mxu1 %v2078_v26  ;;  %v151_v26 = vld [vmem:[%s3739_s1 + $0x408] sm:$0xff]  ;;  %v2130_v29 = vpack.c.bf16 %v199_v21, %v198_v20  ;;  %v17_v37 = vld [vmem:[%s3738_s0 + $0x10] sm:$0xff]  ;;  %v185_v46 = vld [vmem:[%s3739_s1 + $0x518] sm:$0xff] }
  0x31   :  { %2049 = vmatpush3.bf16.msra.mxu0 %v2048_v34  ;;  %v201_v34 = vld [vmem:[%s3739_s1 + $0x598] sm:$0xff]  ;;  %v152_v39 = vld [vmem:[%s3739_s1 + $0x410] sm:$0xff]  ;;  %v2891_v43 = vrot.slane %v17_v37, %v2582_v10  ;;  %v470_v44 = vcombine.high %v17_v37, %v17_v37  ;;  %v170_v47 = vld [vmem:[%s3739_s1 + $0x4a0] sm:$0xff] }
  0x32   :  { %2051 = vmatprep.subr.bf16.mxu0 %v2050_v36  ;;  %v2132_v36 = vpack.c.bf16 %v183_v28, %v182_v27  ;;  %v2134_v45 = vpack.c.bf16 %v201_v34, %v200_v33  ;;  %v171_v48 = vld [vmem:[%s3739_s1 + $0x4a8] sm:$0xff]  ;;  %v2104_v53 = vpack.c.bf16 %v153_v40, %v152_v39  ;;  %v186_v57 = vld [vmem:[%s3739_s1 + $0x520] sm:$0xff]  ;;  %v172_v60 = vld [vmem:[%s3739_s1 + $0x4b0] sm:$0xff] }
  0x33   :  { %2081 = vmatpush3.bf16.msra.mxu1 %v2080_v35  ;;  %v2100_v35 = vpack.c.bf16 %v151_v26, %v150_v23  ;;  %v2912_v52 = vrot.slane %v470_v44, %v2582_v10  ;;  %v2106_v54 = vpack.c.bf16 %v171_v48, %v170_v47  ;;  %v155_v56 = vld [vmem:[%s3739_s1 + $0x428] sm:$0xff]  ;;  %v157_v4 = vld [vmem:[%s3739_s1 + $0x438] sm:$0xff]  ;;  %v188_v5 = vld [vmem:[%s3739_s1 + $0x530] sm:$0xff] }
  0x34   :  { %2083 = vmatprep.subr.bf16.mxu1 %v2082_v42  ;;  %v184_v42 = vld [vmem:[%s3739_s1 + $0x510] sm:$0xff]  ;;  %v187_v59 = vld [vmem:[%s3739_s1 + $0x528] sm:$0xff]  ;;  %v189_v7 = vld [vmem:[%s3739_s1 + $0x538] sm:$0xff] }
  0x35   :  { %2053 = vmatpush3.bf16.msra.mxu0 %v2052_v49  ;;  %v202_v49 = vld [vmem:[%s3739_s1 + $0x5a0] sm:$0xff]  ;;  %v2140_v1 = vpack.c.bf16 %v187_v59, %v186_v57  ;;  %v2144_v14 = vpack.c.bf16 %v189_v7, %v188_v5  ;;  %v159_v17 = vld [vmem:[%s3739_s1 + $0x448] sm:$0xff]  ;;  %v176_v21 = vld [vmem:[%s3739_s1 + $0x4d0] sm:$0xff] }
  0x36   :  { %2055 = vmatprep.subr.bf16.mxu0 %v2054_v51  ;;  %v485_v51 = vcombine.high %v2891_v43, %v2891_v43  ;;  %v174_v8 = vld [vmem:[%s3739_s1 + $0x4c0] sm:$0xff]  ;;  %v191_v20 = vld [vmem:[%s3739_s1 + $0x548] sm:$0xff]  ;;  %v208_v23 = vld [vmem:[%s3739_s1 + $0x5d0] sm:$0xff] }
  0x37   :  { %2085 = vmatpush3.bf16.msra.mxu1 %v2084_v50  ;;  %v203_v50 = vld [vmem:[%s3739_s1 + $0x5a8] sm:$0xff]  ;;  %v190_v18 = vld [vmem:[%s3739_s1 + $0x540] sm:$0xff]  ;;  %v160_v28 = vld [vmem:[%s3739_s1 + $0x450] sm:$0xff] }
  0x38   :  { %2087 = vmatprep.subr.bf16.mxu1 %v2086_v55  ;;  %v154_v55 = vld [vmem:[%s3739_s1 + $0x420] sm:$0xff]  ;;  %v2138_v58 = vpack.c.bf16 %v203_v50, %v202_v49  ;;  %v2148_v26 = vpack.c.bf16 %v191_v20, %v190_v18  ;;  %v192_v30 = vld [vmem:[%s3739_s1 + $0x550] sm:$0xff]  ;;  %v193_v33 = vld [vmem:[%s3739_s1 + $0x558] sm:$0xff] }
  0x39   :  { %2057 = vmatpush3.bf16.msra.mxu0 %v2056_v61  ;;  %v173_v61 = vld [vmem:[%s3739_s1 + $0x4b8] sm:$0xff]  ;;  %v2108_v0 = vpack.c.bf16 %v155_v56, %v154_v55  ;;  %v178_v34 = vld [vmem:[%s3739_s1 + $0x4e0] sm:$0xff]  ;;  %v211_v37 = vld [vmem:[%s3739_s1 + $0x5e8] sm:$0xff]  ;;  %v2152_v39 = vpack.c.bf16 %v193_v33, %v192_v30 }
  0x3a   :  { %2059 = vmatprep.subr.bf16.mxu0 %v2058_v63  ;;  %v205_v63 = vld [vmem:[%s3739_s1 + $0x5b8] sm:$0xff]  ;;  %v2110_v2 = vpack.c.bf16 %v173_v61, %v172_v60  ;;  %v163_v44 = vld [vmem:[%s3739_s1 + $0x468] sm:$0xff]  ;;  %v180_v48 = vld [vmem:[%s3739_s1 + $0x4f0] sm:$0xff] }
  0x3b   :  { %2089 = vmatpush3.bf16.msra.mxu1 %v2088_v62  ;;  %v204_v62 = vld [vmem:[%s3739_s1 + $0x5b0] sm:$0xff]  ;;  %v195_v47 = vld [vmem:[%s3739_s1 + $0x568] sm:$0xff]  ;;  %v181_v49 = vld [vmem:[%s3739_s1 + $0x4f8] sm:$0xff] }
  0x3c   :  { %2091 = vmatprep.subr.bf16.mxu1 %v2090_v3  ;;  %v156_v3 = vld [vmem:[%s3739_s1 + $0x430] sm:$0xff]  ;;  %v2142_v6 = vpack.c.bf16 %v205_v63, %v204_v62  ;;  %v2126_v55 = vpack.c.bf16 %v181_v49, %v180_v48  ;;  %v165_v57 = vld [vmem:[%s3739_s1 + $0x478] sm:$0xff]  ;;  %v230_v60 = vld [vmem:[%s3739_s1 + $0x680] sm:$0xff] }
  0x3d   :  { %2061 = vmatpush3.bf16.msra.mxu0 %v2060_v9  ;;  %v175_v9 = vld [vmem:[%s3739_s1 + $0x4c8] sm:$0xff]  ;;  %v2112_v13 = vpack.c.bf16 %v157_v4, %v156_v3  ;;  %v212_v50 = vld [vmem:[%s3739_s1 + $0x5f0] sm:$0xff]  ;;  %v197_v59 = vld [vmem:[%s3739_s1 + $0x578] sm:$0xff] }
  0x3e   :  { %2063 = vmatprep.subr.bf16.mxu0 %v2062_v12  ;;  %v207_v12 = vld [vmem:[%s3739_s1 + $0x5c8] sm:$0xff]  ;;  %v2114_v15 = vpack.c.bf16 %v175_v9, %v174_v8  ;;  %v164_v56 = vld [vmem:[%s3739_s1 + $0x470] sm:$0xff]  ;;  %v262_v62 = vld [vmem:[%s3739_s1 + $0x780] sm:$0xff] }
  0x3f   :  { %2093 = vmatpush3.bf16.msra.mxu1 %v2092_v11  ;;  %v206_v11 = vld [vmem:[%s3739_s1 + $0x5c0] sm:$0xff]  ;;  %v231_v61 = vld [vmem:[%s3739_s1 + $0x688] sm:$0xff]  ;;  %v232_v9 = vld [vmem:[%s3739_s1 + $0x690] sm:$0xff] }
  0x40   :  { %2095 = vmatprep.subr.bf16.mxu1 %v2094_v16  ;;  %v158_v16 = vld [vmem:[%s3739_s1 + $0x440] sm:$0xff]  ;;  %v2146_v19 = vpack.c.bf16 %v207_v12, %v206_v11  ;;  %v263_v63 = vld [vmem:[%s3739_s1 + $0x788] sm:$0xff]  ;;  %v2162_v3 = vpack.c.bf16 %v231_v61, %v230_v60  ;;  %v233_v11 = vld [vmem:[%s3739_s1 + $0x698] sm:$0xff] }
  0x41   :  { %2065 = vmatpush3.bf16.msra.mxu0 %v2064_v22  ;;  %v177_v22 = vld [vmem:[%s3739_s1 + $0x4d8] sm:$0xff]  ;;  %v214_v4 = vld [vmem:[%s3739_s1 + $0x600] sm:$0xff]  ;;  %v215_v5 = vld [vmem:[%s3739_s1 + $0x608] sm:$0xff]  ;;  %v2194_v7 = vpack.c.bf16 %v263_v63, %v262_v62  ;;  %v2166_v18 = vpack.c.bf16 %v233_v11, %v232_v9 }
  0x42   :  { %2099 = vmatprep.subr.bf16.mxu0 %v2098_v25  ;;  %v2116_v25 = vpack.c.bf16 %v159_v17, %v158_v16  ;;  %v2118_v27 = vpack.c.bf16 %v177_v22, %v176_v21  ;;  %v247_v8 = vld [vmem:[%s3739_s1 + $0x708] sm:$0xff]  ;;  %v2164_v16 = vpack.c.bf16 %v215_v5, %v214_v4  ;;  %v217_v20 = vld [vmem:[%s3739_s1 + $0x618] sm:$0xff]  ;;  %v248_v21 = vld [vmem:[%s3739_s1 + $0x710] sm:$0xff] }
  0x43   :  { %2097 = vmatpush3.bf16.msra.mxu1 %v2096_v24  ;;  %v209_v24 = vld [vmem:[%s3739_s1 + $0x5d8] sm:$0xff]  ;;  %v252_v48 = vld [vmem:[%s3739_s1 + $0x730] sm:$0xff]  ;;  %v255_v61 = vld [vmem:[%s3739_s1 + $0x748] sm:$0xff] }
  0x44   :  { %2131 = vmatprep.subr.bf16.mxu1 %v2130_v29  ;;  %775 = vmatmul.mubr.f32.vlgmr.msra.gmra.mrb[2].mxu0 %v2749_v32  ;;  %v2136_v32 = vpack.c.bf16 %v185_v46, %v184_v42  ;;  %v161_v29 = vld [vmem:[%s3739_s1 + $0x458] sm:$0xff]  ;;  %v2150_v31 = vpack.c.bf16 %v209_v24, %v208_v23  ;;  %v162_v42 = vld [vmem:[%s3739_s1 + $0x460] sm:$0xff]  ;;  %v240_v62 = vld [vmem:[%s3739_s1 + $0x6d0] sm:$0xff] }
  0x45   :  { %2101 = vmatpush3.bf16.msra.mxu0 %v2100_v35  ;;  %914 = vmatprep.mubr.f32.mxu0 %v485_v51  ;;  %v179_v35 = vld [vmem:[%s3739_s1 + $0x4e8] sm:$0xff]  ;;  %v213_v51 = vld [vmem:[%s3739_s1 + $0x5f8] sm:$0xff]  ;;  %v234_v24 = vld [vmem:[%s3739_s1 + $0x6a0] sm:$0xff] }
  0x46   :  { %845 = vmatmul.mubr.f32.vlgmr.msra.gmra.mrb[2].mxu1 %v2763_v41  ;;  %2103 = vmatprep.subr.bf16.mxu0 %v2102_v38  ;;  %v486_v41 = vcombine.high %v2912_v52, %v2912_v52  ;;  %v2120_v38 = vpack.c.bf16 %v161_v29, %v160_v28  ;;  %v2122_v40 = vpack.c.bf16 %v179_v35, %v178_v34  ;;  %v249_v23 = vld [vmem:[%s3739_s1 + $0x718] sm:$0xff]  ;;  %v267_v28 = vld [vmem:[%s3739_s1 + $0x7a8] sm:$0xff]  ;;  %v250_v35 = vld [vmem:[%s3739_s1 + $0x720] sm:$0xff] }
  0x47   :  { %2133 = vmatpush3.bf16.msra.mxu1 %v2132_v36  ;;  %v210_v36 = vld [vmem:[%s3739_s1 + $0x5e0] sm:$0xff]  ;;  %v219_v34 = vld [vmem:[%s3739_s1 + $0x628] sm:$0xff]  ;;  %v241_v63 = vld [vmem:[%s3739_s1 + $0x6d8] sm:$0xff] }
  0x48   :  { %2135 = vmatprep.subr.bf16.mxu1 %v2134_v45  ;;  %984 = vmatprep.mubr.f32.mxu1 %v486_v41  ;;  %v194_v45 = vld [vmem:[%s3739_s1 + $0x560] sm:$0xff]  ;;  %v2154_v46 = vpack.c.bf16 %v211_v37, %v210_v36  ;;  %v196_v41 = vld [vmem:[%s3739_s1 + $0x570] sm:$0xff]  ;;  %v2182_v4 = vpack.c.bf16 %v241_v63, %v240_v62  ;;  %v257_v9 = vld [vmem:[%s3739_s1 + $0x758] sm:$0xff] }
  0x49   :  { %2105 = vmatpush3.bf16.msra.mxu0 %v2104_v53  ;;  %v2124_v53 = vpack.c.bf16 %v163_v44, %v162_v42  ;;  %v236_v37 = vld [vmem:[%s3739_s1 + $0x6b0] sm:$0xff]  ;;  %v242_v11 = vld [vmem:[%s3739_s1 + $0x6e0] sm:$0xff] }
  0x4a   :  { %2107 = vmatprep.subr.bf16.mxu0 %v2106_v54  ;;  %v2156_v54 = vpack.c.bf16 %v195_v47, %v194_v45  ;;  %v221_v47 = vld [vmem:[%s3739_s1 + $0x638] sm:$0xff]  ;;  %v224_v5 = vld [vmem:[%s3739_s1 + $0x650] sm:$0xff] }
  0x4b   :  { %2137 = vmatpush3.bf16.msra.mxu1 %v2136_v32  ;;  %v18_v32 = vld [vmem:[%s3738_s0 + $0x18] sm:$0xff]  ;;  %v312_v62 = vld [vmem:[%s3739_s1 + $0x910] sm:$0xff] }
  0x4c   :  { %2139 = vmatprep.subr.bf16.mxu1 %v2138_v58  ;;  %v2158_v58 = vpack.c.bf16 %v213_v51, %v212_v50  ;;  %v3083_v12 = vrot.slane %v18_v32, %v2582_v10  ;;  %v253_v50 = vld [vmem:[%s3739_s1 + $0x738] sm:$0xff]  ;;  %v238_v51 = vld [vmem:[%s3739_s1 + $0x6c0] sm:$0xff] }
  0x4d   :  { %2109 = vmatpush3.bf16.msra.mxu0 %v2108_v0  ;;  %v487_v0 = vcombine.high %v18_v32, %v18_v32  ;;  %v270_v32 = vld [vmem:[%s3739_s1 + $0x7c0] sm:$0xff] }
  0x4e   :  { %2111 = vmatprep.subr.bf16.mxu0 %v2110_v2  ;;  %v2160_v2 = vpack.c.bf16 %v197_v59, %v196_v41  ;;  %v222_v41 = vld [vmem:[%s3739_s1 + $0x640] sm:$0xff] }
  0x4f   :  { %2141 = vmatpush3.bf16.msra.mxu1 %v2140_v1  ;;  %v2128_v1 = vpack.c.bf16 %v165_v57, %v164_v56  ;;  %v2208_v56 = vpack.c.bf16 %v253_v50, %v252_v48  ;;  %v254_v59 = vld [vmem:[%s3739_s1 + $0x740] sm:$0xff]  ;;  %v279_v48 = vld [vmem:[%s3739_s1 + $0x808] sm:$0xff] }
  0x50   :  { %2143 = vmatprep.subr.bf16.mxu1 %v2142_v6  ;;  %v246_v6 = vld [vmem:[%s3739_s1 + $0x700] sm:$0xff] }
  0x51   :  { %2113 = vmatpush3.bf16.msra.mxu0 %v2112_v13  ;;  %v264_v13 = vld [vmem:[%s3739_s1 + $0x790] sm:$0xff]  ;;  %v2196_v17 = vpack.c.bf16 %v247_v8, %v246_v6  ;;  %v225_v6 = vld [vmem:[%s3739_s1 + $0x658] sm:$0xff] }
  0x52   :  { %2115 = vmatprep.subr.bf16.mxu0 %v2114_v15  ;;  %v3092_v15 = vrot.slane %v487_v0, %v2582_v10  ;;  %v272_v0 = vld [vmem:[%s3739_s1 + $0x7d0] sm:$0xff] }
  0x53   :  { %2145 = vmatpush3.bf16.msra.mxu1 %v2144_v14  ;;  %v265_v14 = vld [vmem:[%s3739_s1 + $0x798] sm:$0xff] }
  0x54   :  { %2147 = vmatprep.subr.bf16.mxu1 %v2146_v19  ;;  %v216_v19 = vld [vmem:[%s3739_s1 + $0x610] sm:$0xff]  ;;  %v2198_v22 = vpack.c.bf16 %v265_v14, %v264_v13  ;;  %v503_v29 = vcombine.high %v3092_v15, %v3092_v15  ;;  %v243_v13 = vld [vmem:[%s3739_s1 + $0x6e8] sm:$0xff]  ;;  %v274_v14 = vld [vmem:[%s3739_s1 + $0x7e0] sm:$0xff] }
  0x55   :  { %2117 = vmatpush3.bf16.msra.mxu0 %v2116_v25  ;;  %v235_v25 = vld [vmem:[%s3739_s1 + $0x6a8] sm:$0xff]  ;;  %v2168_v30 = vpack.c.bf16 %v217_v20, %v216_v19  ;;  %v2186_v19 = vpack.c.bf16 %v243_v13, %v242_v11  ;;  %v226_v20 = vld [vmem:[%s3739_s1 + $0x660] sm:$0xff] }
  0x56   :  { %2119 = vmatprep.subr.bf16.mxu0 %v2118_v27  ;;  %v266_v27 = vld [vmem:[%s3739_s1 + $0x7a0] sm:$0xff]  ;;  %v2170_v33 = vpack.c.bf16 %v235_v25, %v234_v24  ;;  %v259_v24 = vld [vmem:[%s3739_s1 + $0x768] sm:$0xff]  ;;  %v244_v25 = vld [vmem:[%s3739_s1 + $0x6f0] sm:$0xff] }
  0x57   :  { %2149 = vmatpush3.bf16.msra.mxu1 %v2148_v26  ;;  %v502_v26 = vcombine.high %v3083_v12, %v3083_v12  ;;  %v2202_v36 = vpack.c.bf16 %v267_v28, %v266_v27  ;;  %v276_v27 = vld [vmem:[%s3739_s1 + $0x7f0] sm:$0xff]  ;;  %v277_v28 = vld [vmem:[%s3739_s1 + $0x7f8] sm:$0xff]  ;;  %v283_v11 = vld [vmem:[%s3739_s1 + $0x828] sm:$0xff] }
  0x58   :  { %2151 = vmatprep.subr.bf16.mxu1 %v2150_v31  ;;  %v2200_v31 = vpack.c.bf16 %v249_v23, %v248_v21  ;;  %v227_v21 = vld [vmem:[%s3739_s1 + $0x668] sm:$0xff]  ;;  %v314_v13 = vld [vmem:[%s3739_s1 + $0x920] sm:$0xff] }
  0x59   :  { %2121 = vmatpush3.bf16.msra.mxu0 %v2120_v38  ;;  %v237_v38 = vld [vmem:[%s3739_s1 + $0x6b8] sm:$0xff] }
  0x5a   :  { %2123 = vmatprep.subr.bf16.mxu0 %v2122_v40  ;;  %v269_v40 = vld [vmem:[%s3739_s1 + $0x7b8] sm:$0xff]  ;;  %v2174_v45 = vpack.c.bf16 %v237_v38, %v236_v37  ;;  %v294_v37 = vld [vmem:[%s3739_s1 + $0x880] sm:$0xff]  ;;  %v295_v38 = vld [vmem:[%s3739_s1 + $0x888] sm:$0xff] }
  0x5b   :  { %2153 = vmatpush3.bf16.msra.mxu1 %v2152_v39  ;;  %v268_v39 = vld [vmem:[%s3739_s1 + $0x7b0] sm:$0xff] }
  0x5c   :  { %2155 = vmatprep.subr.bf16.mxu1 %v2154_v46  ;;  %v220_v46 = vld [vmem:[%s3739_s1 + $0x630] sm:$0xff]  ;;  %v2206_v49 = vpack.c.bf16 %v269_v40, %v268_v39  ;;  %v326_v39 = vld [vmem:[%s3739_s1 + $0x980] sm:$0xff]  ;;  %v327_v40 = vld [vmem:[%s3739_s1 + $0x988] sm:$0xff] }
  0x5d   :  { %2125 = vmatpush3.bf16.msra.mxu0 %v2124_v53  ;;  %v239_v53 = vld [vmem:[%s3739_s1 + $0x6c8] sm:$0xff]  ;;  %v2258_v50 = vpack.c.bf16 %v327_v40, %v326_v39 }
  0x5e   :  { %2127 = vmatprep.subr.bf16.mxu0 %v2126_v55  ;;  %v2176_v55 = vpack.c.bf16 %v221_v47, %v220_v46  ;;  %v2178_v57 = vpack.c.bf16 %v239_v53, %v238_v51  ;;  %v2226_v46 = vpack.c.bf16 %v295_v38, %v294_v37  ;;  %v278_v47 = vld [vmem:[%s3739_s1 + $0x800] sm:$0xff]  ;;  %v311_v51 = vld [vmem:[%s3739_s1 + $0x908] sm:$0xff]  ;;  %v296_v53 = vld [vmem:[%s3739_s1 + $0x890] sm:$0xff] }
  0x5f   :  { %2157 = vmatpush3.bf16.msra.mxu1 %v2156_v54  ;;  %v271_v54 = vld [vmem:[%s3739_s1 + $0x7c8] sm:$0xff] }
  0x60   :  { %2159 = vmatprep.subr.bf16.mxu1 %v2158_v58  ;;  %v223_v58 = vld [vmem:[%s3739_s1 + $0x648] sm:$0xff]  ;;  %v2210_v60 = vpack.c.bf16 %v271_v54, %v270_v32  ;;  %v297_v32 = vld [vmem:[%s3739_s1 + $0x898] sm:$0xff] }
  0x61   :  { %2129 = vmatpush3.bf16.msra.mxu0 %v2128_v1  ;;  %v273_v1 = vld [vmem:[%s3739_s1 + $0x7d8] sm:$0xff] }
  0x62   :  { %2163 = vmatprep.subr.bf16.mxu0 %v2162_v3  ;;  %v2212_v3 = vpack.c.bf16 %v255_v61, %v254_v59  ;;  %v2214_v8 = vpack.c.bf16 %v273_v1, %v272_v0  ;;  %v2230_v59 = vpack.c.bf16 %v297_v32, %v296_v53  ;;  %v281_v61 = vld [vmem:[%s3739_s1 + $0x818] sm:$0xff]  ;;  %v298_v1 = vld [vmem:[%s3739_s1 + $0x8a0] sm:$0xff] }
  0x63   :  { %2161 = vmatpush3.bf16.msra.mxu1 %v2160_v2  ;;  %v2180_v2 = vpack.c.bf16 %v223_v58, %v222_v41  ;;  %v2228_v41 = vpack.c.bf16 %v279_v48, %v278_v47  ;;  %v313_v0 = vld [vmem:[%s3739_s1 + $0x918] sm:$0xff] }
  0x64   :  { %2195 = vmatprep.subr.bf16.mxu1 %v2194_v7  ;;  %915 = vmatmul.mubr.f32.vlgmr.msra.gmra.mrb[4].mxu0 %v2891_v43  ;;  %v218_v43 = vld [vmem:[%s3739_s1 + $0x620] sm:$0xff]  ;;  %v256_v7 = vld [vmem:[%s3739_s1 + $0x750] sm:$0xff] }
  0x65   :  { %2165 = vmatpush3.bf16.msra.mxu0 %v2164_v16  ;;  %1054 = vmatprep.mubr.f32.mxu0 %v502_v26  ;;  %v2172_v42 = vpack.c.bf16 %v219_v34, %v218_v43  ;;  %v275_v16 = vld [vmem:[%s3739_s1 + $0x7e8] sm:$0xff]  ;;  %v245_v26 = vld [vmem:[%s3739_s1 + $0x6f8] sm:$0xff]  ;;  %v228_v43 = vld [vmem:[%s3739_s1 + $0x670] sm:$0xff] }
  0x66   :  { %985 = vmatmul.mubr.f32.vlgmr.msra.gmra.mrb[4].mxu1 %v2912_v52  ;;  %2167 = vmatprep.subr.bf16.mxu0 %v2166_v18  ;;  %v251_v52 = vld [vmem:[%s3739_s1 + $0x728] sm:$0xff]  ;;  %v2216_v18 = vpack.c.bf16 %v257_v9, %v256_v7  ;;  %v2218_v23 = vpack.c.bf16 %v275_v16, %v274_v14  ;;  %v229_v34 = vld [vmem:[%s3739_s1 + $0x678] sm:$0xff]  ;;  %v300_v16 = vld [vmem:[%s3739_s1 + $0x8b0] sm:$0xff] }
  0x67   :  { %2197 = vmatpush3.bf16.msra.mxu1 %v2196_v17  ;;  %1124 = vmatprep.mubr.f32.mxu1 %v503_v29  ;;  %v2204_v44 = vpack.c.bf16 %v251_v52, %v250_v35  ;;  %v2184_v17 = vpack.c.bf16 %v225_v6, %v224_v5  ;;  %v2188_v29 = vpack.c.bf16 %v227_v21, %v226_v20  ;;  %v260_v35 = vld [vmem:[%s3739_s1 + $0x770] sm:$0xff]  ;;  %v261_v52 = vld [vmem:[%s3739_s1 + $0x778] sm:$0xff]  ;;  %v331_v5 = vld [vmem:[%s3739_s1 + $0x9a8] sm:$0xff] }
  0x68   :  { %2199 = vmatprep.subr.bf16.mxu1 %v2198_v22  ;;  %v258_v22 = vld [vmem:[%s3739_s1 + $0x760] sm:$0xff] }
  0x69   :  { %2169 = vmatpush3.bf16.msra.mxu0 %v2168_v30  ;;  %v19_v30 = vld [vmem:[%s3738_s0 + $0x20] sm:$0xff] }
  0x6a   :  { %2171 = vmatprep.subr.bf16.mxu0 %v2170_v33  ;;  %v2190_v33 = vpack.c.bf16 %v245_v26, %v244_v25  ;;  %v3290_v54 = vrot.slane %v19_v30, %v2582_v10 }
  0x6b   :  { %2201 = vmatpush3.bf16.msra.mxu1 %v2200_v31  ;;  %v2220_v31 = vpack.c.bf16 %v259_v24, %v258_v22 }
  0x6c   :  { %2203 = vmatprep.subr.bf16.mxu1 %v2202_v36  ;;  %v2222_v36 = vpack.c.bf16 %v277_v28, %v276_v27 }
  0x6d   :  { %2173 = vmatpush3.bf16.msra.mxu0 %v2172_v42  ;;  %v504_v42 = vcombine.high %v19_v30, %v19_v30 }
  0x6e   :  { %2175 = vmatprep.subr.bf16.mxu0 %v2174_v45  ;;  %v2224_v45 = vpack.c.bf16 %v261_v52, %v260_v35 }
  0x6f   :  { %2205 = vmatpush3.bf16.msra.mxu1 %v2204_v44  ;;  %v2192_v44 = vpack.c.bf16 %v229_v34, %v228_v43 }
  0x70   :  { %2207 = vmatprep.subr.bf16.mxu1 %v2206_v49  ;;  %v310_v49 = vld [vmem:[%s3739_s1 + $0x900] sm:$0xff] }
  0x71   :  { %2177 = vmatpush3.bf16.msra.mxu0 %v2176_v55  ;;  %v328_v55 = vld [vmem:[%s3739_s1 + $0x990] sm:$0xff]  ;;  %v2260_v58 = vpack.c.bf16 %v311_v51, %v310_v49 }
  0x72   :  { %2179 = vmatprep.subr.bf16.mxu0 %v2178_v57  ;;  %v3299_v57 = vrot.slane %v504_v42, %v2582_v10 }
  0x73   :  { %2209 = vmatpush3.bf16.msra.mxu1 %v2208_v56  ;;  %v329_v56 = vld [vmem:[%s3739_s1 + $0x998] sm:$0xff] }
  0x74   :  { %2211 = vmatprep.subr.bf16.mxu1 %v2210_v60  ;;  %v280_v60 = vld [vmem:[%s3739_s1 + $0x810] sm:$0xff]  ;;  %v2262_v63 = vpack.c.bf16 %v329_v56, %v328_v55  ;;  %v520_v6 = vcombine.high %v3299_v57, %v3299_v57 }
  0x75   :  { %2181 = vmatpush3.bf16.msra.mxu0 %v2180_v2  ;;  %v299_v2 = vld [vmem:[%s3739_s1 + $0x8a8] sm:$0xff]  ;;  %v2232_v7 = vpack.c.bf16 %v281_v61, %v280_v60 }
  0x76   :  { %2183 = vmatprep.subr.bf16.mxu0 %v2182_v4  ;;  %v330_v4 = vld [vmem:[%s3739_s1 + $0x9a0] sm:$0xff]  ;;  %v2234_v9 = vpack.c.bf16 %v299_v2, %v298_v1 }
  0x77   :  { %2213 = vmatpush3.bf16.msra.mxu1 %v2212_v3  ;;  %v519_v3 = vcombine.high %v3290_v54, %v3290_v54  ;;  %v2266_v14 = vpack.c.bf16 %v331_v5, %v330_v4 }
  0x78   :  { %2215 = vmatprep.subr.bf16.mxu1 %v2214_v8  ;;  %v2264_v8 = vpack.c.bf16 %v313_v0, %v312_v62 }
  0x79   :  { %2185 = vmatpush3.bf16.msra.mxu0 %v2184_v17  ;;  %v301_v17 = vld [vmem:[%s3739_s1 + $0x8b8] sm:$0xff] }
  0x7a   :  { %2187 = vmatprep.subr.bf16.mxu0 %v2186_v19  ;;  %v333_v19 = vld [vmem:[%s3739_s1 + $0x9b8] sm:$0xff] }
  0x7b   :  { %2217 = vmatpush3.bf16.msra.mxu1 %v2216_v18  ;;  %v332_v18 = vld [vmem:[%s3739_s1 + $0x9b0] sm:$0xff] }
  0x7c   :  { %2219 = vmatprep.subr.bf16.mxu1 %v2218_v23 }
  0x7d   :  { %2189 = vmatpush3.bf16.msra.mxu0 %v2188_v29 }
  0x7e   :  { %2191 = vmatprep.subr.bf16.mxu0 %v2190_v33 }
  0x7f   :  { %2221 = vmatpush3.bf16.msra.mxu1 %v2220_v31 }
  0x80   :  { %2223 = vmatprep.subr.bf16.mxu1 %v2222_v36 }
  0x81   :  { %2193 = vmatpush3.bf16.msra.mxu0 %v2192_v44 }
  0x82   :  { %2227 = vmatprep.subr.bf16.mxu0 %v2226_v46 }
  0x83   :  { %2225 = vmatpush3.bf16.msra.mxu1 %v2224_v45 }
  0x84   :  { %2259 = vmatprep.subr.bf16.mxu1 %v2258_v50  ;;  %1055 = vmatmul.mubr.f32.vlgmr.msra.gmra.mrb[6].mxu0 %v3083_v12  ;;  %v282_v12 = vld [vmem:[%s3739_s1 + $0x820] sm:$0xff] }
  0x85   :  { %2229 = vmatpush3.bf16.msra.mxu0 %v2228_v41  ;;  %1194 = vmatprep.mubr.f32.mxu0 %v519_v3  ;;  %v2236_v20 = vpack.c.bf16 %v283_v11, %v282_v12 }
  0x86   :  { %1125 = vmatmul.mubr.f32.vlgmr.msra.gmra.mrb[6].mxu1 %v3092_v15  ;;  %2231 = vmatprep.subr.bf16.mxu0 %v2230_v59  ;;  %v315_v15 = vld [vmem:[%s3739_s1 + $0x928] sm:$0xff] }
  0x87   :  { %2261 = vmatpush3.bf16.msra.mxu1 %v2260_v58  ;;  %1264 = vmatprep.mubr.f32.mxu1 %v520_v6 }
  0x88   :  { %2263 = vmatprep.subr.bf16.mxu1 %v2262_v63 }
  0x89   :  { %2233 = vmatpush3.bf16.msra.mxu0 %v2232_v7 }
  0x8a   :  { %8 = vsyncpa [#allocation3], 0  ;;  %2235 = vmatprep.subr.bf16.mxu0 %v2234_v9  ;;  %v2268_v21 = vpack.c.bf16 %v315_v15, %v314_v13  ;;  %v2238_v22 = vpack.c.bf16 %v301_v17, %v300_v16  ;;  %v284_v23 = vld [vmem:[%s3739_s1 + $0x830] sm:$0xff]  ;;  %v285_v24 = vld [vmem:[%s3739_s1 + $0x838] sm:$0xff]  ;;  %v2270_v26 = vpack.c.bf16 %v333_v19, %v332_v18  ;;  %vm2415_vm0 = vmmov 0  }
  0x8b   :  { %2265 = vmatpush3.bf16.msra.mxu1 %v2264_v8  ;;  %v316_v25 = vld [vmem:[%s3739_s1 + $0x930] sm:$0xff]  ;;  %v317_v27 = vld [vmem:[%s3739_s1 + $0x938] sm:$0xff]  ;;  %v302_v28 = vld [vmem:[%s3739_s1 + $0x8c0] sm:$0xff]  ;;  %v2240_v33 = vpack.c.bf16 %v285_v24, %v284_v23  ;;  %vm1480_vm1 = vcmask 74752  }
  0x8c   :  { %2267 = vmatprep.subr.bf16.mxu1 %v2266_v14  ;;  %v303_v29 = vld [vmem:[%s3739_s1 + $0x8c8] sm:$0xff]  ;;  %v334_v30 = vld [vmem:[%s3739_s1 + $0x9c0] sm:$0xff]  ;;  %v2272_v43 = vpack.c.bf16 %v317_v27, %v316_v25  ;;  %v304_v39 = vld [vmem:[%s3739_s1 + $0x8d0] sm:$0xff] }
  0x8d   :  { %v335_v31 = vld [vmem:[%s3739_s1 + $0x9c8] sm:$0xff]  ;;  %2237 = vmatpush3.bf16.msra.mxu0 %v2236_v20  ;;  %v2242_v34 = vpack.c.bf16 %v303_v29, %v302_v28  ;;  %v286_v35 = vld [vmem:[%s3739_s1 + $0x840] sm:$0xff]  ;;  %v305_v40 = vld [vmem:[%s3739_s1 + $0x8d8] sm:$0xff] }
  0x8e   :  { %2239 = vmatprep.subr.bf16.mxu0 %v2238_v22  ;;  %v287_v36 = vld [vmem:[%s3739_s1 + $0x848] sm:$0xff]  ;;  %v318_v52 = vld [vmem:[%s3739_s1 + $0x940] sm:$0xff]  ;;  %v2274_v37 = vpack.c.bf16 %v335_v31, %v334_v30  ;;  %v336_v42 = vld [vmem:[%s3739_s1 + $0x9d0] sm:$0xff]  ;;  %v2246_v47 = vpack.c.bf16 %v305_v40, %v304_v39 }
  0x8f   :  { %2269 = vmatpush3.bf16.msra.mxu1 %v2268_v21  ;;  %v319_v38 = vld [vmem:[%s3739_s1 + $0x948] sm:$0xff]  ;;  %v337_v44 = vld [vmem:[%s3739_s1 + $0x9d8] sm:$0xff]  ;;  %v2244_v45 = vpack.c.bf16 %v287_v36, %v286_v35  ;;  %v288_v48 = vld [vmem:[%s3739_s1 + $0x850] sm:$0xff] }
  0x90   :  { %2271 = vmatprep.subr.bf16.mxu1 %v2270_v26  ;;  %v2276_v46 = vpack.c.bf16 %v319_v38, %v318_v52  ;;  %v289_v49 = vld [vmem:[%s3739_s1 + $0x858] sm:$0xff]  ;;  %v320_v50 = vld [vmem:[%s3739_s1 + $0x950] sm:$0xff]  ;;  %v2278_v51 = vpack.c.bf16 %v337_v44, %v336_v42  ;;  %v306_v32 = vld [vmem:[%s3739_s1 + $0x8e0] sm:$0xff] }
  0x91   :  { %2241 = vmatpush3.bf16.msra.mxu0 %v2240_v33  ;;  %v321_v53 = vld [vmem:[%s3739_s1 + $0x958] sm:$0xff]  ;;  %v307_v55 = vld [vmem:[%s3739_s1 + $0x8e8] sm:$0xff]  ;;  %v338_v56 = vld [vmem:[%s3739_s1 + $0x9e0] sm:$0xff]  ;;  %v2248_v58 = vpack.c.bf16 %v289_v49, %v288_v48 }
  0x92   :  { %2243 = vmatprep.subr.bf16.mxu0 %v2242_v34  ;;  %v339_v41 = vld [vmem:[%s3739_s1 + $0x9e8] sm:$0xff]  ;;  %v2280_v59 = vpack.c.bf16 %v321_v53, %v320_v50  ;;  %v2250_v60 = vpack.c.bf16 %v307_v55, %v306_v32  ;;  %v290_v61 = vld [vmem:[%s3739_s1 + $0x860] sm:$0xff]  ;;  %v308_v2 = vld [vmem:[%s3739_s1 + $0x8f0] sm:$0xff] }
  0x93   :  { %2273 = vmatpush3.bf16.msra.mxu1 %v2272_v43  ;;  %v291_v62 = vld [vmem:[%s3739_s1 + $0x868] sm:$0xff]  ;;  %v322_v63 = vld [vmem:[%s3739_s1 + $0x960] sm:$0xff]  ;;  %v2282_v0 = vpack.c.bf16 %v339_v41, %v338_v56  ;;  %v309_v3 = vld [vmem:[%s3739_s1 + $0x8f8] sm:$0xff] }
  0x94   :  { %2275 = vmatprep.subr.bf16.mxu1 %v2274_v37  ;;  %v323_v1 = vld [vmem:[%s3739_s1 + $0x968] sm:$0xff]  ;;  %v340_v4 = vld [vmem:[%s3739_s1 + $0x9f0] sm:$0xff]  ;;  %v341_v5 = vld [vmem:[%s3739_s1 + $0x9f8] sm:$0xff]  ;;  %v2252_v6 = vpack.c.bf16 %v291_v62, %v290_v61  ;;  %v2254_v9 = vpack.c.bf16 %v309_v3, %v308_v2 }
  0x95   :  { %2245 = vmatpush3.bf16.msra.mxu0 %v2244_v45  ;;  %v20_v7 = vld [vmem:[%s3738_s0 + $0x28] sm:$0xff]  ;;  %v2284_v8 = vpack.c.bf16 %v323_v1, %v322_v63  ;;  %v292_v12 = vld [vmem:[%s3739_s1 + $0x870] sm:$0xff]  ;;  %v293_v11 = vld [vmem:[%s3739_s1 + $0x878] sm:$0xff]  ;;  %v2286_v14 = vpack.c.bf16 %v341_v5, %v340_v4 }
  0x96   :  { %2247 = vmatprep.subr.bf16.mxu0 %v2246_v47  ;;  %v324_v13 = vld [vmem:[%s3739_s1 + $0x970] sm:$0xff]  ;;  %v325_v15 = vld [vmem:[%s3739_s1 + $0x978] sm:$0xff]  ;;  %v358_v16 = vld [vmem:[%s3739_s1 + $0xa80] sm:$0xff]  ;;  %v521_v20 = vcombine.high %v20_v7, %v20_v7  ;;  %v2256_v21 = vpack.c.bf16 %v293_v11, %v292_v12  ;;  %v3497_v31 = vrot.slane %v20_v7, %v2582_v10 }
  0x97   :  { %2277 = vmatpush3.bf16.msra.mxu1 %v2276_v46  ;;  %v359_v17 = vld [vmem:[%s3739_s1 + $0xa88] sm:$0xff]  ;;  %v390_v18 = vld [vmem:[%s3739_s1 + $0xb80] sm:$0xff]  ;;  %v2288_v22 = vpack.c.bf16 %v325_v15, %v324_v13  ;;  %v360_v29 = vld [vmem:[%s3739_s1 + $0xa90] sm:$0xff] }
  0x98   :  { %2279 = vmatprep.subr.bf16.mxu1 %v2278_v51  ;;  %v391_v19 = vld [vmem:[%s3739_s1 + $0xb88] sm:$0xff]  ;;  %v2290_v23 = vpack.c.bf16 %v359_v17, %v358_v16  ;;  %v342_v24 = vld [vmem:[%s3739_s1 + $0xa00] sm:$0xff]  ;;  %v361_v30 = vld [vmem:[%s3739_s1 + $0xa98] sm:$0xff]  ;;  %v3506_v34 = vrot.slane %v521_v20, %v2582_v10  ;;  %v536_v45 = vcombine.high %v3497_v31, %v3497_v31 }
  0x99   :  { %2249 = vmatpush3.bf16.msra.mxu0 %v2248_v58  ;;  %v343_v25 = vld [vmem:[%s3739_s1 + $0xa08] sm:$0xff]  ;;  %v374_v26 = vld [vmem:[%s3739_s1 + $0xb00] sm:$0xff]  ;;  %v2322_v27 = vpack.c.bf16 %v391_v19, %v390_v18  ;;  %v392_v33 = vld [vmem:[%s3739_s1 + $0xb90] sm:$0xff]  ;;  %v2294_v52 = vpack.c.bf16 %v361_v30, %v360_v29 }
  0x9a   :  { %2251 = vmatprep.subr.bf16.mxu0 %v2250_v60  ;;  %v375_v28 = vld [vmem:[%s3739_s1 + $0xb08] sm:$0xff]  ;;  %v393_v43 = vld [vmem:[%s3739_s1 + $0xb98] sm:$0xff]  ;;  %v2292_v35 = vpack.c.bf16 %v343_v25, %v342_v24  ;;  %v344_v37 = vld [vmem:[%s3739_s1 + $0xa10] sm:$0xff]  ;;  %v537_v48 = vcombine.high %v3506_v34, %v3506_v34 }
  0x9b   :  { %2281 = vmatpush3.bf16.msra.mxu1 %v2280_v59  ;;  %v2324_v36 = vpack.c.bf16 %v375_v28, %v374_v26  ;;  %v345_v38 = vld [vmem:[%s3739_s1 + $0xa18] sm:$0xff]  ;;  %v376_v39 = vld [vmem:[%s3739_s1 + $0xb10] sm:$0xff]  ;;  %v2326_v10 = vpack.c.bf16 %v393_v43, %v392_v33  ;;  %v362_v42 = vld [vmem:[%s3739_s1 + $0xaa0] sm:$0xff] }
  0x9c   :  { %2283 = vmatprep.subr.bf16.mxu1 %v2282_v0  ;;  %v377_v40 = vld [vmem:[%s3739_s1 + $0xb18] sm:$0xff]  ;;  %v363_v44 = vld [vmem:[%s3739_s1 + $0xaa8] sm:$0xff]  ;;  %v394_v46 = vld [vmem:[%s3739_s1 + $0xba0] sm:$0xff]  ;;  %v2296_v49 = vpack.c.bf16 %v345_v38, %v344_v37 }
  0x9d   :  { %2253 = vmatpush3.bf16.msra.mxu0 %v2252_v6  ;;  %v395_v47 = vld [vmem:[%s3739_s1 + $0xba8] sm:$0xff]  ;;  %v2328_v50 = vpack.c.bf16 %v377_v40, %v376_v39  ;;  %v2298_v51 = vpack.c.bf16 %v363_v44, %v362_v42  ;;  %v378_v32 = vld [vmem:[%s3739_s1 + $0xb20] sm:$0xff]  ;;  %v364_v56 = vld [vmem:[%s3739_s1 + $0xab0] sm:$0xff] }
  0x9e   :  { %2255 = vmatprep.subr.bf16.mxu0 %v2254_v9  ;;  %v347_v53 = vld [vmem:[%s3739_s1 + $0xa28] sm:$0xff]  ;;  %v2330_v55 = vpack.c.bf16 %v395_v47, %v394_v46  ;;  %v365_v41 = vld [vmem:[%s3739_s1 + $0xab8] sm:$0xff]  ;;  %v396_v58 = vld [vmem:[%s3739_s1 + $0xbb0] sm:$0xff] }
  0x9f   :  { %2285 = vmatpush3.bf16.msra.mxu1 %v2284_v8  ;;  %v397_v59 = vld [vmem:[%s3739_s1 + $0xbb8] sm:$0xff]  ;;  %v2302_v62 = vpack.c.bf16 %v365_v41, %v364_v56  ;;  %v348_v63 = vld [vmem:[%s3739_s1 + $0xa30] sm:$0xff]  ;;  %v366_v4 = vld [vmem:[%s3739_s1 + $0xac0] sm:$0xff] }
  0xa0   :  { %2287 = vmatprep.subr.bf16.mxu1 %v2286_v14  ;;  %v349_v0 = vld [vmem:[%s3739_s1 + $0xa38] sm:$0xff]  ;;  %v380_v1 = vld [vmem:[%s3739_s1 + $0xb30] sm:$0xff]  ;;  %v2334_v2 = vpack.c.bf16 %v397_v59, %v396_v58  ;;  %v367_v5 = vld [vmem:[%s3739_s1 + $0xac8] sm:$0xff]  ;;  %v2414_v59 = vmov 0.0|0.0  }
  0xa1   :  { %2257 = vmatpush3.bf16.msra.mxu0 %v2256_v21  ;;  %v381_v3 = vld [vmem:[%s3739_s1 + $0xb38] sm:$0xff]  ;;  %v398_v6 = vld [vmem:[%s3739_s1 + $0xbc0] sm:$0xff]  ;;  %v399_v7 = vld [vmem:[%s3739_s1 + $0xbc8] sm:$0xff]  ;;  %v2304_v8 = vpack.c.bf16 %v349_v0, %v348_v63  ;;  %v2306_v12 = vpack.c.bf16 %v367_v5, %v366_v4 }
  0xa2   :  { %2291 = vmatprep.subr.bf16.mxu0 %v2290_v23  ;;  %v2336_v9 = vpack.c.bf16 %v381_v3, %v380_v1  ;;  %v350_v11 = vld [vmem:[%s3739_s1 + $0xa40] sm:$0xff]  ;;  %v351_v13 = vld [vmem:[%s3739_s1 + $0xa48] sm:$0xff]  ;;  %v2338_v15 = vpack.c.bf16 %v399_v7, %v398_v6  ;;  %v368_v17 = vld [vmem:[%s3739_s1 + $0xad0] sm:$0xff]  ;;  %v2416_v1 = vmov 0.0  }
  0xa3   :  { %2289 = vmatpush3.bf16.msra.mxu1 %v2288_v22  ;;  %v382_v14 = vld [vmem:[%s3739_s1 + $0xb40] sm:$0xff]  ;;  %v383_v16 = vld [vmem:[%s3739_s1 + $0xb48] sm:$0xff]  ;;  %v369_v18 = vld [vmem:[%s3739_s1 + $0xad8] sm:$0xff]  ;;  %v2308_v21 = vpack.c.bf16 %v351_v13, %v350_v11 }
  0xa4   :  { %2323 = vmatprep.subr.bf16.mxu1 %v2322_v27  ;;  %1195 = vmatmul.mubr.f32.vlgmr.msra.gmra.mrb[8].mxu0 %v3290_v54  ;;  %v346_v54 = vld [vmem:[%s3739_s1 + $0xa20] sm:$0xff]  ;;  %v400_v19 = vld [vmem:[%s3739_s1 + $0xbd0] sm:$0xff]  ;;  %v401_v20 = vld [vmem:[%s3739_s1 + $0xbd8] sm:$0xff]  ;;  %v2340_v22 = vpack.c.bf16 %v383_v16, %v382_v14  ;;  %v2310_v23 = vpack.c.bf16 %v369_v18, %v368_v17 }
  0xa5   :  { %2293 = vmatpush3.bf16.msra.mxu0 %v2292_v35  ;;  %1334 = vmatprep.mubr.f32.mxu0 %v536_v45  ;;  %v2300_v60 = vpack.c.bf16 %v347_v53, %v346_v54  ;;  %v352_v24 = vld [vmem:[%s3739_s1 + $0xa50] sm:$0xff]  ;;  %v353_v25 = vld [vmem:[%s3739_s1 + $0xa58] sm:$0xff]  ;;  %v2342_v27 = vpack.c.bf16 %v401_v20, %v400_v19  ;;  %v370_v29 = vld [vmem:[%s3739_s1 + $0xae0] sm:$0xff] }
  0xa6   :  { %1265 = vmatmul.mubr.f32.vlgmr.msra.gmra.mrb[8].mxu1 %v3299_v57  ;;  %2295 = vmatprep.subr.bf16.mxu0 %v2294_v52  ;;  %v379_v57 = vld [vmem:[%s3739_s1 + $0xb28] sm:$0xff]  ;;  %v384_v26 = vld [vmem:[%s3739_s1 + $0xb50] sm:$0xff]  ;;  %v385_v28 = vld [vmem:[%s3739_s1 + $0xb58] sm:$0xff]  ;;  %v2312_v35 = vpack.c.bf16 %v353_v25, %v352_v24 }
  0xa7   :  { %2325 = vmatpush3.bf16.msra.mxu1 %v2324_v36  ;;  %1404 = vmatprep.mubr.f32.mxu1 %v537_v48  ;;  %v2332_v61 = vpack.c.bf16 %v379_v57, %v378_v32  ;;  %v371_v30 = vld [vmem:[%s3739_s1 + $0xae8] sm:$0xff]  ;;  %v402_v33 = vld [vmem:[%s3739_s1 + $0xbe0] sm:$0xff]  ;;  %v2344_v36 = vpack.c.bf16 %v385_v28, %v384_v26  ;;  %v372_v42 = vld [vmem:[%s3739_s1 + $0xaf0] sm:$0xff] }
  0xa8   :  { %2327 = vmatprep.subr.bf16.mxu1 %v2326_v10  ;;  %v403_v43 = vld [vmem:[%s3739_s1 + $0xbe8] sm:$0xff]  ;;  %v2314_v52 = vpack.c.bf16 %v371_v30, %v370_v29  ;;  %v354_v37 = vld [vmem:[%s3739_s1 + $0xa60] sm:$0xff]  ;;  %v373_v44 = vld [vmem:[%s3739_s1 + $0xaf8] sm:$0xff] }
  0xa9   :  { %2297 = vmatpush3.bf16.msra.mxu0 %v2296_v49  ;;  %v355_v38 = vld [vmem:[%s3739_s1 + $0xa68] sm:$0xff]  ;;  %v386_v39 = vld [vmem:[%s3739_s1 + $0xb60] sm:$0xff]  ;;  %v2346_v10 = vpack.c.bf16 %v403_v43, %v402_v33  ;;  %v404_v45 = vld [vmem:[%s3739_s1 + $0xbf0] sm:$0xff]  ;;  %v2318_v49 = vpack.c.bf16 %v373_v44, %v372_v42 }
  0xaa   :  { %2299 = vmatprep.subr.bf16.mxu0 %v2298_v51  ;;  %v387_v40 = vld [vmem:[%s3739_s1 + $0xb68] sm:$0xff]  ;;  %v405_v46 = vld [vmem:[%s3739_s1 + $0xbf8] sm:$0xff]  ;;  %v2316_v47 = vpack.c.bf16 %v355_v38, %v354_v37  ;;  %v388_v53 = vld [vmem:[%s3739_s1 + $0xb70] sm:$0xff] }
  0xab   :  { %2329 = vmatpush3.bf16.msra.mxu1 %v2328_v50  ;;  %v2348_v48 = vpack.c.bf16 %v387_v40, %v386_v39  ;;  %v356_v50 = vld [vmem:[%s3739_s1 + $0xa70] sm:$0xff]  ;;  %v357_v51 = vld [vmem:[%s3739_s1 + $0xa78] sm:$0xff]  ;;  %v2350_v54 = vpack.c.bf16 %v405_v46, %v404_v45  ;;  %v406_v56 = vld [vmem:[%s3739_s1 + $0xc00] sm:$0xff] }
  0xac   :  { %2331 = vmatprep.subr.bf16.mxu1 %v2330_v55  ;;  %v389_v32 = vld [vmem:[%s3739_s1 + $0xb78] sm:$0xff]  ;;  %v2320_v55 = vpack.c.bf16 %v357_v51, %v356_v50  ;;  %v407_v41 = vld [vmem:[%s3739_s1 + $0xc08] sm:$0xff]  ;;  %v410_v63 = vld [vmem:[%s3739_s1 + $0xc20] sm:$0xff] }
  0xad   :  { %2301 = vmatpush3.bf16.msra.mxu0 %v2300_v60  ;;  %v2352_v57 = vpack.c.bf16 %v389_v32, %v388_v53  ;;  %v2355_v58 = vpack.c.bf16 %v407_v41, %v406_v56  ;;  %v408_v60 = vld [vmem:[%s3739_s1 + $0xc10] sm:$0xff]  ;;  %v411_v0 = vld [vmem:[%s3739_s1 + $0xc28] sm:$0xff]  ;;  %v414_v4 = vld [vmem:[%s3739_s1 + $0xc40] sm:$0xff] }
  0xae   :  { %2303 = vmatprep.subr.bf16.mxu0 %v2302_v62  ;;  %v415_v5 = vld [vmem:[%s3739_s1 + $0xc48] sm:$0xff]  ;;  %v416_v7 = vld [vmem:[%s3739_s1 + $0xc50] sm:$0xff]  ;;  %v1496_v19 = vld [vmem:[%s3740_s2] ss:$0 sm:$0xff] }
  0xaf   :  { %2333 = vmatpush3.bf16.msra.mxu1 %v2332_v61  ;;  %v409_v61 = vld [vmem:[%s3739_s1 + $0xc18] sm:$0xff]  ;;  %v2367_v6 = vpack.c.bf16 %v415_v5, %v414_v4  ;;  %v419_v11 = vld [vmem:[%s3739_s1 + $0xc68] sm:$0xff]  ;;  %v420_v14 = vld [vmem:[%s3739_s1 + $0xc70] sm:$0xff] }
  0xb0   :  { %2335 = vmatprep.subr.bf16.mxu1 %v2334_v2  ;;  %v2358_v62 = vpack.c.bf16 %v409_v61, %v408_v60  ;;  %v2361_v2 = vpack.c.bf16 %v411_v0, %v410_v63  ;;  %v1497_v17 = vld.sshfl [vmem:[%s3738_s0 + $0x30] sm:$0x3 pattern:$0x76325410]  ;;  %s2417_s0 = smov [#allocation2]  }
  0xb1   :  { %2305 = vmatpush3.bf16.msra.mxu0 %v2304_v8  ;;  %v417_v8 = vld [vmem:[%s3739_s1 + $0xc58] sm:$0xff] }
  0xb2   :  { %2307 = vmatprep.subr.bf16.mxu0 %v2306_v12  ;;  %v418_v12 = vld [vmem:[%s3739_s1 + $0xc60] sm:$0xff] }
  0xb3   :  { %2337 = vmatpush3.bf16.msra.mxu1 %v2336_v9  ;;  %v2370_v9 = vpack.c.bf16 %v417_v8, %v416_v7  ;;  %v2373_v13 = vpack.c.bf16 %v419_v11, %v418_v12 }
  0xb4   :  { %2339 = vmatprep.subr.bf16.mxu1 %v2338_v15  ;;  %v421_v15 = vld [vmem:[%s3739_s1 + $0xc78] sm:$0xff] }
  0xb5   :  { %2309 = vmatpush3.bf16.msra.mxu0 %v2308_v21  ;;  %v2376_v16 = vpack.c.bf16 %v421_v15, %v420_v14 }
  0xb6   :  { %2311 = vmatprep.subr.bf16.mxu0 %v2310_v23 }
  0xb7   :  { %2341 = vmatpush3.bf16.msra.mxu1 %v2340_v22 }
  0xb8   :  { %2343 = vmatprep.subr.bf16.mxu1 %v2342_v27 }
  0xb9   :  { %2313 = vmatpush3.bf16.msra.mxu0 %v2312_v35 }
  0xba   :  { %2315 = vmatprep.subr.bf16.mxu0 %v2314_v52 }
  0xbb   :  { %2345 = vmatpush3.bf16.msra.mxu1 %v2344_v36 }
  0xbc   :  { %2347 = vmatprep.subr.bf16.mxu1 %v2346_v10 }
  0xbd   :  { %2317 = vmatpush3.bf16.msra.mxu0 %v2316_v47 }
  0xbe   :  { %2319 = vmatprep.subr.bf16.mxu0 %v2318_v49 }
  0xbf   :  { %2349 = vmatpush3.bf16.msra.mxu1 %v2348_v48 }
  0xc0   :  { %2351 = vmatprep.subr.bf16.mxu1 %v2350_v54 }
  0xc1   :  { %2321 = vmatpush3.bf16.msra.mxu0 %v2320_v55 }
  0xc2   :  { %2354 = vmatprep.subr.bf16.mxu0 %v2414_v59 }
  0xc3   :  { %2353 = vmatpush3.bf16.msra.mxu1 %v2352_v57 }
  0xc4   :  { %1335 = vmatmul.mubr.f32.vlgmr.msra.gmra.mrb[10].mxu0 %v3497_v31  ;;  %v412_v31 = vld [vmem:[%s3739_s1 + $0xc30] sm:$0xff] }
  0xc5   :  { %2356 = vmatpush3.bf16.msra.mxu0 %v2355_v58  ;;  %1967 = vmatprep.mubr.msk.f32.mxu0 %vm2415_vm0, %v2416_v1 }
  0xc6   :  { %1405 = vmatmul.mubr.f32.vlgmr.msra.gmra.mrb[10].mxu1 %v3506_v34  ;;  %2357 = vmatprep.subr.bf16.mxu0 %v2414_v59  ;;  %v413_v34 = vld [vmem:[%s3739_s1 + $0xc38] sm:$0xff]  ;;  %s1488_s1 = sshll.u32 %s2417_s0, 4  ;;  %s1489_s1 = int_to_ptr.vmem [resolvable:$true] %s1488_s1 }
  0xc7   :  { %v2364_v3 = vpack.c.bf16 %v413_v34, %v412_v31  ;;  %s2389_s2 = scalar_lea.vmem %s1489_s1, 32  ;;  %p2394_p1 = scmp.lt.s32.totalorder %s1489_s1, %s1489_s1 }
  0xc8   :  { %p2390_p0 = scmp.ne.s32.totalorder %s1489_s1, %s2389_s2  ;;  %p2395_p2 = scmp.lt.s32.totalorder %s2389_s2, %s2389_s2 }
  0xc9   :  { %2359 = vmatpush3.bf16.msra.mxu0 %v2358_v62 }
  0xca   :  { %2360 = vmatprep.subr.bf16.mxu0 %v2414_v59  ;;  %p2396_p3 = por %p2395_p2, %p2394_p1 }
  0xcc   :  { %p2397_p4 = pnand %p2396_p3, %p2390_p0 }
  0xcd   :  { %2362 = vmatpush3.bf16.msra.mxu0 %v2361_v2 }
  0xce   :  { %2363 = vmatprep.subr.bf16.mxu0 %v2414_v59 }
  0xd1   :  { %2365 = vmatpush3.bf16.msra.mxu0 %v2364_v3 }
  0xd2   :  { %2366 = vmatprep.subr.bf16.mxu0 %v2414_v59 }
  0xd5   :  { %2368 = vmatpush3.bf16.msra.mxu0 %v2367_v6 }
  0xd6   :  { %2369 = vmatprep.subr.bf16.mxu0 %v2414_v59 }
  0xd9   :  { %2371 = vmatpush3.bf16.msra.mxu0 %v2370_v9 }
  0xda   :  { %2372 = vmatprep.subr.bf16.mxu0 %v2414_v59 }
  0xdd   :  { %2374 = vmatpush3.bf16.msra.mxu0 %v2373_v13 }
  0xde   :  { %2375 = vmatprep.subr.bf16.mxu0 %v2414_v59 }
  0xe1   :  { %2377 = vmatpush3.bf16.msra.mxu0 %v2376_v16 }
  0xe4   :  { %1968 = vmatmul.mubr.f32.vlgmr.msra.gmra.mrb[12].mxu0 %v1497_v17 }
  0xf7   :  { %v1530_v18 = vpop.f32.mrb[0].mxu0 }
  0xf8   :  { %v1531_v20 = vpop.f32.mrb[1].mxu0 }
  0xf9   :  { %v1565_v21 = vpop.f32.mrb[0].mxu1  ;;  %v1532_v22 = vadd.f32 %v1531_v20, %v1530_v18 }
  0xfa   :  { %v1566_v23 = vpop.f32.mrb[1].mxu1 }
  0xfb   :  { %v1567_v24 = vadd.f32 %v1566_v23, %v1565_v21  ;;  %v637_v25 = vadd.f32 %v1532_v22, %v1496_v19 }
  0xfd   :  { %v707_v26 = vadd.f32 %v1567_v24, %v637_v25 }
 0x117   :  { %v1600_v27 = vpop.f32.mrb[2].mxu0 }
 0x118   :  { %v1601_v28 = vpop.f32.mrb[3].mxu0 }
 0x119   :  { %v1635_v29 = vpop.f32.mrb[2].mxu1  ;;  %v1602_v30 = vadd.f32 %v1601_v28, %v1600_v27 }
 0x11a   :  { %v1636_v33 = vpop.f32.mrb[3].mxu1 }
 0x11b   :  { %v1637_v43 = vadd.f32 %v1636_v33, %v1635_v29  ;;  %v777_v35 = vadd.f32 %v1602_v30, %v707_v26 }
 0x11d   :  { %v847_v36 = vadd.f32 %v1637_v43, %v777_v35 }
 0x137   :  { %v1670_v52 = vpop.f32.mrb[4].mxu0 }
 0x138   :  { %v1671_v37 = vpop.f32.mrb[5].mxu0 }
 0x139   :  { %v1705_v38 = vpop.f32.mrb[4].mxu1  ;;  %v1672_v39 = vadd.f32 %v1671_v37, %v1670_v52 }
 0x13a   :  { %v1706_v10 = vpop.f32.mrb[5].mxu1 }
 0x13b   :  { %v1707_v40 = vadd.f32 %v1706_v10, %v1705_v38  ;;  %v917_v42 = vadd.f32 %v1672_v39, %v847_v36 }
 0x13d   :  { %v987_v44 = vadd.f32 %v1707_v40, %v917_v42 }
 0x157   :  { %v1740_v45 = vpop.f32.mrb[6].mxu0 }
 0x158   :  { %v1741_v46 = vpop.f32.mrb[7].mxu0 }
 0x159   :  { %v1775_v47 = vpop.f32.mrb[6].mxu1  ;;  %v1742_v48 = vadd.f32 %v1741_v46, %v1740_v45 }
 0x15a   :  { %v1776_v49 = vpop.f32.mrb[7].mxu1 }
 0x15b   :  { %v1777_v50 = vadd.f32 %v1776_v49, %v1775_v47  ;;  %v1057_v51 = vadd.f32 %v1742_v48, %v987_v44 }
 0x15d   :  { %v1127_v54 = vadd.f32 %v1777_v50, %v1057_v51 }
 0x177   :  { %v1810_v53 = vpop.f32.mrb[8].mxu0 }
 0x178   :  { %v1811_v32 = vpop.f32.mrb[9].mxu0 }
 0x179   :  { %v1845_v55 = vpop.f32.mrb[8].mxu1  ;;  %v1812_v57 = vadd.f32 %v1811_v32, %v1810_v53 }
 0x17a   :  { %v1846_v56 = vpop.f32.mrb[9].mxu1 }
 0x17b   :  { %v1847_v41 = vadd.f32 %v1846_v56, %v1845_v55  ;;  %v1197_v58 = vadd.f32 %v1812_v57, %v1127_v54 }
 0x17d   :  { %v1267_v59 = vadd.f32 %v1847_v41, %v1197_v58 }
 0x197   :  { %v1880_v60 = vpop.f32.mrb[10].mxu0 }
 0x198   :  { %v1881_v61 = vpop.f32.mrb[11].mxu0 }
 0x199   :  { %v1915_v62 = vpop.f32.mrb[10].mxu1  ;;  %v1882_v63 = vadd.f32 %v1881_v61, %v1880_v60 }
 0x19a   :  { %v1916_v0 = vpop.f32.mrb[11].mxu1 }
 0x19b   :  { %v1917_v1 = vadd.f32 %v1916_v0, %v1915_v62  ;;  %v1337_v2 = vadd.f32 %v1882_v63, %v1267_v59 }
 0x19d   :  { %v1407_v31 = vadd.f32 %v1917_v1, %v1337_v2 }
 0x1b7   :  { %v1476_v34 = vpop.f32.mrb[12].mxu0 }
 0x1b8   :  { %v1477_v3 = vadd.f32 %v1476_v34, %v1407_v31  ;;  %v1969_v4 = vpop.f32.mrb[13].mxu0 }
 0x1ba   :  { %1481 = vst.msk [vmem:[#allocation2] sm:$0x3] %vm1480_vm1, %v1477_v3 }
 0x1bb   :  { %2400 = shalt.err (!%p2397_p4)
}
 0x1bc   :  { %s2401_s20 = scalar_lea.hbm %s3741_s3, 32 }
 0x1bd   :  { %p2402_p5 = scmp.ne.s32.totalorder %s3741_s3, %s2401_s20  ;;  %p2405_p6 = scmp.lt.u32.totalorder %s2401_s20, %s3741_s3 }
 0x1bf   :  { %p2407_p7 = pnand %p2405_p6, %p2402_p5 }
 0x1c1   :  { %2410 = shalt.err (!%p2407_p7)
}
 0x1c2   :  { %1491 = dma.vmem_to_hbm [thread:$0]  %s1489_s1, 32, %s3741_s3, [#allocation3]  }
 0x1c3   :  { %2411 = dma.done.wait [#allocation3], 32  }
 0x1c4   :  { %2412 = vsyncadd [#allocation3], 4294967264 }
 0x1c5   :  { %1495 = vsyncpa [#allocation3], 1 }

// kernel: simple_cnn_forward.2
= control target key start
LH: loop header
LB: loop body
LE: loop exit
PB: predicated region body
PF: predicated region fallthrough
CT: control target
= control target key end

     0   :  { %s9706_s21 = smov 0   ;;  %s13225_s0 = inlined_call_operand.vmem [shape: f32[2,122,48], index: 0, kind: input, shape index: {}]   ;;  %s13226_s1 = inlined_call_operand.vmem [shape: f32[16,48,64], index: 1, kind: input, shape index: {}]   ;;  %s13227_s2 = inlined_call_operand.vmem [shape: f32[1,64], index: 2, kind: input, shape index: {}]   ;;  %s13228_s3 = inlined_call_operand.vmem [shape: f32[100,1], index: 3, kind: input, shape index: {}]   ;;  %s13229_s4 = inlined_call_operand.vmem [shape: f32[16,64,32], index: 4, kind: input, shape index: {}]   ;;  %s13230_s5 = inlined_call_operand.vmem [shape: f32[1,32], index: 5, kind: input, shape index: {}]   ;;  %s13231_s6 = inlined_call_operand.vmem [shape: f32[2,100,32], index: 6, kind: output, shape index: {}]  }
   0x1 LB: > { %s6304_s22 = sadd.s32 4294967295, %s9665_s21   ;;  %p6308_p0 = scmp.ge.s32.totalorder %s9665_s21, 1  ;;  %s9665_s21 = sphi %s9706_s21, %s16_s21  }
   0x2   : > { %p212_p1 = scmp.lt.s32.totalorder %s9665_s21, 3 }
   0x4   : > { %p213_p2 = pnand %p6308_p0, %p212_p1 }
   0x5   : > { %v6312_v0 = vld [vmem:[%s13226_s1 + $0x30] sm:$0xff] (!%p213_p2)  ;;  %v6313_v1 = vld [vmem:[%s13226_s1 + $0x38] sm:$0xff] (!%p213_p2)  ;;  %v278_v2 = vld [vmem:[%s13226_s1] sm:$0xff] (!%p213_p2)  ;;  %v9667_v3 = vmov (!%p213_p2), 0.0|0.0   ;;  %p242_p3 = scmp.lt.s32.totalorder (!%p213_p2), %s6304_s22, 1  ;;  %vm9668_vm0 = vmmov (!%p213_p2), 0  }
   0x6   : > { %216 = sbr.rel (%p213_p2) target bundleno = 1246 (0x4de), region = 44  ;;  %9279 = vmatprep.subr.bf16.mxu0 (!%p213_p2), %v9667_v3  ;;  %v9280_v4 = vpack.c.bf16 (!%p213_p2), %v6313_v1, %v6312_v0  ;;  %9288 = vmatprep.subr.bf16.mxu1 (!%p213_p2), %v9667_v3  ;;  %v279_v5 = vld [vmem:[%s13226_s1 + $0x8] sm:$0xff] (!%p213_p2)  ;;  %v6314_v6 = vld [vmem:[%s13226_s1 + $0x40] sm:$0xff] (!%p213_p2)  ;;  %v280_v9 = vld [vmem:[%s13226_s1 + $0x10] sm:$0xff] (!%p213_p2)  ;;  %v9669_v11 = vmov (!%p213_p2), 0.0   ;;  %vm304_vm1 = vcmask (!%p213_p2), 392192  }
   0x7   : > { %v6315_v7 = vld [vmem:[%s13226_s1 + $0x48] sm:$0xff] (!%p213_p2)  ;;  %v9289_v8 = vpack.c.bf16 (!%p213_p2), %v279_v5, %v278_v2  ;;  %v281_v10 = vld [vmem:[%s13226_s1 + $0x18] sm:$0xff] (!%p213_p2)  ;;  %7595 = vmatprep.mubr.msk.f32.mxu0 (!%p213_p2), %vm9668_vm0, %v9669_v11  ;;  %7646 = vmatprep.mubr.msk.f32.mxu1 (!%p213_p2), %vm9668_vm0, %v9669_v11  ;;  %v6316_v14 = vld [vmem:[%s13226_s1 + $0x50] sm:$0xff] (!%p213_p2)  ;;  %vm3257_vm2 = vcmask (!%p213_p2), 523264   ;;  %vm3287_vm3 = vcmask (!%p213_p2), 519168   ;;  %vm3273_vm4 = vcmask (!%p213_p2), 517120  }
   0x8   : > { %9281 = vmatpush3.bf16.msra.mxu0 (!%p213_p2), %v9280_v4  ;;  %v9283_v12 = vpack.c.bf16 (!%p213_p2), %v6315_v7, %v6314_v6  ;;  %v9292_v13 = vpack.c.bf16 (!%p213_p2), %v281_v10, %v280_v9  ;;  %v6317_v15 = vld [vmem:[%s13226_s1 + $0x58] sm:$0xff] (!%p213_p2)  ;;  %v282_v16 = vld [vmem:[%s13226_s1 + $0x20] sm:$0xff] (!%p213_p2)  ;;  %v283_v17 = vld [vmem:[%s13226_s1 + $0x28] sm:$0xff] (!%p213_p2)  ;;  %3259 = vst.msk [vmem:[#allocation2 + $0x8] sm:$0xff] (!%p213_p2), %vm3257_vm2, %v9669_v11  ;;  %vm6234_vm5 = vcmask (!%p213_p2), 261120   ;;  %vm6247_vm6 = vcmask (!%p213_p2), 257024  }
   0x9   : > { %9290 = vmatpush3.bf16.msra.mxu1 (!%p213_p2), %v9289_v8  ;;  %9282 = vmatprep.subr.bf16.mxu0 (!%p213_p2), %v9667_v3  ;;  %v9286_v18 = vpack.c.bf16 (!%p213_p2), %v6317_v15, %v6316_v14  ;;  %v9295_v19 = vpack.c.bf16 (!%p213_p2), %v283_v17, %v282_v16  ;;  %v6344_v20 = vld [vmem:[%s13226_s1 + $0x60] sm:$0xff] (!%p213_p2)  ;;  %v6345_v21 = vld [vmem:[%s13226_s1 + $0x68] sm:$0xff] (!%p213_p2)  ;;  %v6363_v22 = vld [vmem:[%s13226_s1 + $0x90] sm:$0xff] (!%p213_p2)  ;;  %3260 = vst.msk [vmem:[#allocation2 + $0x10] sm:$0xff] (!%p213_p2), %vm3257_vm2, %v9669_v11 }
   0xa   : > { %9291 = vmatprep.subr.bf16.mxu1 (!%p213_p2), %v9667_v3  ;;  %v6364_v23 = vld [vmem:[%s13226_s1 + $0x98] sm:$0xff] (!%p213_p2)  ;;  %v9298_v25 = vpack.c.bf16 (!%p213_p2), %v6345_v21, %v6344_v20  ;;  %v6346_v28 = vld [vmem:[%s13226_s1 + $0x70] sm:$0xff] (!%p213_p2)  ;;  %v6365_v30 = vld [vmem:[%s13226_s1 + $0xa0] sm:$0xff] (!%p213_p2)  ;;  %3258 = vst.msk [vmem:[#allocation2] sm:$0xff] (!%p213_p2), %vm3257_vm2, %v9669_v11 }
   0xb   : > { %v9307_v27 = vpack.c.bf16 (!%p213_p2), %v6364_v23, %v6363_v22  ;;  %v6347_v29 = vld [vmem:[%s13226_s1 + $0x78] sm:$0xff] (!%p213_p2)  ;;  %v6366_v31 = vld [vmem:[%s13226_s1 + $0xa8] sm:$0xff] (!%p213_p2)  ;;  %v6348_v36 = vld [vmem:[%s13226_s1 + $0x80] sm:$0xff] (!%p213_p2)  ;;  %3261 = vst.msk [vmem:[#allocation2 + $0x18] sm:$0xff] (!%p213_p2), %vm3257_vm2, %v9669_v11 }
   0xc   : > { %9284 = vmatpush3.bf16.msra.mxu0 (!%p213_p2), %v9283_v12  ;;  %v9301_v34 = vpack.c.bf16 (!%p213_p2), %v6347_v29, %v6346_v28  ;;  %v9310_v35 = vpack.c.bf16 (!%p213_p2), %v6366_v31, %v6365_v30  ;;  %v6349_v37 = vld [vmem:[%s13226_s1 + $0x88] sm:$0xff] (!%p213_p2)  ;;  %v6367_v38 = vld [vmem:[%s13226_s1 + $0xb0] sm:$0xff] (!%p213_p2)  ;;  %v6368_v39 = vld [vmem:[%s13226_s1 + $0xb8] sm:$0xff] (!%p213_p2)  ;;  %3262 = vst.msk [vmem:[#allocation2 + $0x20] sm:$0xff] (!%p213_p2), %vm3257_vm2, %v9669_v11 }
   0xd   : > { %s13233_s22 = smov (!%p242_p3, %s6304_s22), 1  ;;  %9293 = vmatpush3.bf16.msra.mxu1 %v9292_v13  ;;  %9285 = vmatprep.subr.bf16.mxu0 %v9667_v3  ;;  %v9304_v42 = vpack.c.bf16 %v6349_v37, %v6348_v36  ;;  %v9313_v43 = vpack.c.bf16 %v6368_v39, %v6367_v38  ;;  %v6389_v0 = vld [vmem:[%s13226_s1 + $0xf0] sm:$0xff]  ;;  %v6390_v1 = vld [vmem:[%s13226_s1 + $0xf8] sm:$0xff]  ;;  %v6383_v2 = vld [vmem:[%s13226_s1 + $0xc0] sm:$0xff]  ;;  %3263 = vst.msk [vmem:[#allocation2 + $0x28] sm:$0xff] %vm3257_vm2, %v9669_v11 }
   0xe   : > { %s6942_s25 = sshll.u32 %s13233_s22, 7  ;;  %9294 = vmatprep.subr.bf16.mxu1 %v9667_v3  ;;  %v6384_v4 = vld [vmem:[%s13226_s1 + $0xc8] sm:$0xff]  ;;  %v9316_v6 = vpack.c.bf16 %v6390_v1, %v6389_v0  ;;  %v6391_v9 = vld [vmem:[%s13226_s1 + $0x100] sm:$0xff]  ;;  %v6385_v12 = vld [vmem:[%s13226_s1 + $0xd0] sm:$0xff]  ;;  %3264 = vst.msk [vmem:[#allocation2 + $0x30] sm:$0xff] %vm3257_vm2, %v9669_v11  ;;  %s9615_s8 = smul.u32 104, %s13233_s22 }
   0xf   : > { %s9765_s28 = scalar_lea.vmem %s13225_s0, %s6942_s25  ;;  %v9325_v8 = vpack.c.bf16 %v6384_v4, %v6383_v2  ;;  %v6392_v10 = vld [vmem:[%s13226_s1 + $0x108] sm:$0xff]  ;;  %v6386_v13 = vld [vmem:[%s13226_s1 + $0xd8] sm:$0xff]  ;;  %v6387_v20 = vld [vmem:[%s13226_s1 + $0xe0] sm:$0xff]  ;;  %3265 = vst.msk [vmem:[#allocation2 + $0x38] sm:$0xff] %vm3257_vm2, %v9669_v11 }
  0x10   : > { %9287 = vmatpush3.bf16.msra.mxu0 %v9286_v18  ;;  %v9781_v24 = vld [vmem:[%s9765_s28 + $0x1] sm:$0xff]  ;;  %v9802_v32 = vld [vmem:[%s9765_s28 + $0x9] sm:$0xff]  ;;  %v9829_v40 = vld [vmem:[%s9765_s28 + $0x11] sm:$0xff]  ;;  %v9319_v16 = vpack.c.bf16 %v6392_v10, %v6391_v9  ;;  %v9328_v17 = vpack.c.bf16 %v6386_v13, %v6385_v12  ;;  %3266 = vst.msk [vmem:[#allocation2 + $0x40] sm:$0xff] %vm3257_vm2, %v9669_v11  ;;  %s13163_s11 = scalar_lea.vmem %s13231_s6, %s9615_s8 }
  0x11   : > { %9296 = vmatpush3.bf16.msra.mxu1 %v9295_v19  ;;  %9297 = vmatprep.subr.bf16.mxu0 %v9667_v3  ;;  %v265_v26 = vld [vmem:[%s9765_s28] sm:$0xff]  ;;  %v266_v33 = vld [vmem:[%s9765_s28 + $0x8] sm:$0xff]  ;;  %v267_v41 = vld [vmem:[%s9765_s28 + $0x10] sm:$0xff]  ;;  %3267 = vst.msk [vmem:[#allocation2 + $0x48] sm:$0xff] %vm3257_vm2, %v9669_v11 }
  0x12   : > { %9306 = vmatprep.subr.bf16.mxu1 %v9667_v3  ;;  %v9842_v44 = vld [vmem:[%s9765_s28 + $0x19] sm:$0xff]  ;;  %v9855_v46 = vld [vmem:[%s9765_s28 + $0x21] sm:$0xff]  ;;  %v9866_v48 = vld [vmem:[%s9765_s28 + $0x29] sm:$0xff]  ;;  %3268 = vst.msk [vmem:[#allocation2 + $0x50] sm:$0xff] %vm3257_vm2, %v9669_v11 }
  0x13   : > { %7596 = vmatmul.mubr.msk.f32.vlgmr.msra.gmra.mrb[0].mxu0 %vm304_vm1, %v9781_v24  ;;  %v268_v45 = vld [vmem:[%s9765_s28 + $0x18] sm:$0xff]  ;;  %v269_v47 = vld [vmem:[%s9765_s28 + $0x20] sm:$0xff]  ;;  %v270_v49 = vld [vmem:[%s9765_s28 + $0x28] sm:$0xff]  ;;  %3269 = vst.msk [vmem:[#allocation2 + $0x58] sm:$0xff] %vm3257_vm2, %v9669_v11 }
  0x14   : > { %7647 = vmatmul.mubr.msk.f32.vlgmr.msra.gmra.mrb[0].mxu1 %vm304_vm1, %v265_v26  ;;  %9299 = vmatpush3.bf16.msra.mxu0 %v9298_v25  ;;  %v9877_v50 = vld [vmem:[%s9765_s28 + $0x31] sm:$0xff]  ;;  %v9888_v52 = vld [vmem:[%s9765_s28 + $0x39] sm:$0xff]  ;;  %v9899_v54 = vld [vmem:[%s9765_s28 + $0x41] sm:$0xff]  ;;  %3270 = vst.msk [vmem:[#allocation2 + $0x60] sm:$0xff] %vm3257_vm2, %v9669_v11 }
  0x15   : > { %7598 = vmatprep.mubr.msk.f32.mxu0 %vm9668_vm0, %v9669_v11  ;;  %9308 = vmatpush3.bf16.msra.mxu1 %v9307_v27  ;;  %v271_v51 = vld [vmem:[%s9765_s28 + $0x30] sm:$0xff]  ;;  %v272_v53 = vld [vmem:[%s9765_s28 + $0x38] sm:$0xff]  ;;  %v273_v55 = vld [vmem:[%s9765_s28 + $0x40] sm:$0xff]  ;;  %3271 = vst.msk [vmem:[#allocation2 + $0x68] sm:$0xff] %vm3257_vm2, %v9669_v11 }
  0x16   : > { %7649 = vmatprep.mubr.msk.f32.mxu1 %vm9668_vm0, %v9669_v11  ;;  %9300 = vmatprep.subr.bf16.mxu0 %v9667_v3  ;;  %v9910_v56 = vld [vmem:[%s9765_s28 + $0x49] sm:$0xff]  ;;  %v9921_v58 = vld [vmem:[%s9765_s28 + $0x51] sm:$0xff]  ;;  %v9932_v60 = vld [vmem:[%s9765_s28 + $0x59] sm:$0xff]  ;;  %3272 = vst.msk [vmem:[#allocation2 + $0x70] sm:$0xff] %vm3257_vm2, %v9669_v11 }
  0x17   : > { %7599 = vmatmul.mubr.msk.f32.gmra.mrb[2].mxu0 %vm304_vm1, %v9802_v32  ;;  %9309 = vmatprep.subr.bf16.mxu1 %v9667_v3  ;;  %v274_v57 = vld [vmem:[%s9765_s28 + $0x48] sm:$0xff]  ;;  %v275_v59 = vld [vmem:[%s9765_s28 + $0x50] sm:$0xff]  ;;  %v276_v61 = vld [vmem:[%s9765_s28 + $0x58] sm:$0xff]  ;;  %3274 = vst.msk [vmem:[#allocation2 + $0x78] sm:$0x3] %vm3273_vm4, %v9669_v11 }
  0x18   : > { %7650 = vmatmul.mubr.msk.f32.gmra.mrb[2].mxu1 %vm304_vm1, %v266_v33  ;;  %7601 = vmatprep.mubr.msk.f32.mxu0 %vm9668_vm0, %v9669_v11  ;;  %v9943_v62 = vld [vmem:[%s9765_s28 + $0x61] sm:$0xf]  ;;  %v9966_v5 = vld [vmem:[%s9765_s28 + $0xa] sm:$0xff]  ;;  %v9990_v14 = vld [vmem:[%s9765_s28 + $0x12] sm:$0xff] }
  0x19   : > { %7652 = vmatprep.mubr.msk.f32.mxu1 %vm9668_vm0, %v9669_v11  ;;  %9302 = vmatpush3.bf16.msra.mxu0 %v9301_v34  ;;  %v277_v63 = vld [vmem:[%s9765_s28 + $0x60] sm:$0xf]  ;;  %v9971_v7 = vld [vmem:[%s9765_s28 + $0xb] sm:$0xff]  ;;  %v9995_v15 = vld [vmem:[%s9765_s28 + $0x13] sm:$0xff] }
  0x1a   : > { %9311 = vmatpush3.bf16.msra.mxu1 %v9310_v35  ;;  %9303 = vmatprep.subr.bf16.mxu0 %v9667_v3  ;;  %v6393_v18 = vld [vmem:[%s13226_s1 + $0x110] sm:$0xff]  ;;  %v6394_v19 = vld [vmem:[%s13226_s1 + $0x118] sm:$0xff]  ;;  %v6388_v21 = vld [vmem:[%s13226_s1 + $0xe8] sm:$0xff] }
  0x1b   : > { %7602 = vmatmul.mubr.msk.f32.gmra.mrb[4].mxu0 %vm304_vm1, %v9829_v40  ;;  %9312 = vmatprep.subr.bf16.mxu1 %v9667_v3  ;;  %v10020_v22 = vld [vmem:[%s9765_s28 + $0x1a] sm:$0xff]  ;;  %v9322_v25 = vpack.c.bf16 %v6394_v19, %v6393_v18  ;;  %v9331_v26 = vpack.c.bf16 %v6388_v21, %v6387_v20  ;;  %v10036_v27 = vld [vmem:[%s9765_s28 + $0x22] sm:$0xff]  ;;  %v10052_v29 = vld [vmem:[%s9765_s28 + $0x2a] sm:$0xff] }
  0x1c   : > { %7653 = vmatmul.mubr.msk.f32.gmra.mrb[4].mxu1 %vm304_vm1, %v267_v41  ;;  %7604 = vmatprep.mubr.msk.f32.mxu0 %vm9668_vm0, %v9669_v11  ;;  %v10025_v23 = vld [vmem:[%s9765_s28 + $0x1b] sm:$0xff]  ;;  %v10041_v28 = vld [vmem:[%s9765_s28 + $0x23] sm:$0xff]  ;;  %v10057_v30 = vld [vmem:[%s9765_s28 + $0x2b] sm:$0xff] }
  0x1d   : > { %7655 = vmatprep.mubr.msk.f32.mxu1 %vm9668_vm0, %v9669_v11  ;;  %9305 = vmatpush3.bf16.msra.mxu0 %v9304_v42  ;;  %v10066_v31 = vld [vmem:[%s9765_s28 + $0x32] sm:$0xff]  ;;  %v10080_v34 = vld [vmem:[%s9765_s28 + $0x3a] sm:$0xff]  ;;  %v10094_v36 = vld [vmem:[%s9765_s28 + $0x42] sm:$0xff] }
  0x1e   : > { %9314 = vmatpush3.bf16.msra.mxu1 %v9313_v43  ;;  %9315 = vmatprep.subr.bf16.mxu0 %v9667_v3  ;;  %v10071_v33 = vld [vmem:[%s9765_s28 + $0x33] sm:$0xff]  ;;  %v10085_v35 = vld [vmem:[%s9765_s28 + $0x3b] sm:$0xff]  ;;  %v10099_v37 = vld [vmem:[%s9765_s28 + $0x43] sm:$0xff] }
  0x1f   : > { %7605 = vmatmul.mubr.msk.f32.gmra.mrb[6].mxu0 %vm304_vm1, %v9842_v44  ;;  %9324 = vmatprep.subr.bf16.mxu1 %v9667_v3  ;;  %v10108_v38 = vld [vmem:[%s9765_s28 + $0x4a] sm:$0xff]  ;;  %v10122_v41 = vld [vmem:[%s9765_s28 + $0x52] sm:$0xff]  ;;  %v10136_v43 = vld [vmem:[%s9765_s28 + $0x5a] sm:$0xff] }
  0x20   : > { %7656 = vmatmul.mubr.msk.f32.gmra.mrb[6].mxu1 %vm304_vm1, %v268_v45  ;;  %7607 = vmatprep.mubr.msk.f32.mxu0 %vm9668_vm0, %v9669_v11  ;;  %v10113_v39 = vld [vmem:[%s9765_s28 + $0x4b] sm:$0xff]  ;;  %v10127_v42 = vld [vmem:[%s9765_s28 + $0x53] sm:$0xff]  ;;  %v10141_v45 = vld [vmem:[%s9765_s28 + $0x5b] sm:$0xff] }
  0x21   : > { %7658 = vmatprep.mubr.msk.f32.mxu1 %vm9668_vm0, %v9669_v11  ;;  %v6423_v2 = vld [vmem:[%s13226_s1 + $0x130] sm:$0xff]  ;;  %v6424_v4 = vld [vmem:[%s13226_s1 + $0x138] sm:$0xff]  ;;  %v6425_v12 = vld [vmem:[%s13226_s1 + $0x140] sm:$0xff] }
  0x22   : > { %v9337_v9 = vpack.c.bf16 %v6424_v4, %v6423_v2  ;;  %v6444_v13 = vld [vmem:[%s13226_s1 + $0x170] sm:$0xff]  ;;  %v10434_v4 = vld [vmem:[%s9765_s28 + $0x3c] sm:$0xff] }
  0x23   : > { %7608 = vmatmul.mubr.msk.f32.gmra.mrb[8].mxu0 %vm304_vm1, %v9855_v46  ;;  %v10359_v19 = vld [vmem:[%s9765_s28 + $0x14] sm:$0xff] }
  0x24   : > { %7659 = vmatmul.mubr.msk.f32.gmra.mrb[8].mxu1 %vm304_vm1, %v269_v47  ;;  %7610 = vmatprep.mubr.msk.f32.mxu0 %vm9668_vm0, %v9669_v11  ;;  %v10150_v47 = vld [vmem:[%s9765_s28 + $0x62] sm:$0xff]  ;;  %v10423_v2 = vld [vmem:[%s9765_s28 + $0x34] sm:$0xff] }
  0x25   : > { %7661 = vmatprep.mubr.msk.f32.mxu1 %vm9668_vm0, %v9669_v11 }
  0x27   : > { %7611 = vmatmul.mubr.msk.f32.gmra.mrb[10].mxu0 %vm304_vm1, %v9866_v48 }
  0x28   : > { %7662 = vmatmul.mubr.msk.f32.gmra.mrb[10].mxu1 %vm304_vm1, %v270_v49  ;;  %7613 = vmatprep.mubr.msk.f32.mxu0 %vm9668_vm0, %v9669_v11  ;;  %v10155_v49 = vld [vmem:[%s9765_s28 + $0x63] sm:$0xff] }
  0x29   : > { %7664 = vmatprep.mubr.msk.f32.mxu1 %vm9668_vm0, %v9669_v11 }
  0x2b   : > { %7614 = vmatmul.mubr.msk.f32.gmra.mrb[12].mxu0 %vm304_vm1, %v9877_v50 }
  0x2c   : > { %7665 = vmatmul.mubr.msk.f32.gmra.mrb[12].mxu1 %vm304_vm1, %v271_v51  ;;  %7616 = vmatprep.mubr.msk.f32.mxu0 %vm9668_vm0, %v9669_v11  ;;  %v10164_v51 = vld [vmem:[%s9765_s28 + $0x6a] sm:$0xf] }
  0x2d   : > { %7667 = vmatprep.mubr.msk.f32.mxu1 %vm9668_vm0, %v9669_v11 }
  0x2f   : > { %7617 = vmatmul.mubr.msk.f32.gmra.mrb[14].mxu0 %vm304_vm1, %v9888_v52 }
  0x30   : > { %7668 = vmatmul.mubr.msk.f32.gmra.mrb[14].mxu1 %vm304_vm1, %v272_v53  ;;  %7619 = vmatprep.mubr.msk.f32.mxu0 %vm9668_vm0, %v9669_v11  ;;  %v10169_v53 = vld [vmem:[%s9765_s28 + $0x6b] sm:$0xf] }
  0x31   : > { %7670 = vmatprep.mubr.msk.f32.mxu1 %vm9668_vm0, %v9669_v11 }
  0x33   : > { %7620 = vmatmul.mubr.msk.f32.gmra.mrb[16].mxu0 %vm304_vm1, %v9899_v54 }
  0x34   : > { %7671 = vmatmul.mubr.msk.f32.gmra.mrb[16].mxu1 %vm304_vm1, %v273_v55  ;;  %7622 = vmatprep.mubr.msk.f32.mxu0 %vm9668_vm0, %v9669_v11  ;;  %v6421_v55 = vld [vmem:[%s13226_s1 + $0x120] sm:$0xff] }
  0x35   : > { %7673 = vmatprep.mubr.msk.f32.mxu1 %vm9668_vm0, %v9669_v11 }
  0x37   : > { %7623 = vmatmul.mubr.msk.f32.gmra.mrb[18].mxu0 %vm304_vm1, %v9910_v56 }
  0x38   : > { %7674 = vmatmul.mubr.msk.f32.gmra.mrb[18].mxu1 %vm304_vm1, %v274_v57  ;;  %7625 = vmatprep.mubr.msk.f32.mxu0 %vm9668_vm0, %v9669_v11  ;;  %v6422_v57 = vld [vmem:[%s13226_s1 + $0x128] sm:$0xff] }
  0x39   : > { %7676 = vmatprep.mubr.msk.f32.mxu1 %vm9668_vm0, %v9669_v11  ;;  %v9334_v0 = vpack.c.bf16 %v6422_v57, %v6421_v55  ;;  %v6463_v55 = vld [vmem:[%s13226_s1 + $0x1a0] sm:$0xff]  ;;  %v6464_v57 = vld [vmem:[%s13226_s1 + $0x1a8] sm:$0xff] }
  0x3b   : > { %7626 = vmatmul.mubr.msk.f32.gmra.mrb[20].mxu0 %vm304_vm1, %v9921_v58 }
  0x3c   : > { %7677 = vmatmul.mubr.msk.f32.gmra.mrb[20].mxu1 %vm304_vm1, %v275_v59  ;;  %7628 = vmatprep.mubr.msk.f32.mxu0 %vm9668_vm0, %v9669_v11  ;;  %v6440_v59 = vld [vmem:[%s13226_s1 + $0x150] sm:$0xff] }
  0x3d   : > { %7679 = vmatprep.mubr.msk.f32.mxu1 %vm9668_vm0, %v9669_v11 }
  0x3f   : > { %7629 = vmatmul.mubr.msk.f32.gmra.mrb[22].mxu0 %vm304_vm1, %v9932_v60 }
  0x40   : > { %7680 = vmatmul.mubr.msk.f32.gmra.mrb[22].mxu1 %vm304_vm1, %v276_v61  ;;  %7631 = vmatprep.mubr.msk.f32.mxu0 %vm9668_vm0, %v9669_v11  ;;  %v6441_v61 = vld [vmem:[%s13226_s1 + $0x158] sm:$0xff] }
  0x41   : > { %7682 = vmatprep.mubr.msk.f32.mxu1 %vm9668_vm0, %v9669_v11  ;;  %v9343_v1 = vpack.c.bf16 %v6441_v61, %v6440_v59  ;;  %v10386_v59 = vld [vmem:[%s9765_s28 + $0x1c] sm:$0xff] }
  0x43   : > { %7632 = vmatmul.mubr.msk.f32.gmra.mrb[24].mxu0 %vm304_vm1, %v9943_v62 }
  0x44   : > { %7683 = vmatmul.mubr.msk.f32.gmra.mrb[24].mxu1 %vm304_vm1, %v277_v63  ;;  %7697 = vmatprep.mubr.msk.f32.mxu0 %vm9668_vm0, %v9669_v11  ;;  %v1087_v63 = vld [vmem:[%s9765_s28 + $0x2] sm:$0xff] }
  0x45   : > { %7748 = vmatprep.mubr.msk.f32.mxu1 %vm9668_vm0, %v9669_v11 }
  0x47   : > { %7698 = vmatmul.mubr.msk.f32.vlgmr.msra.gmra.mrb[26].mxu0 %vm304_vm1, %v9966_v5 }
  0x48   : > { %7749 = vmatmul.mubr.msk.f32.vlgmr.msra.gmra.mrb[26].mxu1 %vm304_vm1, %v9971_v7  ;;  %9317 = vmatpush3.bf16.msra.mxu0 %v9316_v6  ;;  %v6442_v6 = vld [vmem:[%s13226_s1 + $0x160] sm:$0xff] }
  0x49   : > { %7700 = vmatprep.mubr.msk.f32.mxu0 %vm9668_vm0, %v9669_v11  ;;  %9326 = vmatpush3.bf16.msra.mxu1 %v9325_v8  ;;  %v6443_v8 = vld [vmem:[%s13226_s1 + $0x168] sm:$0xff] }
  0x4a   : > { %7751 = vmatprep.mubr.msk.f32.mxu1 %vm9668_vm0, %v9669_v11  ;;  %9318 = vmatprep.subr.bf16.mxu0 %v9667_v3  ;;  %v9346_v10 = vpack.c.bf16 %v6443_v8, %v6442_v6  ;;  %v10445_v6 = vld [vmem:[%s9765_s28 + $0x44] sm:$0xff]  ;;  %v10456_v8 = vld [vmem:[%s9765_s28 + $0x4c] sm:$0xff] }
  0x4b   : > { %7701 = vmatmul.mubr.msk.f32.gmra.mrb[28].mxu0 %vm304_vm1, %v9990_v14  ;;  %9327 = vmatprep.subr.bf16.mxu1 %v9667_v3 }
  0x4c   : > { %7752 = vmatmul.mubr.msk.f32.gmra.mrb[28].mxu1 %vm304_vm1, %v9995_v15  ;;  %7703 = vmatprep.mubr.msk.f32.mxu0 %vm9668_vm0, %v9669_v11 }
  0x4d   : > { %7754 = vmatprep.mubr.msk.f32.mxu1 %vm9668_vm0, %v9669_v11  ;;  %9320 = vmatpush3.bf16.msra.mxu0 %v9319_v16  ;;  %v6445_v16 = vld [vmem:[%s13226_s1 + $0x178] sm:$0xff] }
  0x4e   : > { %9329 = vmatpush3.bf16.msra.mxu1 %v9328_v17  ;;  %9321 = vmatprep.subr.bf16.mxu0 %v9667_v3  ;;  %v9349_v18 = vpack.c.bf16 %v6445_v16, %v6444_v13  ;;  %v6497_v13 = vld [vmem:[%s13226_s1 + $0x1e0] sm:$0xff]  ;;  %v6498_v16 = vld [vmem:[%s13226_s1 + $0x1e8] sm:$0xff] }
  0x4f   : > { %7704 = vmatmul.mubr.msk.f32.gmra.mrb[30].mxu0 %vm304_vm1, %v10020_v22  ;;  %9330 = vmatprep.subr.bf16.mxu1 %v9667_v3 }
  0x50   : > { %7755 = vmatmul.mubr.msk.f32.gmra.mrb[30].mxu1 %vm304_vm1, %v10025_v23  ;;  %7706 = vmatprep.mubr.msk.f32.mxu0 %vm9668_vm0, %v9669_v11 }
  0x51   : > { %7757 = vmatprep.mubr.msk.f32.mxu1 %vm9668_vm0, %v9669_v11  ;;  %9323 = vmatpush3.bf16.msra.mxu0 %v9322_v25  ;;  %v6469_v25 = vld [vmem:[%s13226_s1 + $0x1d0] sm:$0xff] }
  0x52   : > { %9332 = vmatpush3.bf16.msra.mxu1 %v9331_v26  ;;  %9333 = vmatprep.subr.bf16.mxu0 %v9667_v3  ;;  %v6470_v26 = vld [vmem:[%s13226_s1 + $0x1d8] sm:$0xff] }
  0x53   : > { %7707 = vmatmul.mubr.msk.f32.gmra.mrb[32].mxu0 %vm304_vm1, %v10036_v27  ;;  %9342 = vmatprep.subr.bf16.mxu1 %v9667_v3  ;;  %v9358_v61 = vpack.c.bf16 %v6470_v26, %v6469_v25 }
  0x54   : > { %7758 = vmatmul.mubr.msk.f32.gmra.mrb[32].mxu1 %vm304_vm1, %v10041_v28  ;;  %7709 = vmatprep.mubr.msk.f32.mxu0 %vm9668_vm0, %v9669_v11 }
  0x55   : > { %7760 = vmatprep.mubr.msk.f32.mxu1 %vm9668_vm0, %v9669_v11 }
  0x57   : > { %7710 = vmatmul.mubr.msk.f32.gmra.mrb[34].mxu0 %vm304_vm1, %v10052_v29 }
  0x58   : > { %7761 = vmatmul.mubr.msk.f32.gmra.mrb[34].mxu1 %vm304_vm1, %v10057_v30  ;;  %7712 = vmatprep.mubr.msk.f32.mxu0 %vm9668_vm0, %v9669_v11 }
  0x59   : > { %7763 = vmatprep.mubr.msk.f32.mxu1 %vm9668_vm0, %v9669_v11 }
  0x5b   : > { %7713 = vmatmul.mubr.msk.f32.gmra.mrb[36].mxu0 %vm304_vm1, %v10066_v31 }
  0x5c   : > { %7764 = vmatmul.mubr.msk.f32.gmra.mrb[36].mxu1 %vm304_vm1, %v10071_v33  ;;  %7715 = vmatprep.mubr.msk.f32.mxu0 %vm9668_vm0, %v9669_v11 }
  0x5d   : > { %7766 = vmatprep.mubr.msk.f32.mxu1 %vm9668_vm0, %v9669_v11 }
  0x5f   : > { %7716 = vmatmul.mubr.msk.f32.gmra.mrb[38].mxu0 %vm304_vm1, %v10080_v34 }
  0x60   : > { %7767 = vmatmul.mubr.msk.f32.gmra.mrb[38].mxu1 %vm304_vm1, %v10085_v35  ;;  %7718 = vmatprep.mubr.msk.f32.mxu0 %vm9668_vm0, %v9669_v11 }
  0x61   : > { %7769 = vmatprep.mubr.msk.f32.mxu1 %vm9668_vm0, %v9669_v11 }
  0x63   : > { %7719 = vmatmul.mubr.msk.f32.gmra.mrb[40].mxu0 %vm304_vm1, %v10094_v36 }
  0x64   : > { %7770 = vmatmul.mubr.msk.f32.gmra.mrb[40].mxu1 %vm304_vm1, %v10099_v37  ;;  %7721 = vmatprep.mubr.msk.f32.mxu0 %vm9668_vm0, %v9669_v11 }
  0x65   : > { %7772 = vmatprep.mubr.msk.f32.mxu1 %vm9668_vm0, %v9669_v11 }
  0x67   : > { %7722 = vmatmul.mubr.msk.f32.gmra.mrb[42].mxu0 %vm304_vm1, %v10108_v38 }
  0x68   : > { %7773 = vmatmul.mubr.msk.f32.gmra.mrb[42].mxu1 %vm304_vm1, %v10113_v39  ;;  %7724 = vmatprep.mubr.msk.f32.mxu0 %vm9668_vm0, %v9669_v11 }
  0x69   : > { %7775 = vmatprep.mubr.msk.f32.mxu1 %vm9668_vm0, %v9669_v11 }
  0x6b   : > { %7725 = vmatmul.mubr.msk.f32.gmra.mrb[44].mxu0 %vm304_vm1, %v10122_v41 }
  0x6c   : > { %7776 = vmatmul.mubr.msk.f32.gmra.mrb[44].mxu1 %vm304_vm1, %v10127_v42  ;;  %7727 = vmatprep.mubr.msk.f32.mxu0 %vm9668_vm0, %v9669_v11 }
  0x6d   : > { %7778 = vmatprep.mubr.msk.f32.mxu1 %vm9668_vm0, %v9669_v11 }
  0x6f   : > { %7728 = vmatmul.mubr.msk.f32.gmra.mrb[46].mxu0 %vm304_vm1, %v10136_v43 }
  0x70   : > { %7779 = vmatmul.mubr.msk.f32.gmra.mrb[46].mxu1 %vm304_vm1, %v10141_v45  ;;  %7730 = vmatprep.mubr.msk.f32.mxu0 %vm9668_vm0, %v9669_v11 }
  0x71   : > { %7781 = vmatprep.mubr.msk.f32.mxu1 %vm9668_vm0, %v9669_v11 }
  0x73   : > { %7731 = vmatmul.mubr.msk.f32.gmra.mrb[48].mxu0 %vm304_vm1, %v10150_v47 }
  0x74   : > { %7782 = vmatmul.mubr.msk.f32.gmra.mrb[48].mxu1 %vm304_vm1, %v10155_v49  ;;  %7733 = vmatprep.mubr.msk.f32.mxu0 %vm9668_vm0, %v9669_v11 }
  0x75   : > { %7784 = vmatprep.mubr.msk.f32.mxu1 %vm9668_vm0, %v9669_v11 }
  0x77   : > { %7734 = vmatmul.mubr.msk.f32.gmra.mrb[50].mxu0 %vm304_vm1, %v10164_v51 }
  0x78   : > { %7785 = vmatmul.mubr.msk.f32.gmra.mrb[50].mxu1 %vm304_vm1, %v10169_v53  ;;  %7799 = vmatprep.mubr.msk.f32.mxu0 %vm9668_vm0, %v9669_v11 }
  0x79   : > { %7850 = vmatprep.mubr.msk.f32.mxu1 %vm9668_vm0, %v9669_v11 }
  0x7b   : > { %7800 = vmatmul.mubr.msk.f32.vlgmr.msra.gmra.mrb[52].mxu0 %vm304_vm1, %v1087_v63  ;;  %v9367_v63 = vpack.c.bf16 %v6464_v57, %v6463_v55 }
  0x7c   : > { %7851 = vmatmul.mubr.msk.f32.vlgmr.msra.gmra.mrb[52].mxu1 %vm304_vm1, %v9781_v24  ;;  %9335 = vmatpush3.bf16.msra.mxu0 %v9334_v0  ;;  %v6426_v24 = vld [vmem:[%s13226_s1 + $0x148] sm:$0xff] }
  0x7d   : > { %7802 = vmatprep.mubr.msk.f32.mxu0 %vm9668_vm0, %v9669_v11  ;;  %9344 = vmatpush3.bf16.msra.mxu1 %v9343_v1  ;;  %v9340_v17 = vpack.c.bf16 %v6426_v24, %v6425_v12  ;;  %v10399_v0 = vld [vmem:[%s9765_s28 + $0x24] sm:$0xff]  ;;  %v10412_v1 = vld [vmem:[%s9765_s28 + $0x2c] sm:$0xff] }
  0x7e   : > { %7853 = vmatprep.mubr.msk.f32.mxu1 %vm9668_vm0, %v9669_v11  ;;  %9336 = vmatprep.subr.bf16.mxu0 %v9667_v3  ;;  %v10489_v12 = vld [vmem:[%s9765_s28 + $0x64] sm:$0xff]  ;;  %v10500_v24 = vld [vmem:[%s9765_s28 + $0x6c] sm:$0xf] }
  0x7f   : > { %7803 = vmatmul.mubr.msk.f32.gmra.mrb[54].mxu0 %vm304_vm1, %v9966_v5  ;;  %9345 = vmatprep.subr.bf16.mxu1 %v9667_v3 }
  0x80   : > { %7854 = vmatmul.mubr.msk.f32.gmra.mrb[54].mxu1 %vm304_vm1, %v9802_v32  ;;  %7805 = vmatprep.mubr.msk.f32.mxu0 %vm9668_vm0, %v9669_v11  ;;  %v1099_v32 = vld [vmem:[%s9765_s28 + $0x62] sm:$0xf] }
  0x81   : > { %7856 = vmatprep.mubr.msk.f32.mxu1 %vm9668_vm0, %v9669_v11  ;;  %9338 = vmatpush3.bf16.msra.mxu0 %v9337_v9  ;;  %v10467_v9 = vld [vmem:[%s9765_s28 + $0x54] sm:$0xff] }
  0x82   : > { %9347 = vmatpush3.bf16.msra.mxu1 %v9346_v10  ;;  %9339 = vmatprep.subr.bf16.mxu0 %v9667_v3  ;;  %v10478_v10 = vld [vmem:[%s9765_s28 + $0x5c] sm:$0xff] }
  0x83   : > { %7806 = vmatmul.mubr.msk.f32.gmra.mrb[56].mxu0 %vm304_vm1, %v9990_v14  ;;  %9348 = vmatprep.subr.bf16.mxu1 %v9667_v3 }
  0x84   : > { %7857 = vmatmul.mubr.msk.f32.gmra.mrb[56].mxu1 %vm304_vm1, %v9829_v40  ;;  %7808 = vmatprep.mubr.msk.f32.mxu0 %vm9668_vm0, %v9669_v11  ;;  %v6465_v40 = vld [vmem:[%s13226_s1 + $0x1b0] sm:$0xff] }
  0x85   : > { %7859 = vmatprep.mubr.msk.f32.mxu1 %vm9668_vm0, %v9669_v11  ;;  %9341 = vmatpush3.bf16.msra.mxu0 %v9340_v17  ;;  %v6516_v17 = vld [vmem:[%s13226_s1 + $0x210] sm:$0xff] }
  0x86   : > { %9350 = vmatpush3.bf16.msra.mxu1 %v9349_v18  ;;  %9351 = vmatprep.subr.bf16.mxu0 %v9667_v3  ;;  %v6517_v18 = vld [vmem:[%s13226_s1 + $0x218] sm:$0xff] }
  0x87   : > { %7809 = vmatmul.mubr.msk.f32.gmra.mrb[58].mxu0 %vm304_vm1, %v10020_v22  ;;  %9360 = vmatprep.subr.bf16.mxu1 %v9667_v3 }
  0x88   : > { %7860 = vmatmul.mubr.msk.f32.gmra.mrb[58].mxu1 %vm304_vm1, %v9842_v44  ;;  %7811 = vmatprep.mubr.msk.f32.mxu0 %vm9668_vm0, %v9669_v11  ;;  %v6466_v44 = vld [vmem:[%s13226_s1 + $0x1b8] sm:$0xff] }
  0x89   : > { %7862 = vmatprep.mubr.msk.f32.mxu1 %vm9668_vm0, %v9669_v11 }
  0x8b   : > { %7812 = vmatmul.mubr.msk.f32.gmra.mrb[60].mxu0 %vm304_vm1, %v10036_v27 }
  0x8c   : > { %7863 = vmatmul.mubr.msk.f32.gmra.mrb[60].mxu1 %vm304_vm1, %v9855_v46  ;;  %7814 = vmatprep.mubr.msk.f32.mxu0 %vm9668_vm0, %v9669_v11  ;;  %v6459_v46 = vld [vmem:[%s13226_s1 + $0x180] sm:$0xff] }
  0x8d   : > { %7865 = vmatprep.mubr.msk.f32.mxu1 %vm9668_vm0, %v9669_v11 }
  0x8f   : > { %7815 = vmatmul.mubr.msk.f32.gmra.mrb[62].mxu0 %vm304_vm1, %v10052_v29 }
  0x90   : > { %7866 = vmatmul.mubr.msk.f32.gmra.mrb[62].mxu1 %vm304_vm1, %v9866_v48  ;;  %7817 = vmatprep.mubr.msk.f32.mxu0 %vm9668_vm0, %v9669_v11  ;;  %v6460_v48 = vld [vmem:[%s13226_s1 + $0x188] sm:$0xff] }
  0x91   : > { %7868 = vmatprep.mubr.msk.f32.mxu1 %vm9668_vm0, %v9669_v11 }
  0x93   : > { %7818 = vmatmul.mubr.msk.f32.gmra.mrb[64].mxu0 %vm304_vm1, %v10066_v31 }
  0x94   : > { %7869 = vmatmul.mubr.msk.f32.gmra.mrb[64].mxu1 %vm304_vm1, %v9877_v50  ;;  %7820 = vmatprep.mubr.msk.f32.mxu0 %vm9668_vm0, %v9669_v11  ;;  %v9352_v50 = vpack.c.bf16 %v6466_v44, %v6465_v40  ;;  %v9379_v40 = vpack.c.bf16 %v6517_v18, %v6516_v17  ;;  %v6499_v44 = vld [vmem:[%s13226_s1 + $0x1f0] sm:$0xff] }
  0x95   : > { %7871 = vmatprep.mubr.msk.f32.mxu1 %vm9668_vm0, %v9669_v11 }
  0x97   : > { %7821 = vmatmul.mubr.msk.f32.gmra.mrb[66].mxu0 %vm304_vm1, %v10080_v34 }
  0x98   : > { %7872 = vmatmul.mubr.msk.f32.gmra.mrb[66].mxu1 %vm304_vm1, %v9888_v52  ;;  %7823 = vmatprep.mubr.msk.f32.mxu0 %vm9668_vm0, %v9669_v11  ;;  %v10338_v52 = vld [vmem:[%s9765_s28 + $0xc] sm:$0xff] }
  0x99   : > { %7874 = vmatprep.mubr.msk.f32.mxu1 %vm9668_vm0, %v9669_v11 }
  0x9b   : > { %7824 = vmatmul.mubr.msk.f32.gmra.mrb[68].mxu0 %vm304_vm1, %v10094_v36 }
  0x9c   : > { %7875 = vmatmul.mubr.msk.f32.gmra.mrb[68].mxu1 %vm304_vm1, %v9899_v54  ;;  %7826 = vmatprep.mubr.msk.f32.mxu0 %vm9668_vm0, %v9669_v11  ;;  %v9361_v54 = vpack.c.bf16 %v6460_v48, %v6459_v46  ;;  %v6500_v46 = vld [vmem:[%s13226_s1 + $0x1f8] sm:$0xff]  ;;  %v6518_v48 = vld [vmem:[%s13226_s1 + $0x220] sm:$0xff] }
  0x9d   : > { %7877 = vmatprep.mubr.msk.f32.mxu1 %vm9668_vm0, %v9669_v11 }
  0x9f   : > { %7827 = vmatmul.mubr.msk.f32.gmra.mrb[70].mxu0 %vm304_vm1, %v10108_v38 }
  0xa0   : > { %7878 = vmatmul.mubr.msk.f32.gmra.mrb[70].mxu1 %vm304_vm1, %v9910_v56  ;;  %7829 = vmatprep.mubr.msk.f32.mxu0 %vm9668_vm0, %v9669_v11  ;;  %v6467_v56 = vld [vmem:[%s13226_s1 + $0x1c0] sm:$0xff] }
  0xa1   : > { %7880 = vmatprep.mubr.msk.f32.mxu1 %vm9668_vm0, %v9669_v11 }
  0xa3   : > { %7830 = vmatmul.mubr.msk.f32.gmra.mrb[72].mxu0 %vm304_vm1, %v10122_v41 }
  0xa4   : > { %7881 = vmatmul.mubr.msk.f32.gmra.mrb[72].mxu1 %vm304_vm1, %v9921_v58  ;;  %7832 = vmatprep.mubr.msk.f32.mxu0 %vm9668_vm0, %v9669_v11  ;;  %v6468_v58 = vld [vmem:[%s13226_s1 + $0x1c8] sm:$0xff] }
  0xa5   : > { %7883 = vmatprep.mubr.msk.f32.mxu1 %vm9668_vm0, %v9669_v11  ;;  %v9355_v20 = vpack.c.bf16 %v6468_v58, %v6467_v56  ;;  %v6501_v58 = vld [vmem:[%s13226_s1 + $0x200] sm:$0xff] }
  0xa7   : > { %7833 = vmatmul.mubr.msk.f32.gmra.mrb[74].mxu0 %vm304_vm1, %v10136_v43 }
  0xa8   : > { %7884 = vmatmul.mubr.msk.f32.gmra.mrb[74].mxu1 %vm304_vm1, %v9932_v60  ;;  %7835 = vmatprep.mubr.msk.f32.mxu0 %vm9668_vm0, %v9669_v11  ;;  %v6461_v60 = vld [vmem:[%s13226_s1 + $0x190] sm:$0xff] }
  0xa9   : > { %7886 = vmatprep.mubr.msk.f32.mxu1 %vm9668_vm0, %v9669_v11 }
  0xab   : > { %7836 = vmatmul.mubr.msk.f32.gmra.mrb[76].mxu0 %vm304_vm1, %v1099_v32  ;;  %v9370_v32 = vpack.c.bf16 %v6498_v16, %v6497_v13 }
  0xac   : > { %7887 = vmatmul.mubr.msk.f32.gmra.mrb[76].mxu1 %vm304_vm1, %v9943_v62  ;;  %7901 = vmatprep.mubr.msk.f32.mxu0 %vm9668_vm0, %v9669_v11  ;;  %v6462_v62 = vld [vmem:[%s13226_s1 + $0x198] sm:$0xff] }
  0xad   : > { %7952 = vmatprep.mubr.msk.f32.mxu1 %vm9668_vm0, %v9669_v11  ;;  %v9364_v21 = vpack.c.bf16 %v6462_v62, %v6461_v60 }
  0xaf   : > { %7902 = vmatmul.mubr.msk.f32.vlgmr.msra.gmra.mrb[78].mxu0 %vm304_vm1, %v9971_v7 }
  0xb0   : > { %7953 = vmatmul.mubr.msk.f32.vlgmr.msra.gmra.mrb[78].mxu1 %vm304_vm1, %v10338_v52  ;;  %9353 = vmatpush3.bf16.msra.mxu0 %v9352_v50  ;;  %v6519_v50 = vld [vmem:[%s13226_s1 + $0x228] sm:$0xff] }
  0xb1   : > { %7904 = vmatprep.mubr.msk.f32.mxu0 %vm9668_vm0, %v9669_v11  ;;  %9362 = vmatpush3.bf16.msra.mxu1 %v9361_v54  ;;  %v9373_v54 = vpack.c.bf16 %v6500_v46, %v6499_v44 }
  0xb2   : > { %7955 = vmatprep.mubr.msk.f32.mxu1 %vm9668_vm0, %v9669_v11  ;;  %9354 = vmatprep.subr.bf16.mxu0 %v9667_v3 }
  0xb3   : > { %7905 = vmatmul.mubr.msk.f32.gmra.mrb[80].mxu0 %vm304_vm1, %v9995_v15  ;;  %9363 = vmatprep.subr.bf16.mxu1 %v9667_v3 }
  0xb4   : > { %7956 = vmatmul.mubr.msk.f32.gmra.mrb[80].mxu1 %vm304_vm1, %v10359_v19  ;;  %7907 = vmatprep.mubr.msk.f32.mxu0 %vm9668_vm0, %v9669_v11 }
  0xb5   : > { %7958 = vmatprep.mubr.msk.f32.mxu1 %vm9668_vm0, %v9669_v11  ;;  %9356 = vmatpush3.bf16.msra.mxu0 %v9355_v20  ;;  %v6520_v20 = vld [vmem:[%s13226_s1 + $0x230] sm:$0xff] }
  0xb6   : > { %9365 = vmatpush3.bf16.msra.mxu1 %v9364_v21  ;;  %9357 = vmatprep.subr.bf16.mxu0 %v9667_v3  ;;  %v6521_v21 = vld [vmem:[%s13226_s1 + $0x238] sm:$0xff] }
  0xb7   : > { %7908 = vmatmul.mubr.msk.f32.gmra.mrb[82].mxu0 %vm304_vm1, %v10025_v23  ;;  %9366 = vmatprep.subr.bf16.mxu1 %v9667_v3  ;;  %v9385_v57 = vpack.c.bf16 %v6521_v21, %v6520_v20 }
  0xb8   : > { %7959 = vmatmul.mubr.msk.f32.gmra.mrb[82].mxu1 %vm304_vm1, %v10386_v59  ;;  %7910 = vmatprep.mubr.msk.f32.mxu0 %vm9668_vm0, %v9669_v11 }
  0xb9   : > { %7961 = vmatprep.mubr.msk.f32.mxu1 %vm9668_vm0, %v9669_v11  ;;  %9359 = vmatpush3.bf16.msra.mxu0 %v9358_v61 }
  0xba   : > { %9368 = vmatpush3.bf16.msra.mxu1 %v9367_v63  ;;  %9369 = vmatprep.subr.bf16.mxu0 %v9667_v3 }
  0xbb   : > { %7911 = vmatmul.mubr.msk.f32.gmra.mrb[84].mxu0 %vm304_vm1, %v10041_v28  ;;  %9378 = vmatprep.subr.bf16.mxu1 %v9667_v3 }
  0xbc   : > { %7962 = vmatmul.mubr.msk.f32.gmra.mrb[84].mxu1 %vm304_vm1, %v10399_v0  ;;  %7913 = vmatprep.mubr.msk.f32.mxu0 %vm9668_vm0, %v9669_v11 }
  0xbd   : > { %7964 = vmatprep.mubr.msk.f32.mxu1 %vm9668_vm0, %v9669_v11 }
  0xbf   : > { %7914 = vmatmul.mubr.msk.f32.gmra.mrb[86].mxu0 %vm304_vm1, %v10057_v30 }
  0xc0   : > { %7965 = vmatmul.mubr.msk.f32.gmra.mrb[86].mxu1 %vm304_vm1, %v10412_v1  ;;  %7916 = vmatprep.mubr.msk.f32.mxu0 %vm9668_vm0, %v9669_v11 }
  0xc1   : > { %7967 = vmatprep.mubr.msk.f32.mxu1 %vm9668_vm0, %v9669_v11 }
  0xc3   : > { %7917 = vmatmul.mubr.msk.f32.gmra.mrb[88].mxu0 %vm304_vm1, %v10071_v33 }
  0xc4   : > { %7968 = vmatmul.mubr.msk.f32.gmra.mrb[88].mxu1 %vm304_vm1, %v10423_v2  ;;  %7919 = vmatprep.mubr.msk.f32.mxu0 %vm9668_vm0, %v9669_v11 }
  0xc5   : > { %7970 = vmatprep.mubr.msk.f32.mxu1 %vm9668_vm0, %v9669_v11 }
  0xc7   : > { %7920 = vmatmul.mubr.msk.f32.gmra.mrb[90].mxu0 %vm304_vm1, %v10085_v35 }
  0xc8   : > { %7971 = vmatmul.mubr.msk.f32.gmra.mrb[90].mxu1 %vm304_vm1, %v10434_v4  ;;  %7922 = vmatprep.mubr.msk.f32.mxu0 %vm9668_vm0, %v9669_v11 }
  0xc9   : > { %7973 = vmatprep.mubr.msk.f32.mxu1 %vm9668_vm0, %v9669_v11 }
  0xcb   : > { %7923 = vmatmul.mubr.msk.f32.gmra.mrb[92].mxu0 %vm304_vm1, %v10099_v37 }
  0xcc   : > { %7974 = vmatmul.mubr.msk.f32.gmra.mrb[92].mxu1 %vm304_vm1, %v10445_v6  ;;  %7925 = vmatprep.mubr.msk.f32.mxu0 %vm9668_vm0, %v9669_v11 }
  0xcd   : > { %7976 = vmatprep.mubr.msk.f32.mxu1 %vm9668_vm0, %v9669_v11 }
  0xcf   : > { %7926 = vmatmul.mubr.msk.f32.gmra.mrb[94].mxu0 %vm304_vm1, %v10113_v39 }
  0xd0   : > { %7977 = vmatmul.mubr.msk.f32.gmra.mrb[94].mxu1 %vm304_vm1, %v10456_v8  ;;  %7928 = vmatprep.mubr.msk.f32.mxu0 %vm9668_vm0, %v9669_v11 }
  0xd1   : > { %7979 = vmatprep.mubr.msk.f32.mxu1 %vm9668_vm0, %v9669_v11 }
  0xd3   : > { %7929 = vmatmul.mubr.msk.f32.gmra.mrb[96].mxu0 %vm304_vm1, %v10127_v42 }
  0xd4   : > { %7980 = vmatmul.mubr.msk.f32.gmra.mrb[96].mxu1 %vm304_vm1, %v10467_v9  ;;  %7931 = vmatprep.mubr.msk.f32.mxu0 %vm9668_vm0, %v9669_v11 }
  0xd5   : > { %7982 = vmatprep.mubr.msk.f32.mxu1 %vm9668_vm0, %v9669_v11 }
  0xd7   : > { %7932 = vmatmul.mubr.msk.f32.gmra.mrb[98].mxu0 %vm304_vm1, %v10141_v45 }
  0xd8   : > { %7983 = vmatmul.mubr.msk.f32.gmra.mrb[98].mxu1 %vm304_vm1, %v10478_v10  ;;  %7934 = vmatprep.mubr.msk.f32.mxu0 %vm9668_vm0, %v9669_v11 }
  0xd9   : > { %7985 = vmatprep.mubr.msk.f32.mxu1 %vm9668_vm0, %v9669_v11 }
  0xdb   : > { %7935 = vmatmul.mubr.msk.f32.gmra.mrb[100].mxu0 %vm304_vm1, %v10155_v49 }
  0xdc   : > { %7986 = vmatmul.mubr.msk.f32.gmra.mrb[100].mxu1 %vm304_vm1, %v10489_v12  ;;  %7937 = vmatprep.mubr.msk.f32.mxu0 %vm9668_vm0, %v9669_v11 }
  0xdd   : > { %7988 = vmatprep.mubr.msk.f32.mxu1 %vm9668_vm0, %v9669_v11 }
  0xdf   : > { %7938 = vmatmul.mubr.msk.f32.gmra.mrb[102].mxu0 %vm304_vm1, %v10169_v53 }
  0xe0   : > { %7989 = vmatmul.mubr.msk.f32.gmra.mrb[102].mxu1 %vm304_vm1, %v10500_v24  ;;  %8003 = vmatprep.mubr.msk.f32.mxu0 %vm9668_vm0, %v9669_v11 }
  0xe1   : > { %8054 = vmatprep.mubr.msk.f32.mxu1 %vm9668_vm0, %v9669_v11 }
  0xe3   : > { %8004 = vmatmul.mubr.msk.f32.vlgmr.msra.gmra.mrb[104].mxu0 %vm304_vm1, %v9971_v7  ;;  %v9382_v7 = vpack.c.bf16 %v6519_v50, %v6518_v48 }
  0xe4   : > { %8055 = vmatmul.mubr.msk.f32.vlgmr.msra.gmra.mrb[104].mxu1 %vm304_vm1, %v9966_v5  ;;  %9371 = vmatpush3.bf16.msra.mxu0 %v9370_v32  ;;  %v6502_v5 = vld [vmem:[%s13226_s1 + $0x208] sm:$0xff] }
  0xe5   : > { %8006 = vmatprep.mubr.msk.f32.mxu0 %vm9668_vm0, %v9669_v11  ;;  %9380 = vmatpush3.bf16.msra.mxu1 %v9379_v40 }
  0xe6   : > { %v410_v56 = vpop.f32.mrb[0].mxu0  ;;  %8057 = vmatprep.mubr.msk.f32.mxu1 %vm9668_vm0, %v9669_v11  ;;  %9372 = vmatprep.subr.bf16.mxu0 %v9667_v3 }
  0xe7   : > { %v7597_v60 = vpop.f32.mrb[1].mxu0  ;;  %v579_v62 = vpop.f32.mrb[0].mxu1  ;;  %8007 = vmatmul.mubr.msk.f32.gmra.mrb[106].mxu0 %vm304_vm1, %v9995_v15  ;;  %9381 = vmatprep.subr.bf16.mxu1 %v9667_v3  ;;  %v9376_v15 = vpack.c.bf16 %v6502_v5, %v6501_v58 }
  0xe8   : > { %v10558_v25 = vadd.f32 %v579_v62, %v410_v56  ;;  %8058 = vmatmul.mubr.msk.f32.gmra.mrb[106].mxu1 %vm304_vm1, %v9990_v14  ;;  %v7648_v26 = vpop.f32.mrb[1].mxu1  ;;  %8009 = vmatprep.mubr.msk.f32.mxu0 %vm9668_vm0, %v9669_v11 }
  0xe9   : > { %8060 = vmatprep.mubr.msk.f32.mxu1 %vm9668_vm0, %v9669_v11  ;;  %9374 = vmatpush3.bf16.msra.mxu0 %v9373_v54 }
  0xea   : > { %v415_v55 = vpop.f32.mrb[2].mxu0  ;;  %9383 = vmatpush3.bf16.msra.mxu1 %v9382_v7  ;;  %9375 = vmatprep.subr.bf16.mxu0 %v9667_v3 }
  0xeb   : > { %v7600_v61 = vpop.f32.mrb[3].mxu0  ;;  %v584_v63 = vpop.f32.mrb[2].mxu1  ;;  %8010 = vmatmul.mubr.msk.f32.gmra.mrb[108].mxu0 %vm304_vm1, %v10025_v23  ;;  %9384 = vmatprep.subr.bf16.mxu1 %v9667_v3 }
  0xec   : > { %v10570_v14 = vadd.f32 %v584_v63, %v415_v55  ;;  %8061 = vmatmul.mubr.msk.f32.gmra.mrb[108].mxu1 %vm304_vm1, %v10020_v22  ;;  %v7651_v13 = vpop.f32.mrb[3].mxu1  ;;  %8012 = vmatprep.mubr.msk.f32.mxu0 %vm9668_vm0, %v9669_v11 }
  0xed   : > { %8063 = vmatprep.mubr.msk.f32.mxu1 %vm9668_vm0, %v9669_v11  ;;  %9377 = vmatpush3.bf16.msra.mxu0 %v9376_v15 }
  0xee   : > { %v420_v16 = vpop.f32.mrb[4].mxu0  ;;  %9386 = vmatpush3.bf16.msra.mxu1 %v9385_v57  ;;  %9387 = vmatprep.subr.bf16.mxu0 %v9667_v3 }
  0xef   : > { %v7603_v23 = vpop.f32.mrb[5].mxu0  ;;  %v589_v17 = vpop.f32.mrb[4].mxu1  ;;  %8013 = vmatmul.mubr.msk.f32.gmra.mrb[110].mxu0 %vm304_vm1, %v10041_v28  ;;  %9396 = vmatprep.subr.bf16.mxu1 %v9667_v3 }
  0xf0   : > { %v10582_v22 = vadd.f32 %v589_v17, %v420_v16  ;;  %8064 = vmatmul.mubr.msk.f32.gmra.mrb[110].mxu1 %vm304_vm1, %v10036_v27  ;;  %v7654_v18 = vpop.f32.mrb[5].mxu1  ;;  %8015 = vmatprep.mubr.msk.f32.mxu0 %vm9668_vm0, %v9669_v11 }
  0xf1   : > { %8066 = vmatprep.mubr.msk.f32.mxu1 %vm9668_vm0, %v9669_v11 }
  0xf2   : > { %v425_v32 = vpop.f32.mrb[6].mxu0 }
  0xf3   : > { %v7606_v40 = vpop.f32.mrb[7].mxu0  ;;  %v594_v44 = vpop.f32.mrb[6].mxu1  ;;  %8016 = vmatmul.mubr.msk.f32.gmra.mrb[112].mxu0 %vm304_vm1, %v10057_v30 }
  0xf4   : > { %v10592_v28 = vadd.f32 %v594_v44, %v425_v32  ;;  %8067 = vmatmul.mubr.msk.f32.gmra.mrb[112].mxu1 %vm304_vm1, %v10052_v29  ;;  %v7657_v46 = vpop.f32.mrb[7].mxu1  ;;  %8018 = vmatprep.mubr.msk.f32.mxu0 %vm9668_vm0, %v9669_v11  ;;  %v6536_v32 = vld [vmem:[%s13226_s1 + $0x248] sm:$0xff] }
  0xf5   : > { %8069 = vmatprep.mubr.msk.f32.mxu1 %vm9668_vm0, %v9669_v11 }
  0xf6   : > { %v430_v27 = vpop.f32.mrb[8].mxu0 }
  0xf7   : > { %v7609_v48 = vpop.f32.mrb[9].mxu0  ;;  %v599_v50 = vpop.f32.mrb[8].mxu1  ;;  %8019 = vmatmul.mubr.msk.f32.gmra.mrb[114].mxu0 %vm304_vm1, %v10071_v33 }
  0xf8   : > { %v10602_v54 = vadd.f32 %v599_v50, %v430_v27  ;;  %8070 = vmatmul.mubr.msk.f32.gmra.mrb[114].mxu1 %vm304_vm1, %v10066_v31  ;;  %v7660_v30 = vpop.f32.mrb[9].mxu1  ;;  %8021 = vmatprep.mubr.msk.f32.mxu0 %vm9668_vm0, %v9669_v11  ;;  %v10693_v50 = vld [vmem:[%s9765_s28 + $0x15] sm:$0xff] }
  0xf9   : > { %8072 = vmatprep.mubr.msk.f32.mxu1 %vm9668_vm0, %v9669_v11 }
  0xfa   : > { %v435_v29 = vpop.f32.mrb[10].mxu0 }
  0xfb   : > { %v7612_v56 = vpop.f32.mrb[11].mxu0  ;;  %v604_v7 = vpop.f32.mrb[10].mxu1  ;;  %8022 = vmatmul.mubr.msk.f32.gmra.mrb[116].mxu0 %vm304_vm1, %v10085_v35 }
  0xfc   : > { %v10612_v58 = vadd.f32 %v604_v7, %v435_v29  ;;  %8073 = vmatmul.mubr.msk.f32.gmra.mrb[116].mxu1 %vm304_vm1, %v10080_v34  ;;  %v7663_v33 = vpop.f32.mrb[11].mxu1  ;;  %8024 = vmatprep.mubr.msk.f32.mxu0 %vm9668_vm0, %v9669_v11 }
  0xfd   : > { %8075 = vmatprep.mubr.msk.f32.mxu1 %vm9668_vm0, %v9669_v11  ;;  %v6537_v33 = vld [vmem:[%s13226_s1 + $0x250] sm:$0xff] }
  0xfe   : > { %v440_v31 = vpop.f32.mrb[12].mxu0 }
  0xff   : > { %v7615_v5 = vpop.f32.mrb[13].mxu0  ;;  %v609_v60 = vpop.f32.mrb[12].mxu1  ;;  %8025 = vmatmul.mubr.msk.f32.gmra.mrb[118].mxu0 %vm304_vm1, %v10099_v37 }
 0x100   : > { %v10622_v62 = vadd.f32 %v609_v60, %v440_v31  ;;  %8076 = vmatmul.mubr.msk.f32.gmra.mrb[118].mxu1 %vm304_vm1, %v10094_v36  ;;  %v7666_v35 = vpop.f32.mrb[13].mxu1  ;;  %8027 = vmatprep.mubr.msk.f32.mxu0 %vm9668_vm0, %v9669_v11  ;;  %v6538_v31 = vld [vmem:[%s13226_s1 + $0x258] sm:$0xff] }
 0x101   : > { %8078 = vmatprep.mubr.msk.f32.mxu1 %vm9668_vm0, %v9669_v11  ;;  %v10716_v35 = vld [vmem:[%s9765_s28 + $0x1d] sm:$0xff] }
 0x102   : > { %v445_v34 = vpop.f32.mrb[14].mxu0 }
 0x103   : > { %v7618_v20 = vpop.f32.mrb[15].mxu0  ;;  %v614_v21 = vpop.f32.mrb[14].mxu1  ;;  %8028 = vmatmul.mubr.msk.f32.gmra.mrb[120].mxu0 %vm304_vm1, %v10113_v39 }
 0x104   : > { %v10632_v26 = vadd.f32 %v614_v21, %v445_v34  ;;  %8079 = vmatmul.mubr.msk.f32.gmra.mrb[120].mxu1 %vm304_vm1, %v10108_v38  ;;  %v7669_v37 = vpop.f32.mrb[15].mxu1  ;;  %8030 = vmatprep.mubr.msk.f32.mxu0 %vm9668_vm0, %v9669_v11  ;;  %v9400_v21 = vpack.c.bf16 %v6538_v31, %v6537_v33  ;;  %v10792_v31 = vld [vmem:[%s9765_s28 + $0x3d] sm:$0xff] }
 0x105   : > { %8081 = vmatprep.mubr.msk.f32.mxu1 %vm9668_vm0, %v9669_v11  ;;  %v6545_v37 = vld [vmem:[%s13226_s1 + $0x290] sm:$0xff] }
 0x106   : > { %v450_v36 = vpop.f32.mrb[16].mxu0 }
 0x107   : > { %v7621_v15 = vpop.f32.mrb[17].mxu0  ;;  %v619_v55 = vpop.f32.mrb[16].mxu1  ;;  %8031 = vmatmul.mubr.msk.f32.gmra.mrb[122].mxu0 %vm304_vm1, %v10127_v42 }
 0x108   : > { %v10642_v57 = vadd.f32 %v619_v55, %v450_v36  ;;  %8082 = vmatmul.mubr.msk.f32.gmra.mrb[122].mxu1 %vm304_vm1, %v10122_v41  ;;  %v7672_v39 = vpop.f32.mrb[17].mxu1  ;;  %8033 = vmatprep.mubr.msk.f32.mxu0 %vm9668_vm0, %v9669_v11  ;;  %v6546_v36 = vld [vmem:[%s13226_s1 + $0x298] sm:$0xff] }
 0x109   : > { %8084 = vmatprep.mubr.msk.f32.mxu1 %vm9668_vm0, %v9669_v11 }
 0x10a   : > { %v455_v38 = vpop.f32.mrb[18].mxu0 }
 0x10b   : > { %v7624_v61 = vpop.f32.mrb[19].mxu0  ;;  %v624_v63 = vpop.f32.mrb[18].mxu1  ;;  %8034 = vmatmul.mubr.msk.f32.gmra.mrb[124].mxu0 %vm304_vm1, %v10141_v45 }
 0x10c   : > { %v10652_v13 = vadd.f32 %v624_v63, %v455_v38  ;;  %8085 = vmatmul.mubr.msk.f32.gmra.mrb[124].mxu1 %vm304_vm1, %v10136_v43  ;;  %v7675_v42 = vpop.f32.mrb[19].mxu1  ;;  %8036 = vmatprep.mubr.msk.f32.mxu0 %vm9668_vm0, %v9669_v11  ;;  %v6541_v43 = vld [vmem:[%s13226_s1 + $0x270] sm:$0xff]  ;;  %v6539_v38 = vld [vmem:[%s13226_s1 + $0x260] sm:$0xff]  ;;  %v6540_v61 = vld [vmem:[%s13226_s1 + $0x268] sm:$0xff] }
 0x10d   : > { %8087 = vmatprep.mubr.msk.f32.mxu1 %vm9668_vm0, %v9669_v11  ;;  %v10746_v42 = vld [vmem:[%s9765_s28 + $0x25] sm:$0xff] }
 0x10e   : > { %v460_v41 = vpop.f32.mrb[20].mxu0 }
 0x10f   : > { %v7627_v16 = vpop.f32.mrb[21].mxu0  ;;  %v629_v23 = vpop.f32.mrb[20].mxu1  ;;  %8037 = vmatmul.mubr.msk.f32.gmra.mrb[126].mxu0 %vm304_vm1, %v10155_v49  ;;  %v6542_v49 = vld [vmem:[%s13226_s1 + $0x278] sm:$0xff] }
 0x110   : > { %v10662_v17 = vadd.f32 %v629_v23, %v460_v41  ;;  %8088 = vmatmul.mubr.msk.f32.gmra.mrb[126].mxu1 %vm304_vm1, %v10150_v47  ;;  %v7678_v45 = vpop.f32.mrb[21].mxu1  ;;  %8039 = vmatprep.mubr.msk.f32.mxu0 %vm9668_vm0, %v9669_v11  ;;  %v6535_v47 = vld [vmem:[%s13226_s1 + $0x240] sm:$0xff]  ;;  %v9388_v48 = vpack.c.bf16 %v6542_v49, %v6541_v43  ;;  %v9394_v41 = vpack.c.bf16 %v6546_v36, %v6545_v37 }
 0x111   : > { %8090 = vmatprep.mubr.msk.f32.mxu1 %vm9668_vm0, %v9669_v11  ;;  %v9397_v30 = vpack.c.bf16 %v6536_v32, %v6535_v47  ;;  %v9403_v23 = vpack.c.bf16 %v6540_v61, %v6539_v38  ;;  %v10806_v36 = vld [vmem:[%s9765_s28 + $0x45] sm:$0xff] }
 0x112   : > { %v465_v18 = vpop.f32.mrb[22].mxu0 }
 0x113   : > { %v7630_v40 = vpop.f32.mrb[23].mxu0  ;;  %v634_v44 = vpop.f32.mrb[22].mxu1  ;;  %8040 = vmatmul.mubr.msk.f32.gmra.mrb[128].mxu0 %vm304_vm1, %v10169_v53  ;;  %v6543_v53 = vld [vmem:[%s13226_s1 + $0x280] sm:$0xff] }
 0x114   : > { %v10684_v46 = vadd.f32 %v634_v44, %v465_v18  ;;  %8091 = vmatmul.mubr.msk.f32.gmra.mrb[128].mxu1 %vm304_vm1, %v10164_v51  ;;  %v7681_v27 = vpop.f32.mrb[23].mxu1  ;;  %8105 = vmatprep.mubr.msk.f32.mxu0 %vm9668_vm0, %v9669_v11  ;;  %v6544_v51 = vld [vmem:[%s13226_s1 + $0x288] sm:$0xff] }
 0x115   : > { %8156 = vmatprep.mubr.msk.f32.mxu1 %vm9668_vm0, %v9669_v11  ;;  %v9391_v34 = vpack.c.bf16 %v6544_v51, %v6543_v53 }
 0x116   : > { %v470_v29 = vpop.f32.mrb[24].mxu0 }
 0x117   : > { %v7633_v56 = vpop.f32.mrb[25].mxu0  ;;  %v639_v7 = vpop.f32.mrb[24].mxu1  ;;  %8106 = vmatmul.mubr.msk.f32.vlgmr.msra.gmra.mrb[130].mxu0 %vm304_vm1, %v10359_v19 }
 0x118   : > { %v10709_v5 = vadd.f32 %v639_v7, %v470_v29  ;;  %8157 = vmatmul.mubr.msk.f32.vlgmr.msra.gmra.mrb[130].mxu1 %vm304_vm1, %v10693_v50  ;;  %9389 = vmatpush3.bf16.msra.mxu0 %v9388_v48  ;;  %v7684_v60 = vpop.f32.mrb[25].mxu1 }
 0x119   : > { %8108 = vmatprep.mubr.msk.f32.mxu0 %vm9668_vm0, %v9669_v11  ;;  %9398 = vmatpush3.bf16.msra.mxu1 %v9397_v30 }
 0x11a   : > { %v768_v20 = vpop.f32.mrb[26].mxu0  ;;  %8159 = vmatprep.mubr.msk.f32.mxu1 %vm9668_vm0, %v9669_v11  ;;  %9390 = vmatprep.subr.bf16.mxu0 %v9667_v3 }
 0x11b   : > { %v832_v15 = vadd.f32 %v768_v20, %v10558_v25  ;;  %v7699_v55 = vpop.f32.mrb[27].mxu0  ;;  %8109 = vmatmul.mubr.msk.f32.gmra.mrb[132].mxu0 %vm304_vm1, %v10386_v59  ;;  %v970_v39 = vpop.f32.mrb[26].mxu1  ;;  %9399 = vmatprep.subr.bf16.mxu1 %v9667_v3 }
 0x11c   : > { %8160 = vmatmul.mubr.msk.f32.gmra.mrb[132].mxu1 %vm304_vm1, %v10716_v35  ;;  %v7750_v63 = vpop.f32.mrb[27].mxu1  ;;  %8111 = vmatprep.mubr.msk.f32.mxu0 %vm9668_vm0, %v9669_v11 }
 0x11d   : > { %v10741_v25 = vadd.f32 %v970_v39, %v832_v15  ;;  %8162 = vmatprep.mubr.msk.f32.mxu1 %vm9668_vm0, %v9669_v11  ;;  %9392 = vmatpush3.bf16.msra.mxu0 %v9391_v34  ;;  %v10820_v63 = vld [vmem:[%s9765_s28 + $0x4d] sm:$0xff] }
 0x11e   : > { %v773_v16 = vpop.f32.mrb[28].mxu0  ;;  %9401 = vmatpush3.bf16.msra.mxu1 %v9400_v21  ;;  %9393 = vmatprep.subr.bf16.mxu0 %v9667_v3 }
 0x11f   : > { %v833_v45 = vadd.f32 %v773_v16, %v10570_v14  ;;  %v7702_v43 = vpop.f32.mrb[29].mxu0  ;;  %8112 = vmatmul.mubr.msk.f32.gmra.mrb[134].mxu0 %vm304_vm1, %v10399_v0  ;;  %v975_v49 = vpop.f32.mrb[28].mxu1  ;;  %9402 = vmatprep.subr.bf16.mxu1 %v9667_v3  ;;  %v10762_v14 = vld [vmem:[%s9765_s28 + $0x2d] sm:$0xff] }
 0x120   : > { %8163 = vmatmul.mubr.msk.f32.gmra.mrb[134].mxu1 %vm304_vm1, %v10746_v42  ;;  %v7753_v18 = vpop.f32.mrb[29].mxu1  ;;  %8114 = vmatprep.mubr.msk.f32.mxu0 %vm9668_vm0, %v9669_v11 }
 0x121   : > { %v10757_v47 = vadd.f32 %v975_v49, %v833_v45  ;;  %8165 = vmatprep.mubr.msk.f32.mxu1 %vm9668_vm0, %v9669_v11  ;;  %9395 = vmatpush3.bf16.msra.mxu0 %v9394_v41  ;;  %v10834_v49 = vld [vmem:[%s9765_s28 + $0x55] sm:$0xff] }
 0x122   : > { %v778_v32 = vpop.f32.mrb[30].mxu0  ;;  %9404 = vmatpush3.bf16.msra.mxu1 %v9403_v23  ;;  %9405 = vmatprep.subr.bf16.mxu0 %v9667_v3 }
 0x123   : > { %v834_v40 = vadd.f32 %v778_v32, %v10582_v22  ;;  %v7705_v44 = vpop.f32.mrb[31].mxu0  ;;  %8115 = vmatmul.mubr.msk.f32.gmra.mrb[136].mxu0 %vm304_vm1, %v10412_v1  ;;  %v980_v27 = vpop.f32.mrb[30].mxu1  ;;  %9414 = vmatprep.subr.bf16.mxu1 %v9667_v3  ;;  %v10778_v22 = vld [vmem:[%s9765_s28 + $0x35] sm:$0xff] }
 0x124   : > { %8166 = vmatmul.mubr.msk.f32.gmra.mrb[136].mxu1 %vm304_vm1, %v10762_v14  ;;  %v7756_v48 = vpop.f32.mrb[31].mxu1  ;;  %8117 = vmatprep.mubr.msk.f32.mxu0 %vm9668_vm0, %v9669_v11 }
 0x125   : > { %v10773_v30 = vadd.f32 %v980_v27, %v834_v40  ;;  %8168 = vmatprep.mubr.msk.f32.mxu1 %vm9668_vm0, %v9669_v11  ;;  %v10848_v48 = vld [vmem:[%s9765_s28 + $0x5d] sm:$0xff] }
 0x126   : > { %v783_v29 = vpop.f32.mrb[32].mxu0 }
 0x127   : > { %v835_v53 = vadd.f32 %v783_v29, %v10592_v28  ;;  %v7708_v51 = vpop.f32.mrb[33].mxu0  ;;  %8118 = vmatmul.mubr.msk.f32.gmra.mrb[138].mxu0 %vm304_vm1, %v10423_v2  ;;  %v985_v56 = vpop.f32.mrb[32].mxu1 }
 0x128   : > { %8169 = vmatmul.mubr.msk.f32.gmra.mrb[138].mxu1 %vm304_vm1, %v10778_v22  ;;  %v7759_v7 = vpop.f32.mrb[33].mxu1  ;;  %8120 = vmatprep.mubr.msk.f32.mxu0 %vm9668_vm0, %v9669_v11 }
 0x129   : > { %v10787_v33 = vadd.f32 %v985_v56, %v835_v53  ;;  %8171 = vmatprep.mubr.msk.f32.mxu1 %vm9668_vm0, %v9669_v11 }
 0x12a   : > { %v788_v28 = vpop.f32.mrb[34].mxu0 }
 0x12b   : > { %v836_v60 = vadd.f32 %v788_v28, %v10602_v54  ;;  %v7711_v34 = vpop.f32.mrb[35].mxu0  ;;  %8121 = vmatmul.mubr.msk.f32.gmra.mrb[140].mxu0 %vm304_vm1, %v10434_v4  ;;  %v990_v20 = vpop.f32.mrb[34].mxu1 }
 0x12c   : > { %8172 = vmatmul.mubr.msk.f32.gmra.mrb[140].mxu1 %vm304_vm1, %v10792_v31  ;;  %v7762_v21 = vpop.f32.mrb[35].mxu1  ;;  %8123 = vmatprep.mubr.msk.f32.mxu0 %vm9668_vm0, %v9669_v11 }
 0x12d   : > { %v10801_v37 = vadd.f32 %v990_v20, %v836_v60  ;;  %8174 = vmatprep.mubr.msk.f32.mxu1 %vm9668_vm0, %v9669_v11 }
 0x12e   : > { %v793_v54 = vpop.f32.mrb[36].mxu0 }
 0x12f   : > { %v837_v15 = vadd.f32 %v793_v54, %v10612_v58  ;;  %v7714_v55 = vpop.f32.mrb[37].mxu0  ;;  %8124 = vmatmul.mubr.msk.f32.gmra.mrb[142].mxu0 %vm304_vm1, %v10445_v6  ;;  %v995_v39 = vpop.f32.mrb[36].mxu1  ;;  %v2082_v54 = vld [vmem:[%s9765_s28 + $0x6c] sm:$0xff] }
 0x130   : > { %8175 = vmatmul.mubr.msk.f32.gmra.mrb[142].mxu1 %vm304_vm1, %v10806_v36  ;;  %v7765_v38 = vpop.f32.mrb[37].mxu1  ;;  %8126 = vmatprep.mubr.msk.f32.mxu0 %vm9668_vm0, %v9669_v11 }
 0x131   : > { %v10815_v61 = vadd.f32 %v995_v39, %v837_v15  ;;  %8177 = vmatprep.mubr.msk.f32.mxu1 %vm9668_vm0, %v9669_v11 }
 0x132   : > { %v798_v58 = vpop.f32.mrb[38].mxu0 }
 0x133   : > { %v838_v41 = vadd.f32 %v798_v58, %v10622_v62  ;;  %v7717_v16 = vpop.f32.mrb[39].mxu0  ;;  %8127 = vmatmul.mubr.msk.f32.gmra.mrb[144].mxu0 %vm304_vm1, %v10456_v8  ;;  %v1000_v23 = vpop.f32.mrb[38].mxu1 }
 0x134   : > { %8178 = vmatmul.mubr.msk.f32.gmra.mrb[144].mxu1 %vm304_vm1, %v10820_v63  ;;  %v7768_v45 = vpop.f32.mrb[39].mxu1  ;;  %8129 = vmatprep.mubr.msk.f32.mxu0 %vm9668_vm0, %v9669_v11  ;;  %v2083_v16 = vld [vmem:[%s9765_s28 + $0x74] sm:$0xf] }
 0x135   : > { %v10829_v43 = vadd.f32 %v1000_v23, %v838_v41  ;;  %8180 = vmatprep.mubr.msk.f32.mxu1 %vm9668_vm0, %v9669_v11  ;;  %v252_v23 = vld [vmem:[%s13228_s3] sm:$0xff] }
 0x136   : > { %v803_v62 = vpop.f32.mrb[40].mxu0 }
 0x137   : > { %v839_v18 = vadd.f32 %v803_v62, %v10632_v26  ;;  %v7720_v32 = vpop.f32.mrb[41].mxu0  ;;  %8130 = vmatmul.mubr.msk.f32.gmra.mrb[146].mxu0 %vm304_vm1, %v10467_v9  ;;  %v1005_v40 = vpop.f32.mrb[40].mxu1  ;;  %v6573_v62 = vld [vmem:[%s13226_s1 + $0x2a0] sm:$0xff] }
 0x138   : > { %8181 = vmatmul.mubr.msk.f32.gmra.mrb[146].mxu1 %vm304_vm1, %v10834_v49  ;;  %v7771_v44 = vpop.f32.mrb[41].mxu1  ;;  %8132 = vmatprep.mubr.msk.f32.mxu0 %vm9668_vm0, %v9669_v11  ;;  %v9670_v32 = vmov 0  }
 0x139   : > { %v10843_v27 = vadd.f32 %v1005_v40, %v839_v18  ;;  %8183 = vmatprep.mubr.msk.f32.mxu1 %vm9668_vm0, %v9669_v11  ;;  %v6574_v18 = vld [vmem:[%s13226_s1 + $0x2a8] sm:$0xff]  ;;  %9628 = vset.pattern.permute.xlu0 %v9670_v32  ;;  %v6592_v44 = vld [vmem:[%s13226_s1 + $0x2d0] sm:$0xff] }
 0x13a   : > { %v808_v26 = vpop.f32.mrb[42].mxu0  ;;  %3181 = vperm.xlu0 %9628, %v252_v23   ;;  %9629 = vset.pattern.permute.xlu1 %v9670_v32  ;;  %v6577_v32 = vld [vmem:[%s13226_s1 + $0x2c0] sm:$0xff] }
 0x13b   : > { %v840_v29 = vadd.f32 %v808_v26, %v10642_v57  ;;  %v7723_v53 = vpop.f32.mrb[43].mxu0  ;;  %8133 = vmatmul.mubr.msk.f32.gmra.mrb[148].mxu0 %vm304_vm1, %v10478_v10  ;;  %v1010_v51 = vpop.f32.mrb[42].mxu1  ;;  %v10862_v57 = vld [vmem:[%s9765_s28 + $0x65] sm:$0xff]  ;;  %v6593_v26 = vld [vmem:[%s13226_s1 + $0x2d8] sm:$0xff] }
 0x13c   : > { %8184 = vmatmul.mubr.msk.f32.gmra.mrb[148].mxu1 %vm304_vm1, %v10848_v48  ;;  %v7774_v56 = vpop.f32.mrb[43].mxu1  ;;  %8135 = vmatprep.mubr.msk.f32.mxu0 %vm9668_vm0, %v9669_v11 }
 0x13d   : > { %v10857_v7 = vadd.f32 %v1010_v51, %v840_v29  ;;  %8186 = vmatprep.mubr.msk.f32.mxu1 %vm9668_vm0, %v9669_v11 }
 0x13e   : > { %v813_v28 = vpop.f32.mrb[44].mxu0 }
 0x13f   : > { %v841_v60 = vadd.f32 %v813_v28, %v10652_v13  ;;  %v7726_v34 = vpop.f32.mrb[45].mxu0  ;;  %8136 = vmatmul.mubr.msk.f32.gmra.mrb[150].mxu0 %vm304_vm1, %v10489_v12  ;;  %v1015_v20 = vpop.f32.mrb[44].mxu1  ;;  %v10877_v13 = vld [vmem:[%s9765_s28 + $0x6d] sm:$0xff]  ;;  %v9406_v28 = vpack.c.bf16 %v6574_v18, %v6573_v62 }
 0x140   : > { %8187 = vmatmul.mubr.msk.f32.gmra.mrb[150].mxu1 %vm304_vm1, %v10862_v57  ;;  %v7777_v21 = vpop.f32.mrb[45].mxu1  ;;  %8138 = vmatprep.mubr.msk.f32.mxu0 %vm9668_vm0, %v9669_v11 }
 0x141   : > { %v10872_v15 = vadd.f32 %v1015_v20, %v841_v60  ;;  %8189 = vmatprep.mubr.msk.f32.mxu1 %vm9668_vm0, %v9669_v11  ;;  %v253_v60 = vld [vmem:[%s13228_s3 + $0x8] sm:$0xff]  ;;  %v6575_v21 = vld [vmem:[%s13226_s1 + $0x2b0] sm:$0xff] }
 0x142   : > { %v818_v55 = vpop.f32.mrb[46].mxu0  ;;  %3186 = vperm.xlu0 %9628, %v253_v60  }
 0x143   : > { %v842_v39 = vadd.f32 %v818_v55, %v10662_v17  ;;  %v7729_v38 = vpop.f32.mrb[47].mxu0  ;;  %8139 = vmatmul.mubr.msk.f32.gmra.mrb[152].mxu0 %vm304_vm1, %v2082_v54  ;;  %v1020_v58 = vpop.f32.mrb[46].mxu1  ;;  %v10894_v17 = vld [vmem:[%s9765_s28 + $0x75] sm:$0xf] }
 0x144   : > { %8190 = vmatmul.mubr.msk.f32.gmra.mrb[152].mxu1 %vm304_vm1, %v10877_v13  ;;  %v7780_v41 = vpop.f32.mrb[47].mxu1  ;;  %8141 = vmatprep.mubr.msk.f32.mxu0 %vm9668_vm0, %v9669_v11  ;;  %v6576_v54 = vld [vmem:[%s13226_s1 + $0x2b8] sm:$0xff] }
 0x145   : > { %v10889_v45 = vadd.f32 %v1020_v58, %v842_v39  ;;  %8192 = vmatprep.mubr.msk.f32.mxu1 %vm9668_vm0, %v9669_v11  ;;  %v6594_v58 = vld [vmem:[%s13226_s1 + $0x2e0] sm:$0xff]  ;;  %v6595_v41 = vld [vmem:[%s13226_s1 + $0x2e8] sm:$0xff] }
 0x146   : > { %v823_v40 = vpop.f32.mrb[48].mxu0  ;;  %v9418_v18 = vpack.c.bf16 %v6595_v41, %v6594_v58 }
 0x147   : > { %v843_v29 = vadd.f32 %v823_v40, %v10684_v46  ;;  %v7732_v53 = vpop.f32.mrb[49].mxu0  ;;  %8142 = vmatmul.mubr.msk.f32.gmra.mrb[154].mxu0 %vm304_vm1, %v2083_v16  ;;  %v1025_v51 = vpop.f32.mrb[48].mxu1  ;;  %v9415_v46 = vpack.c.bf16 %v6593_v26, %v6592_v44  ;;  %v9630_v16 = vld [vmem:[%s9765_s28 + $0xb] sm:$0xff] }
 0x148   : > { %8193 = vmatmul.mubr.msk.f32.gmra.mrb[154].mxu1 %vm304_vm1, %v10894_v17  ;;  %v7783_v56 = vpop.f32.mrb[49].mxu1  ;;  %8207 = vmatprep.mubr.msk.f32.mxu0 %vm9668_vm0, %v9669_v11  ;;  %v6578_v40 = vld [vmem:[%s13226_s1 + $0x2c8] sm:$0xff]  ;;  %v6597_v53 = vld [vmem:[%s13226_s1 + $0x2f8] sm:$0xff] }
 0x149   : > { %v10917_v34 = vadd.f32 %v1025_v51, %v843_v29  ;;  %8258 = vmatprep.mubr.msk.f32.mxu1 %vm9668_vm0, %v9669_v11  ;;  %v6596_v29 = vld [vmem:[%s13226_s1 + $0x2f0] sm:$0xff] }
 0x14a   : > { %v828_v20 = vpop.f32.mrb[50].mxu0  ;;  %v9631_v56 = vld [vmem:[%s9765_s28 + $0x13] sm:$0xff] }
 0x14b   : > { %v844_v55 = vadd.f32 %v828_v20, %v10709_v5  ;;  %v7735_v39 = vpop.f32.mrb[51].mxu0  ;;  %8208 = vmatmul.mubr.msk.f32.vlgmr.msra.gmra.mrb[156].mxu0 %vm304_vm1, %v10338_v52  ;;  %v1030_v38 = vpop.f32.mrb[50].mxu1  ;;  %v9409_v52 = vpack.c.bf16 %v6576_v54, %v6575_v21  ;;  %v256_v54 = vld [vmem:[%s13228_s3 + $0x20] sm:$0xff] }
 0x14c   : > { %8259 = vmatmul.mubr.msk.f32.vlgmr.msra.gmra.mrb[156].mxu1 %vm304_vm1, %v9630_v16  ;;  %9407 = vmatpush3.bf16.msra.mxu0 %v9406_v28  ;;  %v7786_v23 = vpop.f32.mrb[51].mxu1  ;;  %v9632_v39 = vld [vmem:[%s9765_s28 + $0x1b] sm:$0xff] }
 0x14d   : > { %v10938_v62 = vadd.f32 %v1030_v38, %v844_v55  ;;  %8210 = vmatprep.mubr.msk.f32.mxu0 %vm9668_vm0, %v9669_v11  ;;  %9416 = vmatpush3.bf16.msra.mxu1 %v9415_v46  ;;  %v9421_v46 = vpack.c.bf16 %v6597_v53, %v6596_v29  ;;  %v258_v23 = vld [vmem:[%s13228_s3 + $0x30] sm:$0xff] }
 0x14e   : > { %v1212_v5 = vpop.f32.mrb[52].mxu0  ;;  %8261 = vmatprep.mubr.msk.f32.mxu1 %vm9668_vm0, %v9669_v11  ;;  %9408 = vmatprep.subr.bf16.mxu0 %v9667_v3  ;;  %v9634_v53 = vld [vmem:[%s9765_s28 + $0x2b] sm:$0xff] }
 0x14f   : > { %v7801_v44 = vpop.f32.mrb[53].mxu0  ;;  %v1342_v26 = vpop.f32.mrb[52].mxu1  ;;  %8211 = vmatmul.mubr.msk.f32.gmra.mrb[158].mxu0 %vm304_vm1, %v10359_v19  ;;  %9417 = vmatprep.subr.bf16.mxu1 %v9667_v3  ;;  %v9412_v19 = vpack.c.bf16 %v6578_v40, %v6577_v32  ;;  %v255_v32 = vld [vmem:[%s13228_s3 + $0x18] sm:$0xff] }
 0x150   : > { %v10960_v51 = vadd.f32 %v1342_v26, %v1212_v5  ;;  %8262 = vmatmul.mubr.msk.f32.gmra.mrb[158].mxu1 %vm304_vm1, %v9631_v56  ;;  %v7852_v28 = vpop.f32.mrb[53].mxu1  ;;  %8213 = vmatprep.mubr.msk.f32.mxu0 %vm9668_vm0, %v9669_v11  ;;  %v9633_v5 = vld [vmem:[%s9765_s28 + $0x23] sm:$0xff] }
 0x151   : > { %8264 = vmatprep.mubr.msk.f32.mxu1 %vm9668_vm0, %v9669_v11  ;;  %9410 = vmatpush3.bf16.msra.mxu0 %v9409_v52  ;;  %v260_v26 = vld [vmem:[%s13228_s3 + $0x40] sm:$0xff]  ;;  %v257_v28 = vld [vmem:[%s13228_s3 + $0x28] sm:$0xff] }
 0x152   : > { %v1217_v60 = vpop.f32.mrb[54].mxu0  ;;  %9419 = vmatpush3.bf16.msra.mxu1 %v9418_v18  ;;  %9411 = vmatprep.subr.bf16.mxu0 %v9667_v3 }
 0x153   : > { %v7804_v20 = vpop.f32.mrb[55].mxu0  ;;  %v1347_v21 = vpop.f32.mrb[54].mxu1  ;;  %8214 = vmatmul.mubr.msk.f32.gmra.mrb[160].mxu0 %vm304_vm1, %v10386_v59  ;;  %9420 = vmatprep.subr.bf16.mxu1 %v9667_v3  ;;  %v254_v59 = vld [vmem:[%s13228_s3 + $0x10] sm:$0xff] }
 0x154   : > { %v10975_v55 = vadd.f32 %v1347_v21, %v1217_v60  ;;  %8265 = vmatmul.mubr.msk.f32.gmra.mrb[160].mxu1 %vm304_vm1, %v9632_v39  ;;  %v7855_v38 = vpop.f32.mrb[55].mxu1  ;;  %8216 = vmatprep.mubr.msk.f32.mxu0 %vm9668_vm0, %v9669_v11  ;;  %v9635_v21 = vld [vmem:[%s9765_s28 + $0x33] sm:$0xff] }
 0x155   : > { %8267 = vmatprep.mubr.msk.f32.mxu1 %vm9668_vm0, %v9669_v11  ;;  %9413 = vmatpush3.bf16.msra.mxu0 %v9412_v19  ;;  %v259_v39 = vld [vmem:[%s13228_s3 + $0x38] sm:$0xff] }
 0x156   : > { %v1222_v58 = vpop.f32.mrb[56].mxu0  ;;  %9422 = vmatpush3.bf16.msra.mxu1 %v9421_v46  ;;  %3201 = vperm.xlu0 %9628, %v256_v54   ;;  %v262_v46 = vld [vmem:[%s13228_s3 + $0x50] sm:$0xff] }
 0x157   : > { %v7807_v41 = vpop.f32.mrb[57].mxu0  ;;  %v1352_v16 = vpop.f32.mrb[56].mxu1  ;;  %8217 = vmatmul.mubr.msk.f32.gmra.mrb[162].mxu0 %vm304_vm1, %v10399_v0  ;;  %3191 = vperm.xlu1 %9629, %v254_v59  }
 0x158   : > { %v10991_v52 = vadd.f32 %v1352_v16, %v1222_v58  ;;  %8268 = vmatmul.mubr.msk.f32.gmra.mrb[162].mxu1 %vm304_vm1, %v9633_v5  ;;  %v7858_v18 = vpop.f32.mrb[57].mxu1  ;;  %8219 = vmatprep.mubr.msk.f32.mxu0 %vm9668_vm0, %v9669_v11  ;;  %v264_v58 = vld [vmem:[%s13228_s3 + $0x60] sm:$0xf]  ;;  %v261_v5 = vld [vmem:[%s13228_s3 + $0x48] sm:$0xff] }
 0x159   : > { %8270 = vmatprep.mubr.msk.f32.mxu1 %vm9668_vm0, %v9669_v11  ;;  %9423 = vmatprep.subr.bf16.mxu0 %v9667_v3  ;;  %v9636_v16 = vld [vmem:[%s9765_s28 + $0x3b] sm:$0xff] }
 0x15a   : > { %v1227_v0 = vpop.f32.mrb[58].mxu0  ;;  %3211 = vperm.xlu0 %9628, %v258_v23   ;;  %9435 = vmatprep.subr.bf16.mxu1 %v9667_v3 }
 0x15b   : > { %v7810_v40 = vpop.f32.mrb[59].mxu0  ;;  %v1357_v44 = vpop.f32.mrb[58].mxu1  ;;  %8220 = vmatmul.mubr.msk.f32.gmra.mrb[164].mxu0 %vm304_vm1, %v10412_v1  ;;  %3196 = vperm.xlu1 %9629, %v255_v32  }
 0x15c   : > { %v11009_v29 = vadd.f32 %v1357_v44, %v1227_v0  ;;  %8271 = vmatmul.mubr.msk.f32.gmra.mrb[164].mxu1 %vm304_vm1, %v9634_v53  ;;  %v7861_v56 = vpop.f32.mrb[59].mxu1  ;;  %8222 = vmatprep.mubr.msk.f32.mxu0 %vm9668_vm0, %v9669_v11  ;;  %v9637_v40 = vld [vmem:[%s9765_s28 + $0x43] sm:$0xff] }
 0x15d   : > { %8273 = vmatprep.mubr.msk.f32.mxu1 %vm9668_vm0, %v9669_v11 }
 0x15e   : > { %v1232_v1 = vpop.f32.mrb[60].mxu0  ;;  %3221 = vperm.xlu0 %9628, %v260_v26   ;;  %v263_v26 = vld [vmem:[%s13228_s3 + $0x58] sm:$0xff] }
 0x15f   : > { %v7813_v19 = vpop.f32.mrb[61].mxu0  ;;  %v1362_v60 = vpop.f32.mrb[60].mxu1  ;;  %8223 = vmatmul.mubr.msk.f32.gmra.mrb[166].mxu0 %vm304_vm1, %v10423_v2  ;;  %3206 = vperm.xlu1 %9629, %v257_v28  }
 0x160   : > { %v11025_v20 = vadd.f32 %v1362_v60, %v1232_v1  ;;  %8274 = vmatmul.mubr.msk.f32.gmra.mrb[166].mxu1 %vm304_vm1, %v9635_v21  ;;  %v7864_v54 = vpop.f32.mrb[61].mxu1  ;;  %8225 = vmatprep.mubr.msk.f32.mxu0 %vm9668_vm0, %v9669_v11  ;;  %v9638_v1 = vld [vmem:[%s9765_s28 + $0x4b] sm:$0xff] }
 0x161   : > { %8276 = vmatprep.mubr.msk.f32.mxu1 %vm9668_vm0, %v9669_v11  ;;  %v9639_v54 = vld [vmem:[%s9765_s28 + $0x53] sm:$0xff] }
 0x162   : > { %v1237_v2 = vpop.f32.mrb[62].mxu0  ;;  %3231 = vperm.xlu0 %9628, %v262_v46  }
 0x163   : > { %v7816_v38 = vpop.f32.mrb[63].mxu0  ;;  %v1367_v59 = vpop.f32.mrb[62].mxu1  ;;  %8226 = vmatmul.mubr.msk.f32.gmra.mrb[168].mxu0 %vm304_vm1, %v10434_v4  ;;  %3216 = vperm.xlu1 %9629, %v259_v39  }
 0x164   : > { %v11041_v41 = vadd.f32 %v1367_v59, %v1237_v2  ;;  %8277 = vmatmul.mubr.msk.f32.gmra.mrb[168].mxu1 %vm304_vm1, %v9636_v16  ;;  %v7867_v23 = vpop.f32.mrb[63].mxu1  ;;  %8228 = vmatprep.mubr.msk.f32.mxu0 %vm9668_vm0, %v9669_v11 }
 0x165   : > { %8279 = vmatprep.mubr.msk.f32.mxu1 %vm9668_vm0, %v9669_v11 }
 0x166   : > { %v1242_v4 = vpop.f32.mrb[64].mxu0  ;;  %3241 = vperm.xlu0 %9628, %v264_v58   ;;  %v9640_v58 = vld [vmem:[%s9765_s28 + $0x5b] sm:$0xff] }
 0x167   : > { %v7819_v18 = vpop.f32.mrb[65].mxu0  ;;  %v1372_v32 = vpop.f32.mrb[64].mxu1  ;;  %8229 = vmatmul.mubr.msk.f32.gmra.mrb[170].mxu0 %vm304_vm1, %v10445_v6  ;;  %3226 = vperm.xlu1 %9629, %v261_v5  }
 0x168   : > { %v11054_v0 = vadd.f32 %v1372_v32, %v1242_v4  ;;  %8280 = vmatmul.mubr.msk.f32.gmra.mrb[170].mxu1 %vm304_vm1, %v9637_v40  ;;  %v7870_v44 = vpop.f32.mrb[65].mxu1  ;;  %8231 = vmatprep.mubr.msk.f32.mxu0 %vm9668_vm0, %v9669_v11  ;;  %v9641_v18 = vld [vmem:[%s9765_s28 + $0x63] sm:$0xff] }
 0x169   : > { %8282 = vmatprep.mubr.msk.f32.mxu1 %vm9668_vm0, %v9669_v11 }
 0x16a   : > { %v1247_v53 = vpop.f32.mrb[66].mxu0 }
 0x16b   : > { %v7822_v6 = vpop.f32.mrb[67].mxu0  ;;  %v1377_v56 = vpop.f32.mrb[66].mxu1  ;;  %8232 = vmatmul.mubr.msk.f32.gmra.mrb[172].mxu0 %vm304_vm1, %v10456_v8  ;;  %3236 = vperm.xlu1 %9629, %v263_v26  }
 0x16c   : > { %v11067_v28 = vadd.f32 %v1377_v56, %v1247_v53  ;;  %8283 = vmatmul.mubr.msk.f32.gmra.mrb[172].mxu1 %vm304_vm1, %v9638_v1  ;;  %v7873_v19 = vpop.f32.mrb[67].mxu1  ;;  %8234 = vmatprep.mubr.msk.f32.mxu0 %vm9668_vm0, %v9669_v11  ;;  %v9642_v53 = vld [vmem:[%s9765_s28 + $0x6b] sm:$0xf]  ;;  %v2938_v56 = vld [vmem:[%s9765_s28 + $0x16] sm:$0xff] }
 0x16d   : > { %8285 = vmatprep.mubr.msk.f32.mxu1 %vm9668_vm0, %v9669_v11 }
 0x16e   : > { %v1252_v60 = vpop.f32.mrb[68].mxu0 }
 0x16f   : > { %v7825_v46 = vpop.f32.mrb[69].mxu0  ;;  %v1382_v21 = vpop.f32.mrb[68].mxu1  ;;  %8235 = vmatmul.mubr.msk.f32.gmra.mrb[174].mxu0 %vm304_vm1, %v10467_v9 }
 0x170   : > { %v11077_v8 = vadd.f32 %v1382_v21, %v1252_v60  ;;  %8286 = vmatmul.mubr.msk.f32.gmra.mrb[174].mxu1 %vm304_vm1, %v9639_v54  ;;  %v7876_v39 = vpop.f32.mrb[69].mxu1  ;;  %8237 = vmatprep.mubr.msk.f32.mxu0 %vm9668_vm0, %v9669_v11  ;;  %v2939_v21 = vld [vmem:[%s9765_s28 + $0x1e] sm:$0xff] }
 0x171   : > { %8288 = vmatprep.mubr.msk.f32.mxu1 %vm9668_vm0, %v9669_v11  ;;  %v11129_v54 = vld [vmem:[%s13227_s2] ss:$0 sm:$0xff] }
 0x172   : > { %v1257_v2 = vpop.f32.mrb[70].mxu0 }
 0x173   : > { %v7828_v38 = vpop.f32.mrb[71].mxu0  ;;  %v1387_v59 = vpop.f32.mrb[70].mxu1  ;;  %8238 = vmatmul.mubr.msk.f32.gmra.mrb[176].mxu0 %vm304_vm1, %v10478_v10 }
 0x174   : > { %v11087_v9 = vadd.f32 %v1387_v59, %v1257_v2  ;;  %8289 = vmatmul.mubr.msk.f32.gmra.mrb[176].mxu1 %vm304_vm1, %v9640_v58  ;;  %v7879_v16 = vpop.f32.mrb[71].mxu1  ;;  %8240 = vmatprep.mubr.msk.f32.mxu0 %vm9668_vm0, %v9669_v11  ;;  %v1054_v58 = vadd.f32 %v11129_v54, %v10741_v25 }
 0x175   : > { %8291 = vmatprep.mubr.msk.f32.mxu1 %vm9668_vm0, %v9669_v11 }
 0x176   : > { %v1262_v23 = vpop.f32.mrb[72].mxu0  ;;  %v1067_v25 = vmax.f32 %v1054_v58, 0.0 }
 0x177   : > { %v7831_v5 = vpop.f32.mrb[73].mxu0  ;;  %v1392_v4 = vpop.f32.mrb[72].mxu1  ;;  %8241 = vmatmul.mubr.msk.f32.gmra.mrb[178].mxu0 %vm304_vm1, %v10489_v12 }
 0x178   : > { %v11097_v10 = vadd.f32 %v1392_v4, %v1262_v23  ;;  %8292 = vmatmul.mubr.msk.f32.gmra.mrb[178].mxu1 %vm304_vm1, %v9641_v18  ;;  %v7882_v32 = vpop.f32.mrb[73].mxu1  ;;  %8243 = vmatprep.mubr.msk.f32.mxu0 %vm9668_vm0, %v9669_v11 }
 0x179   : > { %8294 = vmatprep.mubr.msk.f32.mxu1 %vm9668_vm0, %v9669_v11 }
 0x17a   : > { %v1267_v40 = vpop.f32.mrb[74].mxu0 }
 0x17b   : > { %v7834_v44 = vpop.f32.mrb[75].mxu0  ;;  %v1397_v26 = vpop.f32.mrb[74].mxu1  ;;  %8244 = vmatmul.mubr.msk.f32.gmra.mrb[180].mxu0 %vm304_vm1, %v10500_v24 }
 0x17c   : > { %v11107_v12 = vadd.f32 %v1397_v26, %v1267_v40  ;;  %8295 = vmatmul.mubr.msk.f32.gmra.mrb[180].mxu1 %vm304_vm1, %v9642_v53  ;;  %v7885_v6 = vpop.f32.mrb[75].mxu1  ;;  %8309 = vmatprep.mubr.msk.f32.mxu0 %vm9668_vm0, %v9669_v11  ;;  %v1055_v40 = vadd.f32 %v11129_v54, %v10757_v47 }
 0x17d   : > { %8360 = vmatprep.mubr.msk.f32.mxu1 %vm9668_vm0, %v9669_v11 }
 0x17e   : > { %v1272_v1 = vpop.f32.mrb[76].mxu0 }
 0x17f   : > { %v7837_v19 = vpop.f32.mrb[77].mxu0  ;;  %v1402_v60 = vpop.f32.mrb[76].mxu1  ;;  %8310 = vmatmul.mubr.msk.f32.vlgmr.msra.gmra.mrb[182].mxu0 %vm304_vm1, %v10693_v50 }
 0x180   : > { %v11118_v24 = vadd.f32 %v1402_v60, %v1272_v1  ;;  %v7888_v46 = vpop.f32.mrb[77].mxu1  ;;  %8361 = vmatmul.mubr.msk.f32.vlgmr.msra.gmra.mrb[182].mxu1 %vm304_vm1, %v2938_v56  ;;  %8312 = vmatprep.mubr.msk.f32.mxu0 %vm9668_vm0, %v9669_v11  ;;  %v1068_v60 = vmax.f32 %v1055_v40, 0.0 }
 0x181   : > { %8363 = vmatprep.mubr.msk.f32.mxu1 %vm9668_vm0, %v9669_v11  ;;  %v1056_v46 = vadd.f32 %v11129_v54, %v10773_v30 }
 0x182   : > { %v1479_v39 = vpop.f32.mrb[78].mxu0 }
 0x183   : > { %v1543_v50 = vadd.f32 %v1479_v39, %v10960_v51  ;;  %v7903_v2 = vpop.f32.mrb[79].mxu0  ;;  %8313 = vmatmul.mubr.msk.f32.gmra.mrb[184].mxu0 %vm304_vm1, %v10716_v35  ;;  %v1681_v38 = vpop.f32.mrb[78].mxu1  ;;  %v2940_v51 = vld [vmem:[%s9765_s28 + $0x26] sm:$0xff] }
 0x184   : > { %v7954_v59 = vpop.f32.mrb[79].mxu1  ;;  %8364 = vmatmul.mubr.msk.f32.gmra.mrb[184].mxu1 %vm304_vm1, %v2939_v21  ;;  %8315 = vmatprep.mubr.msk.f32.mxu0 %vm9668_vm0, %v9669_v11 }
 0x185   : > { %v1745_v16 = vadd.f32 %v1681_v38, %v1543_v50  ;;  %8366 = vmatprep.mubr.msk.f32.mxu1 %vm9668_vm0, %v9669_v11 }
 0x186   : > { %v1484_v23 = vpop.f32.mrb[80].mxu0 }
 0x187   : > { %v1758_v5 = vadd.f32 %v11129_v54, %v1745_v16  ;;  %v1544_v35 = vadd.f32 %v1484_v23, %v10975_v55  ;;  %v7906_v4 = vpop.f32.mrb[81].mxu0  ;;  %8316 = vmatmul.mubr.msk.f32.gmra.mrb[186].mxu0 %vm304_vm1, %v10746_v42  ;;  %v1686_v18 = vpop.f32.mrb[80].mxu1  ;;  %v2941_v55 = vld [vmem:[%s9765_s28 + $0x2e] sm:$0xff]  ;;  %v1069_v16 = vmax.f32 %v1056_v46, 0.0 }
 0x188   : > { %v7957_v32 = vpop.f32.mrb[81].mxu1  ;;  %8367 = vmatmul.mubr.msk.f32.gmra.mrb[186].mxu1 %vm304_vm1, %v2940_v51  ;;  %8318 = vmatprep.mubr.msk.f32.mxu0 %vm9668_vm0, %v9669_v11  ;;  %v1057_v51 = vadd.f32 %v11129_v54, %v10787_v33 }
 0x189   : > { %v1771_v44 = vmax.f32 %v1758_v5, 0.0  ;;  %v1746_v26 = vadd.f32 %v1686_v18, %v1544_v35  ;;  %8369 = vmatprep.mubr.msk.f32.mxu1 %vm9668_vm0, %v9669_v11 }
 0x18a   : > { %v1489_v53 = vpop.f32.mrb[82].mxu0  ;;  %v1070_v40 = vmax.f32 %v1057_v51, 0.0 }
 0x18b   : > { %v11154_v42 = vmax.f32 %v1067_v25, %v1771_v44  ;;  %v1759_v6 = vadd.f32 %v11129_v54, %v1746_v26  ;;  %v1545_v56 = vadd.f32 %v1489_v53, %v10991_v52  ;;  %v7909_v1 = vpop.f32.mrb[83].mxu0  ;;  %8319 = vmatmul.mubr.msk.f32.gmra.mrb[188].mxu0 %vm304_vm1, %v10762_v14  ;;  %v1691_v19 = vpop.f32.mrb[82].mxu1  ;;  %v2942_v52 = vld [vmem:[%s9765_s28 + $0x36] sm:$0xff]  ;;  %v1058_v44 = vadd.f32 %v11129_v54, %v10801_v37 }
 0x18c   : > { %v7960_v47 = vpop.f32.mrb[83].mxu1  ;;  %8370 = vmatmul.mubr.msk.f32.gmra.mrb[188].mxu1 %vm304_vm1, %v2941_v55  ;;  %8321 = vmatprep.mubr.msk.f32.mxu0 %vm9668_vm0, %v9669_v11 }
 0x18d   : > { %v1772_v21 = vmax.f32 %v1759_v6, 0.0  ;;  %v1747_v39 = vadd.f32 %v1691_v19, %v1545_v56  ;;  %8372 = vmatprep.mubr.msk.f32.mxu1 %vm9668_vm0, %v9669_v11  ;;  %v1071_v47 = vmax.f32 %v1058_v44, 0.0 }
 0x18e   : > { %v1494_v50 = vpop.f32.mrb[84].mxu0 }
 0x18f   : > { %v11168_v14 = vmax.f32 %v1068_v60, %v1772_v21  ;;  %v1760_v2 = vadd.f32 %v11129_v54, %v1747_v39  ;;  %v1546_v38 = vadd.f32 %v1494_v50, %v11009_v29  ;;  %v7912_v59 = vpop.f32.mrb[85].mxu0  ;;  %8322 = vmatmul.mubr.msk.f32.gmra.mrb[190].mxu0 %vm304_vm1, %v10778_v22  ;;  %v1696_v58 = vpop.f32.mrb[84].mxu1  ;;  %v2943_v29 = vld [vmem:[%s9765_s28 + $0x3e] sm:$0xff]  ;;  %v1059_v60 = vadd.f32 %v11129_v54, %v10815_v61 }
 0x190   : > { %v7963_v30 = vpop.f32.mrb[85].mxu1  ;;  %8373 = vmatmul.mubr.msk.f32.gmra.mrb[190].mxu1 %vm304_vm1, %v2942_v52  ;;  %8324 = vmatprep.mubr.msk.f32.mxu0 %vm9668_vm0, %v9669_v11 }
 0x191   : > { %v1773_v23 = vmax.f32 %v1760_v2, 0.0  ;;  %v1748_v5 = vadd.f32 %v1696_v58, %v1546_v38  ;;  %8375 = vmatprep.mubr.msk.f32.mxu1 %vm9668_vm0, %v9669_v11  ;;  %v1072_v59 = vmax.f32 %v1059_v60, 0.0  ;;  %v1060_v58 = vadd.f32 %v11129_v54, %v10829_v43 }
 0x192   : > { %v1499_v35 = vpop.f32.mrb[86].mxu0 }
 0x193   : > { %v11182_v22 = vmax.f32 %v1069_v16, %v1773_v23  ;;  %v1761_v4 = vadd.f32 %v11129_v54, %v1748_v5  ;;  %v1547_v18 = vadd.f32 %v1499_v35, %v11025_v20  ;;  %v7915_v32 = vpop.f32.mrb[87].mxu0  ;;  %8325 = vmatmul.mubr.msk.f32.gmra.mrb[192].mxu0 %vm304_vm1, %v10792_v31  ;;  %v1701_v25 = vpop.f32.mrb[86].mxu1  ;;  %v2944_v20 = vld [vmem:[%s9765_s28 + $0x46] sm:$0xff] }
 0x194   : > { %v7966_v33 = vpop.f32.mrb[87].mxu1  ;;  %8376 = vmatmul.mubr.msk.f32.gmra.mrb[192].mxu1 %vm304_vm1, %v2943_v29  ;;  %8327 = vmatprep.mubr.msk.f32.mxu0 %vm9668_vm0, %v9669_v11 }
 0x195   : > { %v1774_v26 = vmax.f32 %v1761_v4, 0.0  ;;  %v1749_v55 = vadd.f32 %v1701_v25, %v1547_v18  ;;  %8378 = vmatprep.mubr.msk.f32.mxu1 %vm9668_vm0, %v9669_v11  ;;  %v1073_v4 = vmax.f32 %v1060_v58, 0.0  ;;  %v1061_v18 = vadd.f32 %v11129_v54, %v10843_v27 }
 0x196   : > { %v1504_v53 = vpop.f32.mrb[88].mxu0 }
 0x197   : > { %v11196_v31 = vmax.f32 %v1070_v40, %v1774_v26  ;;  %v1762_v6 = vadd.f32 %v11129_v54, %v1749_v55  ;;  %v1548_v56 = vadd.f32 %v1504_v53, %v11041_v41  ;;  %v7918_v1 = vpop.f32.mrb[89].mxu0  ;;  %8328 = vmatmul.mubr.msk.f32.gmra.mrb[194].mxu0 %vm304_vm1, %v10806_v36  ;;  %v1706_v19 = vpop.f32.mrb[88].mxu1  ;;  %v2945_v41 = vld [vmem:[%s9765_s28 + $0x4e] sm:$0xff]  ;;  %v1062_v53 = vadd.f32 %v11129_v54, %v10857_v7 }
 0x198   : > { %v7969_v37 = vpop.f32.mrb[89].mxu1  ;;  %8379 = vmatmul.mubr.msk.f32.gmra.mrb[194].mxu1 %vm304_vm1, %v2944_v20  ;;  %8330 = vmatprep.mubr.msk.f32.mxu0 %vm9668_vm0, %v9669_v11  ;;  %v1074_v20 = vmax.f32 %v1061_v18, 0.0 }
 0x199   : > { %v1775_v46 = vmax.f32 %v1762_v6, 0.0  ;;  %v1750_v21 = vadd.f32 %v1706_v19, %v1548_v56  ;;  %8381 = vmatprep.mubr.msk.f32.mxu1 %vm9668_vm0, %v9669_v11 }
 0x19a   : > { %v1509_v39 = vpop.f32.mrb[90].mxu0 }
 0x19b   : > { %v11210_v36 = vmax.f32 %v1071_v47, %v1775_v46  ;;  %v1763_v52 = vadd.f32 %v11129_v54, %v1750_v21  ;;  %v1549_v50 = vadd.f32 %v1509_v39, %v11054_v0  ;;  %v7921_v2 = vpop.f32.mrb[91].mxu0  ;;  %8331 = vmatmul.mubr.msk.f32.gmra.mrb[196].mxu0 %vm304_vm1, %v10820_v63  ;;  %v1711_v38 = vpop.f32.mrb[90].mxu1  ;;  %v2946_v0 = vld [vmem:[%s9765_s28 + $0x56] sm:$0xff]  ;;  %v1075_v46 = vmax.f32 %v1062_v53, 0.0 }
 0x19c   : > { %v7972_v61 = vpop.f32.mrb[91].mxu1  ;;  %8382 = vmatmul.mubr.msk.f32.gmra.mrb[196].mxu1 %vm304_vm1, %v2945_v41  ;;  %8333 = vmatprep.mubr.msk.f32.mxu0 %vm9668_vm0, %v9669_v11  ;;  %v1063_v21 = vadd.f32 %v11129_v54, %v10872_v15  ;;  %v1064_v15 = vadd.f32 %v11129_v54, %v10889_v45 }
 0x19d   : > { %v1776_v30 = vmax.f32 %v1763_v52, 0.0  ;;  %v1751_v16 = vadd.f32 %v1711_v38, %v1549_v50  ;;  %8384 = vmatprep.mubr.msk.f32.mxu1 %vm9668_vm0, %v9669_v11 }
 0x19e   : > { %v1514_v51 = vpop.f32.mrb[92].mxu0  ;;  %v1076_v58 = vmax.f32 %v1063_v21, 0.0 }
 0x19f   : > { %v11224_v63 = vmax.f32 %v1072_v59, %v1776_v30  ;;  %v1764_v23 = vadd.f32 %v11129_v54, %v1751_v16  ;;  %v1550_v5 = vadd.f32 %v1514_v51, %v11067_v28  ;;  %v7924_v29 = vpop.f32.mrb[93].mxu0  ;;  %8334 = vmatmul.mubr.msk.f32.gmra.mrb[198].mxu0 %vm304_vm1, %v10834_v49  ;;  %v1716_v35 = vpop.f32.mrb[92].mxu1  ;;  %v2947_v28 = vld [vmem:[%s9765_s28 + $0x5e] sm:$0xff] }
 0x1a0   : > { %v7975_v43 = vpop.f32.mrb[93].mxu1  ;;  %8385 = vmatmul.mubr.msk.f32.gmra.mrb[198].mxu1 %vm304_vm1, %v2946_v0  ;;  %8336 = vmatprep.mubr.msk.f32.mxu0 %vm9668_vm0, %v9669_v11  ;;  %v1077_v29 = vmax.f32 %v1064_v15, 0.0 }
 0x1a1   : > { %v1777_v32 = vmax.f32 %v1764_v23, 0.0  ;;  %v1752_v25 = vadd.f32 %v1716_v35, %v1550_v5  ;;  %8387 = vmatprep.mubr.msk.f32.mxu1 %vm9668_vm0, %v9669_v11  ;;  %v6611_v43 = vld [vmem:[%s13229_s4 + $0x40] sm:$0xff] }
 0x1a2   : > { %v1519_v33 = vpop.f32.mrb[94].mxu0 }
 0x1a3   : > { %v11238_v49 = vmax.f32 %v1073_v4, %v1777_v32  ;;  %v1765_v40 = vadd.f32 %v11129_v54, %v1752_v25  ;;  %v1551_v44 = vadd.f32 %v1519_v33, %v11077_v8  ;;  %v7927_v26 = vpop.f32.mrb[95].mxu0  ;;  %8337 = vmatmul.mubr.msk.f32.gmra.mrb[200].mxu0 %vm304_vm1, %v10848_v48  ;;  %v1721_v55 = vpop.f32.mrb[94].mxu1  ;;  %v2948_v8 = vld [vmem:[%s9765_s28 + $0x66] sm:$0xff] }
 0x1a4   : > { %v7978_v27 = vpop.f32.mrb[95].mxu1  ;;  %8388 = vmatmul.mubr.msk.f32.gmra.mrb[200].mxu1 %vm304_vm1, %v2947_v28  ;;  %8339 = vmatprep.mubr.msk.f32.mxu0 %vm9668_vm0, %v9669_v11  ;;  %v6612_v4 = vld [vmem:[%s13229_s4 + $0x48] sm:$0xff]  ;;  %v3302_v28 = vld [vmem:[%s13229_s4] sm:$0xff] }
 0x1a5   : > { %v1778_v6 = vmax.f32 %v1765_v40, 0.0  ;;  %v1753_v56 = vadd.f32 %v1721_v55, %v1551_v44  ;;  %8390 = vmatprep.mubr.msk.f32.mxu1 %vm9668_vm0, %v9669_v11  ;;  %v9424_v32 = vpack.c.bf16 %v6612_v4, %v6611_v43  ;;  %v3303_v33 = vld [vmem:[%s13229_s4 + $0x8] sm:$0xff] }
 0x1a6   : > { %v1524_v1 = vpop.f32.mrb[96].mxu0  ;;  %v9436_v27 = vpack.c.bf16 %v3303_v33, %v3302_v28  ;;  %v6616_v28 = vld [vmem:[%s13229_s4 + $0x68] sm:$0xff] }
 0x1a7   : > { %v11252_v48 = vmax.f32 %v1074_v20, %v1778_v6  ;;  %v1766_v19 = vadd.f32 %v11129_v54, %v1753_v56  ;;  %v1552_v37 = vadd.f32 %v1524_v1, %v11087_v9  ;;  %v7930_v47 = vpop.f32.mrb[97].mxu0  ;;  %8340 = vmatmul.mubr.msk.f32.gmra.mrb[202].mxu0 %vm304_vm1, %v10862_v57  ;;  %v1726_v60 = vpop.f32.mrb[96].mxu1  ;;  %v2949_v9 = vld [vmem:[%s9765_s28 + $0x6e] sm:$0xff]  ;;  %v1066_v6 = vadd.f32 %v11129_v54, %v10938_v62 }
 0x1a8   : > { %v7981_v7 = vpop.f32.mrb[97].mxu1  ;;  %8391 = vmatmul.mubr.msk.f32.gmra.mrb[202].mxu1 %vm304_vm1, %v2948_v8  ;;  %8342 = vmatprep.mubr.msk.f32.mxu0 %vm9668_vm0, %v9669_v11 }
 0x1a9   : > { %v1779_v41 = vmax.f32 %v1766_v19, 0.0  ;;  %v1754_v39 = vadd.f32 %v1726_v60, %v1552_v37  ;;  %8393 = vmatprep.mubr.msk.f32.mxu1 %vm9668_vm0, %v9669_v11  ;;  %9425 = vmatpush3.bf16.msra.mxu0 %v9424_v32 }
 0x1aa   : > { %v1529_v52 = vpop.f32.mrb[98].mxu0  ;;  %9426 = vmatprep.subr.bf16.mxu0 %v9667_v3  ;;  %9437 = vmatpush3.bf16.msra.mxu1 %v9436_v27  ;;  %v3306_v27 = vld [vmem:[%s13229_s4 + $0x20] sm:$0xff] }
 0x1ab   : > { %v11266_v57 = vmax.f32 %v1075_v46, %v1779_v41  ;;  %v1767_v50 = vadd.f32 %v11129_v54, %v1754_v39  ;;  %v1553_v2 = vadd.f32 %v1529_v52, %v11097_v10  ;;  %v7933_v38 = vpop.f32.mrb[99].mxu0  ;;  %8343 = vmatmul.mubr.msk.f32.gmra.mrb[204].mxu0 %vm304_vm1, %v10877_v13  ;;  %v1731_v61 = vpop.f32.mrb[98].mxu1  ;;  %v2950_v10 = vld [vmem:[%s9765_s28 + $0x76] sm:$0xf]  ;;  %9438 = vmatprep.subr.bf16.mxu1 %v9667_v3  ;;  %v1079_v46 = vmax.f32 %v1066_v6, 0.0 }
 0x1ac   : > { %v7984_v59 = vpop.f32.mrb[99].mxu1  ;;  %8394 = vmatmul.mubr.msk.f32.gmra.mrb[204].mxu1 %vm304_vm1, %v2949_v9  ;;  %8345 = vmatprep.mubr.msk.f32.mxu0 %vm9668_vm0, %v9669_v11  ;;  %v6614_v38 = vld [vmem:[%s13229_s4 + $0x58] sm:$0xff] }
 0x1ad   : > { %v1780_v30 = vmax.f32 %v1767_v50, 0.0  ;;  %v1755_v16 = vadd.f32 %v1731_v61, %v1553_v2  ;;  %8396 = vmatprep.mubr.msk.f32.mxu1 %vm9668_vm0, %v9669_v11  ;;  %v6613_v2 = vld [vmem:[%s13229_s4 + $0x50] sm:$0xff] }
 0x1ae   : > { %v1534_v0 = vpop.f32.mrb[100].mxu0  ;;  %v9427_v61 = vpack.c.bf16 %v6614_v38, %v6613_v2 }
 0x1af   : > { %v11280_v51 = vmax.f32 %v1076_v58, %v1780_v30  ;;  %v1768_v13 = vadd.f32 %v11129_v54, %v1755_v16  ;;  %v1554_v45 = vadd.f32 %v1534_v0, %v11107_v12  ;;  %v7936_v23 = vpop.f32.mrb[101].mxu0  ;;  %8346 = vmatmul.mubr.msk.f32.gmra.mrb[206].mxu0 %vm304_vm1, %v10894_v17  ;;  %v1736_v5 = vpop.f32.mrb[100].mxu1  ;;  %v1065_v12 = vadd.f32 %v11129_v54, %v10917_v34  ;;  %v3305_v0 = vld [vmem:[%s13229_s4 + $0x18] sm:$0xff] }
 0x1b0   : > { %v7987_v35 = vpop.f32.mrb[101].mxu1  ;;  %8397 = vmatmul.mubr.msk.f32.gmra.mrb[206].mxu1 %vm304_vm1, %v2950_v10  ;;  %8415 = vmatprep.mubr.msk.f32.mxu0 %vm9668_vm0, %v9669_v11  ;;  %v3304_v10 = vld [vmem:[%s13229_s4 + $0x10] sm:$0xff] }
 0x1b1   : > { %v1781_v17 = vmax.f32 %v1768_v13, 0.0  ;;  %v1756_v18 = vadd.f32 %v1736_v5, %v1554_v45  ;;  %8470 = vmatprep.mubr.msk.f32.mxu1 %vm9668_vm0, %v9669_v11  ;;  %v1078_v53 = vmax.f32 %v1065_v12, 0.0  ;;  %9428 = vmatpush3.bf16.msra.mxu0 %v9427_v61  ;;  %v9439_v13 = vpack.c.bf16 %v3305_v0, %v3304_v10  ;;  %v6618_v10 = vld [vmem:[%s13229_s4 + $0x78] sm:$0xff] }
 0x1b2   : > { %v1539_v25 = vpop.f32.mrb[102].mxu0  ;;  %9429 = vmatprep.subr.bf16.mxu0 %v9667_v3 }
 0x1b3   : > { %v11305_v40 = vmax.f32 %v1077_v29, %v1781_v17  ;;  %v1769_v44 = vadd.f32 %v11129_v54, %v1756_v18  ;;  %v1555_v34 = vadd.f32 %v1539_v25, %v11118_v24  ;;  %v7939_v26 = vpop.f32.mrb[103].mxu0  ;;  %v1741_v55 = vpop.f32.mrb[102].mxu1  ;;  %9440 = vmatpush3.bf16.msra.mxu1 %v9439_v13  ;;  %v6615_v25 = vld [vmem:[%s13229_s4 + $0x60] sm:$0xff] }
 0x1b4   : > { %v7990_v20 = vpop.f32.mrb[103].mxu1  ;;  %9441 = vmatprep.subr.bf16.mxu1 %v9667_v3 }
 0x1b5   : > { %v1782_v56 = vmax.f32 %v1769_v44, 0.0  ;;  %v1757_v8 = vadd.f32 %v1741_v55, %v1555_v34  ;;  %v9430_v34 = vpack.c.bf16 %v6616_v28, %v6615_v25  ;;  %v3307_v20 = vld [vmem:[%s13229_s4 + $0x28] sm:$0xff] }
 0x1b6   : > { %v1877_v1 = vpop.f32.mrb[104].mxu0 }
 0x1b7   : > { %v11313_v19 = vmax.f32 %v1078_v53, %v1782_v56  ;;  %v1770_v24 = vadd.f32 %v11129_v54, %v1757_v8  ;;  %v8005_v37 = vpop.f32.mrb[105].mxu0  ;;  %v2007_v47 = vpop.f32.mrb[104].mxu1  ;;  %9431 = vmatpush3.bf16.msra.mxu0 %v9430_v34  ;;  %v9442_v53 = vpack.c.bf16 %v3307_v20, %v3306_v27 }
 0x1b8   : > { %v11316_v60 = vadd.f32 %v2007_v47, %v1877_v1  ;;  %v8056_v7 = vpop.f32.mrb[105].mxu1  ;;  %9432 = vmatprep.subr.bf16.mxu0 %v9667_v3 }
 0x1b9   : > { %v1783_v21 = vmax.f32 %v1770_v24, 0.0  ;;  %9443 = vmatpush3.bf16.msra.mxu1 %v9442_v53 }
 0x1ba   : > { %v1882_v41 = vpop.f32.mrb[106].mxu0  ;;  %9444 = vmatprep.subr.bf16.mxu1 %v9667_v3 }
 0x1bb   : > { %v11318_v39 = vmax.f32 %v1079_v46, %v1783_v21  ;;  %v8008_v62 = vpop.f32.mrb[107].mxu0  ;;  %v2012_v9 = vpop.f32.mrb[106].mxu1 }
 0x1bc   : > { %v11320_v52 = vadd.f32 %v2012_v9, %v1882_v41  ;;  %v8059_v50 = vpop.f32.mrb[107].mxu1 }
 0x1be   : > { %v1887_v15 = vpop.f32.mrb[108].mxu0 }
 0x1bf   : > { %v8011_v59 = vpop.f32.mrb[109].mxu0  ;;  %v2017_v58 = vpop.f32.mrb[108].mxu1 }
 0x1c0   : > { %v11328_v30 = vadd.f32 %v2017_v58, %v1887_v15  ;;  %v8062_v16 = vpop.f32.mrb[109].mxu1 }
 0x1c1   : > { %v6617_v16 = vld [vmem:[%s13229_s4 + $0x70] sm:$0xff] }
 0x1c2   : > { %v1892_v45 = vpop.f32.mrb[110].mxu0  ;;  %v9433_v13 = vpack.c.bf16 %v6618_v10, %v6617_v16 }
 0x1c3   : > { %v8014_v23 = vpop.f32.mrb[111].mxu0  ;;  %v2022_v5 = vpop.f32.mrb[110].mxu1 }
 0x1c4   : > { %v11337_v29 = vadd.f32 %v2022_v5, %v1892_v45  ;;  %v8065_v35 = vpop.f32.mrb[111].mxu1  ;;  %v3308_v45 = vld [vmem:[%s13229_s4 + $0x30] sm:$0xff]  ;;  %v3309_v23 = vld [vmem:[%s13229_s4 + $0x38] sm:$0xff]  ;;  %9434 = vmatpush3.bf16.msra.mxu0 %v9433_v13 }
 0x1c5   : > { %9447 = vmatprep.subr.bf16.mxu0 %v9667_v3 }
 0x1c6   : > { %v1897_v43 = vpop.f32.mrb[112].mxu0 }
 0x1c7   : > { %v8017_v4 = vpop.f32.mrb[113].mxu0  ;;  %v2027_v12 = vpop.f32.mrb[112].mxu1 }
 0x1c8   : > { %v11340_v17 = vadd.f32 %v2027_v12, %v1897_v43  ;;  %v8068_v18 = vpop.f32.mrb[113].mxu1  ;;  %v9445_v43 = vpack.c.bf16 %v3309_v23, %v3308_v45 }
 0x1ca   : > { %v1902_v32 = vpop.f32.mrb[114].mxu0  ;;  %9446 = vmatpush3.bf16.msra.mxu1 %v9445_v43 }
 0x1cb   : > { %v8020_v33 = vpop.f32.mrb[115].mxu0  ;;  %v2032_v44 = vpop.f32.mrb[114].mxu1  ;;  %9459 = vmatprep.subr.bf16.mxu1 %v9667_v3 }
 0x1cc   : > { %v11348_v26 = vadd.f32 %v2032_v44, %v1902_v32  ;;  %v8071_v55 = vpop.f32.mrb[115].mxu1  ;;  %v3310_v32 = vld [vmem:[#allocation2 + $0x1] sm:$0xff] }
 0x1cd   : > { %8416 = vmatmul.mubr.msk.f32.vlgmr.msra.gmra.mrb[208].mxu0 %vm3257_vm2, %v3310_v32  ;;  %v3289_v33 = vld [vmem:[#allocation2] sm:$0xff] }
 0x1ce   : > { %v1907_v6 = vpop.f32.mrb[116].mxu0  ;;  %8471 = vmatmul.mubr.msk.f32.vlgmr.msra.gmra.mrb[208].mxu1 %vm3257_vm2, %v3289_v33  ;;  %8418 = vmatprep.mubr.msk.f32.mxu0 %vm9668_vm0, %v9669_v11 }
 0x1cf   : > { %v8023_v56 = vpop.f32.mrb[117].mxu0  ;;  %v2037_v8 = vpop.f32.mrb[116].mxu1  ;;  %8473 = vmatprep.mubr.msk.f32.mxu1 %vm9668_vm0, %v9669_v11 }
 0x1d0   : > { %v11357_v1 = vadd.f32 %v2037_v8, %v1907_v6  ;;  %v8074_v24 = vpop.f32.mrb[117].mxu1 }
 0x1d2   : > { %v1912_v37 = vpop.f32.mrb[118].mxu0 }
 0x1d3   : > { %v8026_v47 = vpop.f32.mrb[119].mxu0  ;;  %v2042_v7 = vpop.f32.mrb[118].mxu1 }
 0x1d4   : > { %v11360_v46 = vadd.f32 %v2042_v7, %v1912_v37  ;;  %v8077_v21 = vpop.f32.mrb[119].mxu1 }
 0x1d6   : > { %v1917_v41 = vpop.f32.mrb[120].mxu0 }
 0x1d7   : > { %v8029_v62 = vpop.f32.mrb[121].mxu0  ;;  %v2047_v9 = vpop.f32.mrb[120].mxu1 }
 0x1d8   : > { %v11362_v50 = vadd.f32 %v2047_v9, %v1917_v41  ;;  %v8080_v2 = vpop.f32.mrb[121].mxu1 }
 0x1da   : > { %v1922_v38 = vpop.f32.mrb[122].mxu0 }
 0x1db   : > { %v8032_v61 = vpop.f32.mrb[123].mxu0  ;;  %v2052_v15 = vpop.f32.mrb[122].mxu1 }
 0x1dc   : > { %v11394_v59 = vadd.f32 %v2052_v15, %v1922_v38  ;;  %v8083_v58 = vpop.f32.mrb[123].mxu1  ;;  %v6645_v38 = vld [vmem:[%s13229_s4 + $0x80] sm:$0xff]  ;;  %v6646_v61 = vld [vmem:[%s13229_s4 + $0x88] sm:$0xff] }
 0x1dd   : > { %v9448_v58 = vpack.c.bf16 %v6646_v61, %v6645_v38 }
 0x1de   : > { %v1927_v0 = vpop.f32.mrb[124].mxu0 }
 0x1df   : > { %v8035_v5 = vpop.f32.mrb[125].mxu0  ;;  %v2057_v35 = vpop.f32.mrb[124].mxu1  ;;  %9449 = vmatpush3.bf16.msra.mxu0 %v9448_v58 }
 0x1e0   : > { %v11408_v4 = vadd.f32 %v2057_v35, %v1927_v0  ;;  %v8086_v12 = vpop.f32.mrb[125].mxu1  ;;  %9450 = vmatprep.subr.bf16.mxu0 %v9667_v3 }
 0x1e2   : > { %v1932_v18 = vpop.f32.mrb[126].mxu0 }
 0x1e3   : > { %v8038_v25 = vpop.f32.mrb[127].mxu0  ;;  %v2062_v28 = vpop.f32.mrb[126].mxu1 }
 0x1e4   : > { %v11413_v44 = vadd.f32 %v2062_v28, %v1932_v18  ;;  %v8089_v34 = vpop.f32.mrb[127].mxu1 }
 0x1e6   : > { %v1937_v55 = vpop.f32.mrb[128].mxu0 }
 0x1e7   : > { %v8041_v27 = vpop.f32.mrb[129].mxu0  ;;  %v2067_v20 = vpop.f32.mrb[128].mxu1 }
 0x1e8   : > { %v11420_v53 = vadd.f32 %v2067_v20, %v1937_v55  ;;  %v8092_v6 = vpop.f32.mrb[129].mxu1 }
 0x1ea   : > { %v2196_v56 = vpop.f32.mrb[130].mxu0 }
 0x1eb   : > { %v2260_v8 = vadd.f32 %v2196_v56, %v11316_v60  ;;  %v8107_v24 = vpop.f32.mrb[131].mxu0  ;;  %v2398_v37 = vpop.f32.mrb[130].mxu1  ;;  %v6666_v60 = vld [vmem:[%s13229_s4 + $0xc0] sm:$0xff] }
 0x1ec   : > { %v8158_v47 = vpop.f32.mrb[131].mxu1 }
 0x1ed   : > { %v2462_v7 = vadd.f32 %v2398_v37, %v2260_v8 }
 0x1ee   : > { %v2201_v21 = vpop.f32.mrb[132].mxu0 }
 0x1ef   : > { %v2475_v41 = vadd.f32 %v11129_v54, %v2462_v7  ;;  %v2261_v62 = vadd.f32 %v2201_v21, %v11320_v52  ;;  %v8110_v9 = vpop.f32.mrb[133].mxu0  ;;  %v2403_v2 = vpop.f32.mrb[132].mxu1  ;;  %v6667_v52 = vld [vmem:[%s13229_s4 + $0xc8] sm:$0xff]  ;;  %v6668_v7 = vld [vmem:[%s13229_s4 + $0xd0] sm:$0xff] }
 0x1f0   : > { %v8161_v15 = vpop.f32.mrb[133].mxu1  ;;  %v9460_v0 = vpack.c.bf16 %v6667_v52, %v6666_v60 }
 0x1f1   : > { %v2488_v16 = vmax.f32 %v2475_v41, 0.0  ;;  %v2463_v10 = vadd.f32 %v2403_v2, %v2261_v62 }
 0x1f2   : > { %v2206_v13 = vpop.f32.mrb[134].mxu0  ;;  %9461 = vmatpush3.bf16.msra.mxu1 %v9460_v0 }
 0x1f3   : > { %v2476_v45 = vadd.f32 %v11129_v54, %v2463_v10  ;;  %v2262_v23 = vadd.f32 %v2206_v13, %v11328_v30  ;;  %v8113_v5 = vpop.f32.mrb[135].mxu0  ;;  %v2408_v35 = vpop.f32.mrb[134].mxu1  ;;  %v11440_v43 = vmax.f32 %v11154_v42, %v2488_v16  ;;  %9462 = vmatprep.subr.bf16.mxu1 %v9667_v3 }
 0x1f4   : > { %v8164_v12 = vpop.f32.mrb[135].mxu1 }
 0x1f5   : > { %v2489_v18 = vmax.f32 %v2476_v45, 0.0  ;;  %v2464_v32 = vadd.f32 %v2408_v35, %v2262_v23 }
 0x1f6   : > { %v2211_v25 = vpop.f32.mrb[136].mxu0 }
 0x1f7   : > { %v2477_v28 = vadd.f32 %v11129_v54, %v2464_v32  ;;  %v2263_v33 = vadd.f32 %v2211_v25, %v11337_v29  ;;  %v8116_v34 = vpop.f32.mrb[137].mxu0  ;;  %v2413_v30 = vpop.f32.mrb[136].mxu1  ;;  %v11447_v55 = vmax.f32 %v11168_v14, %v2489_v18  ;;  %v6647_v29 = vld [vmem:[%s13229_s4 + $0x90] sm:$0xff]  ;;  %v6648_v14 = vld [vmem:[%s13229_s4 + $0x98] sm:$0xff] }
 0x1f8   : > { %v8167_v42 = vpop.f32.mrb[137].mxu1  ;;  %v9451_v41 = vpack.c.bf16 %v6648_v14, %v6647_v29  ;;  %v6671_v29 = vld [vmem:[%s13229_s4 + $0xe8] sm:$0xff] }
 0x1f9   : > { %v2490_v27 = vmax.f32 %v2477_v28, 0.0  ;;  %v2465_v20 = vadd.f32 %v2413_v30, %v2263_v33 }
 0x1fa   : > { %v2216_v6 = vpop.f32.mrb[138].mxu0  ;;  %9452 = vmatpush3.bf16.msra.mxu0 %v9451_v41 }
 0x1fb   : > { %v2478_v56 = vadd.f32 %v11129_v54, %v2465_v20  ;;  %v2264_v8 = vadd.f32 %v2216_v6, %v11340_v17  ;;  %v8119_v24 = vpop.f32.mrb[139].mxu0  ;;  %v2418_v37 = vpop.f32.mrb[138].mxu1  ;;  %v11452_v47 = vmax.f32 %v11182_v22, %v2490_v27  ;;  %v6669_v17 = vld [vmem:[%s13229_s4 + $0xd8] sm:$0xff]  ;;  %9453 = vmatprep.subr.bf16.mxu0 %v9667_v3 }
 0x1fc   : > { %v8170_v21 = vpop.f32.mrb[139].mxu1  ;;  %v9463_v9 = vpack.c.bf16 %v6669_v17, %v6668_v7 }
 0x1fd   : > { %v2491_v22 = vmax.f32 %v2478_v56, 0.0  ;;  %v2466_v62 = vadd.f32 %v2418_v37, %v2264_v8  ;;  %v6670_v37 = vld [vmem:[%s13229_s4 + $0xe0] sm:$0xff] }
 0x1fe   : > { %v2221_v2 = vpop.f32.mrb[140].mxu0  ;;  %9464 = vmatpush3.bf16.msra.mxu1 %v9463_v9  ;;  %v9466_v7 = vpack.c.bf16 %v6671_v29, %v6670_v37 }
 0x1ff   : > { %v2479_v38 = vadd.f32 %v11129_v54, %v2466_v62  ;;  %v2265_v61 = vadd.f32 %v2221_v2, %v11348_v26  ;;  %v8122_v60 = vpop.f32.mrb[141].mxu0  ;;  %v2423_v15 = vpop.f32.mrb[140].mxu1  ;;  %v11469_v58 = vmax.f32 %v11196_v31, %v2491_v22  ;;  %9465 = vmatprep.subr.bf16.mxu1 %v9667_v3  ;;  %v6651_v2 = vld [vmem:[%s13229_s4 + $0xb0] sm:$0xff] }
 0x200   : > { %v8173_v52 = vpop.f32.mrb[141].mxu1 }
 0x201   : > { %v2492_v16 = vmax.f32 %v2479_v38, 0.0  ;;  %v2467_v10 = vadd.f32 %v2423_v15, %v2265_v61  ;;  %v6652_v38 = vld [vmem:[%s13229_s4 + $0xb8] sm:$0xff]  ;;  %v6672_v61 = vld [vmem:[%s13229_s4 + $0xf0] sm:$0xff] }
 0x202   : > { %v2226_v0 = vpop.f32.mrb[142].mxu0  ;;  %9467 = vmatpush3.bf16.msra.mxu1 %v9466_v7  ;;  %v9457_v60 = vpack.c.bf16 %v6652_v38, %v6651_v2 }
 0x203   : > { %v2480_v13 = vadd.f32 %v11129_v54, %v2467_v10  ;;  %v2266_v45 = vadd.f32 %v2226_v0, %v11357_v1  ;;  %v8125_v23 = vpop.f32.mrb[143].mxu0  ;;  %v2428_v26 = vpop.f32.mrb[142].mxu1  ;;  %v11476_v5 = vmax.f32 %v11210_v36, %v2492_v16  ;;  %v6649_v1 = vld [vmem:[%s13229_s4 + $0xa0] sm:$0xff]  ;;  %v6650_v36 = vld [vmem:[%s13229_s4 + $0xa8] sm:$0xff]  ;;  %9468 = vmatprep.subr.bf16.mxu1 %v9667_v3 }
 0x204   : > { %v8176_v31 = vpop.f32.mrb[143].mxu1  ;;  %v9454_v42 = vpack.c.bf16 %v6650_v36, %v6649_v1 }
 0x205   : > { %v2493_v35 = vmax.f32 %v2480_v13, 0.0  ;;  %v2468_v12 = vadd.f32 %v2428_v26, %v2266_v45 }
 0x206   : > { %v2231_v18 = vpop.f32.mrb[144].mxu0  ;;  %9455 = vmatpush3.bf16.msra.mxu0 %v9454_v42 }
 0x207   : > { %v2481_v32 = vadd.f32 %v11129_v54, %v2468_v12  ;;  %v2267_v25 = vadd.f32 %v2231_v18, %v11360_v46  ;;  %v8128_v28 = vpop.f32.mrb[145].mxu0  ;;  %v2433_v33 = vpop.f32.mrb[144].mxu1  ;;  %v11481_v34 = vmax.f32 %v11224_v63, %v2493_v35  ;;  %9456 = vmatprep.subr.bf16.mxu0 %v9667_v3 }
 0x208   : > { %v8179_v30 = vpop.f32.mrb[145].mxu1 }
 0x209   : > { %v2494_v27 = vmax.f32 %v2481_v32, 0.0  ;;  %v2469_v20 = vadd.f32 %v2433_v33, %v2267_v25 }
 0x20a   : > { %v2236_v6 = vpop.f32.mrb[146].mxu0  ;;  %9458 = vmatpush3.bf16.msra.mxu0 %v9457_v60 }
 0x20b   : > { %v2482_v46 = vadd.f32 %v11129_v54, %v2469_v20  ;;  %v2268_v56 = vadd.f32 %v2236_v6, %v11362_v50  ;;  %v8131_v63 = vpop.f32.mrb[147].mxu0  ;;  %v2438_v8 = vpop.f32.mrb[146].mxu1  ;;  %v11492_v24 = vmax.f32 %v11238_v49, %v2494_v27  ;;  %9471 = vmatprep.subr.bf16.mxu0 %v9667_v3 }
 0x20c   : > { %v8182_v14 = vpop.f32.mrb[147].mxu1 }
 0x20d   : > { %v2495_v21 = vmax.f32 %v2482_v46, 0.0  ;;  %v2470_v41 = vadd.f32 %v2438_v8, %v2268_v56 }
 0x20e   : > { %v2241_v50 = vpop.f32.mrb[148].mxu0 }
 0x20f   : > { %v2483_v17 = vadd.f32 %v11129_v54, %v2470_v41  ;;  %v2269_v49 = vadd.f32 %v2241_v50, %v11394_v59  ;;  %v8134_v22 = vpop.f32.mrb[149].mxu0  ;;  %v2443_v62 = vpop.f32.mrb[148].mxu1  ;;  %v11504_v9 = vmax.f32 %v11252_v48, %v2495_v21  ;;  %v6673_v48 = vld [vmem:[%s13229_s4 + $0xf8] sm:$0xff] }
 0x210   : > { %v8185_v59 = vpop.f32.mrb[149].mxu1  ;;  %v9469_v16 = vpack.c.bf16 %v6673_v48, %v6672_v61 }
 0x211   : > { %v2496_v15 = vmax.f32 %v2483_v17, 0.0  ;;  %v2471_v52 = vadd.f32 %v2443_v62, %v2269_v49 }
 0x212   : > { %v2246_v10 = vpop.f32.mrb[150].mxu0  ;;  %9470 = vmatpush3.bf16.msra.mxu1 %v9469_v16 }
 0x213   : > { %v2484_v0 = vadd.f32 %v11129_v54, %v2471_v52  ;;  %v2270_v13 = vadd.f32 %v2246_v10, %v11408_v4  ;;  %v8137_v45 = vpop.f32.mrb[151].mxu0  ;;  %v2448_v23 = vpop.f32.mrb[150].mxu1  ;;  %v11522_v26 = vmax.f32 %v11266_v57, %v2496_v15  ;;  %9483 = vmatprep.subr.bf16.mxu1 %v9667_v3 }
 0x214   : > { %v8188_v31 = vpop.f32.mrb[151].mxu1 }
 0x215   : > { %v2497_v35 = vmax.f32 %v2484_v0, 0.0  ;;  %v2472_v12 = vadd.f32 %v2448_v23, %v2270_v13 }
 0x216   : > { %v2251_v18 = vpop.f32.mrb[152].mxu0 }
 0x217   : > { %v2485_v32 = vadd.f32 %v11129_v54, %v2472_v12  ;;  %v2271_v25 = vadd.f32 %v2251_v18, %v11413_v44  ;;  %v8140_v28 = vpop.f32.mrb[153].mxu0  ;;  %v2453_v4 = vpop.f32.mrb[152].mxu1  ;;  %v11529_v33 = vmax.f32 %v11280_v51, %v2497_v35 }
 0x218   : > { %v8191_v57 = vpop.f32.mrb[153].mxu1 }
 0x219   : > { %v2498_v1 = vmax.f32 %v2485_v32, 0.0  ;;  %v2473_v36 = vadd.f32 %v2453_v4, %v2271_v25 }
 0x21a   : > { %v2256_v30 = vpop.f32.mrb[154].mxu0 }
 0x21b   : > { %v2486_v42 = vadd.f32 %v11129_v54, %v2473_v36  ;;  %v2272_v27 = vadd.f32 %v2256_v30, %v11420_v53  ;;  %v8143_v20 = vpop.f32.mrb[155].mxu0  ;;  %v2458_v6 = vpop.f32.mrb[154].mxu1  ;;  %v11534_v46 = vmax.f32 %v11305_v40, %v2498_v1 }
 0x21c   : > { %v8194_v56 = vpop.f32.mrb[155].mxu1 }
 0x21d   : > { %v2499_v44 = vmax.f32 %v2486_v42, 0.0  ;;  %v2474_v63 = vadd.f32 %v2458_v6, %v2272_v27 }
 0x21e   : > { %v2594_v8 = vpop.f32.mrb[156].mxu0 }
 0x21f   : > { %v2487_v51 = vadd.f32 %v11129_v54, %v2474_v63  ;;  %v8209_v37 = vpop.f32.mrb[157].mxu0  ;;  %v2724_v29 = vpop.f32.mrb[156].mxu1  ;;  %v11538_v14 = vmax.f32 %v11313_v19, %v2499_v44 }
 0x220   : > { %v8260_v7 = vpop.f32.mrb[157].mxu1  ;;  %v11540_v21 = vadd.f32 %v2724_v29, %v2594_v8 }
 0x221   : > { %v2500_v53 = vmax.f32 %v2487_v51, 0.0 }
 0x222   : > { %v2599_v41 = vpop.f32.mrb[158].mxu0 }
 0x223   : > { %v8212_v50 = vpop.f32.mrb[159].mxu0  ;;  %v2729_v17 = vpop.f32.mrb[158].mxu1  ;;  %v11543_v40 = vmax.f32 %v11318_v39, %v2500_v53 }
 0x224   : > { %v8263_v49 = vpop.f32.mrb[159].mxu1  ;;  %v11545_v22 = vadd.f32 %v2729_v17, %v2599_v41 }
 0x226   : > { %v2604_v62 = vpop.f32.mrb[160].mxu0 }
 0x227   : > { %v8215_v54 = vpop.f32.mrb[161].mxu0  ;;  %v2734_v2 = vpop.f32.mrb[160].mxu1 }
 0x228   : > { %v11547_v38 = vadd.f32 %v2734_v2, %v2604_v62  ;;  %v8266_v19 = vpop.f32.mrb[161].mxu1 }
 0x22a   : > { %v2609_v61 = vpop.f32.mrb[162].mxu0 }
 0x22b   : > { %v8218_v59 = vpop.f32.mrb[163].mxu0  ;;  %v2739_v60 = vpop.f32.mrb[162].mxu1 }
 0x22c   : > { %v11549_v48 = vadd.f32 %v2739_v60, %v2609_v61  ;;  %v8269_v15 = vpop.f32.mrb[163].mxu1 }
 0x22e   : > { %v2614_v52 = vpop.f32.mrb[164].mxu0 }
 0x22f   : > { %v8221_v16 = vpop.f32.mrb[165].mxu0  ;;  %v2744_v10 = vpop.f32.mrb[164].mxu1 }
 0x230   : > { %v11551_v39 = vadd.f32 %v2744_v10, %v2614_v52  ;;  %v8272_v0 = vpop.f32.mrb[165].mxu1 }
 0x232   : > { %v2619_v13 = vpop.f32.mrb[166].mxu0 }
 0x233   : > { %v8224_v45 = vpop.f32.mrb[167].mxu0  ;;  %v2749_v23 = vpop.f32.mrb[166].mxu1 }
 0x234   : > { %v11553_v31 = vadd.f32 %v2749_v23, %v2619_v13  ;;  %v8275_v35 = vpop.f32.mrb[167].mxu1 }
 0x235   : > { %v11573_v35 = vld [vmem:[%s13227_s2] ss:$0 sm:$0xff] }
 0x236   : > { %v2624_v12 = vpop.f32.mrb[168].mxu0 }
 0x237   : > { %v8227_v18 = vpop.f32.mrb[169].mxu0  ;;  %v2754_v32 = vpop.f32.mrb[168].mxu1 }
 0x238   : > { %v11555_v25 = vadd.f32 %v2754_v32, %v2624_v12  ;;  %v8278_v28 = vpop.f32.mrb[169].mxu1 }
 0x23a   : > { %v2629_v4 = vpop.f32.mrb[170].mxu0 }
 0x23b   : > { %v8230_v57 = vpop.f32.mrb[171].mxu0  ;;  %v2759_v1 = vpop.f32.mrb[170].mxu1 }
 0x23c   : > { %v11557_v36 = vadd.f32 %v2759_v1, %v2629_v4  ;;  %v8281_v30 = vpop.f32.mrb[171].mxu1 }
 0x23e   : > { %v2634_v42 = vpop.f32.mrb[172].mxu0 }
 0x23f   : > { %v8233_v27 = vpop.f32.mrb[173].mxu0  ;;  %v2764_v20 = vpop.f32.mrb[172].mxu1 }
 0x240   : > { %v11559_v6 = vadd.f32 %v2764_v20, %v2634_v42  ;;  %v8284_v56 = vpop.f32.mrb[173].mxu1 }
 0x242   : > { %v2639_v44 = vpop.f32.mrb[174].mxu0 }
 0x243   : > { %v8236_v63 = vpop.f32.mrb[175].mxu0  ;;  %v2769_v8 = vpop.f32.mrb[174].mxu1 }
 0x244   : > { %v11561_v51 = vadd.f32 %v2769_v8, %v2639_v44  ;;  %v8287_v37 = vpop.f32.mrb[175].mxu1 }
 0x246   : > { %v2644_v29 = vpop.f32.mrb[176].mxu0 }
 0x247   : > { %v8239_v7 = vpop.f32.mrb[177].mxu0  ;;  %v2774_v53 = vpop.f32.mrb[176].mxu1 }
 0x248   : > { %v11563_v41 = vadd.f32 %v2774_v53, %v2644_v29  ;;  %v8290_v50 = vpop.f32.mrb[177].mxu1 }
 0x24a   : > { %v2649_v17 = vpop.f32.mrb[178].mxu0 }
 0x24b   : > { %v8242_v49 = vpop.f32.mrb[179].mxu0  ;;  %v2779_v62 = vpop.f32.mrb[178].mxu1 }
 0x24c   : > { %v11565_v54 = vadd.f32 %v2779_v62, %v2649_v17  ;;  %v8293_v2 = vpop.f32.mrb[179].mxu1 }
 0x24e   : > { %v2654_v19 = vpop.f32.mrb[180].mxu0 }
 0x24f   : > { %v8245_v61 = vpop.f32.mrb[181].mxu0  ;;  %v2784_v59 = vpop.f32.mrb[180].mxu1 }
 0x250   : > { %v11567_v60 = vadd.f32 %v2784_v59, %v2654_v19  ;;  %v8296_v15 = vpop.f32.mrb[181].mxu1  ;;  %v3192_v61 = vpop.permute.xlu1 %3191 }
 0x252   : > { %v2861_v52 = vpop.f32.mrb[182].mxu0 }
 0x253   : > { %v2925_v16 = vadd.f32 %v2861_v52, %v11540_v21  ;;  %v8311_v10 = vpop.f32.mrb[183].mxu0  ;;  %v3063_v0 = vpop.f32.mrb[182].mxu1 }
 0x254   : > { %v8362_v13 = vpop.f32.mrb[183].mxu1  ;;  %v3182_v21 = vpop.permute.xlu0 %3181 }
 0x255   : > { %v3127_v45 = vadd.f32 %v3063_v0, %v2925_v16 }
 0x256   : > { %v2866_v23 = vpop.f32.mrb[184].mxu0 }
 0x257   : > { %v3140_v12 = vadd.f32 %v11573_v35, %v3127_v45  ;;  %v2926_v18 = vadd.f32 %v2866_v23, %v11545_v22  ;;  %v8314_v32 = vpop.f32.mrb[185].mxu0  ;;  %v3068_v28 = vpop.f32.mrb[184].mxu1 }
 0x258   : > { %v8365_v4 = vpop.f32.mrb[185].mxu1  ;;  %v3187_v49 = vpop.permute.xlu0 %3186 }
 0x259   : > { %v3153_v57 = vmax.f32 %v3140_v12, 0.0  ;;  %v3128_v1 = vadd.f32 %v3068_v28, %v2926_v18 }
 0x25a   : > { %v2871_v30 = vpop.f32.mrb[186].mxu0 }
 0x25b   : > { %v3166_v42 = vmax.f32 %v11440_v43, %v3153_v57  ;;  %v3141_v27 = vadd.f32 %v11573_v35, %v3128_v1  ;;  %v2927_v20 = vadd.f32 %v2871_v30, %v11547_v38  ;;  %v8317_v56 = vpop.f32.mrb[187].mxu0  ;;  %v3073_v44 = vpop.f32.mrb[186].mxu1 }
 0x25c   : > { %v8368_v63 = vpop.f32.mrb[187].mxu1  ;;  %v3197_v57 = vpop.permute.xlu1 %3196 }
 0x25d   : > { %v3244_v8 = vmul.f32 %v3182_v21, %v3166_v42  ;;  %v3154_v37 = vmax.f32 %v3141_v27, 0.0  ;;  %v3129_v29 = vadd.f32 %v3073_v44, %v2927_v20 }
 0x25e   : > { %v2876_v22 = vpop.f32.mrb[188].mxu0 }
 0x25f   : > { %3275 = vst.msk [vmem:[#allocation2 + $0xb] sm:$0xff] %vm3257_vm2, %v3244_v8  ;;  %v3167_v7 = vmax.f32 %v11447_v55, %v3154_v37  ;;  %v3142_v53 = vadd.f32 %v11573_v35, %v3129_v29  ;;  %v2928_v50 = vadd.f32 %v2876_v22, %v11549_v48  ;;  %v8320_v43 = vpop.f32.mrb[189].mxu0  ;;  %v3078_v17 = vpop.f32.mrb[188].mxu1 }
 0x260   : > { %v8371_v62 = vpop.f32.mrb[189].mxu1  ;;  %v3202_v37 = vpop.permute.xlu0 %3201 }
 0x261   : > { %v3245_v38 = vmul.f32 %v3187_v49, %v3167_v7  ;;  %v3155_v2 = vmax.f32 %v3142_v53, 0.0  ;;  %v3130_v19 = vadd.f32 %v3078_v17, %v2928_v50 }
 0x262   : > { %v2881_v59 = vpop.f32.mrb[190].mxu0 }
 0x263   : > { %3276 = vst.msk [vmem:[#allocation2 + $0x13] sm:$0xff] %vm3257_vm2, %v3245_v38  ;;  %v3168_v15 = vmax.f32 %v11452_v47, %v3155_v2  ;;  %v3143_v52 = vadd.f32 %v11573_v35, %v3130_v19  ;;  %v2929_v55 = vadd.f32 %v2881_v59, %v11551_v39  ;;  %v8323_v16 = vpop.f32.mrb[191].mxu0  ;;  %v3083_v10 = vpop.f32.mrb[190].mxu1 }
 0x264   : > { %v8374_v48 = vpop.f32.mrb[191].mxu1  ;;  %v3207_v2 = vpop.permute.xlu1 %3206 }
 0x265   : > { %v3246_v0 = vmul.f32 %v3192_v61, %v3168_v15  ;;  %v3156_v13 = vmax.f32 %v3143_v52, 0.0  ;;  %v3131_v45 = vadd.f32 %v3083_v10, %v2929_v55 }
 0x266   : > { %v2886_v23 = vpop.f32.mrb[192].mxu0  ;;  %v11588_v12 = vld [vmem:[#allocation2 + $0x9] sm:$0xff] }
 0x267   : > { %v3290_v18 = vld [vmem:[#allocation2 + $0x8] sm:$0xff]  ;;  %3277 = vst.msk [vmem:[#allocation2 + $0x1b] sm:$0xff] %vm3257_vm2, %v3246_v0  ;;  %v3169_v32 = vmax.f32 %v11469_v58, %v3156_v13  ;;  %v3144_v47 = vadd.f32 %v11573_v35, %v3131_v45  ;;  %v2930_v28 = vadd.f32 %v2886_v23, %v11553_v31  ;;  %v8326_v4 = vpop.f32.mrb[193].mxu0  ;;  %8419 = vmatmul.mubr.msk.f32.gmra.mrb[210].mxu0 %vm3257_vm2, %v11588_v12  ;;  %v3088_v39 = vpop.f32.mrb[192].mxu1 }
 0x268   : > { %8474 = vmatmul.mubr.msk.f32.gmra.mrb[210].mxu1 %vm3257_vm2, %v3290_v18  ;;  %v8377_v1 = vpop.f32.mrb[193].mxu1  ;;  %8421 = vmatprep.mubr.msk.f32.mxu0 %vm9668_vm0, %v9669_v11  ;;  %v3212_v13 = vpop.permute.xlu0 %3211 }
 0x269   : > { %8476 = vmatprep.mubr.msk.f32.mxu1 %vm9668_vm0, %v9669_v11  ;;  %v3247_v58 = vmul.f32 %v3197_v57, %v3169_v32  ;;  %v3157_v21 = vmax.f32 %v3144_v47, 0.0  ;;  %v3132_v30 = vadd.f32 %v3088_v39, %v2930_v28 }
 0x26a   : > { %v2891_v42 = vpop.f32.mrb[194].mxu0  ;;  %v11601_v31 = vld [vmem:[#allocation2 + $0x11] sm:$0xff] }
 0x26b   : > { %v3291_v27 = vld [vmem:[#allocation2 + $0x10] sm:$0xff]  ;;  %3278 = vst.msk [vmem:[#allocation2 + $0x23] sm:$0xff] %vm3257_vm2, %v3247_v58  ;;  %v3170_v20 = vmax.f32 %v11476_v5, %v3157_v21  ;;  %v3145_v56 = vadd.f32 %v11573_v35, %v3132_v30  ;;  %v2931_v44 = vadd.f32 %v2891_v42, %v11555_v25  ;;  %v8329_v63 = vpop.f32.mrb[195].mxu0  ;;  %8422 = vmatmul.mubr.msk.f32.gmra.mrb[212].mxu0 %vm3257_vm2, %v11601_v31  ;;  %v3093_v8 = vpop.f32.mrb[194].mxu1 }
 0x26c   : > { %8477 = vmatmul.mubr.msk.f32.gmra.mrb[212].mxu1 %vm3257_vm2, %v3291_v27  ;;  %v8380_v29 = vpop.f32.mrb[195].mxu1  ;;  %8424 = vmatprep.mubr.msk.f32.mxu0 %vm9668_vm0, %v9669_v11  ;;  %v3217_v58 = vpop.permute.xlu1 %3216 }
 0x26d   : > { %8479 = vmatprep.mubr.msk.f32.mxu1 %vm9668_vm0, %v9669_v11  ;;  %v3248_v5 = vmul.f32 %v3202_v37, %v3170_v20  ;;  %v3158_v22 = vmax.f32 %v3145_v56, 0.0  ;;  %v3133_v7 = vadd.f32 %v3093_v8, %v2931_v44  ;;  %v3222_v29 = vpop.permute.xlu0 %3221 }
 0x26e   : > { %v2896_v53 = vpop.f32.mrb[196].mxu0  ;;  %v11614_v25 = vld [vmem:[#allocation2 + $0x19] sm:$0xff] }
 0x26f   : > { %v3292_v50 = vld [vmem:[#allocation2 + $0x18] sm:$0xff]  ;;  %3279 = vst.msk [vmem:[#allocation2 + $0x2b] sm:$0xff] %vm3257_vm2, %v3248_v5  ;;  %v3171_v43 = vmax.f32 %v11481_v34, %v3158_v22  ;;  %v3146_v17 = vadd.f32 %v11573_v35, %v3133_v7  ;;  %v2932_v49 = vadd.f32 %v2896_v53, %v11557_v36  ;;  %v8332_v62 = vpop.f32.mrb[197].mxu0  ;;  %8425 = vmatmul.mubr.msk.f32.gmra.mrb[214].mxu0 %vm3257_vm2, %v11614_v25  ;;  %v3098_v38 = vpop.f32.mrb[196].mxu1 }
 0x270   : > { %8480 = vmatmul.mubr.msk.f32.gmra.mrb[214].mxu1 %vm3257_vm2, %v3292_v50  ;;  %v8383_v19 = vpop.f32.mrb[197].mxu1  ;;  %8427 = vmatprep.mubr.msk.f32.mxu0 %vm9668_vm0, %v9669_v11 }
 0x271   : > { %8482 = vmatprep.mubr.msk.f32.mxu1 %vm9668_vm0, %v9669_v11  ;;  %v3249_v34 = vmul.f32 %v3207_v2, %v3171_v43  ;;  %v3159_v61 = vmax.f32 %v3146_v17, 0.0  ;;  %v3134_v59 = vadd.f32 %v3098_v38, %v2932_v49  ;;  %v3227_v2 = vpop.permute.xlu1 %3226 }
 0x272   : > { %v2901_v15 = vpop.f32.mrb[198].mxu0  ;;  %v11627_v36 = vld [vmem:[#allocation2 + $0x21] sm:$0xff] }
 0x273   : > { %v3293_v52 = vld [vmem:[#allocation2 + $0x20] sm:$0xff]  ;;  %3280 = vst.msk [vmem:[#allocation2 + $0x33] sm:$0xff] %vm3257_vm2, %v3249_v34  ;;  %v3172_v55 = vmax.f32 %v11492_v24, %v3159_v61  ;;  %v3147_v16 = vadd.f32 %v11573_v35, %v3134_v59  ;;  %v2933_v10 = vadd.f32 %v2901_v15, %v11559_v6  ;;  %v8335_v48 = vpop.f32.mrb[199].mxu0  ;;  %8428 = vmatmul.mubr.msk.f32.gmra.mrb[216].mxu0 %vm3257_vm2, %v11627_v36  ;;  %v3103_v0 = vpop.f32.mrb[198].mxu1 }
 0x274   : > { %8483 = vmatmul.mubr.msk.f32.gmra.mrb[216].mxu1 %vm3257_vm2, %v3293_v52  ;;  %v8386_v45 = vpop.f32.mrb[199].mxu1  ;;  %8430 = vmatprep.mubr.msk.f32.mxu0 %vm9668_vm0, %v9669_v11 }
 0x275   : > { %8485 = vmatprep.mubr.msk.f32.mxu1 %vm9668_vm0, %v9669_v11  ;;  %v3250_v24 = vmul.f32 %v3212_v13, %v3172_v55  ;;  %v3160_v23 = vmax.f32 %v3147_v16, 0.0  ;;  %v3135_v18 = vadd.f32 %v3103_v0, %v2933_v10  ;;  %v3232_v0 = vpop.permute.xlu0 %3231 }
 0x276   : > { %v2906_v32 = vpop.f32.mrb[200].mxu0  ;;  %v11640_v6 = vld [vmem:[#allocation2 + $0x29] sm:$0xff] }
 0x277   : > { %v3294_v47 = vld [vmem:[#allocation2 + $0x28] sm:$0xff]  ;;  %3281 = vst.msk [vmem:[#allocation2 + $0x3b] sm:$0xff] %vm3257_vm2, %v3250_v24  ;;  %v3173_v28 = vmax.f32 %v11504_v9, %v3160_v23  ;;  %v3148_v4 = vadd.f32 %v11573_v35, %v3135_v18  ;;  %v2934_v39 = vadd.f32 %v2906_v32, %v11561_v51  ;;  %v8338_v57 = vpop.f32.mrb[201].mxu0  ;;  %8431 = vmatmul.mubr.msk.f32.gmra.mrb[218].mxu0 %vm3257_vm2, %v11640_v6  ;;  %v3108_v1 = vpop.f32.mrb[200].mxu1 }
 0x278   : > { %8486 = vmatmul.mubr.msk.f32.gmra.mrb[218].mxu1 %vm3257_vm2, %v3294_v47  ;;  %v8389_v21 = vpop.f32.mrb[201].mxu1  ;;  %8433 = vmatprep.mubr.msk.f32.mxu0 %vm9668_vm0, %v9669_v11  ;;  %v3237_v47 = vpop.permute.xlu1 %3236 }
 0x279   : > { %8488 = vmatprep.mubr.msk.f32.mxu1 %vm9668_vm0, %v9669_v11  ;;  %v3251_v9 = vmul.f32 %v3217_v58, %v3173_v28  ;;  %v3161_v30 = vmax.f32 %v3148_v4, 0.0  ;;  %v3136_v42 = vadd.f32 %v3108_v1, %v2934_v39 }
 0x27a   : > { %v2911_v27 = vpop.f32.mrb[202].mxu0  ;;  %v11653_v51 = vld [vmem:[#allocation2 + $0x31] sm:$0xff] }
 0x27b   : > { %v3295_v20 = vld [vmem:[#allocation2 + $0x30] sm:$0xff]  ;;  %3282 = vst.msk [vmem:[#allocation2 + $0x43] sm:$0xff] %vm3257_vm2, %v3251_v9  ;;  %v3174_v56 = vmax.f32 %v11522_v26, %v3161_v30  ;;  %v3149_v44 = vadd.f32 %v11573_v35, %v3136_v42  ;;  %v2935_v63 = vadd.f32 %v2911_v27, %v11563_v41  ;;  %v8341_v8 = vpop.f32.mrb[203].mxu0  ;;  %8434 = vmatmul.mubr.msk.f32.gmra.mrb[220].mxu0 %vm3257_vm2, %v11653_v51  ;;  %v3113_v37 = vpop.f32.mrb[202].mxu1  ;;  %v6697_v9 = vld [vmem:[%s13229_s4 + $0x148] sm:$0xff]  ;;  %v6688_v30 = vld [vmem:[%s13229_s4 + $0x100] sm:$0xff] }
 0x27c   : > { %8489 = vmatmul.mubr.msk.f32.gmra.mrb[220].mxu1 %vm3257_vm2, %v3295_v20  ;;  %v8392_v5 = vpop.f32.mrb[203].mxu1  ;;  %8436 = vmatprep.mubr.msk.f32.mxu0 %vm9668_vm0, %v9669_v11  ;;  %v6689_v20 = vld [vmem:[%s13229_s4 + $0x108] sm:$0xff]  ;;  %v6699_v8 = vld [vmem:[%s13229_s4 + $0x158] sm:$0xff] }
 0x27d   : > { %8491 = vmatprep.mubr.msk.f32.mxu1 %vm9668_vm0, %v9669_v11  ;;  %v3252_v26 = vmul.f32 %v3222_v29, %v3174_v56  ;;  %v3162_v22 = vmax.f32 %v3149_v44, 0.0  ;;  %v3137_v7 = vadd.f32 %v3113_v37, %v2935_v63  ;;  %v9484_v44 = vpack.c.bf16 %v6689_v20, %v6688_v30  ;;  %v6698_v63 = vld [vmem:[%s13229_s4 + $0x150] sm:$0xff]  ;;  %v6730_v20 = vld [vmem:[%s13229_s4 + $0x180] sm:$0xff] }
 0x27e   : > { %v2916_v53 = vpop.f32.mrb[204].mxu0  ;;  %v11666_v41 = vld [vmem:[#allocation2 + $0x39] sm:$0xff]  ;;  %v6690_v37 = vld [vmem:[%s13229_s4 + $0x110] sm:$0xff] }
 0x27f   : > { %v3296_v50 = vld [vmem:[#allocation2 + $0x38] sm:$0xff]  ;;  %3283 = vst.msk [vmem:[#allocation2 + $0x4b] sm:$0xff] %vm3257_vm2, %v3252_v26  ;;  %v3175_v43 = vmax.f32 %v11529_v33, %v3162_v22  ;;  %v3150_v17 = vadd.f32 %v11573_v35, %v3137_v7  ;;  %v2936_v49 = vadd.f32 %v2916_v53, %v11565_v54  ;;  %v8344_v62 = vpop.f32.mrb[205].mxu0  ;;  %8437 = vmatmul.mubr.msk.f32.gmra.mrb[222].mxu0 %vm3257_vm2, %v11666_v41  ;;  %v3118_v38 = vpop.f32.mrb[204].mxu1  ;;  %v11754_v29 = vld [vmem:[#allocation2 + $0xa] sm:$0xff]  ;;  %v6700_v53 = vld [vmem:[%s13229_s4 + $0x160] sm:$0xff] }
 0x280   : > { %8492 = vmatmul.mubr.msk.f32.gmra.mrb[222].mxu1 %vm3257_vm2, %v3296_v50  ;;  %v8395_v19 = vpop.f32.mrb[205].mxu1  ;;  %8439 = vmatprep.mubr.msk.f32.mxu0 %vm9668_vm0, %v9669_v11  ;;  %v11756_v5 = vld [vmem:[#allocation2 + $0xb] sm:$0xff]  ;;  %v6691_v26 = vld [vmem:[%s13229_s4 + $0x118] sm:$0xff]  ;;  %v9475_v22 = vpack.c.bf16 %v6699_v8, %v6698_v63 }
 0x281   : > { %8494 = vmatprep.mubr.msk.f32.mxu1 %vm9668_vm0, %v9669_v11  ;;  %v3253_v33 = vmul.f32 %v3227_v2, %v3175_v43  ;;  %v3163_v34 = vmax.f32 %v3150_v17, 0.0  ;;  %v3138_v61 = vadd.f32 %v3118_v38, %v2936_v49  ;;  %v9487_v7 = vpack.c.bf16 %v6691_v26, %v6690_v37  ;;  %v6701_v50 = vld [vmem:[%s13229_s4 + $0x168] sm:$0xff]  ;;  %v6692_v43 = vld [vmem:[%s13229_s4 + $0x120] sm:$0xff]  ;;  %v11778_v17 = vld [vmem:[#allocation2 + $0x12] sm:$0xff] }
 0x282   : > { %v2921_v59 = vpop.f32.mrb[206].mxu0  ;;  %v11679_v54 = vld [vmem:[#allocation2 + $0x41] sm:$0xff]  ;;  %v11780_v49 = vld [vmem:[#allocation2 + $0x13] sm:$0xff]  ;;  %v9478_v38 = vpack.c.bf16 %v6701_v50, %v6700_v53 }
 0x283   : > { %v3297_v15 = vld [vmem:[#allocation2 + $0x40] sm:$0xff]  ;;  %3284 = vst.msk [vmem:[#allocation2 + $0x53] sm:$0xff] %vm3257_vm2, %v3253_v33  ;;  %v3176_v52 = vmax.f32 %v11534_v46, %v3163_v34  ;;  %v3151_v55 = vadd.f32 %v11573_v35, %v3138_v61  ;;  %v2937_v16 = vadd.f32 %v2921_v59, %v11567_v60  ;;  %8440 = vmatmul.mubr.msk.f32.gmra.mrb[224].mxu0 %vm3257_vm2, %v11679_v54  ;;  %v3123_v10 = vpop.f32.mrb[206].mxu1  ;;  %v8347_v48 = vpop.f32.mrb[207].mxu0  ;;  %v6693_v62 = vld [vmem:[%s13229_s4 + $0x128] sm:$0xff]  ;;  %v6702_v19 = vld [vmem:[%s13229_s4 + $0x170] sm:$0xff] }
 0x284   : > { %8495 = vmatmul.mubr.msk.f32.gmra.mrb[224].mxu1 %vm3257_vm2, %v3297_v15  ;;  %8442 = vmatprep.mubr.msk.f32.mxu0 %vm9668_vm0, %v9669_v11  ;;  %v8398_v13 = vpop.f32.mrb[207].mxu1  ;;  %v9490_v2 = vpack.c.bf16 %v6693_v62, %v6692_v43  ;;  %v6703_v33 = vld [vmem:[%s13229_s4 + $0x178] sm:$0xff]  ;;  %v6694_v34 = vld [vmem:[%s13229_s4 + $0x130] sm:$0xff]  ;;  %v6752_v37 = vld [vmem:[%s13229_s4 + $0x1c8] sm:$0xff] }
 0x285   : > { %8497 = vmatprep.mubr.msk.f32.mxu1 %vm9668_vm0, %v9669_v11  ;;  %v3254_v46 = vmul.f32 %v3232_v0, %v3176_v52  ;;  %v3164_v45 = vmax.f32 %v3151_v55, 0.0  ;;  %v3139_v24 = vadd.f32 %v3123_v10, %v2937_v16  ;;  %v11804_v61 = vld [vmem:[#allocation2 + $0x1a] sm:$0xff]  ;;  %v9481_v52 = vpack.c.bf16 %v6703_v33, %v6702_v19  ;;  %v11821_v16 = vld [vmem:[#allocation2 + $0x22] sm:$0xff]  ;;  %v11835_v48 = vld [vmem:[#allocation2 + $0x2a] sm:$0xff] }
 0x286   : > { %v11692_v23 = vld [vmem:[#allocation2 + $0x49] sm:$0xff]  ;;  %v11806_v59 = vld [vmem:[#allocation2 + $0x1b] sm:$0xff]  ;;  %v11849_v13 = vld [vmem:[#allocation2 + $0x32] sm:$0xff] }
 0x287   : > { %v3298_v60 = vld [vmem:[#allocation2 + $0x48] sm:$0xff]  ;;  %3285 = vst.msk [vmem:[#allocation2 + $0x5b] sm:$0xff] %vm3257_vm2, %v3254_v46  ;;  %v3177_v18 = vmax.f32 %v11538_v14, %v3164_v45  ;;  %v3152_v32 = vadd.f32 %v11573_v35, %v3139_v24  ;;  %8443 = vmatmul.mubr.msk.f32.gmra.mrb[226].mxu0 %vm3257_vm2, %v11692_v23  ;;  %v3242_v35 = vpop.permute.xlu0 %3241  ;;  %v6695_v15 = vld [vmem:[%s13229_s4 + $0x138] sm:$0xff]  ;;  %v6732_v53 = vld [vmem:[%s13229_s4 + $0x190] sm:$0xff] }
 0x288   : > { %8498 = vmatmul.mubr.msk.f32.gmra.mrb[226].mxu1 %vm3257_vm2, %v3298_v60  ;;  %8445 = vmatprep.mubr.msk.f32.mxu0 %vm9668_vm0, %v9669_v11  ;;  %v9493_v55 = vpack.c.bf16 %v6695_v15, %v6694_v34  ;;  %v11823_v10 = vld [vmem:[#allocation2 + $0x23] sm:$0xff]  ;;  %v11837_v0 = vld [vmem:[#allocation2 + $0x2b] sm:$0xff]  ;;  %v11851_v46 = vld [vmem:[#allocation2 + $0x33] sm:$0xff] }
 0x289   : > { %8500 = vmatprep.mubr.msk.f32.mxu1 %vm9668_vm0, %v9669_v11  ;;  %v3255_v28 = vmul.f32 %v3237_v47, %v3177_v18  ;;  %v3165_v4 = vmax.f32 %v3152_v32, 0.0  ;;  %v11861_v45 = vld [vmem:[#allocation2 + $0x3a] sm:$0xff]  ;;  %v11873_v60 = vld [vmem:[#allocation2 + $0x42] sm:$0xff]  ;;  %v11885_v32 = vld [vmem:[#allocation2 + $0x4a] sm:$0xff] }
 0x28a   : > { %v11704_v39 = vld [vmem:[#allocation2 + $0x51] sm:$0xff]  ;;  %v11863_v24 = vld [vmem:[#allocation2 + $0x3b] sm:$0xff]  ;;  %v11875_v18 = vld [vmem:[#allocation2 + $0x43] sm:$0xff] }
 0x28b   : > { %v3299_v57 = vld [vmem:[#allocation2 + $0x50] sm:$0xff]  ;;  %3286 = vst.msk [vmem:[#allocation2 + $0x63] sm:$0xff] %vm3257_vm2, %v3255_v28  ;;  %v3178_v14 = vmax.f32 %v11543_v40, %v3165_v4  ;;  %8446 = vmatmul.mubr.msk.f32.gmra.mrb[228].mxu0 %vm3257_vm2, %v11704_v39  ;;  %v6696_v40 = vld [vmem:[%s13229_s4 + $0x140] sm:$0xff]  ;;  %v6733_v50 = vld [vmem:[%s13229_s4 + $0x198] sm:$0xff] }
 0x28c   : > { %8501 = vmatmul.mubr.msk.f32.gmra.mrb[228].mxu1 %vm3257_vm2, %v3299_v57  ;;  %8448 = vmatprep.mubr.msk.f32.mxu0 %vm9668_vm0, %v9669_v11  ;;  %v9472_v56 = vpack.c.bf16 %v6697_v9, %v6696_v40  ;;  %v11887_v47 = vld [vmem:[#allocation2 + $0x4b] sm:$0xff]  ;;  %v4120_v26 = vld [vmem:[#allocation2 + $0x2] sm:$0xff]  ;;  %v6754_v62 = vld [vmem:[%s13229_s4 + $0x1d8] sm:$0xff] }
 0x28d   : > { %8503 = vmatprep.mubr.msk.f32.mxu1 %vm9668_vm0, %v9669_v11  ;;  %v3256_v1 = vmul.f32 %v3242_v35, %v3178_v14  ;;  %v6753_v43 = vld [vmem:[%s13229_s4 + $0x1d0] sm:$0xff]  ;;  %v6734_v33 = vld [vmem:[%s13229_s4 + $0x1a0] sm:$0xff]  ;;  %v6735_v34 = vld [vmem:[%s13229_s4 + $0x1a8] sm:$0xff] }
 0x28e   : > { %v11715_v58 = vld [vmem:[#allocation2 + $0x59] sm:$0xff]  ;;  %v9511_v19 = vpack.c.bf16 %v6754_v62, %v6753_v43  ;;  %v6777_v43 = vld [vmem:[%s13229_s4 + $0x228] sm:$0xff] }
 0x28f   : > { %v3300_v21 = vld [vmem:[#allocation2 + $0x58] sm:$0xff]  ;;  %3288 = vst.msk [vmem:[#allocation2 + $0x6b] sm:$0xf] %vm3287_vm3, %v3256_v1  ;;  %8449 = vmatmul.mubr.msk.f32.gmra.mrb[230].mxu0 %vm3257_vm2, %v11715_v58  ;;  %v6755_v15 = vld [vmem:[%s13229_s4 + $0x1e0] sm:$0xff] }
 0x290   : > { %8504 = vmatmul.mubr.msk.f32.gmra.mrb[230].mxu1 %vm3257_vm2, %v3300_v21  ;;  %8451 = vmatprep.mubr.msk.f32.mxu0 %vm9668_vm0, %v9669_v11  ;;  %v11899_v1 = vld [vmem:[#allocation2 + $0x52] sm:$0xff]  ;;  %v11911_v40 = vld [vmem:[#allocation2 + $0x5a] sm:$0xff] }
 0x291   : > { %8506 = vmatprep.mubr.msk.f32.mxu1 %vm9668_vm0, %v9669_v11  ;;  %v11901_v21 = vld [vmem:[#allocation2 + $0x53] sm:$0xff]  ;;  %v11913_v9 = vld [vmem:[#allocation2 + $0x5b] sm:$0xff] }
 0x292   : > { %v11733_v42 = vld [vmem:[#allocation2 + $0x61] sm:$0xf] }
 0x293   : > { %v3301_v27 = vld [vmem:[#allocation2 + $0x60] sm:$0xf]  ;;  %8452 = vmatmul.mubr.msk.f32.gmra.mrb[232].mxu0 %vm3257_vm2, %v11733_v42 }
 0x294   : > { %8507 = vmatmul.mubr.msk.f32.gmra.mrb[232].mxu1 %vm3257_vm2, %v3301_v27  ;;  %8525 = vmatprep.mubr.msk.f32.mxu0 %vm9668_vm0, %v9669_v11  ;;  %v11923_v30 = vld [vmem:[#allocation2 + $0x62] sm:$0xff] }
 0x295   : > { %8580 = vmatprep.mubr.msk.f32.mxu1 %vm9668_vm0, %v9669_v11  ;;  %v11925_v27 = vld [vmem:[#allocation2 + $0x63] sm:$0xff] }
 0x296   : > { %v11944_v63 = vld [vmem:[#allocation2 + $0x6a] sm:$0xf]  ;;  %v12162_v62 = vld [vmem:[#allocation2 + $0x1c] sm:$0xff] }
 0x297   : > { %8526 = vmatmul.mubr.msk.f32.vlgmr.msra.gmra.mrb[234].mxu0 %vm3257_vm2, %v11754_v29  ;;  %v11946_v8 = vld [vmem:[#allocation2 + $0x6b] sm:$0xf] }
 0x298   : > { %8581 = vmatmul.mubr.msk.f32.vlgmr.msra.gmra.mrb[234].mxu1 %vm3257_vm2, %v11756_v5  ;;  %9473 = vmatpush3.bf16.msra.mxu0 %v9472_v56  ;;  %v6731_v56 = vld [vmem:[%s13229_s4 + $0x188] sm:$0xff] }
 0x299   : > { %8528 = vmatprep.mubr.msk.f32.mxu0 %vm9668_vm0, %v9669_v11  ;;  %8583 = vmatprep.mubr.msk.f32.mxu1 %vm9668_vm0, %v9669_v11 }
 0x29a   : > { %9485 = vmatpush3.bf16.msra.mxu1 %v9484_v44  ;;  %9474 = vmatprep.subr.bf16.mxu0 %v9667_v3  ;;  %v6751_v44 = vld [vmem:[%s13229_s4 + $0x1c0] sm:$0xff] }
 0x29b   : > { %9486 = vmatprep.subr.bf16.mxu1 %v9667_v3  ;;  %8529 = vmatmul.mubr.msk.f32.gmra.mrb[236].mxu0 %vm3257_vm2, %v11778_v17 }
 0x29c   : > { %8584 = vmatmul.mubr.msk.f32.gmra.mrb[236].mxu1 %vm3257_vm2, %v11780_v49  ;;  %8531 = vmatprep.mubr.msk.f32.mxu0 %vm9668_vm0, %v9669_v11 }
 0x29d   : > { %8586 = vmatprep.mubr.msk.f32.mxu1 %vm9668_vm0, %v9669_v11  ;;  %9476 = vmatpush3.bf16.msra.mxu0 %v9475_v22  ;;  %v9496_v22 = vpack.c.bf16 %v6731_v56, %v6730_v20 }
 0x29e   : > { %9488 = vmatpush3.bf16.msra.mxu1 %v9487_v7  ;;  %9477 = vmatprep.subr.bf16.mxu0 %v9667_v3  ;;  %v9508_v7 = vpack.c.bf16 %v6752_v37, %v6751_v44  ;;  %v6775_v44 = vld [vmem:[%s13229_s4 + $0x218] sm:$0xff] }
 0x29f   : > { %9489 = vmatprep.subr.bf16.mxu1 %v9667_v3  ;;  %8532 = vmatmul.mubr.msk.f32.gmra.mrb[238].mxu0 %vm3257_vm2, %v11804_v61  ;;  %v12138_v37 = vld [vmem:[#allocation2 + $0x14] sm:$0xff] }
 0x2a0   : > { %8587 = vmatmul.mubr.msk.f32.gmra.mrb[238].mxu1 %vm3257_vm2, %v11806_v59  ;;  %8534 = vmatprep.mubr.msk.f32.mxu0 %vm9668_vm0, %v9669_v11  ;;  %v3437_v28 = vpop.f32.mrb[208].mxu0 }
 0x2a1   : > { %8589 = vmatprep.mubr.msk.f32.mxu1 %vm9668_vm0, %v9669_v11  ;;  %9479 = vmatpush3.bf16.msra.mxu0 %v9478_v38  ;;  %v8417_v4 = vpop.f32.mrb[209].mxu0  ;;  %v3606_v57 = vpop.f32.mrb[208].mxu1  ;;  %v9644_v38 = vld [vmem:[#allocation2 + $0x1] sm:$0xff] }
 0x2a2   : > { %9491 = vmatpush3.bf16.msra.mxu1 %v9490_v2  ;;  %9480 = vmatprep.subr.bf16.mxu0 %v9667_v3  ;;  %v11897_v14 = vadd.f32 %v3606_v57, %v3437_v28  ;;  %v8472_v35 = vpop.f32.mrb[209].mxu1  ;;  %v9499_v2 = vpack.c.bf16 %v6733_v50, %v6732_v53  ;;  %v6736_v4 = vld [vmem:[%s13229_s4 + $0x1b0] sm:$0xff]  ;;  %v6785_v53 = vld [vmem:[%s13229_s4 + $0x268] sm:$0xff]  ;;  %v6776_v50 = vld [vmem:[%s13229_s4 + $0x220] sm:$0xff] }
 0x2a3   : > { %9492 = vmatprep.subr.bf16.mxu1 %v9667_v3  ;;  %8535 = vmatmul.mubr.msk.f32.gmra.mrb[240].mxu0 %vm3257_vm2, %v11821_v16  ;;  %v6757_v57 = vld [vmem:[%s13229_s4 + $0x1f0] sm:$0xff]  ;;  %v6758_v35 = vld [vmem:[%s13229_s4 + $0x1f8] sm:$0xff] }
 0x2a4   : > { %8590 = vmatmul.mubr.msk.f32.gmra.mrb[240].mxu1 %vm3257_vm2, %v11823_v10  ;;  %8537 = vmatprep.mubr.msk.f32.mxu0 %vm9668_vm0, %v9669_v11  ;;  %v9517_v56 = vpack.c.bf16 %v6758_v35, %v6757_v57  ;;  %v12221_v57 = vld [vmem:[#allocation2 + $0x3c] sm:$0xff]  ;;  %v12231_v35 = vld [vmem:[#allocation2 + $0x44] sm:$0xff] }
 0x2a5   : > { %8592 = vmatprep.mubr.msk.f32.mxu1 %vm9668_vm0, %v9669_v11  ;;  %9482 = vmatpush3.bf16.msra.mxu0 %v9481_v52  ;;  %v6756_v52 = vld [vmem:[%s13229_s4 + $0x1e8] sm:$0xff] }
 0x2a6   : > { %9494 = vmatpush3.bf16.msra.mxu1 %v9493_v55  ;;  %9495 = vmatprep.subr.bf16.mxu0 %v9667_v3  ;;  %v9502_v55 = vpack.c.bf16 %v6735_v34, %v6734_v33  ;;  %v9514_v28 = vpack.c.bf16 %v6756_v52, %v6755_v15  ;;  %v6787_v33 = vld [vmem:[%s13229_s4 + $0x278] sm:$0xff]  ;;  %v6778_v34 = vld [vmem:[%s13229_s4 + $0x230] sm:$0xff] }
 0x2a7   : > { %9507 = vmatprep.subr.bf16.mxu1 %v9667_v3  ;;  %8538 = vmatmul.mubr.msk.f32.gmra.mrb[242].mxu0 %vm3257_vm2, %v11835_v48  ;;  %v6779_v15 = vld [vmem:[%s13229_s4 + $0x238] sm:$0xff] }
 0x2a8   : > { %8593 = vmatmul.mubr.msk.f32.gmra.mrb[242].mxu1 %vm3257_vm2, %v11837_v0  ;;  %8540 = vmatprep.mubr.msk.f32.mxu0 %vm9668_vm0, %v9669_v11 }
 0x2a9   : > { %8595 = vmatprep.mubr.msk.f32.mxu1 %vm9668_vm0, %v9669_v11 }
 0x2ab   : > { %8541 = vmatmul.mubr.msk.f32.gmra.mrb[244].mxu0 %vm3257_vm2, %v11849_v13 }
 0x2ac   : > { %8596 = vmatmul.mubr.msk.f32.gmra.mrb[244].mxu1 %vm3257_vm2, %v11851_v46  ;;  %8543 = vmatprep.mubr.msk.f32.mxu0 %vm9668_vm0, %v9669_v11 }
 0x2ad   : > { %8598 = vmatprep.mubr.msk.f32.mxu1 %vm9668_vm0, %v9669_v11 }
 0x2af   : > { %8544 = vmatmul.mubr.msk.f32.gmra.mrb[246].mxu0 %vm3257_vm2, %v11861_v45 }
 0x2b0   : > { %8599 = vmatmul.mubr.msk.f32.gmra.mrb[246].mxu1 %vm3257_vm2, %v11863_v24  ;;  %8546 = vmatprep.mubr.msk.f32.mxu0 %vm9668_vm0, %v9669_v11 }
 0x2b1   : > { %8601 = vmatprep.mubr.msk.f32.mxu1 %vm9668_vm0, %v9669_v11 }
 0x2b3   : > { %8547 = vmatmul.mubr.msk.f32.gmra.mrb[248].mxu0 %vm3257_vm2, %v11873_v60 }
 0x2b4   : > { %8602 = vmatmul.mubr.msk.f32.gmra.mrb[248].mxu1 %vm3257_vm2, %v11875_v18  ;;  %8549 = vmatprep.mubr.msk.f32.mxu0 %vm9668_vm0, %v9669_v11 }
 0x2b5   : > { %8604 = vmatprep.mubr.msk.f32.mxu1 %vm9668_vm0, %v9669_v11 }
 0x2b7   : > { %8550 = vmatmul.mubr.msk.f32.gmra.mrb[250].mxu0 %vm3257_vm2, %v11885_v32 }
 0x2b8   : > { %8605 = vmatmul.mubr.msk.f32.gmra.mrb[250].mxu1 %vm3257_vm2, %v11887_v47  ;;  %8552 = vmatprep.mubr.msk.f32.mxu0 %vm9668_vm0, %v9669_v11 }
 0x2b9   : > { %8607 = vmatprep.mubr.msk.f32.mxu1 %vm9668_vm0, %v9669_v11 }
 0x2bb   : > { %8553 = vmatmul.mubr.msk.f32.gmra.mrb[252].mxu0 %vm3257_vm2, %v11899_v1 }
 0x2bc   : > { %8608 = vmatmul.mubr.msk.f32.gmra.mrb[252].mxu1 %vm3257_vm2, %v11901_v21  ;;  %8555 = vmatprep.mubr.msk.f32.mxu0 %vm9668_vm0, %v9669_v11 }
 0x2bd   : > { %8610 = vmatprep.mubr.msk.f32.mxu1 %vm9668_vm0, %v9669_v11 }
 0x2bf   : > { %8556 = vmatmul.mubr.msk.f32.gmra.mrb[254].mxu0 %vm3257_vm2, %v11911_v40 }
 0x2c0   : > { %8611 = vmatmul.mubr.msk.f32.gmra.mrb[254].mxu1 %vm3257_vm2, %v11913_v9  ;;  %8558 = vmatprep.mubr.msk.f32.mxu0 %vm9668_vm0, %v9669_v11 }
 0x2c1   : > { %8613 = vmatprep.mubr.msk.f32.mxu1 %vm9668_vm0, %v9669_v11 }
 0x2c3   : > { %8559 = vmatmul.mubr.msk.f32.gmra.mrb[0].mxu0 %vm3257_vm2, %v11923_v30 }
 0x2c4   : > { %8614 = vmatmul.mubr.msk.f32.gmra.mrb[0].mxu1 %vm3257_vm2, %v11925_v27  ;;  %8561 = vmatprep.mubr.msk.f32.mxu0 %vm9668_vm0, %v9669_v11 }
 0x2c5   : > { %8616 = vmatprep.mubr.msk.f32.mxu1 %vm9668_vm0, %v9669_v11 }
 0x2c7   : > { %8562 = vmatmul.mubr.msk.f32.gmra.mrb[2].mxu0 %vm3257_vm2, %v11944_v63 }
 0x2c8   : > { %8617 = vmatmul.mubr.msk.f32.gmra.mrb[2].mxu1 %vm3257_vm2, %v11946_v8  ;;  %8635 = vmatprep.mubr.msk.f32.mxu0 %vm9668_vm0, %v9669_v11 }
 0x2c9   : > { %8690 = vmatprep.mubr.msk.f32.mxu1 %vm9668_vm0, %v9669_v11 }
 0x2cb   : > { %8636 = vmatmul.mubr.msk.f32.vlgmr.msra.gmra.mrb[4].mxu0 %vm3257_vm2, %v4120_v26 }
 0x2cc   : > { %8691 = vmatmul.mubr.msk.f32.vlgmr.msra.gmra.mrb[4].mxu1 %vm3257_vm2, %v9644_v38  ;;  %9497 = vmatpush3.bf16.msra.mxu0 %v9496_v22 }
 0x2cd   : > { %8638 = vmatprep.mubr.msk.f32.mxu0 %vm9668_vm0, %v9669_v11  ;;  %8693 = vmatprep.mubr.msk.f32.mxu1 %vm9668_vm0, %v9669_v11 }
 0x2ce   : > { %9509 = vmatpush3.bf16.msra.mxu1 %v9508_v7  ;;  %9498 = vmatprep.subr.bf16.mxu0 %v9667_v3  ;;  %v6784_v7 = vld [vmem:[%s13229_s4 + $0x260] sm:$0xff] }
 0x2cf   : > { %9510 = vmatprep.subr.bf16.mxu1 %v9667_v3  ;;  %8639 = vmatmul.mubr.msk.f32.gmra.mrb[6].mxu0 %vm3257_vm2, %v11754_v29  ;;  %v9526_v38 = vpack.c.bf16 %v6785_v53, %v6784_v7 }
 0x2d0   : > { %8694 = vmatmul.mubr.msk.f32.gmra.mrb[6].mxu1 %vm3257_vm2, %v11588_v12  ;;  %8641 = vmatprep.mubr.msk.f32.mxu0 %vm9668_vm0, %v9669_v11  ;;  %v6737_v12 = vld [vmem:[%s13229_s4 + $0x1b8] sm:$0xff] }
 0x2d1   : > { %8696 = vmatprep.mubr.msk.f32.mxu1 %vm9668_vm0, %v9669_v11  ;;  %9500 = vmatpush3.bf16.msra.mxu0 %v9499_v2  ;;  %v9505_v20 = vpack.c.bf16 %v6737_v12, %v6736_v4  ;;  %v9538_v2 = vpack.c.bf16 %v6777_v43, %v6776_v50  ;;  %v12198_v4 = vld [vmem:[#allocation2 + $0x2c] sm:$0xff]  ;;  %v12210_v12 = vld [vmem:[#allocation2 + $0x34] sm:$0xff]  ;;  %v6818_v50 = vld [vmem:[%s13229_s4 + $0x2a0] sm:$0xff] }
 0x2d2   : > { %9512 = vmatpush3.bf16.msra.mxu1 %v9511_v19  ;;  %9501 = vmatprep.subr.bf16.mxu0 %v9667_v3  ;;  %v6786_v19 = vld [vmem:[%s13229_s4 + $0x270] sm:$0xff]  ;;  %v6840_v43 = vld [vmem:[%s13229_s4 + $0x2e8] sm:$0xff] }
 0x2d3   : > { %9513 = vmatprep.subr.bf16.mxu1 %v9667_v3  ;;  %8642 = vmatmul.mubr.msk.f32.gmra.mrb[8].mxu0 %vm3257_vm2, %v11778_v17  ;;  %v9529_v52 = vpack.c.bf16 %v6787_v33, %v6786_v19  ;;  %v6820_v19 = vld [vmem:[%s13229_s4 + $0x2b0] sm:$0xff] }
 0x2d4   : > { %8697 = vmatmul.mubr.msk.f32.gmra.mrb[8].mxu1 %vm3257_vm2, %v11601_v31  ;;  %8644 = vmatprep.mubr.msk.f32.mxu0 %vm9668_vm0, %v9669_v11  ;;  %v6780_v31 = vld [vmem:[%s13229_s4 + $0x240] sm:$0xff] }
 0x2d5   : > { %8699 = vmatprep.mubr.msk.f32.mxu1 %vm9668_vm0, %v9669_v11  ;;  %9503 = vmatpush3.bf16.msra.mxu0 %v9502_v55  ;;  %v9541_v55 = vpack.c.bf16 %v6779_v15, %v6778_v34  ;;  %v6842_v15 = vld [vmem:[%s13229_s4 + $0x2f8] sm:$0xff] }
 0x2d6   : > { %9515 = vmatpush3.bf16.msra.mxu1 %v9514_v28  ;;  %9504 = vmatprep.subr.bf16.mxu0 %v9667_v3  ;;  %v12186_v28 = vld [vmem:[#allocation2 + $0x24] sm:$0xff] }
 0x2d7   : > { %9516 = vmatprep.subr.bf16.mxu1 %v9667_v3  ;;  %8645 = vmatmul.mubr.msk.f32.gmra.mrb[10].mxu0 %vm3257_vm2, %v11804_v61 }
 0x2d8   : > { %8700 = vmatmul.mubr.msk.f32.gmra.mrb[10].mxu1 %vm3257_vm2, %v11614_v25  ;;  %8647 = vmatprep.mubr.msk.f32.mxu0 %vm9668_vm0, %v9669_v11  ;;  %v6781_v25 = vld [vmem:[%s13229_s4 + $0x248] sm:$0xff] }
 0x2d9   : > { %8702 = vmatprep.mubr.msk.f32.mxu1 %vm9668_vm0, %v9669_v11  ;;  %9506 = vmatpush3.bf16.msra.mxu0 %v9505_v20  ;;  %v12241_v20 = vld [vmem:[#allocation2 + $0x4c] sm:$0xff] }
 0x2da   : > { %9518 = vmatpush3.bf16.msra.mxu1 %v9517_v56  ;;  %9519 = vmatprep.subr.bf16.mxu0 %v9667_v3  ;;  %v12251_v56 = vld [vmem:[#allocation2 + $0x54] sm:$0xff] }
 0x2db   : > { %9531 = vmatprep.subr.bf16.mxu1 %v9667_v3  ;;  %8648 = vmatmul.mubr.msk.f32.gmra.mrb[12].mxu0 %vm3257_vm2, %v11821_v16 }
 0x2dc   : > { %8703 = vmatmul.mubr.msk.f32.gmra.mrb[12].mxu1 %vm3257_vm2, %v11627_v36  ;;  %8650 = vmatprep.mubr.msk.f32.mxu0 %vm9668_vm0, %v9669_v11  ;;  %v4132_v36 = vld [vmem:[#allocation2 + $0x62] sm:$0xf] }
 0x2dd   : > { %8705 = vmatprep.mubr.msk.f32.mxu1 %vm9668_vm0, %v9669_v11 }
 0x2df   : > { %8651 = vmatmul.mubr.msk.f32.gmra.mrb[14].mxu0 %vm3257_vm2, %v11835_v48 }
 0x2e0   : > { %8706 = vmatmul.mubr.msk.f32.gmra.mrb[14].mxu1 %vm3257_vm2, %v11640_v6  ;;  %8653 = vmatprep.mubr.msk.f32.mxu0 %vm9668_vm0, %v9669_v11  ;;  %v6772_v6 = vld [vmem:[%s13229_s4 + $0x200] sm:$0xff] }
 0x2e1   : > { %8708 = vmatprep.mubr.msk.f32.mxu1 %vm9668_vm0, %v9669_v11 }
 0x2e3   : > { %8654 = vmatmul.mubr.msk.f32.gmra.mrb[16].mxu0 %vm3257_vm2, %v11849_v13 }
 0x2e4   : > { %8709 = vmatmul.mubr.msk.f32.gmra.mrb[16].mxu1 %vm3257_vm2, %v11653_v51  ;;  %8656 = vmatprep.mubr.msk.f32.mxu0 %vm9668_vm0, %v9669_v11  ;;  %v6773_v51 = vld [vmem:[%s13229_s4 + $0x208] sm:$0xff] }
 0x2e5   : > { %8711 = vmatprep.mubr.msk.f32.mxu1 %vm9668_vm0, %v9669_v11 }
 0x2e7   : > { %8657 = vmatmul.mubr.msk.f32.gmra.mrb[18].mxu0 %vm3257_vm2, %v11861_v45 }
 0x2e8   : > { %8712 = vmatmul.mubr.msk.f32.gmra.mrb[18].mxu1 %vm3257_vm2, %v11666_v41  ;;  %8659 = vmatprep.mubr.msk.f32.mxu0 %vm9668_vm0, %v9669_v11  ;;  %v9520_v41 = vpack.c.bf16 %v6781_v25, %v6780_v31  ;;  %v12261_v31 = vld [vmem:[#allocation2 + $0x5c] sm:$0xff]  ;;  %v12271_v25 = vld [vmem:[#allocation2 + $0x64] sm:$0xff] }
 0x2e9   : > { %8714 = vmatprep.mubr.msk.f32.mxu1 %vm9668_vm0, %v9669_v11 }
 0x2eb   : > { %8660 = vmatmul.mubr.msk.f32.gmra.mrb[20].mxu0 %vm3257_vm2, %v11873_v60 }
 0x2ec   : > { %8715 = vmatmul.mubr.msk.f32.gmra.mrb[20].mxu1 %vm3257_vm2, %v11679_v54  ;;  %8662 = vmatprep.mubr.msk.f32.mxu0 %vm9668_vm0, %v9669_v11  ;;  %v12116_v54 = vld [vmem:[#allocation2 + $0xc] sm:$0xff] }
 0x2ed   : > { %8717 = vmatprep.mubr.msk.f32.mxu1 %vm9668_vm0, %v9669_v11 }
 0x2ef   : > { %8663 = vmatmul.mubr.msk.f32.gmra.mrb[22].mxu0 %vm3257_vm2, %v11885_v32 }
 0x2f0   : > { %8718 = vmatmul.mubr.msk.f32.gmra.mrb[22].mxu1 %vm3257_vm2, %v11692_v23  ;;  %8665 = vmatprep.mubr.msk.f32.mxu0 %vm9668_vm0, %v9669_v11  ;;  %v9532_v23 = vpack.c.bf16 %v6773_v51, %v6772_v6  ;;  %v6815_v6 = vld [vmem:[%s13229_s4 + $0x288] sm:$0xff] }
 0x2f1   : > { %8720 = vmatprep.mubr.msk.f32.mxu1 %vm9668_vm0, %v9669_v11  ;;  %v12287_v51 = vld [vmem:[#allocation2 + $0x6c] sm:$0xf] }
 0x2f3   : > { %8666 = vmatmul.mubr.msk.f32.gmra.mrb[24].mxu0 %vm3257_vm2, %v11899_v1 }
 0x2f4   : > { %8721 = vmatmul.mubr.msk.f32.gmra.mrb[24].mxu1 %vm3257_vm2, %v11704_v39  ;;  %8668 = vmatprep.mubr.msk.f32.mxu0 %vm9668_vm0, %v9669_v11  ;;  %v6782_v39 = vld [vmem:[%s13229_s4 + $0x250] sm:$0xff] }
 0x2f5   : > { %8723 = vmatprep.mubr.msk.f32.mxu1 %vm9668_vm0, %v9669_v11 }
 0x2f7   : > { %8669 = vmatmul.mubr.msk.f32.gmra.mrb[26].mxu0 %vm3257_vm2, %v11911_v40 }
 0x2f8   : > { %8724 = vmatmul.mubr.msk.f32.gmra.mrb[26].mxu1 %vm3257_vm2, %v11715_v58  ;;  %8671 = vmatprep.mubr.msk.f32.mxu0 %vm9668_vm0, %v9669_v11  ;;  %v6783_v58 = vld [vmem:[%s13229_s4 + $0x258] sm:$0xff] }
 0x2f9   : > { %8726 = vmatprep.mubr.msk.f32.mxu1 %vm9668_vm0, %v9669_v11  ;;  %v9523_v26 = vpack.c.bf16 %v6783_v58, %v6782_v39 }
 0x2fb   : > { %8672 = vmatmul.mubr.msk.f32.gmra.mrb[28].mxu0 %vm3257_vm2, %v4132_v36  ;;  %v6814_v36 = vld [vmem:[%s13229_s4 + $0x280] sm:$0xff] }
 0x2fc   : > { %8727 = vmatmul.mubr.msk.f32.gmra.mrb[28].mxu1 %vm3257_vm2, %v11733_v42  ;;  %8745 = vmatprep.mubr.msk.f32.mxu0 %vm9668_vm0, %v9669_v11  ;;  %v6774_v42 = vld [vmem:[%s13229_s4 + $0x210] sm:$0xff]  ;;  %v9544_v39 = vpack.c.bf16 %v6815_v6, %v6814_v36 }
 0x2fd   : > { %8800 = vmatprep.mubr.msk.f32.mxu1 %vm9668_vm0, %v9669_v11  ;;  %v9535_v22 = vpack.c.bf16 %v6775_v44, %v6774_v42  ;;  %v6816_v42 = vld [vmem:[%s13229_s4 + $0x290] sm:$0xff]  ;;  %v6817_v44 = vld [vmem:[%s13229_s4 + $0x298] sm:$0xff] }
 0x2fe   : > { %v9547_v7 = vpack.c.bf16 %v6817_v44, %v6816_v42 }
 0x2ff   : > { %8746 = vmatmul.mubr.msk.f32.vlgmr.msra.gmra.mrb[30].mxu0 %vm3257_vm2, %v11756_v5 }
 0x300   : > { %8801 = vmatmul.mubr.msk.f32.vlgmr.msra.gmra.mrb[30].mxu1 %vm3257_vm2, %v12116_v54  ;;  %9521 = vmatpush3.bf16.msra.mxu0 %v9520_v41  ;;  %v6835_v41 = vld [vmem:[%s13229_s4 + $0x2c0] sm:$0xff] }
 0x301   : > { %8748 = vmatprep.mubr.msk.f32.mxu0 %vm9668_vm0, %v9669_v11  ;;  %8803 = vmatprep.mubr.msk.f32.mxu1 %vm9668_vm0, %v9669_v11 }
 0x302   : > { %9533 = vmatpush3.bf16.msra.mxu1 %v9532_v23  ;;  %9522 = vmatprep.subr.bf16.mxu0 %v9667_v3  ;;  %v6836_v23 = vld [vmem:[%s13229_s4 + $0x2c8] sm:$0xff] }
 0x303   : > { %9534 = vmatprep.subr.bf16.mxu1 %v9667_v3  ;;  %8749 = vmatmul.mubr.msk.f32.gmra.mrb[32].mxu0 %vm3257_vm2, %v11780_v49  ;;  %v9556_v58 = vpack.c.bf16 %v6836_v23, %v6835_v41 }
 0x304   : > { %8804 = vmatmul.mubr.msk.f32.gmra.mrb[32].mxu1 %vm3257_vm2, %v12138_v37  ;;  %8751 = vmatprep.mubr.msk.f32.mxu0 %vm9668_vm0, %v9669_v11 }
 0x305   : > { %8806 = vmatprep.mubr.msk.f32.mxu1 %vm9668_vm0, %v9669_v11  ;;  %9524 = vmatpush3.bf16.msra.mxu0 %v9523_v26  ;;  %v6837_v26 = vld [vmem:[%s13229_s4 + $0x2d0] sm:$0xff] }
 0x306   : > { %9536 = vmatpush3.bf16.msra.mxu1 %v9535_v22  ;;  %9525 = vmatprep.subr.bf16.mxu0 %v9667_v3  ;;  %v6838_v22 = vld [vmem:[%s13229_s4 + $0x2d8] sm:$0xff] }
 0x307   : > { %9537 = vmatprep.subr.bf16.mxu1 %v9667_v3  ;;  %8752 = vmatmul.mubr.msk.f32.gmra.mrb[34].mxu0 %vm3257_vm2, %v11806_v59  ;;  %v9559_v53 = vpack.c.bf16 %v6838_v22, %v6837_v26 }
 0x308   : > { %8807 = vmatmul.mubr.msk.f32.gmra.mrb[34].mxu1 %vm3257_vm2, %v12162_v62  ;;  %8754 = vmatprep.mubr.msk.f32.mxu0 %vm9668_vm0, %v9669_v11 }
 0x309   : > { %8809 = vmatprep.mubr.msk.f32.mxu1 %vm9668_vm0, %v9669_v11  ;;  %9527 = vmatpush3.bf16.msra.mxu0 %v9526_v38 }
 0x30a   : > { %9539 = vmatpush3.bf16.msra.mxu1 %v9538_v2  ;;  %9528 = vmatprep.subr.bf16.mxu0 %v9667_v3 }
 0x30b   : > { %9540 = vmatprep.subr.bf16.mxu1 %v9667_v3  ;;  %8755 = vmatmul.mubr.msk.f32.gmra.mrb[36].mxu0 %vm3257_vm2, %v11823_v10 }
 0x30c   : > { %8810 = vmatmul.mubr.msk.f32.gmra.mrb[36].mxu1 %vm3257_vm2, %v12186_v28  ;;  %8757 = vmatprep.mubr.msk.f32.mxu0 %vm9668_vm0, %v9669_v11 }
 0x30d   : > { %8812 = vmatprep.mubr.msk.f32.mxu1 %vm9668_vm0, %v9669_v11  ;;  %9530 = vmatpush3.bf16.msra.mxu0 %v9529_v52 }
 0x30e   : > { %9542 = vmatpush3.bf16.msra.mxu1 %v9541_v55  ;;  %9543 = vmatprep.subr.bf16.mxu0 %v9667_v3 }
 0x30f   : > { %9555 = vmatprep.subr.bf16.mxu1 %v9667_v3  ;;  %8758 = vmatmul.mubr.msk.f32.gmra.mrb[38].mxu0 %vm3257_vm2, %v11837_v0 }
 0x310   : > { %8813 = vmatmul.mubr.msk.f32.gmra.mrb[38].mxu1 %vm3257_vm2, %v12198_v4  ;;  %8760 = vmatprep.mubr.msk.f32.mxu0 %vm9668_vm0, %v9669_v11 }
 0x311   : > { %8815 = vmatprep.mubr.msk.f32.mxu1 %vm9668_vm0, %v9669_v11 }
 0x313   : > { %8761 = vmatmul.mubr.msk.f32.gmra.mrb[40].mxu0 %vm3257_vm2, %v11851_v46 }
 0x314   : > { %8816 = vmatmul.mubr.msk.f32.gmra.mrb[40].mxu1 %vm3257_vm2, %v12210_v12  ;;  %8763 = vmatprep.mubr.msk.f32.mxu0 %vm9668_vm0, %v9669_v11 }
 0x315   : > { %8818 = vmatprep.mubr.msk.f32.mxu1 %vm9668_vm0, %v9669_v11 }
 0x317   : > { %8764 = vmatmul.mubr.msk.f32.gmra.mrb[42].mxu0 %vm3257_vm2, %v11863_v24 }
 0x318   : > { %8819 = vmatmul.mubr.msk.f32.gmra.mrb[42].mxu1 %vm3257_vm2, %v12221_v57  ;;  %8766 = vmatprep.mubr.msk.f32.mxu0 %vm9668_vm0, %v9669_v11 }
 0x319   : > { %8821 = vmatprep.mubr.msk.f32.mxu1 %vm9668_vm0, %v9669_v11 }
 0x31b   : > { %8767 = vmatmul.mubr.msk.f32.gmra.mrb[44].mxu0 %vm3257_vm2, %v11875_v18 }
 0x31c   : > { %8822 = vmatmul.mubr.msk.f32.gmra.mrb[44].mxu1 %vm3257_vm2, %v12231_v35  ;;  %8769 = vmatprep.mubr.msk.f32.mxu0 %vm9668_vm0, %v9669_v11 }
 0x31d   : > { %8824 = vmatprep.mubr.msk.f32.mxu1 %vm9668_vm0, %v9669_v11 }
 0x31f   : > { %8770 = vmatmul.mubr.msk.f32.gmra.mrb[46].mxu0 %vm3257_vm2, %v11887_v47 }
 0x320   : > { %8825 = vmatmul.mubr.msk.f32.gmra.mrb[46].mxu1 %vm3257_vm2, %v12241_v20  ;;  %8772 = vmatprep.mubr.msk.f32.mxu0 %vm9668_vm0, %v9669_v11 }
 0x321   : > { %8827 = vmatprep.mubr.msk.f32.mxu1 %vm9668_vm0, %v9669_v11 }
 0x323   : > { %8773 = vmatmul.mubr.msk.f32.gmra.mrb[48].mxu0 %vm3257_vm2, %v11901_v21 }
 0x324   : > { %8828 = vmatmul.mubr.msk.f32.gmra.mrb[48].mxu1 %vm3257_vm2, %v12251_v56  ;;  %8775 = vmatprep.mubr.msk.f32.mxu0 %vm9668_vm0, %v9669_v11 }
 0x325   : > { %8830 = vmatprep.mubr.msk.f32.mxu1 %vm9668_vm0, %v9669_v11 }
 0x327   : > { %8776 = vmatmul.mubr.msk.f32.gmra.mrb[50].mxu0 %vm3257_vm2, %v11913_v9 }
 0x328   : > { %8831 = vmatmul.mubr.msk.f32.gmra.mrb[50].mxu1 %vm3257_vm2, %v12261_v31  ;;  %8778 = vmatprep.mubr.msk.f32.mxu0 %vm9668_vm0, %v9669_v11 }
 0x329   : > { %8833 = vmatprep.mubr.msk.f32.mxu1 %vm9668_vm0, %v9669_v11 }
 0x32b   : > { %8779 = vmatmul.mubr.msk.f32.gmra.mrb[52].mxu0 %vm3257_vm2, %v11925_v27 }
 0x32c   : > { %8834 = vmatmul.mubr.msk.f32.gmra.mrb[52].mxu1 %vm3257_vm2, %v12271_v25  ;;  %8781 = vmatprep.mubr.msk.f32.mxu0 %vm9668_vm0, %v9669_v11 }
 0x32d   : > { %8836 = vmatprep.mubr.msk.f32.mxu1 %vm9668_vm0, %v9669_v11 }
 0x32f   : > { %8782 = vmatmul.mubr.msk.f32.gmra.mrb[54].mxu0 %vm3257_vm2, %v11946_v8 }
 0x330   : > { %8837 = vmatmul.mubr.msk.f32.gmra.mrb[54].mxu1 %vm3257_vm2, %v12287_v51  ;;  %8855 = vmatprep.mubr.msk.f32.mxu0 %vm9668_vm0, %v9669_v11 }
 0x331   : > { %8910 = vmatprep.mubr.msk.f32.mxu1 %vm9668_vm0, %v9669_v11 }
 0x333   : > { %8856 = vmatmul.mubr.msk.f32.vlgmr.msra.gmra.mrb[56].mxu0 %vm3257_vm2, %v11756_v5  ;;  %v6839_v5 = vld [vmem:[%s13229_s4 + $0x2e0] sm:$0xff] }
 0x334   : > { %8911 = vmatmul.mubr.msk.f32.vlgmr.msra.gmra.mrb[56].mxu1 %vm3257_vm2, %v11754_v29  ;;  %9545 = vmatpush3.bf16.msra.mxu0 %v9544_v39  ;;  %v6819_v29 = vld [vmem:[%s13229_s4 + $0x2a8] sm:$0xff]  ;;  %v9562_v2 = vpack.c.bf16 %v6840_v43, %v6839_v5 }
 0x335   : > { %8858 = vmatprep.mubr.msk.f32.mxu0 %vm9668_vm0, %v9669_v11  ;;  %8913 = vmatprep.mubr.msk.f32.mxu1 %vm9668_vm0, %v9669_v11  ;;  %v9550_v38 = vpack.c.bf16 %v6819_v29, %v6818_v50 }
 0x336   : > { %9557 = vmatpush3.bf16.msra.mxu1 %v9556_v58  ;;  %9546 = vmatprep.subr.bf16.mxu0 %v9667_v3 }
 0x337   : > { %9558 = vmatprep.subr.bf16.mxu1 %v9667_v3  ;;  %8859 = vmatmul.mubr.msk.f32.gmra.mrb[58].mxu0 %vm3257_vm2, %v11780_v49  ;;  %v6841_v49 = vld [vmem:[%s13229_s4 + $0x2f0] sm:$0xff] }
 0x338   : > { %8914 = vmatmul.mubr.msk.f32.gmra.mrb[58].mxu1 %vm3257_vm2, %v11778_v17  ;;  %8861 = vmatprep.mubr.msk.f32.mxu0 %vm9668_vm0, %v9669_v11  ;;  %v6821_v17 = vld [vmem:[%s13229_s4 + $0x2b8] sm:$0xff]  ;;  %v9565_v41 = vpack.c.bf16 %v6842_v15, %v6841_v49 }
 0x339   : > { %8916 = vmatprep.mubr.msk.f32.mxu1 %vm9668_vm0, %v9669_v11  ;;  %9548 = vmatpush3.bf16.msra.mxu0 %v9547_v7  ;;  %v9553_v6 = vpack.c.bf16 %v6821_v17, %v6820_v19 }
 0x33a   : > { %9560 = vmatpush3.bf16.msra.mxu1 %v9559_v53  ;;  %v3442_v33 = vpop.f32.mrb[210].mxu0  ;;  %9549 = vmatprep.subr.bf16.mxu0 %v9667_v3 }
 0x33b   : > { %v3611_v34 = vpop.f32.mrb[210].mxu1  ;;  %9561 = vmatprep.subr.bf16.mxu1 %v9667_v3  ;;  %v8420_v55 = vpop.f32.mrb[211].mxu0  ;;  %8862 = vmatmul.mubr.msk.f32.gmra.mrb[60].mxu0 %vm3257_vm2, %v11806_v59 }
 0x33c   : > { %v12359_v52 = vadd.f32 %v3611_v34, %v3442_v33  ;;  %v8475_v36 = vpop.f32.mrb[211].mxu1  ;;  %8917 = vmatmul.mubr.msk.f32.gmra.mrb[60].mxu1 %vm3257_vm2, %v11804_v61  ;;  %8864 = vmatprep.mubr.msk.f32.mxu0 %vm9668_vm0, %v9669_v11 }
 0x33d   : > { %8919 = vmatprep.mubr.msk.f32.mxu1 %vm9668_vm0, %v9669_v11  ;;  %9551 = vmatpush3.bf16.msra.mxu0 %v9550_v38 }
 0x33e   : > { %9563 = vmatpush3.bf16.msra.mxu1 %v9562_v2  ;;  %v3447_v23 = vpop.f32.mrb[212].mxu0  ;;  %9552 = vmatprep.subr.bf16.mxu0 %v9667_v3 }
 0x33f   : > { %v3616_v39 = vpop.f32.mrb[212].mxu1  ;;  %9564 = vmatprep.subr.bf16.mxu1 %v9667_v3  ;;  %v8423_v58 = vpop.f32.mrb[213].mxu0  ;;  %8865 = vmatmul.mubr.msk.f32.gmra.mrb[62].mxu0 %vm3257_vm2, %v11823_v10 }
 0x340   : > { %v12371_v59 = vadd.f32 %v3616_v39, %v3447_v23  ;;  %v8478_v61 = vpop.f32.mrb[213].mxu1  ;;  %8920 = vmatmul.mubr.msk.f32.gmra.mrb[62].mxu1 %vm3257_vm2, %v11821_v16  ;;  %8867 = vmatprep.mubr.msk.f32.mxu0 %vm9668_vm0, %v9669_v11 }
 0x341   : > { %8922 = vmatprep.mubr.msk.f32.mxu1 %vm9668_vm0, %v9669_v11  ;;  %9554 = vmatpush3.bf16.msra.mxu0 %v9553_v6 }
 0x342   : > { %9566 = vmatpush3.bf16.msra.mxu1 %v9565_v41  ;;  %v3452_v42 = vpop.f32.mrb[214].mxu0  ;;  %9567 = vmatprep.subr.bf16.mxu0 %v9667_v3 }
 0x343   : > { %v3621_v44 = vpop.f32.mrb[214].mxu1  ;;  %9579 = vmatprep.subr.bf16.mxu1 %v9667_v3  ;;  %v8426_v10 = vpop.f32.mrb[215].mxu0  ;;  %8868 = vmatmul.mubr.msk.f32.gmra.mrb[64].mxu0 %vm3257_vm2, %v11837_v0 }
 0x344   : > { %v12383_v26 = vadd.f32 %v3621_v44, %v3452_v42  ;;  %v8481_v22 = vpop.f32.mrb[215].mxu1  ;;  %8923 = vmatmul.mubr.msk.f32.gmra.mrb[64].mxu1 %vm3257_vm2, %v11835_v48  ;;  %8870 = vmatprep.mubr.msk.f32.mxu0 %vm9668_vm0, %v9669_v11 }
 0x345   : > { %8925 = vmatprep.mubr.msk.f32.mxu1 %vm9668_vm0, %v9669_v11 }
 0x346   : > { %v3457_v16 = vpop.f32.mrb[216].mxu0 }
 0x347   : > { %v3626_v7 = vpop.f32.mrb[216].mxu1  ;;  %v8429_v50 = vpop.f32.mrb[217].mxu0  ;;  %8871 = vmatmul.mubr.msk.f32.gmra.mrb[66].mxu0 %vm3257_vm2, %v11851_v46 }
 0x348   : > { %v12393_v53 = vadd.f32 %v3626_v7, %v3457_v16  ;;  %v8484_v29 = vpop.f32.mrb[217].mxu1  ;;  %8926 = vmatmul.mubr.msk.f32.gmra.mrb[66].mxu1 %vm3257_vm2, %v11849_v13  ;;  %8873 = vmatprep.mubr.msk.f32.mxu0 %vm9668_vm0, %v9669_v11  ;;  %v12485_v50 = vld [vmem:[#allocation2 + $0x15] sm:$0xff] }
 0x349   : > { %8928 = vmatprep.mubr.msk.f32.mxu1 %vm9668_vm0, %v9669_v11 }
 0x34a   : > { %v3462_v48 = vpop.f32.mrb[218].mxu0 }
 0x34b   : > { %v3631_v0 = vpop.f32.mrb[218].mxu1  ;;  %v8432_v43 = vpop.f32.mrb[219].mxu0  ;;  %8874 = vmatmul.mubr.msk.f32.gmra.mrb[68].mxu0 %vm3257_vm2, %v11863_v24 }
 0x34c   : > { %v12403_v5 = vadd.f32 %v3631_v0, %v3462_v48  ;;  %v8487_v38 = vpop.f32.mrb[219].mxu1  ;;  %8929 = vmatmul.mubr.msk.f32.gmra.mrb[68].mxu1 %vm3257_vm2, %v11861_v45  ;;  %8876 = vmatprep.mubr.msk.f32.mxu0 %vm9668_vm0, %v9669_v11  ;;  %v6866_v48 = vld [vmem:[%s13229_s4 + $0x350] sm:$0xff] }
 0x34d   : > { %8931 = vmatprep.mubr.msk.f32.mxu1 %vm9668_vm0, %v9669_v11  ;;  %v6859_v38 = vld [vmem:[%s13229_s4 + $0x318] sm:$0xff] }
 0x34e   : > { %v3467_v13 = vpop.f32.mrb[220].mxu0 }
 0x34f   : > { %v3636_v46 = vpop.f32.mrb[220].mxu1  ;;  %v8435_v19 = vpop.f32.mrb[221].mxu0  ;;  %8877 = vmatmul.mubr.msk.f32.gmra.mrb[70].mxu0 %vm3257_vm2, %v11875_v18 }
 0x350   : > { %v12413_v2 = vadd.f32 %v3636_v46, %v3467_v13  ;;  %v8490_v33 = vpop.f32.mrb[221].mxu1  ;;  %8932 = vmatmul.mubr.msk.f32.gmra.mrb[70].mxu1 %vm3257_vm2, %v11873_v60  ;;  %8879 = vmatprep.mubr.msk.f32.mxu0 %vm9668_vm0, %v9669_v11 }
 0x351   : > { %8934 = vmatprep.mubr.msk.f32.mxu1 %vm9668_vm0, %v9669_v11  ;;  %v12509_v33 = vld [vmem:[#allocation2 + $0x1d] sm:$0xff] }
 0x352   : > { %v3472_v45 = vpop.f32.mrb[222].mxu0 }
 0x353   : > { %v3641_v24 = vpop.f32.mrb[222].mxu1  ;;  %v8438_v17 = vpop.f32.mrb[223].mxu0  ;;  %8880 = vmatmul.mubr.msk.f32.gmra.mrb[72].mxu0 %vm3257_vm2, %v11887_v47 }
 0x354   : > { %v12423_v34 = vadd.f32 %v3641_v24, %v3472_v45  ;;  %v8493_v49 = vpop.f32.mrb[223].mxu1  ;;  %8935 = vmatmul.mubr.msk.f32.gmra.mrb[72].mxu1 %vm3257_vm2, %v11885_v32  ;;  %8882 = vmatprep.mubr.msk.f32.mxu0 %vm9668_vm0, %v9669_v11  ;;  %v6868_v17 = vld [vmem:[%s13229_s4 + $0x360] sm:$0xff] }
 0x355   : > { %8937 = vmatprep.mubr.msk.f32.mxu1 %vm9668_vm0, %v9669_v11 }
 0x356   : > { %v3477_v60 = vpop.f32.mrb[224].mxu0 }
 0x357   : > { %v3646_v18 = vpop.f32.mrb[224].mxu1  ;;  %v8441_v55 = vpop.f32.mrb[225].mxu0  ;;  %8883 = vmatmul.mubr.msk.f32.gmra.mrb[74].mxu0 %vm3257_vm2, %v11901_v21 }
 0x358   : > { %v12433_v15 = vadd.f32 %v3646_v18, %v3477_v60  ;;  %v8496_v36 = vpop.f32.mrb[225].mxu1  ;;  %8938 = vmatmul.mubr.msk.f32.gmra.mrb[74].mxu1 %vm3257_vm2, %v11899_v1  ;;  %8885 = vmatprep.mubr.msk.f32.mxu0 %vm9668_vm0, %v9669_v11  ;;  %v6869_v18 = vld [vmem:[%s13229_s4 + $0x368] sm:$0xff]  ;;  %v6860_v55 = vld [vmem:[%s13229_s4 + $0x320] sm:$0xff] }
 0x359   : > { %8940 = vmatprep.mubr.msk.f32.mxu1 %vm9668_vm0, %v9669_v11  ;;  %v6861_v36 = vld [vmem:[%s13229_s4 + $0x328] sm:$0xff] }
 0x35a   : > { %v3482_v32 = vpop.f32.mrb[226].mxu0 }
 0x35b   : > { %v3651_v47 = vpop.f32.mrb[226].mxu1  ;;  %v8444_v41 = vpop.f32.mrb[227].mxu0  ;;  %8886 = vmatmul.mubr.msk.f32.gmra.mrb[76].mxu0 %vm3257_vm2, %v11913_v9  ;;  %v6865_v9 = vld [vmem:[%s13229_s4 + $0x348] sm:$0xff] }
 0x35c   : > { %v12443_v6 = vadd.f32 %v3651_v47, %v3482_v32  ;;  %v8499_v23 = vpop.f32.mrb[227].mxu1  ;;  %8941 = vmatmul.mubr.msk.f32.gmra.mrb[76].mxu1 %vm3257_vm2, %v11911_v40  ;;  %8888 = vmatprep.mubr.msk.f32.mxu0 %vm9668_vm0, %v9669_v11  ;;  %v6864_v40 = vld [vmem:[%s13229_s4 + $0x340] sm:$0xff] }
 0x35d   : > { %8943 = vmatprep.mubr.msk.f32.mxu1 %vm9668_vm0, %v9669_v11  ;;  %v9568_v7 = vpack.c.bf16 %v6865_v9, %v6864_v40  ;;  %v6871_v9 = vld [vmem:[%s13229_s4 + $0x378] sm:$0xff] }
 0x35e   : > { %v3487_v1 = vpop.f32.mrb[228].mxu0 }
 0x35f   : > { %v3656_v21 = vpop.f32.mrb[228].mxu1  ;;  %v8447_v58 = vpop.f32.mrb[229].mxu0  ;;  %8889 = vmatmul.mubr.msk.f32.gmra.mrb[78].mxu0 %vm3257_vm2, %v11925_v27  ;;  %v6857_v27 = vld [vmem:[%s13229_s4 + $0x308] sm:$0xff] }
 0x360   : > { %v12453_v39 = vadd.f32 %v3656_v21, %v3487_v1  ;;  %v8502_v61 = vpop.f32.mrb[229].mxu1  ;;  %8944 = vmatmul.mubr.msk.f32.gmra.mrb[78].mxu1 %vm3257_vm2, %v11923_v30  ;;  %8891 = vmatprep.mubr.msk.f32.mxu0 %vm9668_vm0, %v9669_v11  ;;  %v6856_v30 = vld [vmem:[%s13229_s4 + $0x300] sm:$0xff]  ;;  %v9586_v21 = vpack.c.bf16 %v6861_v36, %v6860_v55  ;;  %v6870_v58 = vld [vmem:[%s13229_s4 + $0x370] sm:$0xff] }
 0x361   : > { %8946 = vmatprep.mubr.msk.f32.mxu1 %vm9668_vm0, %v9669_v11  ;;  %v9580_v29 = vpack.c.bf16 %v6857_v27, %v6856_v30  ;;  %v12536_v1 = vld [vmem:[#allocation2 + $0x25] sm:$0xff]  ;;  %v12593_v55 = vld [vmem:[#allocation2 + $0x3d] sm:$0xff] }
 0x362   : > { %v3492_v42 = vpop.f32.mrb[230].mxu0 }
 0x363   : > { %v3661_v44 = vpop.f32.mrb[230].mxu1  ;;  %v8450_v22 = vpop.f32.mrb[231].mxu0  ;;  %8892 = vmatmul.mubr.msk.f32.gmra.mrb[80].mxu0 %vm3257_vm2, %v11946_v8  ;;  %v6858_v8 = vld [vmem:[%s13229_s4 + $0x310] sm:$0xff] }
 0x364   : > { %v12475_v10 = vadd.f32 %v3661_v44, %v3492_v42  ;;  %v8505_v16 = vpop.f32.mrb[231].mxu1  ;;  %8947 = vmatmul.mubr.msk.f32.gmra.mrb[80].mxu1 %vm3257_vm2, %v11944_v63  ;;  %8965 = vmatprep.mubr.msk.f32.mxu0 %vm9668_vm0, %v9669_v11  ;;  %v6867_v63 = vld [vmem:[%s13229_s4 + $0x358] sm:$0xff]  ;;  %v9583_v24 = vpack.c.bf16 %v6859_v38, %v6858_v8  ;;  %v6862_v42 = vld [vmem:[%s13229_s4 + $0x330] sm:$0xff] }
 0x365   : > { %9020 = vmatprep.mubr.msk.f32.mxu1 %vm9668_vm0, %v9669_v11  ;;  %v9571_v45 = vpack.c.bf16 %v6867_v63, %v6866_v48  ;;  %v6863_v44 = vld [vmem:[%s13229_s4 + $0x338] sm:$0xff] }
 0x366   : > { %v3497_v0 = vpop.f32.mrb[232].mxu0 }
 0x367   : > { %v3666_v43 = vpop.f32.mrb[232].mxu1  ;;  %v8453_v46 = vpop.f32.mrb[233].mxu0  ;;  %8966 = vmatmul.mubr.msk.f32.vlgmr.msra.gmra.mrb[82].mxu0 %vm3257_vm2, %v12138_v37 }
 0x368   : > { %v12499_v13 = vadd.f32 %v3666_v43, %v3497_v0  ;;  %v8508_v19 = vpop.f32.mrb[233].mxu1  ;;  %9021 = vmatmul.mubr.msk.f32.vlgmr.msra.gmra.mrb[82].mxu1 %vm3257_vm2, %v12485_v50  ;;  %9569 = vmatpush3.bf16.msra.mxu0 %v9568_v7  ;;  %v9577_v7 = vpack.c.bf16 %v6871_v9, %v6870_v58  ;;  %v12563_v0 = vld [vmem:[#allocation2 + $0x2d] sm:$0xff] }
 0x369   : > { %8968 = vmatprep.mubr.msk.f32.mxu0 %vm9668_vm0, %v9669_v11  ;;  %9023 = vmatprep.mubr.msk.f32.mxu1 %vm9668_vm0, %v9669_v11  ;;  %v12578_v19 = vld [vmem:[#allocation2 + $0x35] sm:$0xff] }
 0x36a   : > { %9581 = vmatpush3.bf16.msra.mxu1 %v9580_v29  ;;  %v3797_v49 = vpop.f32.mrb[234].mxu0  ;;  %9570 = vmatprep.subr.bf16.mxu0 %v9667_v3 }
 0x36b   : > { %v4001_v60 = vpop.f32.mrb[234].mxu1  ;;  %9582 = vmatprep.subr.bf16.mxu1 %v9667_v3  ;;  %v3861_v32 = vadd.f32 %v3797_v49, %v11897_v14  ;;  %v8527_v47 = vpop.f32.mrb[235].mxu0  ;;  %8969 = vmatmul.mubr.msk.f32.gmra.mrb[84].mxu0 %vm3257_vm2, %v12162_v62  ;;  %v9574_v14 = vpack.c.bf16 %v6869_v18, %v6868_v17 }
 0x36c   : > { %v8582_v41 = vpop.f32.mrb[235].mxu1  ;;  %9024 = vmatmul.mubr.msk.f32.gmra.mrb[84].mxu1 %vm3257_vm2, %v12509_v33  ;;  %8971 = vmatprep.mubr.msk.f32.mxu0 %vm9668_vm0, %v9669_v11 }
 0x36d   : > { %9026 = vmatprep.mubr.msk.f32.mxu1 %vm9668_vm0, %v9669_v11  ;;  %v12534_v23 = vadd.f32 %v4001_v60, %v3861_v32  ;;  %9572 = vmatpush3.bf16.msra.mxu0 %v9571_v45 }
 0x36e   : > { %9584 = vmatpush3.bf16.msra.mxu1 %v9583_v24  ;;  %v3802_v61 = vpop.f32.mrb[236].mxu0  ;;  %9573 = vmatprep.subr.bf16.mxu0 %v9667_v3 }
 0x36f   : > { %v4006_v40 = vpop.f32.mrb[236].mxu1  ;;  %9585 = vmatprep.subr.bf16.mxu1 %v9667_v3  ;;  %v3862_v30 = vadd.f32 %v3802_v61, %v12359_v52  ;;  %v8530_v27 = vpop.f32.mrb[237].mxu0  ;;  %8972 = vmatmul.mubr.msk.f32.gmra.mrb[86].mxu0 %vm3257_vm2, %v12186_v28  ;;  %v9589_v52 = vpack.c.bf16 %v6863_v44, %v6862_v42  ;;  %v12619_v44 = vld [vmem:[#allocation2 + $0x4d] sm:$0xff] }
 0x370   : > { %v8585_v22 = vpop.f32.mrb[237].mxu1  ;;  %9027 = vmatmul.mubr.msk.f32.gmra.mrb[86].mxu1 %vm3257_vm2, %v12536_v1  ;;  %8974 = vmatprep.mubr.msk.f32.mxu0 %vm9668_vm0, %v9669_v11 }
 0x371   : > { %9029 = vmatprep.mubr.msk.f32.mxu1 %vm9668_vm0, %v9669_v11  ;;  %v12561_v16 = vadd.f32 %v4006_v40, %v3862_v30  ;;  %9575 = vmatpush3.bf16.msra.mxu0 %v9574_v14 }
 0x372   : > { %9587 = vmatpush3.bf16.msra.mxu1 %v9586_v21  ;;  %v3807_v29 = vpop.f32.mrb[238].mxu0  ;;  %9576 = vmatprep.subr.bf16.mxu0 %v9667_v3  ;;  %v12606_v21 = vld [vmem:[#allocation2 + $0x45] sm:$0xff] }
 0x373   : > { %v4011_v48 = vpop.f32.mrb[238].mxu1  ;;  %9588 = vmatprep.subr.bf16.mxu1 %v9667_v3  ;;  %v3863_v43 = vadd.f32 %v3807_v29, %v12371_v59  ;;  %v8533_v63 = vpop.f32.mrb[239].mxu0  ;;  %8975 = vmatmul.mubr.msk.f32.gmra.mrb[88].mxu0 %vm3257_vm2, %v12198_v4  ;;  %v12632_v29 = vld [vmem:[#allocation2 + $0x55] sm:$0xff] }
 0x374   : > { %v8588_v8 = vpop.f32.mrb[239].mxu1  ;;  %9030 = vmatmul.mubr.msk.f32.gmra.mrb[88].mxu1 %vm3257_vm2, %v12563_v0  ;;  %8977 = vmatprep.mubr.msk.f32.mxu0 %vm9668_vm0, %v9669_v11 }
 0x375   : > { %9032 = vmatprep.mubr.msk.f32.mxu1 %vm9668_vm0, %v9669_v11  ;;  %v12576_v38 = vadd.f32 %v4011_v48, %v3863_v43  ;;  %9578 = vmatpush3.bf16.msra.mxu0 %v9577_v7 }
 0x376   : > { %9590 = vmatpush3.bf16.msra.mxu1 %v9589_v52  ;;  %v3812_v46 = vpop.f32.mrb[240].mxu0  ;;  %9591 = vmatprep.subr.bf16.mxu0 %v9667_v3 }
 0x377   : > { %v4016_v59 = vpop.f32.mrb[240].mxu1  ;;  %9603 = vmatprep.subr.bf16.mxu1 %v9667_v3  ;;  %v3864_v45 = vadd.f32 %v3812_v46, %v12383_v26  ;;  %v8536_v24 = vpop.f32.mrb[241].mxu0  ;;  %8978 = vmatmul.mubr.msk.f32.gmra.mrb[90].mxu0 %vm3257_vm2, %v12210_v12 }
 0x378   : > { %v8591_v17 = vpop.f32.mrb[241].mxu1  ;;  %9033 = vmatmul.mubr.msk.f32.gmra.mrb[90].mxu1 %vm3257_vm2, %v12578_v19  ;;  %8980 = vmatprep.mubr.msk.f32.mxu0 %vm9668_vm0, %v9669_v11 }
 0x379   : > { %9035 = vmatprep.mubr.msk.f32.mxu1 %vm9668_vm0, %v9669_v11  ;;  %v12591_v49 = vadd.f32 %v4016_v59, %v3864_v45  ;;  %v12645_v59 = vld [vmem:[#allocation2 + $0x5d] sm:$0xff] }
 0x37a   : > { %v3817_v60 = vpop.f32.mrb[242].mxu0 }
 0x37b   : > { %v4021_v18 = vpop.f32.mrb[242].mxu1  ;;  %v3865_v26 = vadd.f32 %v3817_v60, %v12393_v53  ;;  %v8539_v36 = vpop.f32.mrb[243].mxu0  ;;  %8981 = vmatmul.mubr.msk.f32.gmra.mrb[92].mxu0 %vm3257_vm2, %v12221_v57 }
 0x37c   : > { %v8594_v32 = vpop.f32.mrb[243].mxu1  ;;  %9036 = vmatmul.mubr.msk.f32.gmra.mrb[92].mxu1 %vm3257_vm2, %v12593_v55  ;;  %8983 = vmatprep.mubr.msk.f32.mxu0 %vm9668_vm0, %v9669_v11 }
 0x37d   : > { %9038 = vmatprep.mubr.msk.f32.mxu1 %vm9668_vm0, %v9669_v11  ;;  %v12604_v47 = vadd.f32 %v4021_v18, %v3865_v26  ;;  %v12658_v26 = vld [vmem:[#allocation2 + $0x65] sm:$0xff] }
 0x37e   : > { %v3822_v41 = vpop.f32.mrb[244].mxu0 }
 0x37f   : > { %v4026_v14 = vpop.f32.mrb[244].mxu1  ;;  %v3866_v53 = vadd.f32 %v3822_v41, %v12403_v5  ;;  %v8542_v58 = vpop.f32.mrb[245].mxu0  ;;  %8984 = vmatmul.mubr.msk.f32.gmra.mrb[94].mxu0 %vm3257_vm2, %v12231_v35 }
 0x380   : > { %v8597_v61 = vpop.f32.mrb[245].mxu1  ;;  %9039 = vmatmul.mubr.msk.f32.gmra.mrb[94].mxu1 %vm3257_vm2, %v12606_v21  ;;  %8986 = vmatprep.mubr.msk.f32.mxu0 %vm9668_vm0, %v9669_v11  ;;  %v5125_v58 = vld [vmem:[#allocation2 + $0x6c] sm:$0xff] }
 0x381   : > { %9041 = vmatprep.mubr.msk.f32.mxu1 %vm9668_vm0, %v9669_v11  ;;  %v12617_v40 = vadd.f32 %v4026_v14, %v3866_v53 }
 0x382   : > { %v3827_v9 = vpop.f32.mrb[246].mxu0 }
 0x383   : > { %v4031_v42 = vpop.f32.mrb[246].mxu1  ;;  %v3867_v5 = vadd.f32 %v3827_v9, %v12413_v2  ;;  %v8545_v30 = vpop.f32.mrb[247].mxu0  ;;  %8987 = vmatmul.mubr.msk.f32.gmra.mrb[96].mxu0 %vm3257_vm2, %v12241_v20 }
 0x384   : > { %v8600_v27 = vpop.f32.mrb[247].mxu1  ;;  %9042 = vmatmul.mubr.msk.f32.gmra.mrb[96].mxu1 %vm3257_vm2, %v12619_v44  ;;  %8989 = vmatprep.mubr.msk.f32.mxu0 %vm9668_vm0, %v9669_v11  ;;  %v12681_v30 = vld [vmem:[#allocation2 + $0x75] sm:$0xf] }
 0x385   : > { %9044 = vmatprep.mubr.msk.f32.mxu1 %vm9668_vm0, %v9669_v11  ;;  %v12630_v22 = vadd.f32 %v4031_v42, %v3867_v5  ;;  %v5126_v5 = vld [vmem:[#allocation2 + $0x74] sm:$0xf] }
 0x386   : > { %v3832_v7 = vpop.f32.mrb[248].mxu0 }
 0x387   : > { %v4036_v52 = vpop.f32.mrb[248].mxu1  ;;  %v3868_v2 = vadd.f32 %v3832_v7, %v12423_v34  ;;  %v8548_v48 = vpop.f32.mrb[249].mxu0  ;;  %8990 = vmatmul.mubr.msk.f32.gmra.mrb[98].mxu0 %vm3257_vm2, %v12251_v56  ;;  %v6899_v7 = vld [vmem:[%s13229_s4 + $0x388] sm:$0xff] }
 0x388   : > { %v8603_v43 = vpop.f32.mrb[249].mxu1  ;;  %9045 = vmatmul.mubr.msk.f32.gmra.mrb[98].mxu1 %vm3257_vm2, %v12632_v29  ;;  %8992 = vmatprep.mubr.msk.f32.mxu0 %vm9668_vm0, %v9669_v11  ;;  %v6919_v48 = vld [vmem:[%s13229_s4 + $0x3c0] sm:$0xff] }
 0x389   : > { %9047 = vmatprep.mubr.msk.f32.mxu1 %vm9668_vm0, %v9669_v11  ;;  %v12643_v63 = vadd.f32 %v4036_v52, %v3868_v2  ;;  %v6920_v43 = vld [vmem:[%s13229_s4 + $0x3c8] sm:$0xff] }
 0x38a   : > { %v3837_v8 = vpop.f32.mrb[250].mxu0 }
 0x38b   : > { %v4041_v46 = vpop.f32.mrb[250].mxu1  ;;  %v3869_v34 = vadd.f32 %v3837_v8, %v12433_v15  ;;  %v8551_v45 = vpop.f32.mrb[251].mxu0  ;;  %8993 = vmatmul.mubr.msk.f32.gmra.mrb[100].mxu0 %vm3257_vm2, %v12261_v31 }
 0x38c   : > { %v8606_v24 = vpop.f32.mrb[251].mxu1  ;;  %9048 = vmatmul.mubr.msk.f32.gmra.mrb[100].mxu1 %vm3257_vm2, %v12645_v59  ;;  %8995 = vmatprep.mubr.msk.f32.mxu0 %vm9668_vm0, %v9669_v11 }
 0x38d   : > { %9050 = vmatprep.mubr.msk.f32.mxu1 %vm9668_vm0, %v9669_v11  ;;  %v12656_v17 = vadd.f32 %v4041_v46, %v3869_v34 }
 0x38e   : > { %v3842_v60 = vpop.f32.mrb[252].mxu0 }
 0x38f   : > { %v4046_v18 = vpop.f32.mrb[252].mxu1  ;;  %v3870_v15 = vadd.f32 %v3842_v60, %v12443_v6  ;;  %v8554_v36 = vpop.f32.mrb[253].mxu0  ;;  %8996 = vmatmul.mubr.msk.f32.gmra.mrb[102].mxu0 %vm3257_vm2, %v12271_v25  ;;  %v12671_v6 = vld [vmem:[#allocation2 + $0x6d] sm:$0xff]  ;;  %v9604_v60 = vpack.c.bf16 %v6920_v43, %v6919_v48 }
 0x390   : > { %v8609_v32 = vpop.f32.mrb[253].mxu1  ;;  %9051 = vmatmul.mubr.msk.f32.gmra.mrb[102].mxu1 %vm3257_vm2, %v12658_v26  ;;  %8998 = vmatprep.mubr.msk.f32.mxu0 %vm9668_vm0, %v9669_v11  ;;  %v6901_v36 = vld [vmem:[%s13229_s4 + $0x398] sm:$0xff]  ;;  %v6924_v48 = vld [vmem:[%s13229_s4 + $0x3e8] sm:$0xff] }
 0x391   : > { %9053 = vmatprep.mubr.msk.f32.mxu1 %vm9668_vm0, %v9669_v11  ;;  %v12669_v41 = vadd.f32 %v4046_v18, %v3870_v15  ;;  %v6921_v32 = vld [vmem:[%s13229_s4 + $0x3d0] sm:$0xff] }
 0x392   : > { %v3847_v14 = vpop.f32.mrb[254].mxu0 }
 0x393   : > { %v4051_v53 = vpop.f32.mrb[254].mxu1  ;;  %v3871_v61 = vadd.f32 %v3847_v14, %v12453_v39  ;;  %v8557_v9 = vpop.f32.mrb[255].mxu0  ;;  %8999 = vmatmul.mubr.msk.f32.gmra.mrb[104].mxu0 %vm3257_vm2, %v5125_v58  ;;  %v6898_v39 = vld [vmem:[%s13229_s4 + $0x380] sm:$0xff]  ;;  %v6922_v14 = vld [vmem:[%s13229_s4 + $0x3d8] sm:$0xff] }
 0x394   : > { %v8612_v42 = vpop.f32.mrb[255].mxu1  ;;  %9054 = vmatmul.mubr.msk.f32.gmra.mrb[104].mxu1 %vm3257_vm2, %v12671_v6  ;;  %9001 = vmatprep.mubr.msk.f32.mxu0 %vm9668_vm0, %v9669_v11  ;;  %v9592_v45 = vpack.c.bf16 %v6899_v7, %v6898_v39  ;;  %v9645_v9 = vld [vmem:[#allocation2 + $0xb] sm:$0xff]  ;;  %v6902_v39 = vld [vmem:[%s13229_s4 + $0x3a0] sm:$0xff] }
 0x395   : > { %9056 = vmatprep.mubr.msk.f32.mxu1 %vm9668_vm0, %v9669_v11  ;;  %v12683_v27 = vadd.f32 %v4051_v53, %v3871_v61 }
 0x396   : > { %v3852_v52 = vpop.f32.mrb[0].mxu0 }
 0x397   : > { %v4056_v2 = vpop.f32.mrb[0].mxu1  ;;  %v3872_v8 = vadd.f32 %v3852_v52, %v12475_v10  ;;  %v8560_v46 = vpop.f32.mrb[1].mxu0  ;;  %9002 = vmatmul.mubr.msk.f32.gmra.mrb[106].mxu0 %vm3257_vm2, %v5126_v5  ;;  %v6900_v10 = vld [vmem:[%s13229_s4 + $0x390] sm:$0xff]  ;;  %v6903_v52 = vld [vmem:[%s13229_s4 + $0x3a8] sm:$0xff] }
 0x398   : > { %v8615_v34 = vpop.f32.mrb[1].mxu1  ;;  %9057 = vmatmul.mubr.msk.f32.gmra.mrb[106].mxu1 %vm3257_vm2, %v12681_v30  ;;  %9075 = vmatprep.mubr.msk.f32.mxu0 %vm9668_vm0, %v9669_v11  ;;  %v9595_v5 = vpack.c.bf16 %v6901_v36, %v6900_v10  ;;  %v9646_v46 = vld [vmem:[#allocation2 + $0x13] sm:$0xff] }
 0x399   : > { %9130 = vmatprep.mubr.msk.f32.mxu1 %vm9668_vm0, %v9669_v11  ;;  %v12705_v24 = vadd.f32 %v4056_v2, %v3872_v8  ;;  %v6923_v2 = vld [vmem:[%s13229_s4 + $0x3e0] sm:$0xff]  ;;  %v6904_v10 = vld [vmem:[%s13229_s4 + $0x3b0] sm:$0xff] }
 0x39a   : > { %v3857_v18 = vpop.f32.mrb[2].mxu0  ;;  %v6925_v36 = vld [vmem:[%s13229_s4 + $0x3f0] sm:$0xff] }
 0x39b   : > { %v4061_v15 = vpop.f32.mrb[2].mxu1  ;;  %v3873_v53 = vadd.f32 %v3857_v18, %v12499_v13  ;;  %v8563_v58 = vpop.f32.mrb[3].mxu0  ;;  %9076 = vmatmul.mubr.msk.f32.vlgmr.msra.gmra.mrb[108].mxu0 %vm3257_vm2, %v12116_v54  ;;  %v9607_v13 = vpack.c.bf16 %v6922_v14, %v6921_v32  ;;  %v6926_v32 = vld [vmem:[%s13229_s4 + $0x3f8] sm:$0xff] }
 0x39c   : > { %v8618_v61 = vpop.f32.mrb[3].mxu1  ;;  %9131 = vmatmul.mubr.msk.f32.vlgmr.msra.gmra.mrb[108].mxu1 %vm3257_vm2, %v9645_v9  ;;  %9593 = vmatpush3.bf16.msra.mxu0 %v9592_v45  ;;  %v9598_v45 = vpack.c.bf16 %v6903_v52, %v6902_v39  ;;  %v9648_v52 = vld [vmem:[#allocation2 + $0x23] sm:$0xff] }
 0x39d   : > { %9078 = vmatprep.mubr.msk.f32.mxu0 %vm9668_vm0, %v9669_v11  ;;  %v12725_v42 = vadd.f32 %v4061_v15, %v3873_v53  ;;  %9133 = vmatprep.mubr.msk.f32.mxu1 %vm9668_vm0, %v9669_v11  ;;  %v6905_v15 = vld [vmem:[%s13229_s4 + $0x3b8] sm:$0xff] }
 0x39e   : > { %9605 = vmatpush3.bf16.msra.mxu1 %v9604_v60  ;;  %v4247_v54 = vpop.f32.mrb[4].mxu0  ;;  %9594 = vmatprep.subr.bf16.mxu0 %v9667_v3  ;;  %v9610_v60 = vpack.c.bf16 %v6924_v48, %v6923_v2  ;;  %v9647_v61 = vld [vmem:[#allocation2 + $0x1b] sm:$0xff]  ;;  %v9601_v9 = vpack.c.bf16 %v6905_v15, %v6904_v10 }
 0x39f   : > { %v4377_v7 = vpop.f32.mrb[4].mxu1  ;;  %9606 = vmatprep.subr.bf16.mxu1 %v9667_v3  ;;  %v8637_v43 = vpop.f32.mrb[5].mxu0  ;;  %9079 = vmatmul.mubr.msk.f32.gmra.mrb[110].mxu0 %vm3257_vm2, %v12138_v37 }
 0x3a0   : > { %v12743_v8 = vadd.f32 %v4377_v7, %v4247_v54  ;;  %9134 = vmatmul.mubr.msk.f32.gmra.mrb[110].mxu1 %vm3257_vm2, %v9646_v46  ;;  %v8692_v34 = vpop.f32.mrb[5].mxu1  ;;  %9081 = vmatprep.mubr.msk.f32.mxu0 %vm9668_vm0, %v9669_v11 }
 0x3a1   : > { %9136 = vmatprep.mubr.msk.f32.mxu1 %vm9668_vm0, %v9669_v11  ;;  %9596 = vmatpush3.bf16.msra.mxu0 %v9595_v5  ;;  %v9613_v5 = vpack.c.bf16 %v6926_v32, %v6925_v36 }
 0x3a2   : > { %9608 = vmatpush3.bf16.msra.mxu1 %v9607_v13  ;;  %v4252_v18 = vpop.f32.mrb[6].mxu0  ;;  %9597 = vmatprep.subr.bf16.mxu0 %v9667_v3 }
 0x3a3   : > { %v4382_v37 = vpop.f32.mrb[6].mxu1  ;;  %9609 = vmatprep.subr.bf16.mxu1 %v9667_v3  ;;  %v8640_v53 = vpop.f32.mrb[7].mxu0  ;;  %9082 = vmatmul.mubr.msk.f32.gmra.mrb[112].mxu0 %vm3257_vm2, %v12162_v62 }
 0x3a4   : > { %v12766_v14 = vadd.f32 %v4382_v37, %v4252_v18  ;;  %v8695_v58 = vpop.f32.mrb[7].mxu1  ;;  %9137 = vmatmul.mubr.msk.f32.gmra.mrb[112].mxu1 %vm3257_vm2, %v9647_v61  ;;  %9084 = vmatprep.mubr.msk.f32.mxu0 %vm9668_vm0, %v9669_v11  ;;  %v9650_v37 = vld [vmem:[#allocation2 + $0x33] sm:$0xff] }
 0x3a5   : > { %9139 = vmatprep.mubr.msk.f32.mxu1 %vm9668_vm0, %v9669_v11  ;;  %9599 = vmatpush3.bf16.msra.mxu0 %v9598_v45  ;;  %v9651_v58 = vld [vmem:[#allocation2 + $0x3b] sm:$0xff] }
 0x3a6   : > { %9611 = vmatpush3.bf16.msra.mxu1 %v9610_v60  ;;  %v4257_v13 = vpop.f32.mrb[8].mxu0  ;;  %9600 = vmatprep.subr.bf16.mxu0 %v9667_v3 }
 0x3a7   : > { %v4387_v39 = vpop.f32.mrb[8].mxu1  ;;  %9612 = vmatprep.subr.bf16.mxu1 %v9667_v3  ;;  %v8643_v54 = vpop.f32.mrb[9].mxu0  ;;  %9085 = vmatmul.mubr.msk.f32.gmra.mrb[114].mxu0 %vm3257_vm2, %v12186_v28  ;;  %v9649_v28 = vld [vmem:[#allocation2 + $0x2b] sm:$0xff] }
 0x3a8   : > { %v12777_v62 = vadd.f32 %v4387_v39, %v4257_v13  ;;  %v8698_v7 = vpop.f32.mrb[9].mxu1  ;;  %9140 = vmatmul.mubr.msk.f32.gmra.mrb[114].mxu1 %vm3257_vm2, %v9648_v52  ;;  %9087 = vmatprep.mubr.msk.f32.mxu0 %vm9668_vm0, %v9669_v11  ;;  %v9652_v39 = vld [vmem:[#allocation2 + $0x43] sm:$0xff] }
 0x3a9   : > { %9142 = vmatprep.mubr.msk.f32.mxu1 %vm9668_vm0, %v9669_v11  ;;  %9602 = vmatpush3.bf16.msra.mxu0 %v9601_v9 }
 0x3aa   : > { %9614 = vmatpush3.bf16.msra.mxu1 %v9613_v5  ;;  %v4262_v2 = vpop.f32.mrb[10].mxu0 }
 0x3ab   : > { %v4392_v3 = vpop.f32.mrb[10].mxu1  ;;  %v8646_v43 = vpop.f32.mrb[11].mxu0  ;;  %9088 = vmatmul.mubr.msk.f32.gmra.mrb[116].mxu0 %vm3257_vm2, %v12198_v4 }
 0x3ac   : > { %v12786_v48 = vadd.f32 %v4392_v3, %v4262_v2  ;;  %v8701_v46 = vpop.f32.mrb[11].mxu1  ;;  %9143 = vmatmul.mubr.msk.f32.gmra.mrb[116].mxu1 %vm3257_vm2, %v9649_v28  ;;  %9090 = vmatprep.mubr.msk.f32.mxu0 %vm9668_vm0, %v9669_v11  ;;  %v9653_v3 = vld [vmem:[#allocation2 + $0x4b] sm:$0xff] }
 0x3ad   : > { %9145 = vmatprep.mubr.msk.f32.mxu1 %vm9668_vm0, %v9669_v11 }
 0x3ae   : > { %v4267_v34 = vpop.f32.mrb[12].mxu0 }
 0x3af   : > { %v4397_v45 = vpop.f32.mrb[12].mxu1  ;;  %v8649_v10 = vpop.f32.mrb[13].mxu0  ;;  %9091 = vmatmul.mubr.msk.f32.gmra.mrb[118].mxu0 %vm3257_vm2, %v12210_v12 }
 0x3b0   : > { %v12795_v60 = vadd.f32 %v4397_v45, %v4267_v34  ;;  %v8704_v18 = vpop.f32.mrb[13].mxu1  ;;  %9146 = vmatmul.mubr.msk.f32.gmra.mrb[118].mxu1 %vm3257_vm2, %v9650_v37  ;;  %9093 = vmatprep.mubr.msk.f32.mxu0 %vm9668_vm0, %v9669_v11  ;;  %v9654_v45 = vld [vmem:[#allocation2 + $0x53] sm:$0xff] }
 0x3b1   : > { %9148 = vmatprep.mubr.msk.f32.mxu1 %vm9668_vm0, %v9669_v11 }
 0x3b2   : > { %v4272_v4 = vpop.f32.mrb[14].mxu0 }
 0x3b3   : > { %v4402_v15 = vpop.f32.mrb[14].mxu1  ;;  %v8652_v32 = vpop.f32.mrb[15].mxu0  ;;  %9094 = vmatmul.mubr.msk.f32.gmra.mrb[120].mxu0 %vm3257_vm2, %v12221_v57 }
 0x3b4   : > { %v12804_v36 = vadd.f32 %v4402_v15, %v4272_v4  ;;  %v8707_v53 = vpop.f32.mrb[15].mxu1  ;;  %9149 = vmatmul.mubr.msk.f32.gmra.mrb[120].mxu1 %vm3257_vm2, %v9651_v58  ;;  %9096 = vmatprep.mubr.msk.f32.mxu0 %vm9668_vm0, %v9669_v11  ;;  %v9655_v15 = vld [vmem:[#allocation2 + $0x5b] sm:$0xff] }
 0x3b5   : > { %9151 = vmatprep.mubr.msk.f32.mxu1 %vm9668_vm0, %v9669_v11 }
 0x3b6   : > { %v4277_v12 = vpop.f32.mrb[16].mxu0 }
 0x3b7   : > { %v4407_v61 = vpop.f32.mrb[16].mxu1  ;;  %v8655_v5 = vpop.f32.mrb[17].mxu0  ;;  %9097 = vmatmul.mubr.msk.f32.gmra.mrb[122].mxu0 %vm3257_vm2, %v12231_v35 }
 0x3b8   : > { %v12813_v9 = vadd.f32 %v4407_v61, %v4277_v12  ;;  %v8710_v13 = vpop.f32.mrb[17].mxu1  ;;  %9152 = vmatmul.mubr.msk.f32.gmra.mrb[122].mxu1 %vm3257_vm2, %v9652_v39  ;;  %9099 = vmatprep.mubr.msk.f32.mxu0 %vm9668_vm0, %v9669_v11  ;;  %v9656_v61 = vld [vmem:[#allocation2 + $0x63] sm:$0xff] }
 0x3b9   : > { %9154 = vmatprep.mubr.msk.f32.mxu1 %vm9668_vm0, %v9669_v11 }
 0x3ba   : > { %v4282_v57 = vpop.f32.mrb[18].mxu0 }
 0x3bb   : > { %v4412_v54 = vpop.f32.mrb[18].mxu1  ;;  %v8658_v52 = vpop.f32.mrb[19].mxu0  ;;  %9100 = vmatmul.mubr.msk.f32.gmra.mrb[124].mxu0 %vm3257_vm2, %v12241_v20 }
 0x3bc   : > { %v12822_v7 = vadd.f32 %v4412_v54, %v4282_v57  ;;  %v8713_v2 = vpop.f32.mrb[19].mxu1  ;;  %9155 = vmatmul.mubr.msk.f32.gmra.mrb[124].mxu1 %vm3257_vm2, %v9653_v3  ;;  %9102 = vmatprep.mubr.msk.f32.mxu0 %vm9668_vm0, %v9669_v11  ;;  %v9657_v54 = vld [vmem:[#allocation2 + $0x6b] sm:$0xf] }
 0x3bd   : > { %9157 = vmatprep.mubr.msk.f32.mxu1 %vm9668_vm0, %v9669_v11  ;;  %v5991_v2 = vld [vmem:[#allocation2 + $0x16] sm:$0xff] }
 0x3be   : > { %v4287_v35 = vpop.f32.mrb[20].mxu0 }
 0x3bf   : > { %v4417_v43 = vpop.f32.mrb[20].mxu1  ;;  %v8661_v28 = vpop.f32.mrb[21].mxu0  ;;  %9103 = vmatmul.mubr.msk.f32.gmra.mrb[126].mxu0 %vm3257_vm2, %v12251_v56 }
 0x3c0   : > { %v12831_v46 = vadd.f32 %v4417_v43, %v4287_v35  ;;  %v8716_v34 = vpop.f32.mrb[21].mxu1  ;;  %9158 = vmatmul.mubr.msk.f32.gmra.mrb[126].mxu1 %vm3257_vm2, %v9654_v45  ;;  %9105 = vmatprep.mubr.msk.f32.mxu0 %vm9668_vm0, %v9669_v11  ;;  %v5992_v45 = vld [vmem:[#allocation2 + $0x1e] sm:$0xff] }
 0x3c1   : > { %9160 = vmatprep.mubr.msk.f32.mxu1 %vm9668_vm0, %v9669_v11 }
 0x3c2   : > { %v4292_v20 = vpop.f32.mrb[22].mxu0 }
 0x3c3   : > { %v4422_v10 = vpop.f32.mrb[22].mxu1  ;;  %v8664_v37 = vpop.f32.mrb[23].mxu0  ;;  %9106 = vmatmul.mubr.msk.f32.gmra.mrb[128].mxu0 %vm3257_vm2, %v12261_v31 }
 0x3c4   : > { %v12840_v18 = vadd.f32 %v4422_v10, %v4292_v20  ;;  %v8719_v4 = vpop.f32.mrb[23].mxu1  ;;  %9161 = vmatmul.mubr.msk.f32.gmra.mrb[128].mxu1 %vm3257_vm2, %v9655_v15  ;;  %9108 = vmatprep.mubr.msk.f32.mxu0 %vm9668_vm0, %v9669_v11 }
 0x3c5   : > { %9163 = vmatprep.mubr.msk.f32.mxu1 %vm9668_vm0, %v9669_v11 }
 0x3c6   : > { %v4297_v56 = vpop.f32.mrb[24].mxu0 }
 0x3c7   : > { %v4427_v32 = vpop.f32.mrb[24].mxu1  ;;  %v8667_v58 = vpop.f32.mrb[25].mxu0  ;;  %9109 = vmatmul.mubr.msk.f32.gmra.mrb[130].mxu0 %vm3257_vm2, %v12271_v25 }
 0x3c8   : > { %v12849_v53 = vadd.f32 %v4427_v32, %v4297_v56  ;;  %v8722_v12 = vpop.f32.mrb[25].mxu1  ;;  %9164 = vmatmul.mubr.msk.f32.gmra.mrb[130].mxu1 %vm3257_vm2, %v9656_v61  ;;  %9111 = vmatprep.mubr.msk.f32.mxu0 %vm9668_vm0, %v9669_v11 }
 0x3c9   : > { %9166 = vmatprep.mubr.msk.f32.mxu1 %vm9668_vm0, %v9669_v11 }
 0x3ca   : > { %v4302_v31 = vpop.f32.mrb[26].mxu0 }
 0x3cb   : > { %v4432_v5 = vpop.f32.mrb[26].mxu1  ;;  %v8670_v39 = vpop.f32.mrb[27].mxu0  ;;  %9112 = vmatmul.mubr.msk.f32.gmra.mrb[132].mxu0 %vm3257_vm2, %v12287_v51  ;;  %v12879_v51 = vld [vmem:[%s13230_s5] ss:$0 sm:$0xff] }
 0x3cc   : > { %v12858_v13 = vadd.f32 %v4432_v5, %v4302_v31  ;;  %v8725_v57 = vpop.f32.mrb[27].mxu1  ;;  %9167 = vmatmul.mubr.msk.f32.gmra.mrb[132].mxu1 %vm3257_vm2, %v9657_v54  ;;  %9185 = vmatprep.mubr.msk.f32.mxu0 %vm9668_vm0, %v9669_v11  ;;  %v4085_v37 = vadd.f32 %v12879_v51, %v12534_v23  ;;  %v4086_v61 = vadd.f32 %v12879_v51, %v12561_v16 }
 0x3cd   : > { %9240 = vmatprep.mubr.msk.f32.mxu1 %vm9668_vm0, %v9669_v11  ;;  %v5994_v57 = vld [vmem:[#allocation2 + $0x2e] sm:$0xff] }
 0x3ce   : > { %v4307_v25 = vpop.f32.mrb[28].mxu0  ;;  %v4098_v23 = vmax.f32 %v4085_v37, 0.0  ;;  %v4099_v16 = vmax.f32 %v4086_v61, 0.0  ;;  %v4089_v61 = vadd.f32 %v12879_v51, %v12604_v47 }
 0x3cf   : > { %v4437_v52 = vpop.f32.mrb[28].mxu1  ;;  %v8673_v35 = vpop.f32.mrb[29].mxu0  ;;  %9186 = vmatmul.mubr.msk.f32.vlgmr.msra.gmra.mrb[134].mxu0 %vm3257_vm2, %v12485_v50 }
 0x3d0   : > { %v12867_v3 = vadd.f32 %v4437_v52, %v4307_v25  ;;  %v8728_v43 = vpop.f32.mrb[29].mxu1  ;;  %9241 = vmatmul.mubr.msk.f32.vlgmr.msra.gmra.mrb[134].mxu1 %vm3257_vm2, %v5991_v2  ;;  %9188 = vmatprep.mubr.msk.f32.mxu0 %vm9668_vm0, %v9669_v11  ;;  %v4087_v35 = vadd.f32 %v12879_v51, %v12576_v38  ;;  %v4102_v47 = vmax.f32 %v4089_v61, 0.0 }
 0x3d1   : > { %9243 = vmatprep.mubr.msk.f32.mxu1 %vm9668_vm0, %v9669_v11 }
 0x3d2   : > { %v4516_v28 = vpop.f32.mrb[30].mxu0  ;;  %v4100_v38 = vmax.f32 %v4087_v35, 0.0 }
 0x3d3   : > { %v4720_v34 = vpop.f32.mrb[30].mxu1  ;;  %v4580_v20 = vadd.f32 %v4516_v28, %v12743_v8  ;;  %v8747_v10 = vpop.f32.mrb[31].mxu0  ;;  %9189 = vmatmul.mubr.msk.f32.gmra.mrb[136].mxu0 %vm3257_vm2, %v12509_v33  ;;  %v5993_v8 = vld [vmem:[#allocation2 + $0x26] sm:$0xff] }
 0x3d4   : > { %v8802_v50 = vpop.f32.mrb[31].mxu1  ;;  %9244 = vmatmul.mubr.msk.f32.gmra.mrb[136].mxu1 %vm3257_vm2, %v5992_v45  ;;  %9191 = vmatprep.mubr.msk.f32.mxu0 %vm9668_vm0, %v9669_v11  ;;  %v5995_v45 = vld [vmem:[#allocation2 + $0x36] sm:$0xff] }
 0x3d5   : > { %9246 = vmatprep.mubr.msk.f32.mxu1 %vm9668_vm0, %v9669_v11  ;;  %v4784_v4 = vadd.f32 %v4720_v34, %v4580_v20 }
 0x3d6   : > { %v4521_v15 = vpop.f32.mrb[32].mxu0 }
 0x3d7   : > { %v4725_v56 = vpop.f32.mrb[32].mxu1  ;;  %v4797_v32 = vadd.f32 %v12879_v51, %v4784_v4  ;;  %v4581_v58 = vadd.f32 %v4521_v15, %v12766_v14  ;;  %v8750_v33 = vpop.f32.mrb[33].mxu0  ;;  %9192 = vmatmul.mubr.msk.f32.gmra.mrb[138].mxu0 %vm3257_vm2, %v12536_v1  ;;  %v4088_v4 = vadd.f32 %v12879_v51, %v12591_v49 }
 0x3d8   : > { %v8805_v12 = vpop.f32.mrb[33].mxu1  ;;  %9247 = vmatmul.mubr.msk.f32.gmra.mrb[138].mxu1 %vm3257_vm2, %v5993_v8  ;;  %9194 = vmatprep.mubr.msk.f32.mxu0 %vm9668_vm0, %v9669_v11 }
 0x3d9   : > { %9249 = vmatprep.mubr.msk.f32.mxu1 %vm9668_vm0, %v9669_v11  ;;  %v4810_v31 = vmax.f32 %v4797_v32, 0.0  ;;  %v4785_v5 = vadd.f32 %v4725_v56, %v4581_v58  ;;  %v5996_v32 = vld [vmem:[#allocation2 + $0x3e] sm:$0xff]  ;;  %v4101_v49 = vmax.f32 %v4088_v4, 0.0  ;;  %v5999_v4 = vld [vmem:[#allocation2 + $0x56] sm:$0xff] }
 0x3da   : > { %v4526_v14 = vpop.f32.mrb[34].mxu0 }
 0x3db   : > { %v4730_v39 = vpop.f32.mrb[34].mxu1  ;;  %v12902_v54 = vmax.f32 %v4098_v23, %v4810_v31  ;;  %v4798_v1 = vadd.f32 %v12879_v51, %v4785_v5  ;;  %v4582_v25 = vadd.f32 %v4526_v14, %v12777_v62  ;;  %v8753_v52 = vpop.f32.mrb[35].mxu0  ;;  %9195 = vmatmul.mubr.msk.f32.gmra.mrb[140].mxu0 %vm3257_vm2, %v12563_v0 }
 0x3dc   : > { %v8808_v2 = vpop.f32.mrb[35].mxu1  ;;  %9250 = vmatmul.mubr.msk.f32.gmra.mrb[140].mxu1 %vm3257_vm2, %v5994_v57  ;;  %9197 = vmatprep.mubr.msk.f32.mxu0 %vm9668_vm0, %v9669_v11 }
 0x3dd   : > { %9252 = vmatprep.mubr.msk.f32.mxu1 %vm9668_vm0, %v9669_v11  ;;  %v4811_v43 = vmax.f32 %v4798_v1, 0.0  ;;  %v4786_v28 = vadd.f32 %v4730_v39, %v4582_v25  ;;  %v5997_v39 = vld [vmem:[#allocation2 + $0x46] sm:$0xff]  ;;  %v4090_v2 = vadd.f32 %v12879_v51, %v12617_v40 }
 0x3de   : > { %v4531_v62 = vpop.f32.mrb[36].mxu0 }
 0x3df   : > { %v4735_v34 = vpop.f32.mrb[36].mxu1  ;;  %v12915_v20 = vmax.f32 %v4099_v16, %v4811_v43  ;;  %v4799_v0 = vadd.f32 %v12879_v51, %v4786_v28  ;;  %v4583_v10 = vadd.f32 %v4531_v62, %v12786_v48  ;;  %v8756_v50 = vpop.f32.mrb[37].mxu0  ;;  %9198 = vmatmul.mubr.msk.f32.gmra.mrb[142].mxu0 %vm3257_vm2, %v12578_v19  ;;  %v5998_v28 = vld [vmem:[#allocation2 + $0x4e] sm:$0xff]  ;;  %v4103_v40 = vmax.f32 %v4090_v2, 0.0 }
 0x3e0   : > { %v8811_v37 = vpop.f32.mrb[37].mxu1  ;;  %9253 = vmatmul.mubr.msk.f32.gmra.mrb[142].mxu1 %vm3257_vm2, %v5995_v45  ;;  %9200 = vmatprep.mubr.msk.f32.mxu0 %vm9668_vm0, %v9669_v11 }
 0x3e1   : > { %9255 = vmatprep.mubr.msk.f32.mxu1 %vm9668_vm0, %v9669_v11  ;;  %v4812_v15 = vmax.f32 %v4799_v0, 0.0  ;;  %v4787_v56 = vadd.f32 %v4735_v34, %v4583_v10  ;;  %v4091_v10 = vadd.f32 %v12879_v51, %v12630_v22 }
 0x3e2   : > { %v4536_v48 = vpop.f32.mrb[38].mxu0 }
 0x3e3   : > { %v4740_v8 = vpop.f32.mrb[38].mxu1  ;;  %v12928_v58 = vmax.f32 %v4100_v38, %v4812_v15  ;;  %v4800_v19 = vadd.f32 %v12879_v51, %v4787_v56  ;;  %v4584_v33 = vadd.f32 %v4536_v48, %v12795_v60  ;;  %v8759_v12 = vpop.f32.mrb[39].mxu0  ;;  %9201 = vmatmul.mubr.msk.f32.gmra.mrb[144].mxu0 %vm3257_vm2, %v12593_v55  ;;  %v4104_v22 = vmax.f32 %v4091_v10, 0.0 }
 0x3e4   : > { %v8814_v23 = vpop.f32.mrb[39].mxu1  ;;  %9256 = vmatmul.mubr.msk.f32.gmra.mrb[144].mxu1 %vm3257_vm2, %v5996_v32  ;;  %9203 = vmatprep.mubr.msk.f32.mxu0 %vm9668_vm0, %v9669_v11  ;;  %v4092_v32 = vadd.f32 %v12879_v51, %v12643_v63  ;;  %v4095_v10 = vadd.f32 %v12879_v51, %v12683_v27  ;;  %v4096_v27 = vadd.f32 %v12879_v51, %v12705_v24 }
 0x3e5   : > { %9258 = vmatprep.mubr.msk.f32.mxu1 %vm9668_vm0, %v9669_v11  ;;  %v4813_v31 = vmax.f32 %v4800_v19, 0.0  ;;  %v4788_v5 = vadd.f32 %v4740_v8, %v4584_v33  ;;  %v6000_v23 = vld [vmem:[#allocation2 + $0x5e] sm:$0xff] }
 0x3e6   : > { %v4541_v60 = vpop.f32.mrb[40].mxu0  ;;  %v4105_v63 = vmax.f32 %v4092_v32, 0.0 }
 0x3e7   : > { %v4745_v14 = vpop.f32.mrb[40].mxu1  ;;  %v12941_v57 = vmax.f32 %v4101_v49, %v4813_v31  ;;  %v4801_v55 = vadd.f32 %v12879_v51, %v4788_v5  ;;  %v4585_v1 = vadd.f32 %v4541_v60, %v12804_v36  ;;  %v8762_v25 = vpop.f32.mrb[41].mxu0  ;;  %9204 = vmatmul.mubr.msk.f32.gmra.mrb[146].mxu0 %vm3257_vm2, %v12606_v21  ;;  %v4093_v60 = vadd.f32 %v12879_v51, %v12656_v17 }
 0x3e8   : > { %v8817_v52 = vpop.f32.mrb[41].mxu1  ;;  %9259 = vmatmul.mubr.msk.f32.gmra.mrb[146].mxu1 %vm3257_vm2, %v5997_v39  ;;  %9206 = vmatprep.mubr.msk.f32.mxu0 %vm9668_vm0, %v9669_v11 }
 0x3e9   : > { %9261 = vmatprep.mubr.msk.f32.mxu1 %vm9668_vm0, %v9669_v11  ;;  %v4814_v16 = vmax.f32 %v4801_v55, 0.0  ;;  %v4789_v35 = vadd.f32 %v4745_v14, %v4585_v1  ;;  %v6001_v1 = vld [vmem:[#allocation2 + $0x66] sm:$0xff]  ;;  %v4106_v17 = vmax.f32 %v4093_v60, 0.0 }
 0x3ea   : > { %v4546_v36 = vpop.f32.mrb[42].mxu0 }
 0x3eb   : > { %v4750_v43 = vpop.f32.mrb[42].mxu1  ;;  %v12954_v62 = vmax.f32 %v4102_v47, %v4814_v16  ;;  %v4802_v21 = vadd.f32 %v12879_v51, %v4789_v35  ;;  %v4586_v34 = vadd.f32 %v4546_v36, %v12813_v9  ;;  %v8765_v45 = vpop.f32.mrb[43].mxu0  ;;  %9207 = vmatmul.mubr.msk.f32.gmra.mrb[148].mxu0 %vm3257_vm2, %v12619_v44  ;;  %v4094_v16 = vadd.f32 %v12879_v51, %v12669_v41  ;;  %v6003_v41 = vld [vmem:[#allocation2 + $0x76] sm:$0xf] }
 0x3ec   : > { %v8820_v0 = vpop.f32.mrb[43].mxu1  ;;  %9262 = vmatmul.mubr.msk.f32.gmra.mrb[148].mxu1 %vm3257_vm2, %v5998_v28  ;;  %9209 = vmatprep.mubr.msk.f32.mxu0 %vm9668_vm0, %v9669_v11  ;;  %v6002_v28 = vld [vmem:[#allocation2 + $0x6e] sm:$0xff] }
 0x3ed   : > { %9264 = vmatprep.mubr.msk.f32.mxu1 %vm9668_vm0, %v9669_v11  ;;  %v4815_v50 = vmax.f32 %v4802_v21, 0.0  ;;  %v4790_v37 = vadd.f32 %v4750_v43, %v4586_v34 }
 0x3ee   : > { %v4551_v9 = vpop.f32.mrb[44].mxu0 }
 0x3ef   : > { %v4755_v38 = vpop.f32.mrb[44].mxu1  ;;  %v12967_v15 = vmax.f32 %v4103_v40, %v4815_v50  ;;  %v4803_v44 = vadd.f32 %v12879_v51, %v4790_v37  ;;  %v4587_v56 = vadd.f32 %v4551_v9, %v12822_v7  ;;  %v8768_v48 = vpop.f32.mrb[45].mxu0  ;;  %9210 = vmatmul.mubr.msk.f32.gmra.mrb[150].mxu0 %vm3257_vm2, %v12632_v29  ;;  %v4107_v40 = vmax.f32 %v4094_v16, 0.0 }
 0x3f0   : > { %v8823_v8 = vpop.f32.mrb[45].mxu1  ;;  %9265 = vmatmul.mubr.msk.f32.gmra.mrb[150].mxu1 %vm3257_vm2, %v5999_v4  ;;  %9212 = vmatprep.mubr.msk.f32.mxu0 %vm9668_vm0, %v9669_v11 }
 0x3f1   : > { %9267 = vmatprep.mubr.msk.f32.mxu1 %vm9668_vm0, %v9669_v11  ;;  %v4816_v19 = vmax.f32 %v4803_v44, 0.0  ;;  %v4791_v33 = vadd.f32 %v4755_v38, %v4587_v56 }
 0x3f2   : > { %v4556_v7 = vpop.f32.mrb[46].mxu0 }
 0x3f3   : > { %v4760_v12 = vpop.f32.mrb[46].mxu1  ;;  %v12980_v49 = vmax.f32 %v4104_v22, %v4816_v19  ;;  %v4804_v29 = vadd.f32 %v12879_v51, %v4791_v33  ;;  %v4588_v61 = vadd.f32 %v4556_v7, %v12831_v46  ;;  %v8771_v31 = vpop.f32.mrb[47].mxu0  ;;  %9213 = vmatmul.mubr.msk.f32.gmra.mrb[152].mxu0 %vm3257_vm2, %v12645_v59 }
 0x3f4   : > { %v8826_v5 = vpop.f32.mrb[47].mxu1  ;;  %9268 = vmatmul.mubr.msk.f32.gmra.mrb[152].mxu1 %vm3257_vm2, %v6000_v23  ;;  %9215 = vmatprep.mubr.msk.f32.mxu0 %vm9668_vm0, %v9669_v11  ;;  %v4109_v23 = vmax.f32 %v4096_v27, 0.0 }
 0x3f5   : > { %9270 = vmatprep.mubr.msk.f32.mxu1 %vm9668_vm0, %v9669_v11  ;;  %v4817_v14 = vmax.f32 %v4804_v29, 0.0  ;;  %v4792_v39 = vadd.f32 %v4760_v12, %v4588_v61 }
 0x3f6   : > { %v4561_v46 = vpop.f32.mrb[48].mxu0 }
 0x3f7   : > { %v4765_v55 = vpop.f32.mrb[48].mxu1  ;;  %v12993_v25 = vmax.f32 %v4105_v63, %v4817_v14  ;;  %v4805_v59 = vadd.f32 %v12879_v51, %v4792_v39  ;;  %v4589_v52 = vadd.f32 %v4561_v46, %v12840_v18  ;;  %v8774_v47 = vpop.f32.mrb[49].mxu0  ;;  %9216 = vmatmul.mubr.msk.f32.gmra.mrb[154].mxu0 %vm3257_vm2, %v12658_v26 }
 0x3f8   : > { %v8829_v2 = vpop.f32.mrb[49].mxu1  ;;  %9271 = vmatmul.mubr.msk.f32.gmra.mrb[154].mxu1 %vm3257_vm2, %v6001_v1  ;;  %9218 = vmatprep.mubr.msk.f32.mxu0 %vm9668_vm0, %v9669_v11 }
 0x3f9   : > { %9273 = vmatprep.mubr.msk.f32.mxu1 %vm9668_vm0, %v9669_v11  ;;  %v4818_v35 = vmax.f32 %v4805_v59, 0.0  ;;  %v4793_v36 = vadd.f32 %v4765_v55, %v4589_v52 }
 0x3fa   : > { %v4566_v18 = vpop.f32.mrb[50].mxu0 }
 0x3fb   : > { %v4770_v43 = vpop.f32.mrb[50].mxu1  ;;  %v13006_v21 = vmax.f32 %v4106_v17, %v4818_v35  ;;  %v4806_v26 = vadd.f32 %v12879_v51, %v4793_v36  ;;  %v4590_v34 = vadd.f32 %v4566_v18, %v12849_v53  ;;  %v8777_v45 = vpop.f32.mrb[51].mxu0  ;;  %9219 = vmatmul.mubr.msk.f32.gmra.mrb[156].mxu0 %vm3257_vm2, %v12671_v6 }
 0x3fc   : > { %v8832_v0 = vpop.f32.mrb[51].mxu1  ;;  %9274 = vmatmul.mubr.msk.f32.gmra.mrb[156].mxu1 %vm3257_vm2, %v6002_v28  ;;  %9221 = vmatprep.mubr.msk.f32.mxu0 %vm9668_vm0, %v9669_v11 }
 0x3fd   : > { %9276 = vmatprep.mubr.msk.f32.mxu1 %vm9668_vm0, %v9669_v11  ;;  %v4819_v50 = vmax.f32 %v4806_v26, 0.0  ;;  %v4794_v53 = vadd.f32 %v4770_v43, %v4590_v34  ;;  %v4108_v11 = vmax.f32 %v4095_v10, 0.0 }
 0x3fe   : > { %v4571_v37 = vpop.f32.mrb[52].mxu0 }
 0x3ff   : > { %v4775_v9 = vpop.f32.mrb[52].mxu1  ;;  %v13019_v38 = vmax.f32 %v4107_v40, %v4819_v50  ;;  %v4807_v6 = vadd.f32 %v12879_v51, %v4794_v53  ;;  %v4591_v4 = vadd.f32 %v4571_v37, %v12858_v13  ;;  %v8780_v44 = vpop.f32.mrb[53].mxu0  ;;  %9222 = vmatmul.mubr.msk.f32.gmra.mrb[158].mxu0 %vm3257_vm2, %v12681_v30  ;;  %v4097_v30 = vadd.f32 %v12879_v51, %v12725_v42 }
 0x400   : > { %v8835_v56 = vpop.f32.mrb[53].mxu1  ;;  %9277 = vmatmul.mubr.msk.f32.gmra.mrb[158].mxu1 %vm3257_vm2, %v6003_v41 }
 0x401   : > { %v4820_v48 = vmax.f32 %v4807_v6, 0.0  ;;  %v4795_v8 = vadd.f32 %v4775_v9, %v4591_v4  ;;  %v4110_v46 = vmax.f32 %v4097_v30, 0.0 }
 0x402   : > { %v4576_v22 = vpop.f32.mrb[54].mxu0 }
 0x403   : > { %v4780_v32 = vpop.f32.mrb[54].mxu1  ;;  %v13028_v19 = vmax.f32 %v4108_v11, %v4820_v48  ;;  %v4808_v33 = vadd.f32 %v12879_v51, %v4795_v8  ;;  %v4592_v13 = vadd.f32 %v4576_v22, %v12867_v3  ;;  %v8783_v7 = vpop.f32.mrb[55].mxu0 }
 0x404   : > { %v8838_v12 = vpop.f32.mrb[55].mxu1 }
 0x405   : > { %v4821_v29 = vmax.f32 %v4808_v33, 0.0  ;;  %v4796_v61 = vadd.f32 %v4780_v32, %v4592_v13 }
 0x406   : > { %v4920_v31 = vpop.f32.mrb[56].mxu0 }
 0x407   : > { %v5050_v24 = vpop.f32.mrb[56].mxu1  ;;  %v13034_v5 = vmax.f32 %v4109_v23, %v4821_v29  ;;  %v4809_v63 = vadd.f32 %v12879_v51, %v4796_v61  ;;  %v8857_v14 = vpop.f32.mrb[57].mxu0 }
 0x408   : > { %v13037_v60 = vadd.f32 %v5050_v24, %v4920_v31  ;;  %v8912_v39 = vpop.f32.mrb[57].mxu1 }
 0x409   : > { %v4822_v3 = vmax.f32 %v4809_v63, 0.0 }
 0x40a   : > { %v4925_v55 = vpop.f32.mrb[58].mxu0 }
 0x40b   : > { %v5055_v1 = vpop.f32.mrb[58].mxu1  ;;  %v13039_v59 = vmax.f32 %v4110_v46, %v4822_v3  ;;  %v8860_v42 = vpop.f32.mrb[59].mxu0 }
 0x40c   : > { %v13041_v52 = vadd.f32 %v5055_v1, %v4925_v55  ;;  %v8915_v47 = vpop.f32.mrb[59].mxu1 }
 0x40e   : > { %v4930_v2 = vpop.f32.mrb[60].mxu0 }
 0x40f   : > { %v5060_v17 = vpop.f32.mrb[60].mxu1  ;;  %v8863_v35 = vpop.f32.mrb[61].mxu0 }
 0x410   : > { %v13043_v16 = vadd.f32 %v5060_v17, %v4930_v2  ;;  %v8918_v36 = vpop.f32.mrb[61].mxu1 }
 0x412   : > { %v4935_v18 = vpop.f32.mrb[62].mxu0 }
 0x413   : > { %v5065_v43 = vpop.f32.mrb[62].mxu1  ;;  %v8866_v26 = vpop.f32.mrb[63].mxu0 }
 0x414   : > { %v13045_v28 = vadd.f32 %v5065_v43, %v4935_v18  ;;  %v8921_v34 = vpop.f32.mrb[63].mxu1 }
 0x416   : > { %v4940_v45 = vpop.f32.mrb[64].mxu0 }
 0x417   : > { %v5070_v0 = vpop.f32.mrb[64].mxu1  ;;  %v8869_v40 = vpop.f32.mrb[65].mxu0 }
 0x418   : > { %v13047_v41 = vadd.f32 %v5070_v0, %v4940_v45  ;;  %v8924_v10 = vpop.f32.mrb[65].mxu1 }
 0x41a   : > { %v4945_v50 = vpop.f32.mrb[66].mxu0 }
 0x41b   : > { %v5075_v53 = vpop.f32.mrb[66].mxu1  ;;  %v8872_v9 = vpop.f32.mrb[67].mxu0 }
 0x41c   : > { %v13049_v37 = vadd.f32 %v5075_v53, %v4945_v50  ;;  %v8927_v6 = vpop.f32.mrb[67].mxu1 }
 0x41e   : > { %v4950_v4 = vpop.f32.mrb[68].mxu0 }
 0x41f   : > { %v5080_v44 = vpop.f32.mrb[68].mxu1  ;;  %v8875_v11 = vpop.f32.mrb[69].mxu0 }
 0x420   : > { %v13051_v56 = vadd.f32 %v5080_v44, %v4950_v4  ;;  %v8930_v27 = vpop.f32.mrb[69].mxu1 }
 0x422   : > { %v4955_v48 = vpop.f32.mrb[70].mxu0 }
 0x423   : > { %v5085_v8 = vpop.f32.mrb[70].mxu1  ;;  %v8878_v32 = vpop.f32.mrb[71].mxu0 }
 0x424   : > { %v13053_v22 = vadd.f32 %v5085_v8, %v4955_v48  ;;  %v8933_v33 = vpop.f32.mrb[71].mxu1 }
 0x426   : > { %v4960_v13 = vpop.f32.mrb[72].mxu0 }
 0x427   : > { %v5090_v7 = vpop.f32.mrb[72].mxu1  ;;  %v8881_v23 = vpop.f32.mrb[73].mxu0 }
 0x428   : > { %v13055_v12 = vadd.f32 %v5090_v7, %v4960_v13  ;;  %v8936_v30 = vpop.f32.mrb[73].mxu1 }
 0x42a   : > { %v4965_v29 = vpop.f32.mrb[74].mxu0 }
 0x42b   : > { %v5095_v61 = vpop.f32.mrb[74].mxu1  ;;  %v8884_v24 = vpop.f32.mrb[75].mxu0 }
 0x42c   : > { %v13057_v31 = vadd.f32 %v5095_v61, %v4965_v29  ;;  %v8939_v63 = vpop.f32.mrb[75].mxu1 }
 0x42e   : > { %v4970_v14 = vpop.f32.mrb[76].mxu0 }
 0x42f   : > { %v5100_v39 = vpop.f32.mrb[76].mxu1  ;;  %v8887_v3 = vpop.f32.mrb[77].mxu0 }
 0x430   : > { %v13059_v46 = vadd.f32 %v5100_v39, %v4970_v14  ;;  %v8942_v55 = vpop.f32.mrb[77].mxu1 }
 0x432   : > { %v4975_v1 = vpop.f32.mrb[78].mxu0 }
 0x433   : > { %v5105_v42 = vpop.f32.mrb[78].mxu1  ;;  %v8890_v2 = vpop.f32.mrb[79].mxu0 }
 0x434   : > { %v13061_v47 = vadd.f32 %v5105_v42, %v4975_v1  ;;  %v8945_v17 = vpop.f32.mrb[79].mxu1 }
 0x436   : > { %v4980_v35 = vpop.f32.mrb[80].mxu0 }
 0x437   : > { %v5110_v36 = vpop.f32.mrb[80].mxu1  ;;  %v8893_v43 = vpop.f32.mrb[81].mxu0 }
 0x438   : > { %v13063_v18 = vadd.f32 %v5110_v36, %v4980_v35  ;;  %v8948_v26 = vpop.f32.mrb[81].mxu1 }
 0x43a   : > { %v5241_v34 = vpop.f32.mrb[82].mxu0 }
 0x43b   : > { %v5445_v45 = vpop.f32.mrb[82].mxu1  ;;  %v5305_v0 = vadd.f32 %v5241_v34, %v13037_v60  ;;  %v8967_v40 = vpop.f32.mrb[83].mxu0 }
 0x43c   : > { %v9022_v10 = vpop.f32.mrb[83].mxu1 }
 0x43d   : > { %v5509_v50 = vadd.f32 %v5445_v45, %v5305_v0 }
 0x43e   : > { %v5246_v53 = vpop.f32.mrb[84].mxu0 }
 0x43f   : > { %v5450_v9 = vpop.f32.mrb[84].mxu1  ;;  %v5522_v6 = vadd.f32 %v12879_v51, %v5509_v50  ;;  %v5306_v4 = vadd.f32 %v5246_v53, %v13041_v52  ;;  %v8970_v44 = vpop.f32.mrb[85].mxu0 }
 0x440   : > { %v9025_v11 = vpop.f32.mrb[85].mxu1 }
 0x441   : > { %v5535_v27 = vmax.f32 %v5522_v6, 0.0  ;;  %v5510_v48 = vadd.f32 %v5450_v9, %v5306_v4 }
 0x442   : > { %v5251_v8 = vpop.f32.mrb[86].mxu0 }
 0x443   : > { %v5455_v32 = vpop.f32.mrb[86].mxu1  ;;  %v13069_v33 = vmax.f32 %v12902_v54, %v5535_v27  ;;  %v5523_v60 = vadd.f32 %v12879_v51, %v5510_v48  ;;  %v5307_v13 = vadd.f32 %v5251_v8, %v13043_v16  ;;  %v8973_v7 = vpop.f32.mrb[87].mxu0 }
 0x444   : > { %v9028_v23 = vpop.f32.mrb[87].mxu1 }
 0x445   : > { %v5536_v30 = vmax.f32 %v5523_v60, 0.0  ;;  %v5511_v29 = vadd.f32 %v5455_v32, %v5307_v13 }
 0x446   : > { %v5256_v61 = vpop.f32.mrb[88].mxu0 }
 0x447   : > { %v5460_v24 = vpop.f32.mrb[88].mxu1  ;;  %v13074_v52 = vmax.f32 %v12915_v20, %v5536_v30  ;;  %v5524_v63 = vadd.f32 %v12879_v51, %v5511_v29  ;;  %v5308_v14 = vadd.f32 %v5256_v61, %v13045_v28  ;;  %v8976_v39 = vpop.f32.mrb[89].mxu0 }
 0x448   : > { %v9031_v54 = vpop.f32.mrb[89].mxu1 }
 0x449   : > { %v5537_v3 = vmax.f32 %v5524_v63, 0.0  ;;  %v5512_v55 = vadd.f32 %v5460_v24, %v5308_v14 }
 0x44a   : > { %v5261_v1 = vpop.f32.mrb[90].mxu0 }
 0x44b   : > { %v5465_v42 = vpop.f32.mrb[90].mxu1  ;;  %v13079_v16 = vmax.f32 %v12928_v58, %v5537_v3  ;;  %v5525_v2 = vadd.f32 %v12879_v51, %v5512_v55  ;;  %v5309_v17 = vadd.f32 %v5261_v1, %v13047_v41  ;;  %v8979_v35 = vpop.f32.mrb[91].mxu0 }
 0x44c   : > { %v9034_v20 = vpop.f32.mrb[91].mxu1 }
 0x44d   : > { %v5538_v36 = vmax.f32 %v5525_v2, 0.0  ;;  %v5513_v43 = vadd.f32 %v5465_v42, %v5309_v17 }
 0x44e   : > { %v5266_v26 = vpop.f32.mrb[92].mxu0 }
 0x44f   : > { %v5470_v34 = vpop.f32.mrb[92].mxu1  ;;  %v13084_v28 = vmax.f32 %v12941_v57, %v5538_v36  ;;  %v5526_v45 = vadd.f32 %v12879_v51, %v5513_v43  ;;  %v5310_v0 = vadd.f32 %v5266_v26, %v13049_v37  ;;  %v8982_v40 = vpop.f32.mrb[93].mxu0 }
 0x450   : > { %v9037_v58 = vpop.f32.mrb[93].mxu1 }
 0x451   : > { %v5539_v10 = vmax.f32 %v5526_v45, 0.0  ;;  %v5514_v50 = vadd.f32 %v5470_v34, %v5310_v0 }
 0x452   : > { %v5271_v53 = vpop.f32.mrb[94].mxu0 }
 0x453   : > { %v5475_v9 = vpop.f32.mrb[94].mxu1  ;;  %v13089_v41 = vmax.f32 %v12954_v62, %v5539_v10  ;;  %v5527_v6 = vadd.f32 %v12879_v51, %v5514_v50  ;;  %v5311_v4 = vadd.f32 %v5271_v53, %v13051_v56  ;;  %v8985_v44 = vpop.f32.mrb[95].mxu0 }
 0x454   : > { %v9040_v57 = vpop.f32.mrb[95].mxu1 }
 0x455   : > { %v5540_v11 = vmax.f32 %v5527_v6, 0.0  ;;  %v5515_v27 = vadd.f32 %v5475_v9, %v5311_v4 }
 0x456   : > { %v5276_v48 = vpop.f32.mrb[96].mxu0 }
 0x457   : > { %v5480_v8 = vpop.f32.mrb[96].mxu1  ;;  %v13094_v37 = vmax.f32 %v12967_v15, %v5540_v11  ;;  %v5528_v32 = vadd.f32 %v12879_v51, %v5515_v27  ;;  %v5312_v60 = vadd.f32 %v5276_v48, %v13053_v22  ;;  %v8988_v13 = vpop.f32.mrb[97].mxu0 }
 0x458   : > { %v9043_v62 = vpop.f32.mrb[97].mxu1 }
 0x459   : > { %v5541_v7 = vmax.f32 %v5528_v32, 0.0  ;;  %v5516_v23 = vadd.f32 %v5480_v8, %v5312_v60 }
 0x45a   : > { %v5281_v30 = vpop.f32.mrb[98].mxu0 }
 0x45b   : > { %v5485_v29 = vpop.f32.mrb[98].mxu1  ;;  %v13099_v56 = vmax.f32 %v12980_v49, %v5541_v7  ;;  %v5529_v61 = vadd.f32 %v12879_v51, %v5516_v23  ;;  %v5313_v24 = vadd.f32 %v5281_v30, %v13055_v12  ;;  %v8991_v63 = vpop.f32.mrb[99].mxu0 }
 0x45c   : > { %v9046_v15 = vpop.f32.mrb[99].mxu1 }
 0x45d   : > { %v5542_v14 = vmax.f32 %v5529_v61, 0.0  ;;  %v5517_v39 = vadd.f32 %v5485_v29, %v5313_v24 }
 0x45e   : > { %v5286_v54 = vpop.f32.mrb[100].mxu0 }
 0x45f   : > { %v5490_v3 = vpop.f32.mrb[100].mxu1  ;;  %v13104_v22 = vmax.f32 %v12993_v25, %v5542_v14  ;;  %v5530_v55 = vadd.f32 %v12879_v51, %v5517_v39  ;;  %v5314_v1 = vadd.f32 %v5286_v54, %v13057_v31  ;;  %v8994_v42 = vpop.f32.mrb[101].mxu0 }
 0x460   : > { %v9049_v49 = vpop.f32.mrb[101].mxu1 }
 0x461   : > { %v5543_v2 = vmax.f32 %v5530_v55, 0.0  ;;  %v5518_v17 = vadd.f32 %v5490_v3, %v5314_v1 }
 0x462   : > { %v5291_v35 = vpop.f32.mrb[102].mxu0 }
 0x463   : > { %v5495_v20 = vpop.f32.mrb[102].mxu1  ;;  %v13109_v12 = vmax.f32 %v13006_v21, %v5543_v2  ;;  %v5531_v36 = vadd.f32 %v12879_v51, %v5518_v17  ;;  %v5315_v43 = vadd.f32 %v5291_v35, %v13059_v46  ;;  %v8997_v26 = vpop.f32.mrb[103].mxu0 }
 0x464   : > { %v9052_v25 = vpop.f32.mrb[103].mxu1 }
 0x465   : > { %v5544_v34 = vmax.f32 %v5531_v36, 0.0  ;;  %v5519_v45 = vadd.f32 %v5495_v20, %v5315_v43 }
 0x466   : > { %v5296_v0 = vpop.f32.mrb[104].mxu0 }
 0x467   : > { %v5500_v40 = vpop.f32.mrb[104].mxu1  ;;  %v13114_v31 = vmax.f32 %v13019_v38, %v5544_v34  ;;  %v5532_v58 = vadd.f32 %v12879_v51, %v5519_v45  ;;  %v5316_v10 = vadd.f32 %v5296_v0, %v13061_v47  ;;  %v9000_v50 = vpop.f32.mrb[105].mxu0 }
 0x468   : > { %v9055_v21 = vpop.f32.mrb[105].mxu1 }
 0x469   : > { %v5545_v53 = vmax.f32 %v5532_v58, 0.0  ;;  %v5520_v9 = vadd.f32 %v5500_v40, %v5316_v10 }
 0x46a   : > { %v5301_v6 = vpop.f32.mrb[106].mxu0 }
 0x46b   : > { %v5505_v4 = vpop.f32.mrb[106].mxu1  ;;  %v13119_v46 = vmax.f32 %v13028_v19, %v5545_v53  ;;  %v5533_v44 = vadd.f32 %v12879_v51, %v5520_v9  ;;  %v5317_v57 = vadd.f32 %v5301_v6, %v13063_v18  ;;  %v9003_v11 = vpop.f32.mrb[107].mxu0 }
 0x46c   : > { %v9058_v38 = vpop.f32.mrb[107].mxu1 }
 0x46d   : > { %v5546_v27 = vmax.f32 %v5533_v44, 0.0  ;;  %v5521_v48 = vadd.f32 %v5505_v4, %v5317_v57 }
 0x46e   : > { %v5645_v8 = vpop.f32.mrb[108].mxu0 }
 0x46f   : > { %v5775_v32 = vpop.f32.mrb[108].mxu1  ;;  %v13124_v47 = vmax.f32 %v13034_v5, %v5546_v27  ;;  %v5534_v60 = vadd.f32 %v12879_v51, %v5521_v48  ;;  %v9077_v62 = vpop.f32.mrb[109].mxu0 }
 0x470   : > { %v13127_v13 = vadd.f32 %v5775_v32, %v5645_v8  ;;  %v9132_v19 = vpop.f32.mrb[109].mxu1 }
 0x471   : > { %v5547_v7 = vmax.f32 %v5534_v60, 0.0 }
 0x472   : > { %v5650_v23 = vpop.f32.mrb[110].mxu0 }
 0x473   : > { %v5780_v30 = vpop.f32.mrb[110].mxu1  ;;  %v13130_v18 = vmax.f32 %v13039_v59, %v5547_v7  ;;  %v9080_v61 = vpop.f32.mrb[111].mxu0 }
 0x474   : > { %v13132_v29 = vadd.f32 %v5780_v30, %v5650_v23  ;;  %v9135_v24 = vpop.f32.mrb[111].mxu1 }
 0x476   : > { %v5655_v63 = vpop.f32.mrb[112].mxu0 }
 0x477   : > { %v5785_v15 = vpop.f32.mrb[112].mxu1  ;;  %v9083_v14 = vpop.f32.mrb[113].mxu0 }
 0x478   : > { %v13134_v5 = vadd.f32 %v5785_v15, %v5655_v63  ;;  %v9138_v39 = vpop.f32.mrb[113].mxu1 }
 0x47a   : > { %v5660_v54 = vpop.f32.mrb[114].mxu0 }
 0x47b   : > { %v5790_v3 = vpop.f32.mrb[114].mxu1  ;;  %v9086_v1 = vpop.f32.mrb[115].mxu0 }
 0x47c   : > { %v13136_v55 = vadd.f32 %v5790_v3, %v5660_v54  ;;  %v9141_v42 = vpop.f32.mrb[115].mxu1 }
 0x47e   : > { %v5665_v49 = vpop.f32.mrb[116].mxu0 }
 0x47f   : > { %v5795_v2 = vpop.f32.mrb[116].mxu1  ;;  %v9089_v17 = vpop.f32.mrb[117].mxu0 }
 0x480   : > { %v13138_v59 = vadd.f32 %v5795_v2, %v5665_v49  ;;  %v9144_v35 = vpop.f32.mrb[117].mxu1 }
 0x482   : > { %v5670_v20 = vpop.f32.mrb[118].mxu0 }
 0x483   : > { %v5800_v36 = vpop.f32.mrb[118].mxu1  ;;  %v9092_v26 = vpop.f32.mrb[119].mxu0 }
 0x484   : > { %v13140_v43 = vadd.f32 %v5800_v36, %v5670_v20  ;;  %v9147_v25 = vpop.f32.mrb[119].mxu1 }
 0x486   : > { %v5675_v34 = vpop.f32.mrb[120].mxu0 }
 0x487   : > { %v5805_v45 = vpop.f32.mrb[120].mxu1  ;;  %v9095_v40 = vpop.f32.mrb[121].mxu0 }
 0x488   : > { %v13142_v0 = vadd.f32 %v5805_v45, %v5675_v34  ;;  %v9150_v58 = vpop.f32.mrb[121].mxu1 }
 0x48a   : > { %v5680_v10 = vpop.f32.mrb[122].mxu0 }
 0x48b   : > { %v5810_v50 = vpop.f32.mrb[122].mxu1  ;;  %v9098_v53 = vpop.f32.mrb[123].mxu0 }
 0x48c   : > { %v13144_v21 = vadd.f32 %v5810_v50, %v5680_v10  ;;  %v9153_v9 = vpop.f32.mrb[123].mxu1 }
 0x48e   : > { %v5685_v6 = vpop.f32.mrb[124].mxu0 }
 0x48f   : > { %v5815_v4 = vpop.f32.mrb[124].mxu1  ;;  %v9101_v57 = vpop.f32.mrb[125].mxu0 }
 0x490   : > { %v13146_v44 = vadd.f32 %v5815_v4, %v5685_v6  ;;  %v9156_v11 = vpop.f32.mrb[125].mxu1 }
 0x492   : > { %v5690_v38 = vpop.f32.mrb[126].mxu0 }
 0x493   : > { %v5820_v27 = vpop.f32.mrb[126].mxu1  ;;  %v9104_v8 = vpop.f32.mrb[127].mxu0 }
 0x494   : > { %v13148_v48 = vadd.f32 %v5820_v27, %v5690_v38  ;;  %v9159_v32 = vpop.f32.mrb[127].mxu1 }
 0x496   : > { %v5695_v60 = vpop.f32.mrb[128].mxu0 }
 0x497   : > { %v5825_v62 = vpop.f32.mrb[128].mxu1  ;;  %v9107_v7 = vpop.f32.mrb[129].mxu0 }
 0x498   : > { %v13150_v19 = vadd.f32 %v5825_v62, %v5695_v60  ;;  %v9162_v23 = vpop.f32.mrb[129].mxu1 }
 0x49a   : > { %v5700_v30 = vpop.f32.mrb[130].mxu0 }
 0x49b   : > { %v5830_v61 = vpop.f32.mrb[130].mxu1  ;;  %v9110_v63 = vpop.f32.mrb[131].mxu0 }
 0x49c   : > { %v13152_v24 = vadd.f32 %v5830_v61, %v5700_v30  ;;  %v9165_v15 = vpop.f32.mrb[131].mxu1 }
 0x49e   : > { %v5705_v14 = vpop.f32.mrb[132].mxu0 }
 0x49f   : > { %v5835_v39 = vpop.f32.mrb[132].mxu1  ;;  %v9113_v3 = vpop.f32.mrb[133].mxu0 }
 0x4a0   : > { %v13154_v54 = vadd.f32 %v5835_v39, %v5705_v14  ;;  %v9168_v1 = vpop.f32.mrb[133].mxu1 }
 0x4a2   : > { %v5914_v42 = vpop.f32.mrb[134].mxu0 }
 0x4a3   : > { %v6118_v49 = vpop.f32.mrb[134].mxu1  ;;  %v5978_v2 = vadd.f32 %v5914_v42, %v13127_v13  ;;  %v9187_v17 = vpop.f32.mrb[135].mxu0 }
 0x4a4   : > { %v9242_v35 = vpop.f32.mrb[135].mxu1 }
 0x4a5   : > { %v6182_v20 = vadd.f32 %v6118_v49, %v5978_v2 }
 0x4a6   : > { %v5919_v36 = vpop.f32.mrb[136].mxu0 }
 0x4a7   : > { %v6123_v26 = vpop.f32.mrb[136].mxu1  ;;  %v6195_v25 = vadd.f32 %v12879_v51, %v6182_v20  ;;  %v5979_v34 = vadd.f32 %v5919_v36, %v13132_v29  ;;  %v9190_v45 = vpop.f32.mrb[137].mxu0 }
 0x4a8   : > { %v9245_v40 = vpop.f32.mrb[137].mxu1 }
 0x4a9   : > { %v6208_v58 = vmax.f32 %v6195_v25, 0.0  ;;  %v6183_v10 = vadd.f32 %v6123_v26, %v5979_v34 }
 0x4aa   : > { %v5924_v13 = vpop.f32.mrb[138].mxu0 }
 0x4ab   : > { %v6128_v50 = vpop.f32.mrb[138].mxu1  ;;  %v6221_v53 = vmax.f32 %v13069_v33, %v6208_v58  ;;  %v6196_v9 = vadd.f32 %v12879_v51, %v6183_v10  ;;  %v5980_v29 = vadd.f32 %v5924_v13, %v13134_v5  ;;  %v9193_v6 = vpop.f32.mrb[139].mxu0 }
 0x4ac   : > { %v9248_v4 = vpop.f32.mrb[139].mxu1 }
 0x4ad   : > { %6235 = vst.msk [vmem:[%s13163_s11] sm:$0xff] %vm6234_vm5, %v6221_v53  ;;  %v6209_v57 = vmax.f32 %v6196_v9, 0.0  ;;  %v6184_v11 = vadd.f32 %v6128_v50, %v5980_v29 }
 0x4ae   : > { %v5929_v38 = vpop.f32.mrb[140].mxu0 }
 0x4af   : > { %v6133_v27 = vpop.f32.mrb[140].mxu1  ;;  %v6222_v8 = vmax.f32 %v13074_v52, %v6209_v57  ;;  %v6197_v32 = vadd.f32 %v12879_v51, %v6184_v11  ;;  %v5981_v60 = vadd.f32 %v5929_v38, %v13136_v55  ;;  %v9196_v33 = vpop.f32.mrb[141].mxu0 }
 0x4b0   : > { %v9251_v62 = vpop.f32.mrb[141].mxu1 }
 0x4b1   : > { %6236 = vst.msk [vmem:[%s13163_s11 + $0x8] sm:$0xff] %vm6234_vm5, %v6222_v8  ;;  %v6210_v5 = vmax.f32 %v6197_v32, 0.0  ;;  %v6185_v7 = vadd.f32 %v6133_v27, %v5981_v60 }
 0x4b2   : > { %v5934_v23 = vpop.f32.mrb[142].mxu0 }
 0x4b3   : > { %v6138_v30 = vpop.f32.mrb[142].mxu1  ;;  %v6223_v61 = vmax.f32 %v13079_v16, %v6210_v5  ;;  %v6198_v63 = vadd.f32 %v12879_v51, %v6185_v7  ;;  %v5982_v15 = vadd.f32 %v5934_v23, %v13138_v59  ;;  %v9199_v52 = vpop.f32.mrb[143].mxu0 }
 0x4b4   : > { %v9254_v14 = vpop.f32.mrb[143].mxu1 }
 0x4b5   : > { %6237 = vst.msk [vmem:[%s13163_s11 + $0x10] sm:$0xff] %vm6234_vm5, %v6223_v61  ;;  %v6211_v55 = vmax.f32 %v6198_v63, 0.0  ;;  %v6186_v39 = vadd.f32 %v6138_v30, %v5982_v15 }
 0x4b6   : > { %v5939_v3 = vpop.f32.mrb[144].mxu0 }
 0x4b7   : > { %v6143_v1 = vpop.f32.mrb[144].mxu1  ;;  %v6224_v42 = vmax.f32 %v13084_v28, %v6211_v55  ;;  %v6199_v49 = vadd.f32 %v12879_v51, %v6186_v39  ;;  %v5983_v2 = vadd.f32 %v5939_v3, %v13140_v43  ;;  %v9202_v16 = vpop.f32.mrb[145].mxu0 }
 0x4b8   : > { %v9257_v17 = vpop.f32.mrb[145].mxu1 }
 0x4b9   : > { %6238 = vst.msk [vmem:[%s13163_s11 + $0x18] sm:$0xff] %vm6234_vm5, %v6224_v42  ;;  %v6212_v59 = vmax.f32 %v6199_v49, 0.0  ;;  %v6187_v35 = vadd.f32 %v6143_v1, %v5983_v2 }
 0x4ba   : > { %v5944_v20 = vpop.f32.mrb[146].mxu0 }
 0x4bb   : > { %v6148_v36 = vpop.f32.mrb[146].mxu1  ;;  %v6225_v26 = vmax.f32 %v13089_v41, %v6212_v59  ;;  %v6200_v25 = vadd.f32 %v12879_v51, %v6187_v35  ;;  %v5984_v34 = vadd.f32 %v5944_v20, %v13142_v0  ;;  %v9205_v28 = vpop.f32.mrb[147].mxu0  ;;  %v9658_v41 = vld [vmem:[%s13230_s5] ss:$0 sm:$0xff] }
 0x4bc   : > { %v9260_v45 = vpop.f32.mrb[147].mxu1 }
 0x4bd   : > { %6239 = vst.msk [vmem:[%s13163_s11 + $0x20] sm:$0xff] %vm6234_vm5, %v6225_v26  ;;  %v6213_v43 = vmax.f32 %v6200_v25, 0.0  ;;  %v6188_v40 = vadd.f32 %v6148_v36, %v5984_v34 }
 0x4be   : > { %v5949_v58 = vpop.f32.mrb[148].mxu0 }
 0x4bf   : > { %v6153_v10 = vpop.f32.mrb[148].mxu1  ;;  %v6226_v13 = vmax.f32 %v13094_v37, %v6213_v43  ;;  %v6201_v50 = vadd.f32 %v9658_v41, %v6188_v40  ;;  %v5985_v51 = vadd.f32 %v5949_v58, %v13144_v21  ;;  %v9208_v53 = vpop.f32.mrb[149].mxu0 }
 0x4c0   : > { %v9263_v0 = vpop.f32.mrb[149].mxu1 }
 0x4c1   : > { %6240 = vst.msk [vmem:[%s13163_s11 + $0x28] sm:$0xff] %vm6234_vm5, %v6226_v13  ;;  %v6214_v9 = vmax.f32 %v6201_v50, 0.0  ;;  %v6189_v29 = vadd.f32 %v6153_v10, %v5985_v51 }
 0x4c2   : > { %v5954_v6 = vpop.f32.mrb[150].mxu0 }
 0x4c3   : > { %v6158_v4 = vpop.f32.mrb[150].mxu1  ;;  %v6227_v57 = vmax.f32 %v13099_v56, %v6214_v9  ;;  %v6202_v37 = vadd.f32 %v9658_v41, %v6189_v29  ;;  %v5986_v11 = vadd.f32 %v5954_v6, %v13146_v44  ;;  %v9211_v38 = vpop.f32.mrb[151].mxu0 }
 0x4c4   : > { %v9266_v27 = vpop.f32.mrb[151].mxu1 }
 0x4c5   : > { %6241 = vst.msk [vmem:[%s13163_s11 + $0x30] sm:$0xff] %vm6234_vm5, %v6227_v57  ;;  %v6215_v8 = vmax.f32 %v6202_v37, 0.0  ;;  %v6190_v21 = vadd.f32 %v6158_v4, %v5986_v11 }
 0x4c6   : > { %v5959_v32 = vpop.f32.mrb[152].mxu0 }
 0x4c7   : > { %v6163_v60 = vpop.f32.mrb[152].mxu1  ;;  %v6228_v33 = vmax.f32 %v13104_v22, %v6215_v8  ;;  %v6203_v62 = vadd.f32 %v9658_v41, %v6190_v21  ;;  %v5987_v5 = vadd.f32 %v5959_v32, %v13148_v48  ;;  %v9214_v7 = vpop.f32.mrb[153].mxu0 }
 0x4c8   : > { %v9269_v23 = vpop.f32.mrb[153].mxu1 }
 0x4c9   : > { %6242 = vst.msk [vmem:[%s13163_s11 + $0x38] sm:$0xff] %vm6234_vm5, %v6228_v33  ;;  %v6216_v56 = vmax.f32 %v6203_v62, 0.0  ;;  %v6191_v44 = vadd.f32 %v6163_v60, %v5987_v5 }
 0x4ca   : > { %v5964_v30 = vpop.f32.mrb[154].mxu0 }
 0x4cb   : > { %v6168_v61 = vpop.f32.mrb[154].mxu1  ;;  %v6229_v63 = vmax.f32 %v13109_v12, %v6216_v56  ;;  %v6204_v15 = vadd.f32 %v9658_v41, %v6191_v44  ;;  %v5988_v52 = vadd.f32 %v5964_v30, %v13150_v19  ;;  %v9217_v14 = vpop.f32.mrb[155].mxu0 }
 0x4cc   : > { %v9272_v55 = vpop.f32.mrb[155].mxu1 }
 0x4cd   : > { %6243 = vst.msk [vmem:[%s13163_s11 + $0x40] sm:$0xff] %vm6234_vm5, %v6229_v63  ;;  %v6217_v22 = vmax.f32 %v6204_v15, 0.0  ;;  %v6192_v48 = vadd.f32 %v6168_v61, %v5988_v52 }
 0x4ce   : > { %v5969_v39 = vpop.f32.mrb[156].mxu0 }
 0x4cf   : > { %v6173_v3 = vpop.f32.mrb[156].mxu1  ;;  %v6230_v1 = vmax.f32 %v13114_v31, %v6217_v22  ;;  %v6205_v42 = vadd.f32 %v9658_v41, %v6192_v48  ;;  %v5989_v49 = vadd.f32 %v5969_v39, %v13152_v24  ;;  %v9220_v2 = vpop.f32.mrb[157].mxu0 }
 0x4d0   : > { %v9275_v16 = vpop.f32.mrb[157].mxu1 }
 0x4d1   : > { %6244 = vst.msk [vmem:[%s13163_s11 + $0x48] sm:$0xff] %vm6234_vm5, %v6230_v1  ;;  %v6218_v12 = vmax.f32 %v6205_v42, 0.0  ;;  %v6193_v19 = vadd.f32 %v6173_v3, %v5989_v49 }
 0x4d2   : > { %v5974_v17 = vpop.f32.mrb[158].mxu0 }
 0x4d3   : > { %v6178_v59 = vpop.f32.mrb[158].mxu1  ;;  %v6231_v35 = vmax.f32 %v13119_v46, %v6218_v12  ;;  %v6206_v20 = vadd.f32 %v9658_v41, %v6193_v19  ;;  %v5990_v36 = vadd.f32 %v5974_v17, %v13154_v54  ;;  %v9223_v26 = vpop.f32.mrb[159].mxu0 }
 0x4d4   : > { %v9278_v31 = vpop.f32.mrb[159].mxu1 }
 0x4d5   : > { %6245 = vst.msk [vmem:[%s13163_s11 + $0x50] sm:$0xff] %vm6234_vm5, %v6231_v35  ;;  %v6219_v24 = vmax.f32 %v6206_v20, 0.0  ;;  %v6194_v25 = vadd.f32 %v6178_v59, %v5990_v36 }
 0x4d7   : > { %v6232_v34 = vmax.f32 %v13124_v47, %v6219_v24  ;;  %v6207_v28 = vadd.f32 %v9658_v41, %v6194_v25 }
 0x4d9   : > { %6246 = vst.msk [vmem:[%s13163_s11 + $0x58] sm:$0xff] %vm6234_vm5, %v6232_v34  ;;  %v6220_v45 = vmax.f32 %v6207_v28, 0.0 }
 0x4db   : > { %v6233_v43 = vmax.f32 %v13130_v18, %v6220_v45 }
 0x4dd   : > { %6248 = vst.msk [vmem:[%s13163_s11 + $0x60] sm:$0xf] %vm6247_vm6, %v6233_v43 }
 0x4de PF: > { %s16_s21 = sadd.s32 1, %s9665_s21  }
 0x4df   : > { %p13_p4 = scmp.ge.s32.totalorder %s16_s21, 4  }
 0x4e1   :  { %15 = sbr.rel (!%p13_p4) target bundleno = 1 (0x1), region = 104 }

</bundles_post_ra>
